<compile_context>
chip_gen: v5e
topology: v5e:2x2
jax: 0.10.0
libtpu: 0.0.40
codegen_flags: <defaults>
</compile_context>

<pallas_src>
import math

import jax
import jax.numpy as jnp
from jax.experimental import pallas as pl
from jax.experimental.pallas import tpu as pltpu

# ----------------------------- config -----------------------------
BATCH = 2
IMG = 32
PATCH = 16
EMBED = 128
DEPTH = 2
NUM_HEADS = 4
HEAD_DIM = EMBED // NUM_HEADS              # 32
MLP_DIM = 4 * EMBED                        # 512
NUM_CLASSES = 1000
HEAD_PAD = 1024                            # lane-dense, unmasked-store head
NUM_PATCHES = (IMG // PATCH) ** 2          # 4
SEQ = NUM_PATCHES + 1                      # 5 (cls token)
PATCH_DIM = 3 * PATCH * PATCH              # 768
C_MID = 16                                 # denoise hidden channels
LN_EPS = 1e-6                              # timm ViT layernorm eps
ATTN_SCALE = HEAD_DIM ** -0.5


# ----------------------------- in-kernel math helpers -----------------------------
def _erf_approx(x):
    # Abramowitz & Stegun 7.1.26 (|err| < 1.5e-7): exact-GELU erf via exp only.
    a1, a2, a3, a4, a5 = 0.254829592, -0.284496736, 1.421413741, -1.453152027, 1.061405429
    p = 0.3275911
    s = jnp.where(x >= 0.0, 1.0, -1.0)
    ax = jnp.abs(x)
    t = 1.0 / (1.0 + p * ax)
    poly = ((((a5 * t + a4) * t + a3) * t + a2) * t + a1) * t
    return s * (1.0 - poly * jnp.exp(-ax * ax))


def _gelu(x):  # exact (erf) GELU like torch.nn.GELU()
    return 0.5 * x * (1.0 + _erf_approx(x * (1.0 / math.sqrt(2.0))))


def _layernorm(x, g, b):
    mean = jnp.mean(x, axis=-1, keepdims=True)
    xc = x - mean
    var = jnp.mean(xc * xc, axis=-1, keepdims=True)
    return xc * jax.lax.rsqrt(var + LN_EPS) * g + b


# ----------------------------- kernel 1: fused denoise CNN -----------------------------
def _denoise_kernel(xp_ref, t1_ref, b1_ref, t2_ref, b2_ref, o_ref, mid_ref):
    # xp_ref : (1, IMG+2, IMG*3)  vertically zero-padded image rows (lane = x*3 + c)
    # t1_ref : (3, IMG*3, IMG*16) block-Toeplitz conv1 weights (one per kh)
    # t2_ref : (3, IMG*16, IMG*3) block-Toeplitz conv2 weights
    # mid_ref: (IMG+2, IMG*16)    VMEM scratch for padded relu(conv1) output
    mid_ref[...] = jnp.zeros_like(mid_ref)

    acc = jnp.dot(xp_ref[0, 0:IMG, :], t1_ref[0], preferred_element_type=jnp.float32)
    for kh in (1, 2):
        acc = acc + jnp.dot(xp_ref[0, kh:kh + IMG, :], t1_ref[kh],
                            preferred_element_type=jnp.float32)
    mid_ref[1:1 + IMG, :] = jnp.maximum(acc + b1_ref[...], 0.0)

    acc2 = jnp.dot(mid_ref[0:IMG, :], t2_ref[0], preferred_element_type=jnp.float32)
    for kh in (1, 2):
        acc2 = acc2 + jnp.dot(mid_ref[kh:kh + IMG, :], t2_ref[kh],
                              preferred_element_type=jnp.float32)
    o_ref[0] = acc2 + b2_ref[...]


def denoise_forward(xp, prep):
    B = xp.shape[0]
    return pl.pallas_call(
        _denoise_kernel,
        out_shape=jax.ShapeDtypeStruct((B, IMG, IMG * 3), jnp.float32),
        grid=(B,),
        in_specs=[
            pl.BlockSpec((1, IMG + 2, IMG * 3), lambda b: (b, 0, 0)),
            pl.BlockSpec((3, IMG * 3, IMG * C_MID), lambda b: (0, 0, 0)),
            pl.BlockSpec((1, IMG * C_MID), lambda b: (0, 0)),
            pl.BlockSpec((3, IMG * C_MID, IMG * 3), lambda b: (0, 0, 0)),
            pl.BlockSpec((1, IMG * 3), lambda b: (0, 0)),
        ],
        out_specs=pl.BlockSpec((1, IMG, IMG * 3), lambda b: (b, 0, 0)),
        scratch_shapes=[pltpu.VMEM((IMG + 2, IMG * C_MID), jnp.float32)],
        compiler_params=pltpu.CompilerParams(dimension_semantics=("parallel",)),
    )(xp, prep["t1"], prep["b1t"], prep["t2"], prep["b2t"])


# ----------------------------- kernel 2: fused ViT -----------------------------
def _vit_kernel(patches_ref, pe_w_ref, pos_ref,
                ln1_g_ref, ln1_b_ref,
                wq_ref, bq_ref, wk_ref, bk_ref, wv_ref, bv_ref,
                pw_ref, pb_ref,
                ln2_g_ref, ln2_b_ref,
                fc1_w_ref, fc1_b_ref, fc2_w_ref, fc2_b_ref,
                lnf_g_ref, lnf_b_ref, head_w_ref, head_b_ref,
                o_ref):
    # patches_ref: (1, SEQ, 768) -- row 0 is zeros (cls slot), rows 1..4 patch pixels.
    # pos_ref    : (SEQ, 128)    -- row0 = cls+pos0, rows i>0 = pos_i + patch_embed bias.
    x = jnp.dot(patches_ref[0], pe_w_ref[...],
                preferred_element_type=jnp.float32) + pos_ref[...]        # (SEQ, D)

    for d in range(DEPTH):
        # --- attention branch ---
        h1 = _layernorm(x, ln1_g_ref[d], ln1_b_ref[d])
        attn = jnp.zeros((SEQ, EMBED), jnp.float32)
        for hd in range(NUM_HEADS):
            q = (jnp.dot(h1, wq_ref[d, hd], preferred_element_type=jnp.float32)
                 + bq_ref[d, hd]) * ATTN_SCALE                            # (SEQ, Dh)
            k = jnp.dot(h1, wk_ref[d, hd], preferred_element_type=jnp.float32) + bk_ref[d, hd]
            v = jnp.dot(h1, wv_ref[d, hd], preferred_element_type=jnp.float32) + bv_ref[d, hd]
            s = jnp.dot(q, k.T, preferred_element_type=jnp.float32)       # (SEQ, SEQ)
            s = s - jnp.max(s, axis=-1, keepdims=True)
            p = jnp.exp(s)
            p = p / jnp.sum(p, axis=-1, keepdims=True)
            oh = jnp.dot(p, v, preferred_element_type=jnp.float32)        # (SEQ, Dh)
            attn = attn + jnp.dot(oh, pw_ref[d, hd],
                                  preferred_element_type=jnp.float32)     # per-head proj
        x = x + attn + pb_ref[d]

        # --- MLP branch ---
        h2 = _layernorm(x, ln2_g_ref[d], ln2_b_ref[d])
        m = jnp.dot(h2, fc1_w_ref[d], preferred_element_type=jnp.float32) + fc1_b_ref[d]
        m = _gelu(m)
        m = jnp.dot(m, fc2_w_ref[d], preferred_element_type=jnp.float32) + fc2_b_ref[d]
        x = x + m

    xf = _layernorm(x, lnf_g_ref[...], lnf_b_ref[...])
    cls = xf[0:1, :]                                                      # token pooling
    o_ref[0] = (jnp.dot(cls, head_w_ref[...], preferred_element_type=jnp.float32)
                + head_b_ref[...])


def vit_forward(patches, prep):
    B = patches.shape[0]
    in_specs = [
        pl.BlockSpec((1, SEQ, PATCH_DIM), lambda b: (b, 0, 0)),                    # patches
        pl.BlockSpec((PATCH_DIM, EMBED), lambda b: (0, 0)),                        # pe_w
        pl.BlockSpec((SEQ, EMBED), lambda b: (0, 0)),                              # pos_plus
        pl.BlockSpec((DEPTH, 1, EMBED), lambda b: (0, 0, 0)),                      # ln1_g
        pl.BlockSpec((DEPTH, 1, EMBED), lambda b: (0, 0, 0)),                      # ln1_b
        pl.BlockSpec((DEPTH, NUM_HEADS, EMBED, HEAD_DIM), lambda b: (0, 0, 0, 0)), # wq
        pl.BlockSpec((DEPTH, NUM_HEADS, 1, HEAD_DIM), lambda b: (0, 0, 0, 0)),     # bq
        pl.BlockSpec((DEPTH, NUM_HEADS, EMBED, HEAD_DIM), lambda b: (0, 0, 0, 0)), # wk
        pl.BlockSpec((DEPTH, NUM_HEADS, 1, HEAD_DIM), lambda b: (0, 0, 0, 0)),     # bk
        pl.BlockSpec((DEPTH, NUM_HEADS, EMBED, HEAD_DIM), lambda b: (0, 0, 0, 0)), # wv
        pl.BlockSpec((DEPTH, NUM_HEADS, 1, HEAD_DIM), lambda b: (0, 0, 0, 0)),     # bv
        pl.BlockSpec((DEPTH, NUM_HEADS, HEAD_DIM, EMBED), lambda b: (0, 0, 0, 0)), # pw
        pl.BlockSpec((DEPTH, 1, EMBED), lambda b: (0, 0, 0)),                      # pb
        pl.BlockSpec((DEPTH, 1, EMBED), lambda b: (0, 0, 0)),                      # ln2_g
        pl.BlockSpec((DEPTH, 1, EMBED), lambda b: (0, 0, 0)),                      # ln2_b
        pl.BlockSpec((DEPTH, EMBED, MLP_DIM), lambda b: (0, 0, 0)),                # fc1_w
        pl.BlockSpec((DEPTH, 1, MLP_DIM), lambda b: (0, 0, 0)),                    # fc1_b
        pl.BlockSpec((DEPTH, MLP_DIM, EMBED), lambda b: (0, 0, 0)),                # fc2_w
        pl.BlockSpec((DEPTH, 1, EMBED), lambda b: (0, 0, 0)),                      # fc2_b
        pl.BlockSpec((1, EMBED), lambda b: (0, 0)),                                # lnf_g
        pl.BlockSpec((1, EMBED), lambda b: (0, 0)),                                # lnf_b
        pl.BlockSpec((EMBED, HEAD_PAD), lambda b: (0, 0)),                         # head_w
        pl.BlockSpec((1, HEAD_PAD), lambda b: (0, 0)),                             # head_b
    ]
    return pl.pallas_call(
        _vit_kernel,
        out_shape=jax.ShapeDtypeStruct((B, 1, HEAD_PAD), jnp.float32),
        grid=(B,),
        in_specs=in_specs,
        out_specs=pl.BlockSpec((1, 1, HEAD_PAD), lambda b: (b, 0, 0)),
        compiler_params=pltpu.CompilerParams(dimension_semantics=("parallel",)),
    )(patches, prep["pe_w"], prep["pos_plus"],
      prep["ln1_g"], prep["ln1_b"],
      prep["wq"], prep["bq"], prep["wk"], prep["bk"], prep["wv"], prep["bv"],
      prep["pw"], prep["pb"],
      prep["ln2_g"], prep["ln2_b"],
      prep["fc1_w"], prep["fc1_b"], prep["fc2_w"], prep["fc2_b"],
      prep["lnf_g"], prep["lnf_b"], prep["head_w"], prep["head_b"])


# ----------------------------- full forward (2 pallas_calls + tiny glue) -----------------------------
@jax.jit
def vit_with_denoise_forward(x_nchw, prep):
    B = x_nchw.shape[0]
    x_nhwc = jnp.transpose(x_nchw, (0, 2, 3, 1))                               # (B,H,W,3)
    xp = jnp.pad(x_nhwc, ((0, 0), (1, 1), (0, 0), (0, 0))).reshape(B, IMG + 2, IMG * 3)

    den = denoise_forward(xp, prep).reshape(B, IMG, IMG, 3)                    # fused CNN

    g = IMG // PATCH
    patches = den.reshape(B, g, PATCH, g, PATCH, 3)
    patches = patches.transpose(0, 1, 3, 2, 4, 5).reshape(B, NUM_PATCHES, PATCH_DIM)
    patches = jnp.pad(patches, ((0, 0), (1, 0), (0, 0)))                       # zero cls row

    logits = vit_forward(patches, prep)                                        # fused ViT
    return logits[:, 0, :NUM_CLASSES]


# ----------------------------- parameter init + kernel-ready repacking -----------------------------
def init_params(key):
    keys = iter(jax.random.split(key, 64))

    def nrm(shape, scale=0.02):
        return scale * jax.random.normal(next(keys), shape, jnp.float32)

    params = {
        # SimpleDenoiseCNN (PyTorch conv weight layout: (Cout, Cin, kh, kw))
        "dc1_w": nrm((C_MID, 3, 3, 3), 0.1), "dc1_b": nrm((C_MID,), 0.1),
        "dc2_w": nrm((3, C_MID, 3, 3), 0.1), "dc2_b": nrm((3,), 0.1),
        # ViT
        "pe_w": nrm((EMBED, 3, PATCH, PATCH)), "pe_b": nrm((EMBED,)),
        "cls": nrm((1, 1, EMBED)),
        "pos": nrm((1, SEQ, EMBED)),
        "lnf_g": jnp.ones((EMBED,), jnp.float32), "lnf_b": jnp.zeros((EMBED,), jnp.float32),
        "head_w": nrm((EMBED, NUM_CLASSES)), "head_b": jnp.zeros((NUM_CLASSES,), jnp.float32),
        "blocks": [],
    }
    for _ in range(DEPTH):
        params["blocks"].append({
            "ln1_g": jnp.ones((EMBED,), jnp.float32), "ln1_b": jnp.zeros((EMBED,), jnp.float32),
            "qkv_w": nrm((EMBED, 3 * EMBED)), "qkv_b": jnp.zeros((3 * EMBED,), jnp.float32),
            "proj_w": nrm((EMBED, EMBED)), "proj_b": jnp.zeros((EMBED,), jnp.float32),
            "ln2_g": jnp.ones((EMBED,), jnp.float32), "ln2_b": jnp.zeros((EMBED,), jnp.float32),
            "fc1_w": nrm((EMBED, MLP_DIM)), "fc1_b": jnp.zeros((MLP_DIM,), jnp.float32),
            "fc2_w": nrm((MLP_DIM, EMBED)), "fc2_b": jnp.zeros((EMBED,), jnp.float32),
        })
    return params


def _conv3_toeplitz(w):
    """(Cout,Cin,3,3) conv weight -> (3, IMG*Cin, IMG*Cout) per-kh Toeplitz matrices.

    Row index = x_in*Cin + ci, col index = x_out*Cout + co; horizontal zero
    padding is folded in by dropping out-of-range taps.
    """
    Cout, Cin, KH, KW = w.shape
    p = jnp.arange(IMG)[:, None]            # input column
    x = jnp.arange(IMG)[None, :]            # output column
    kw = p - x + 1                          # (IMG, IMG)
    valid = ((kw >= 0) & (kw < KW)).astype(w.dtype)
    kw_c = jnp.clip(kw, 0, KW - 1)
    w_t = jnp.transpose(w, (2, 3, 1, 0))    # (KH, KW, Cin, Cout)
    t = w_t[:, kw_c] * valid[None, :, :, None, None]          # (KH, IMG, IMG, Cin, Cout)
    return jnp.transpose(t, (0, 1, 3, 2, 4)).reshape(KH, IMG * Cin, IMG * Cout)


def prepare_params(p):
    """Repack PyTorch-layout params into the fused-kernel layouts (run once)."""
    prep = {}
    # denoise CNN -> block-Toeplitz matmul weights + lane-tiled biases
    prep["t1"] = _conv3_toeplitz(p["dc1_w"])                                  # (3, 96, 512)
    prep["b1t"] = jnp.tile(p["dc1_b"], IMG).reshape(1, IMG * C_MID)
    prep["t2"] = _conv3_toeplitz(p["dc2_w"])                                  # (3, 512, 96)
    prep["b2t"] = jnp.tile(p["dc2_b"], IMG).reshape(1, IMG * 3)

    # patch embed: rows ordered (ph, pw, c) to match the patch-row extraction
    prep["pe_w"] = jnp.transpose(p["pe_w"], (2, 3, 1, 0)).reshape(PATCH_DIM, EMBED)
    pos = p["pos"][0]                                                          # (SEQ, D)
    row0 = (p["cls"][0, 0] + pos[0])[None, :]
    rest = pos[1:] + p["pe_b"][None, :]
    prep["pos_plus"] = jnp.concatenate([row0, rest], axis=0)                   # (SEQ, D)

    def stack(name):
        return jnp.stack([blk[name] for blk in p["blocks"]])

    prep["ln1_g"] = stack("ln1_g")[:, None, :]
    prep["ln1_b"] = stack("ln1_b")[:, None, :]
    qkv_w = stack("qkv_w").reshape(DEPTH, EMBED, 3, NUM_HEADS, HEAD_DIM)
    qkv_b = stack("qkv_b").reshape(DEPTH, 3, NUM_HEADS, HEAD_DIM)
    prep["wq"] = jnp.transpose(qkv_w[:, :, 0], (0, 2, 1, 3))                   # (Dp,H,D,Dh)
    prep["wk"] = jnp.transpose(qkv_w[:, :, 1], (0, 2, 1, 3))
    prep["wv"] = jnp.transpose(qkv_w[:, :, 2], (0, 2, 1, 3))
    prep["bq"] = qkv_b[:, 0][:, :, None, :]                                    # (Dp,H,1,Dh)
    prep["bk"] = qkv_b[:, 1][:, :, None, :]
    prep["bv"] = qkv_b[:, 2][:, :, None, :]
    prep["pw"] = stack("proj_w").reshape(DEPTH, NUM_HEADS, HEAD_DIM, EMBED)    # per-head proj
    prep["pb"] = stack("proj_b")[:, None, :]
    prep["ln2_g"] = stack("ln2_g")[:, None, :]
    prep["ln2_b"] = stack("ln2_b")[:, None, :]
    prep["fc1_w"] = stack("fc1_w")
    prep["fc1_b"] = stack("fc1_b")[:, None, :]
    prep["fc2_w"] = stack("fc2_w")
    prep["fc2_b"] = stack("fc2_b")[:, None, :]
    prep["lnf_g"] = p["lnf_g"][None, :]
    prep["lnf_b"] = p["lnf_b"][None, :]
    # pad classifier head N: 1000 -> 1024 (unmasked stores); sliced back after.
    prep["head_w"] = jnp.pad(p["head_w"], ((0, 0), (0, HEAD_PAD - NUM_CLASSES)))
    prep["head_b"] = jnp.pad(p["head_b"], (0, HEAD_PAD - NUM_CLASSES))[None, :]
    return prep


# ----------------------------- main -----------------------------
if __name__ == "__main__":
    key = jax.random.PRNGKey(0)
    k_param, k_x = jax.random.split(key)
    params = init_params(k_param)
    prep = prepare_params(params)
    x = jax.random.normal(k_x, (BATCH, 3, IMG, IMG), jnp.float32)  # NCHW like PyTorch

    logits = vit_with_denoise_forward(x, prep)
    jax.block_until_ready(logits)
    assert logits.shape == (BATCH, NUM_CLASSES)
    assert bool(jnp.all(jnp.isfinite(logits)))
    print("KERNEL_OK")
</pallas_src>

<mosaic_0001>
module attributes {stable_mosaic.version = 11 : i64} {
  func.func @_denoise_kernel(%arg0: i32, %arg1: memref<1x34x96xf32, #tpu.memory_space<vmem>>, %arg2: memref<3x96x512xf32, #tpu.memory_space<vmem>>, %arg3: memref<1x512xf32, #tpu.memory_space<vmem>>, %arg4: memref<3x512x96xf32, #tpu.memory_space<vmem>>, %arg5: memref<1x96xf32, #tpu.memory_space<vmem>>, %arg6: memref<1x32x96xf32, #tpu.memory_space<vmem>>, %arg7: memref<34x512xf32, #tpu.memory_space<vmem>>) attributes {dimension_semantics = [#tpu.dimension_semantics<parallel>], iteration_bounds = array<i64: 2>, scalar_prefetch = 0 : i64, scratch_operands = 1 : i64, tpu.core_type = #tpu.core_type<tc>, window_params = [{transform_indices = @transform_0, window_bounds = array<i64: 1, 34, 96>}, {pipeline_mode = #tpu.pipeline_mode<synchronous>, transform_indices = @transform_1, window_bounds = array<i64: 3, 96, 512>}, {pipeline_mode = #tpu.pipeline_mode<synchronous>, transform_indices = @transform_2, window_bounds = array<i64: 1, 512>}, {pipeline_mode = #tpu.pipeline_mode<synchronous>, transform_indices = @transform_3, window_bounds = array<i64: 3, 512, 96>}, {pipeline_mode = #tpu.pipeline_mode<synchronous>, transform_indices = @transform_4, window_bounds = array<i64: 1, 96>}, {transform_indices = @transform_5, window_bounds = array<i64: 1, 32, 96>}]} {
    %cst = arith.constant 0.000000e+00 : f32
    %0 = vector.broadcast %cst : f32 to vector<34x512xf32>
    %c0 = arith.constant 0 : index
    %c0_0 = arith.constant 0 : index
    %1 = vector.load %arg7[%c0, %c0_0] : memref<34x512xf32, #tpu.memory_space<vmem>>, vector<34x512xf32>
    tpu.vector_store %arg7[%c0, %c0_0], %0 {strides = array<i32>} : memref<34x512xf32, #tpu.memory_space<vmem>>, vector<34x512xf32>,
    %c0_1 = arith.constant 0 : index
    %c0_2 = arith.constant 0 : index
    %c0_3 = arith.constant 0 : index
    %2 = vector.load %arg1[%c0_1, %c0_2, %c0_3] : memref<1x34x96xf32, #tpu.memory_space<vmem>>, vector<1x32x96xf32>
    %3 = vector.shape_cast %2 : vector<1x32x96xf32> to vector<32x96xf32>
    %c0_4 = arith.constant 0 : index
    %c0_5 = arith.constant 0 : index
    %c0_6 = arith.constant 0 : index
    %4 = vector.load %arg2[%c0_4, %c0_5, %c0_6] : memref<3x96x512xf32, #tpu.memory_space<vmem>>, vector<1x96x512xf32>
    %5 = vector.shape_cast %4 : vector<1x96x512xf32> to vector<96x512xf32>
    %cst_7 = arith.constant dense<0.000000e+00> : vector<32x512xf32>
    %6 = tpu.matmul %3, %5, %cst_7 {dimension_numbers = #tpu.dot_dimension_numbers<[1], [0], [0], [1], [0, 0, 1, 1], [], []>} : vector<32x96xf32>, vector<96x512xf32>, vector<32x512xf32> -> vector<32x512xf32>
    %c0_8 = arith.constant 0 : index
    %c1 = arith.constant 1 : index
    %c0_9 = arith.constant 0 : index
    %7 = vector.load %arg1[%c0_8, %c1, %c0_9] : memref<1x34x96xf32, #tpu.memory_space<vmem>>, vector<1x32x96xf32>
    %8 = vector.shape_cast %7 : vector<1x32x96xf32> to vector<32x96xf32>
    %c1_10 = arith.constant 1 : index
    %c0_11 = arith.constant 0 : index
    %c0_12 = arith.constant 0 : index
    %9 = vector.load %arg2[%c1_10, %c0_11, %c0_12] : memref<3x96x512xf32, #tpu.memory_space<vmem>>, vector<1x96x512xf32>
    %10 = vector.shape_cast %9 : vector<1x96x512xf32> to vector<96x512xf32>
    %cst_13 = arith.constant dense<0.000000e+00> : vector<32x512xf32>
    %11 = tpu.matmul %8, %10, %cst_13 {dimension_numbers = #tpu.dot_dimension_numbers<[1], [0], [0], [1], [0, 0, 1, 1], [], []>} : vector<32x96xf32>, vector<96x512xf32>, vector<32x512xf32> -> vector<32x512xf32>
    %12 = arith.addf %6, %11 : vector<32x512xf32>
    %c0_14 = arith.constant 0 : index
    %c2 = arith.constant 2 : index
    %c0_15 = arith.constant 0 : index
    %13 = vector.load %arg1[%c0_14, %c2, %c0_15] : memref<1x34x96xf32, #tpu.memory_space<vmem>>, vector<1x32x96xf32>
    %14 = vector.shape_cast %13 : vector<1x32x96xf32> to vector<32x96xf32>
    %c2_16 = arith.constant 2 : index
    %c0_17 = arith.constant 0 : index
    %c0_18 = arith.constant 0 : index
    %15 = vector.load %arg2[%c2_16, %c0_17, %c0_18] : memref<3x96x512xf32, #tpu.memory_space<vmem>>, vector<1x96x512xf32>
    %16 = vector.shape_cast %15 : vector<1x96x512xf32> to vector<96x512xf32>
    %cst_19 = arith.constant dense<0.000000e+00> : vector<32x512xf32>
    %17 = tpu.matmul %14, %16, %cst_19 {dimension_numbers = #tpu.dot_dimension_numbers<[1], [0], [0], [1], [0, 0, 1, 1], [], []>} : vector<32x96xf32>, vector<96x512xf32>, vector<32x512xf32> -> vector<32x512xf32>
    %18 = arith.addf %12, %17 : vector<32x512xf32>
    %c0_20 = arith.constant 0 : index
    %c0_21 = arith.constant 0 : index
    %19 = vector.load %arg3[%c0_20, %c0_21] : memref<1x512xf32, #tpu.memory_space<vmem>>, vector<1x512xf32>
    %20 = vector.broadcast %19 : vector<1x512xf32> to vector<32x512xf32>
    %21 = arith.addf %18, %20 : vector<32x512xf32>
    %cst_22 = arith.constant 0.000000e+00 : f32
    %22 = vector.broadcast %cst_22 : f32 to vector<32x512xf32>
    %23 = arith.maximumf %21, %22 : vector<32x512xf32>
    %c1_23 = arith.constant 1 : index
    %c0_24 = arith.constant 0 : index
    %24 = vector.load %arg7[%c1_23, %c0_24] : memref<34x512xf32, #tpu.memory_space<vmem>>, vector<32x512xf32>
    tpu.vector_store %arg7[%c1_23, %c0_24], %23 {strides = array<i32>} : memref<34x512xf32, #tpu.memory_space<vmem>>, vector<32x512xf32>,
    %c0_25 = arith.constant 0 : index
    %c0_26 = arith.constant 0 : index
    %25 = vector.load %arg7[%c0_25, %c0_26] : memref<34x512xf32, #tpu.memory_space<vmem>>, vector<32x512xf32>
    %c0_27 = arith.constant 0 : index
    %c0_28 = arith.constant 0 : index
    %c0_29 = arith.constant 0 : index
    %26 = vector.load %arg4[%c0_27, %c0_28, %c0_29] : memref<3x512x96xf32, #tpu.memory_space<vmem>>, vector<1x512x96xf32>
    %27 = vector.shape_cast %26 : vector<1x512x96xf32> to vector<512x96xf32>
    %cst_30 = arith.constant dense<0.000000e+00> : vector<32x96xf32>
    %28 = tpu.matmul %25, %27, %cst_30 {dimension_numbers = #tpu.dot_dimension_numbers<[1], [0], [0], [1], [0, 0, 1, 1], [], []>} : vector<32x512xf32>, vector<512x96xf32>, vector<32x96xf32> -> vector<32x96xf32>
    %c1_31 = arith.constant 1 : index
    %c0_32 = arith.constant 0 : index
    %29 = vector.load %arg7[%c1_31, %c0_32] : memref<34x512xf32, #tpu.memory_space<vmem>>, vector<32x512xf32>
    %c1_33 = arith.constant 1 : index
    %c0_34 = arith.constant 0 : index
    %c0_35 = arith.constant 0 : index
    %30 = vector.load %arg4[%c1_33, %c0_34, %c0_35] : memref<3x512x96xf32, #tpu.memory_space<vmem>>, vector<1x512x96xf32>
    %31 = vector.shape_cast %30 : vector<1x512x96xf32> to vector<512x96xf32>
    %cst_36 = arith.constant dense<0.000000e+00> : vector<32x96xf32>
    %32 = tpu.matmul %29, %31, %cst_36 {dimension_numbers = #tpu.dot_dimension_numbers<[1], [0], [0], [1], [0, 0, 1, 1], [], []>} : vector<32x512xf32>, vector<512x96xf32>, vector<32x96xf32> -> vector<32x96xf32>
    %33 = arith.addf %28, %32 : vector<32x96xf32>
    %c2_37 = arith.constant 2 : index
    %c0_38 = arith.constant 0 : index
    %34 = vector.load %arg7[%c2_37, %c0_38] : memref<34x512xf32, #tpu.memory_space<vmem>>, vector<32x512xf32>
    %c2_39 = arith.constant 2 : index
    %c0_40 = arith.constant 0 : index
    %c0_41 = arith.constant 0 : index
    %35 = vector.load %arg4[%c2_39, %c0_40, %c0_41] : memref<3x512x96xf32, #tpu.memory_space<vmem>>, vector<1x512x96xf32>
    %36 = vector.shape_cast %35 : vector<1x512x96xf32> to vector<512x96xf32>
    %cst_42 = arith.constant dense<0.000000e+00> : vector<32x96xf32>
    %37 = tpu.matmul %34, %36, %cst_42 {dimension_numbers = #tpu.dot_dimension_numbers<[1], [0], [0], [1], [0, 0, 1, 1], [], []>} : vector<32x512xf32>, vector<512x96xf32>, vector<32x96xf32> -> vector<32x96xf32>
    %38 = arith.addf %33, %37 : vector<32x96xf32>
    %c0_43 = arith.constant 0 : index
    %c0_44 = arith.constant 0 : index
    %39 = vector.load %arg5[%c0_43, %c0_44] : memref<1x96xf32, #tpu.memory_space<vmem>>, vector<1x96xf32>
    %40 = vector.broadcast %39 : vector<1x96xf32> to vector<32x96xf32>
    %41 = arith.addf %38, %40 : vector<32x96xf32>
    %c0_45 = arith.constant 0 : index
    %c0_46 = arith.constant 0 : index
    %c0_47 = arith.constant 0 : index
    %42 = vector.load %arg6[%c0_45, %c0_46, %c0_47] : memref<1x32x96xf32, #tpu.memory_space<vmem>>, vector<1x32x96xf32>
    %43 = vector.shape_cast %42 : vector<1x32x96xf32> to vector<32x96xf32>
    %44 = vector.shape_cast %41 : vector<32x96xf32> to vector<1x32x96xf32>
    tpu.vector_store %arg6[%c0_45, %c0_46, %c0_47], %44 {strides = array<i32>} : memref<1x32x96xf32, #tpu.memory_space<vmem>>, vector<1x32x96xf32>,
    return
  }
  func.func @transform_0(%arg0: i32) -> (i32, i32, i32) {
    %c0_i32 = arith.constant 0 : i32
    %c0_i32_0 = arith.constant 0 : i32
    %c0_i32_1 = arith.constant 0 : i32
    return %arg0, %c0_i32, %c0_i32_0 : i32, i32, i32
  }
  func.func @transform_1(%arg0: i32) -> (i32, i32, i32) {
    %c0_i32 = arith.constant 0 : i32
    %c0_i32_0 = arith.constant 0 : i32
    %c0_i32_1 = arith.constant 0 : i32
    %c0_i32_2 = arith.constant 0 : i32
    return %c0_i32, %c0_i32_0, %c0_i32_1 : i32, i32, i32
  }
  func.func @transform_2(%arg0: i32) -> (i32, i32) {
    %c0_i32 = arith.constant 0 : i32
    %c0_i32_0 = arith.constant 0 : i32
    %c0_i32_1 = arith.constant 0 : i32
    return %c0_i32, %c0_i32_0 : i32, i32
  }
  func.func @transform_3(%arg0: i32) -> (i32, i32, i32) {
    %c0_i32 = arith.constant 0 : i32
    %c0_i32_0 = arith.constant 0 : i32
    %c0_i32_1 = arith.constant 0 : i32
    %c0_i32_2 = arith.constant 0 : i32
    return %c0_i32, %c0_i32_0, %c0_i32_1 : i32, i32, i32
  }
  func.func @transform_4(%arg0: i32) -> (i32, i32) {
    %c0_i32 = arith.constant 0 : i32
    %c0_i32_0 = arith.constant 0 : i32
    %c0_i32_1 = arith.constant 0 : i32
    return %c0_i32, %c0_i32_0 : i32, i32
  }
  func.func @transform_5(%arg0: i32) -> (i32, i32, i32) {
    %c0_i32 = arith.constant 0 : i32
    %c0_i32_0 = arith.constant 0 : i32
    %c0_i32_1 = arith.constant 0 : i32
    return %arg0, %c0_i32, %c0_i32_0 : i32, i32, i32
  }
}

module attributes {stable_mosaic.version = 11 : i64} {
  func.func @_vit_kernel(%arg0: i32, %arg1: memref<1x5x768xf32, #tpu.memory_space<vmem>>, %arg2: memref<768x128xf32, #tpu.memory_space<vmem>>, %arg3: memref<5x128xf32, #tpu.memory_space<vmem>>, %arg4: memref<2x1x128xf32, #tpu.memory_space<vmem>>, %arg5: memref<2x1x128xf32, #tpu.memory_space<vmem>>, %arg6: memref<2x4x128x32xf32, #tpu.memory_space<vmem>>, %arg7: memref<2x4x1x32xf32, #tpu.memory_space<vmem>>, %arg8: memref<2x4x128x32xf32, #tpu.memory_space<vmem>>, %arg9: memref<2x4x1x32xf32, #tpu.memory_space<vmem>>, %arg10: memref<2x4x128x32xf32, #tpu.memory_space<vmem>>, %arg11: memref<2x4x1x32xf32, #tpu.memory_space<vmem>>, %arg12: memref<2x4x32x128xf32, #tpu.memory_space<vmem>>, %arg13: memref<2x1x128xf32, #tpu.memory_space<vmem>>, %arg14: memref<2x1x128xf32, #tpu.memory_space<vmem>>, %arg15: memref<2x1x128xf32, #tpu.memory_space<vmem>>, %arg16: memref<2x128x512xf32, #tpu.memory_space<vmem>>, %arg17: memref<2x1x512xf32, #tpu.memory_space<vmem>>, %arg18: memref<2x512x128xf32, #tpu.memory_space<vmem>>, %arg19: memref<2x1x128xf32, #tpu.memory_space<vmem>>, %arg20: memref<1x128xf32, #tpu.memory_space<vmem>>, %arg21: memref<1x128xf32, #tpu.memory_space<vmem>>, %arg22: memref<128x1024xf32, #tpu.memory_space<vmem>>, %arg23: memref<1x1024xf32, #tpu.memory_space<vmem>>, %arg24: memref<1x1x1024xf32, #tpu.memory_space<vmem>>) attributes {dimension_semantics = [#tpu.dimension_semantics<parallel>], iteration_bounds = array<i64: 2>, scalar_prefetch = 0 : i64, scratch_operands = 0 : i64, tpu.core_type = #tpu.core_type<tc>, window_params = [{transform_indices = @transform_0, window_bounds = array<i64: 1, 5, 768>}, {pipeline_mode = #tpu.pipeline_mode<synchronous>, transform_indices = @transform_1, window_bounds = array<i64: 768, 128>}, {pipeline_mode = #tpu.pipeline_mode<synchronous>, transform_indices = @transform_2, window_bounds = array<i64: 5, 128>}, {pipeline_mode = #tpu.pipeline_mode<synchronous>, transform_indices = @transform_3, window_bounds = array<i64: 2, 1, 128>}, {pipeline_mode = #tpu.pipeline_mode<synchronous>, transform_indices = @transform_4, window_bounds = array<i64: 2, 1, 128>}, {pipeline_mode = #tpu.pipeline_mode<synchronous>, transform_indices = @transform_5, window_bounds = array<i64: 2, 4, 128, 32>}, {pipeline_mode = #tpu.pipeline_mode<synchronous>, transform_indices = @transform_6, window_bounds = array<i64: 2, 4, 1, 32>}, {pipeline_mode = #tpu.pipeline_mode<synchronous>, transform_indices = @transform_7, window_bounds = array<i64: 2, 4, 128, 32>}, {pipeline_mode = #tpu.pipeline_mode<synchronous>, transform_indices = @transform_8, window_bounds = array<i64: 2, 4, 1, 32>}, {pipeline_mode = #tpu.pipeline_mode<synchronous>, transform_indices = @transform_9, window_bounds = array<i64: 2, 4, 128, 32>}, {pipeline_mode = #tpu.pipeline_mode<synchronous>, transform_indices = @transform_10, window_bounds = array<i64: 2, 4, 1, 32>}, {pipeline_mode = #tpu.pipeline_mode<synchronous>, transform_indices = @transform_11, window_bounds = array<i64: 2, 4, 32, 128>}, {pipeline_mode = #tpu.pipeline_mode<synchronous>, transform_indices = @transform_12, window_bounds = array<i64: 2, 1, 128>}, {pipeline_mode = #tpu.pipeline_mode<synchronous>, transform_indices = @transform_13, window_bounds = array<i64: 2, 1, 128>}, {pipeline_mode = #tpu.pipeline_mode<synchronous>, transform_indices = @transform_14, window_bounds = array<i64: 2, 1, 128>}, {pipeline_mode = #tpu.pipeline_mode<synchronous>, transform_indices = @transform_15, window_bounds = array<i64: 2, 128, 512>}, {pipeline_mode = #tpu.pipeline_mode<synchronous>, transform_indices = @transform_16, window_bounds = array<i64: 2, 1, 512>}, {pipeline_mode = #tpu.pipeline_mode<synchronous>, transform_indices = @transform_17, window_bounds = array<i64: 2, 512, 128>}, {pipeline_mode = #tpu.pipeline_mode<synchronous>, transform_indices = @transform_18, window_bounds = array<i64: 2, 1, 128>}, {pipeline_mode = #tpu.pipeline_mode<synchronous>, transform_indices = @transform_19, window_bounds = array<i64: 1, 128>}, {pipeline_mode = #tpu.pipeline_mode<synchronous>, transform_indices = @transform_20, window_bounds = array<i64: 1, 128>}, {pipeline_mode = #tpu.pipeline_mode<synchronous>, transform_indices = @transform_21, window_bounds = array<i64: 128, 1024>}, {pipeline_mode = #tpu.pipeline_mode<synchronous>, transform_indices = @transform_22, window_bounds = array<i64: 1, 1024>}, {transform_indices = @transform_23, window_bounds = array<i64: 1, 1, 1024>}]} {
    %c0 = arith.constant 0 : index
    %c0_0 = arith.constant 0 : index
    %c0_1 = arith.constant 0 : index
    %0 = vector.load %arg1[%c0, %c0_0, %c0_1] : memref<1x5x768xf32, #tpu.memory_space<vmem>>, vector<1x5x768xf32>
    %1 = vector.shape_cast %0 : vector<1x5x768xf32> to vector<5x768xf32>
    %c0_2 = arith.constant 0 : index
    %c0_3 = arith.constant 0 : index
    %2 = vector.load %arg2[%c0_2, %c0_3] : memref<768x128xf32, #tpu.memory_space<vmem>>, vector<768x128xf32>
    %cst = arith.constant dense<0.000000e+00> : vector<5x128xf32>
    %3 = tpu.matmul %1, %2, %cst {dimension_numbers = #tpu.dot_dimension_numbers<[1], [0], [0], [1], [0, 0, 1, 1], [], []>} : vector<5x768xf32>, vector<768x128xf32>, vector<5x128xf32> -> vector<5x128xf32>
    %c0_4 = arith.constant 0 : index
    %c0_5 = arith.constant 0 : index
    %4 = vector.load %arg3[%c0_4, %c0_5] : memref<5x128xf32, #tpu.memory_space<vmem>>, vector<5x128xf32>
    %5 = arith.addf %3, %4 : vector<5x128xf32>
    %c0_6 = arith.constant 0 : index
    %c0_7 = arith.constant 0 : index
    %c0_8 = arith.constant 0 : index
    %6 = vector.load %arg4[%c0_6, %c0_7, %c0_8] : memref<2x1x128xf32, #tpu.memory_space<vmem>>, vector<1x1x128xf32>
    %7 = vector.shape_cast %6 : vector<1x1x128xf32> to vector<1x128xf32>
    %c0_9 = arith.constant 0 : index
    %c0_10 = arith.constant 0 : index
    %c0_11 = arith.constant 0 : index
    %8 = vector.load %arg5[%c0_9, %c0_10, %c0_11] : memref<2x1x128xf32, #tpu.memory_space<vmem>>, vector<1x1x128xf32>
    %9 = vector.shape_cast %8 : vector<1x1x128xf32> to vector<1x128xf32>
    %cst_12 = arith.constant dense<0.000000e+00> : vector<5xf32>
    %10 = vector.multi_reduction <add>, %5, %cst_12 [1] : vector<5x128xf32> to vector<5xf32>
    %11 = vector.shape_cast %10 : vector<5xf32> to vector<5x1xf32>
    %cst_13 = arith.constant 1.280000e+02 : f32
    %12 = vector.broadcast %cst_13 : f32 to vector<5x1xf32>
    %13 = arith.divf %11, %12 : vector<5x1xf32>
    %14 = vector.broadcast %13 : vector<5x1xf32> to vector<5x128xf32>
    %15 = arith.subf %5, %14 : vector<5x128xf32>
    %16 = arith.mulf %15, %15 : vector<5x128xf32>
    %cst_14 = arith.constant dense<0.000000e+00> : vector<5xf32>
    %17 = vector.multi_reduction <add>, %16, %cst_14 [1] : vector<5x128xf32> to vector<5xf32>
    %18 = vector.shape_cast %17 : vector<5xf32> to vector<5x1xf32>
    %cst_15 = arith.constant 1.280000e+02 : f32
    %19 = vector.broadcast %cst_15 : f32 to vector<5x1xf32>
    %20 = arith.divf %18, %19 : vector<5x1xf32>
    %cst_16 = arith.constant 9.99999997E-7 : f32
    %21 = vector.broadcast %cst_16 : f32 to vector<5x1xf32>
    %22 = arith.addf %20, %21 : vector<5x1xf32>
    %23 = math.rsqrt %22 : vector<5x1xf32>
    %24 = vector.broadcast %23 : vector<5x1xf32> to vector<5x128xf32>
    %25 = arith.mulf %15, %24 : vector<5x128xf32>
    %26 = vector.broadcast %7 : vector<1x128xf32> to vector<5x128xf32>
    %27 = arith.mulf %25, %26 : vector<5x128xf32>
    %28 = vector.broadcast %9 : vector<1x128xf32> to vector<5x128xf32>
    %29 = arith.addf %27, %28 : vector<5x128xf32>
    %cst_17 = arith.constant 0.000000e+00 : f32
    %30 = vector.broadcast %cst_17 : f32 to vector<5x128xf32>
    %c0_18 = arith.constant 0 : index
    %c0_19 = arith.constant 0 : index
    %c0_20 = arith.constant 0 : index
    %c0_21 = arith.constant 0 : index
    %31 = vector.load %arg6[%c0_18, %c0_19, %c0_20, %c0_21] : memref<2x4x128x32xf32, #tpu.memory_space<vmem>>, vector<1x1x128x32xf32>
    %32 = vector.shape_cast %31 : vector<1x1x128x32xf32> to vector<128x32xf32>
    %cst_22 = arith.constant dense<0.000000e+00> : vector<5x32xf32>
    %33 = tpu.matmul %29, %32, %cst_22 {dimension_numbers = #tpu.dot_dimension_numbers<[1], [0], [0], [1], [0, 0, 1, 1], [], []>} : vector<5x128xf32>, vector<128x32xf32>, vector<5x32xf32> -> vector<5x32xf32>
    %c0_23 = arith.constant 0 : index
    %c0_24 = arith.constant 0 : index
    %c0_25 = arith.constant 0 : index
    %c0_26 = arith.constant 0 : index
    %34 = vector.load %arg7[%c0_23, %c0_24, %c0_25, %c0_26] : memref<2x4x1x32xf32, #tpu.memory_space<vmem>>, vector<1x1x1x32xf32>
    %35 = vector.shape_cast %34 : vector<1x1x1x32xf32> to vector<1x32xf32>
    %36 = vector.broadcast %35 : vector<1x32xf32> to vector<5x32xf32>
    %37 = arith.addf %33, %36 : vector<5x32xf32>
    %cst_27 = arith.constant 0.176776692 : f32
    %38 = vector.broadcast %cst_27 : f32 to vector<5x32xf32>
    %39 = arith.mulf %37, %38 : vector<5x32xf32>
    %c0_28 = arith.constant 0 : index
    %c0_29 = arith.constant 0 : index
    %c0_30 = arith.constant 0 : index
    %c0_31 = arith.constant 0 : index
    %40 = vector.load %arg8[%c0_28, %c0_29, %c0_30, %c0_31] : memref<2x4x128x32xf32, #tpu.memory_space<vmem>>, vector<1x1x128x32xf32>
    %41 = vector.shape_cast %40 : vector<1x1x128x32xf32> to vector<128x32xf32>
    %cst_32 = arith.constant dense<0.000000e+00> : vector<5x32xf32>
    %42 = tpu.matmul %29, %41, %cst_32 {dimension_numbers = #tpu.dot_dimension_numbers<[1], [0], [0], [1], [0, 0, 1, 1], [], []>} : vector<5x128xf32>, vector<128x32xf32>, vector<5x32xf32> -> vector<5x32xf32>
    %c0_33 = arith.constant 0 : index
    %c0_34 = arith.constant 0 : index
    %c0_35 = arith.constant 0 : index
    %c0_36 = arith.constant 0 : index
    %43 = vector.load %arg9[%c0_33, %c0_34, %c0_35, %c0_36] : memref<2x4x1x32xf32, #tpu.memory_space<vmem>>, vector<1x1x1x32xf32>
    %44 = vector.shape_cast %43 : vector<1x1x1x32xf32> to vector<1x32xf32>
    %45 = vector.broadcast %44 : vector<1x32xf32> to vector<5x32xf32>
    %46 = arith.addf %42, %45 : vector<5x32xf32>
    %c0_37 = arith.constant 0 : index
    %c0_38 = arith.constant 0 : index
    %c0_39 = arith.constant 0 : index
    %c0_40 = arith.constant 0 : index
    %47 = vector.load %arg10[%c0_37, %c0_38, %c0_39, %c0_40] : memref<2x4x128x32xf32, #tpu.memory_space<vmem>>, vector<1x1x128x32xf32>
    %48 = vector.shape_cast %47 : vector<1x1x128x32xf32> to vector<128x32xf32>
    %cst_41 = arith.constant dense<0.000000e+00> : vector<5x32xf32>
    %49 = tpu.matmul %29, %48, %cst_41 {dimension_numbers = #tpu.dot_dimension_numbers<[1], [0], [0], [1], [0, 0, 1, 1], [], []>} : vector<5x128xf32>, vector<128x32xf32>, vector<5x32xf32> -> vector<5x32xf32>
    %c0_42 = arith.constant 0 : index
    %c0_43 = arith.constant 0 : index
    %c0_44 = arith.constant 0 : index
    %c0_45 = arith.constant 0 : index
    %50 = vector.load %arg11[%c0_42, %c0_43, %c0_44, %c0_45] : memref<2x4x1x32xf32, #tpu.memory_space<vmem>>, vector<1x1x1x32xf32>
    %51 = vector.shape_cast %50 : vector<1x1x1x32xf32> to vector<1x32xf32>
    %52 = vector.broadcast %51 : vector<1x32xf32> to vector<5x32xf32>
    %53 = arith.addf %49, %52 : vector<5x32xf32>
    %54 = tpu.transpose %46, [1, 0] : vector<5x32xf32> -> vector<32x5xf32>
    %cst_46 = arith.constant dense<0.000000e+00> : vector<5x5xf32>
    %55 = tpu.matmul %39, %54, %cst_46 {dimension_numbers = #tpu.dot_dimension_numbers<[1], [0], [0], [1], [0, 0, 1, 1], [], []>} : vector<5x32xf32>, vector<32x5xf32>, vector<5x5xf32> -> vector<5x5xf32>
    %cst_47 = arith.constant dense<0xFF800000> : vector<5xf32>
    %56 = vector.multi_reduction <maximumf>, %55, %cst_47 [1] : vector<5x5xf32> to vector<5xf32>
    %57 = vector.shape_cast %56 : vector<5xf32> to vector<5x1xf32>
    %58 = vector.broadcast %57 : vector<5x1xf32> to vector<5x5xf32>
    %59 = arith.subf %55, %58 : vector<5x5xf32>
    %60 = math.exp %59 : vector<5x5xf32>
    %cst_48 = arith.constant dense<0.000000e+00> : vector<5xf32>
    %61 = vector.multi_reduction <add>, %60, %cst_48 [1] : vector<5x5xf32> to vector<5xf32>
    %62 = vector.shape_cast %61 : vector<5xf32> to vector<5x1xf32>
    %63 = vector.broadcast %62 : vector<5x1xf32> to vector<5x5xf32>
    %64 = arith.divf %60, %63 : vector<5x5xf32>
    %cst_49 = arith.constant dense<0.000000e+00> : vector<5x32xf32>
    %65 = tpu.matmul %64, %53, %cst_49 {dimension_numbers = #tpu.dot_dimension_numbers<[1], [0], [0], [1], [0, 0, 1, 1], [], []>} : vector<5x5xf32>, vector<5x32xf32>, vector<5x32xf32> -> vector<5x32xf32>
    %c0_50 = arith.constant 0 : index
    %c0_51 = arith.constant 0 : index
    %c0_52 = arith.constant 0 : index
    %c0_53 = arith.constant 0 : index
    %66 = vector.load %arg12[%c0_50, %c0_51, %c0_52, %c0_53] : memref<2x4x32x128xf32, #tpu.memory_space<vmem>>, vector<1x1x32x128xf32>
    %67 = vector.shape_cast %66 : vector<1x1x32x128xf32> to vector<32x128xf32>
    %cst_54 = arith.constant dense<0.000000e+00> : vector<5x128xf32>
    %68 = tpu.matmul %65, %67, %cst_54 {dimension_numbers = #tpu.dot_dimension_numbers<[1], [0], [0], [1], [0, 0, 1, 1], [], []>} : vector<5x32xf32>, vector<32x128xf32>, vector<5x128xf32> -> vector<5x128xf32>
    %69 = arith.addf %30, %68 : vector<5x128xf32>
    %c0_55 = arith.constant 0 : index
    %c1 = arith.constant 1 : index
    %c0_56 = arith.constant 0 : index
    %c0_57 = arith.constant 0 : index
    %70 = vector.load %arg6[%c0_55, %c1, %c0_56, %c0_57] : memref<2x4x128x32xf32, #tpu.memory_space<vmem>>, vector<1x1x128x32xf32>
    %71 = vector.shape_cast %70 : vector<1x1x128x32xf32> to vector<128x32xf32>
    %cst_58 = arith.constant dense<0.000000e+00> : vector<5x32xf32>
    %72 = tpu.matmul %29, %71, %cst_58 {dimension_numbers = #tpu.dot_dimension_numbers<[1], [0], [0], [1], [0, 0, 1, 1], [], []>} : vector<5x128xf32>, vector<128x32xf32>, vector<5x32xf32> -> vector<5x32xf32>
    %c0_59 = arith.constant 0 : index
    %c1_60 = arith.constant 1 : index
    %c0_61 = arith.constant 0 : index
    %c0_62 = arith.constant 0 : index
    %73 = vector.load %arg7[%c0_59, %c1_60, %c0_61, %c0_62] : memref<2x4x1x32xf32, #tpu.memory_space<vmem>>, vector<1x1x1x32xf32>
    %74 = vector.shape_cast %73 : vector<1x1x1x32xf32> to vector<1x32xf32>
    %75 = vector.broadcast %74 : vector<1x32xf32> to vector<5x32xf32>
    %76 = arith.addf %72, %75 : vector<5x32xf32>
    %cst_63 = arith.constant 0.176776692 : f32
    %77 = vector.broadcast %cst_63 : f32 to vector<5x32xf32>
    %78 = arith.mulf %76, %77 : vector<5x32xf32>
    %c0_64 = arith.constant 0 : index
    %c1_65 = arith.constant 1 : index
    %c0_66 = arith.constant 0 : index
    %c0_67 = arith.constant 0 : index
    %79 = vector.load %arg8[%c0_64, %c1_65, %c0_66, %c0_67] : memref<2x4x128x32xf32, #tpu.memory_space<vmem>>, vector<1x1x128x32xf32>
    %80 = vector.shape_cast %79 : vector<1x1x128x32xf32> to vector<128x32xf32>
    %cst_68 = arith.constant dense<0.000000e+00> : vector<5x32xf32>
    %81 = tpu.matmul %29, %80, %cst_68 {dimension_numbers = #tpu.dot_dimension_numbers<[1], [0], [0], [1], [0, 0, 1, 1], [], []>} : vector<5x128xf32>, vector<128x32xf32>, vector<5x32xf32> -> vector<5x32xf32>
    %c0_69 = arith.constant 0 : index
    %c1_70 = arith.constant 1 : index
    %c0_71 = arith.constant 0 : index
    %c0_72 = arith.constant 0 : index
    %82 = vector.load %arg9[%c0_69, %c1_70, %c0_71, %c0_72] : memref<2x4x1x32xf32, #tpu.memory_space<vmem>>, vector<1x1x1x32xf32>
    %83 = vector.shape_cast %82 : vector<1x1x1x32xf32> to vector<1x32xf32>
    %84 = vector.broadcast %83 : vector<1x32xf32> to vector<5x32xf32>
    %85 = arith.addf %81, %84 : vector<5x32xf32>
    %c0_73 = arith.constant 0 : index
    %c1_74 = arith.constant 1 : index
    %c0_75 = arith.constant 0 : index
    %c0_76 = arith.constant 0 : index
    %86 = vector.load %arg10[%c0_73, %c1_74, %c0_75, %c0_76] : memref<2x4x128x32xf32, #tpu.memory_space<vmem>>, vector<1x1x128x32xf32>
    %87 = vector.shape_cast %86 : vector<1x1x128x32xf32> to vector<128x32xf32>
    %cst_77 = arith.constant dense<0.000000e+00> : vector<5x32xf32>
    %88 = tpu.matmul %29, %87, %cst_77 {dimension_numbers = #tpu.dot_dimension_numbers<[1], [0], [0], [1], [0, 0, 1, 1], [], []>} : vector<5x128xf32>, vector<128x32xf32>, vector<5x32xf32> -> vector<5x32xf32>
    %c0_78 = arith.constant 0 : index
    %c1_79 = arith.constant 1 : index
    %c0_80 = arith.constant 0 : index
    %c0_81 = arith.constant 0 : index
    %89 = vector.load %arg11[%c0_78, %c1_79, %c0_80, %c0_81] : memref<2x4x1x32xf32, #tpu.memory_space<vmem>>, vector<1x1x1x32xf32>
    %90 = vector.shape_cast %89 : vector<1x1x1x32xf32> to vector<1x32xf32>
    %91 = vector.broadcast %90 : vector<1x32xf32> to vector<5x32xf32>
    %92 = arith.addf %88, %91 : vector<5x32xf32>
    %93 = tpu.transpose %85, [1, 0] : vector<5x32xf32> -> vector<32x5xf32>
    %cst_82 = arith.constant dense<0.000000e+00> : vector<5x5xf32>
    %94 = tpu.matmul %78, %93, %cst_82 {dimension_numbers = #tpu.dot_dimension_numbers<[1], [0], [0], [1], [0, 0, 1, 1], [], []>} : vector<5x32xf32>, vector<32x5xf32>, vector<5x5xf32> -> vector<5x5xf32>
    %cst_83 = arith.constant dense<0xFF800000> : vector<5xf32>
    %95 = vector.multi_reduction <maximumf>, %94, %cst_83 [1] : vector<5x5xf32> to vector<5xf32>
    %96 = vector.shape_cast %95 : vector<5xf32> to vector<5x1xf32>
    %97 = vector.broadcast %96 : vector<5x1xf32> to vector<5x5xf32>
    %98 = arith.subf %94, %97 : vector<5x5xf32>
    %99 = math.exp %98 : vector<5x5xf32>
    %cst_84 = arith.constant dense<0.000000e+00> : vector<5xf32>
    %100 = vector.multi_reduction <add>, %99, %cst_84 [1] : vector<5x5xf32> to vector<5xf32>
    %101 = vector.shape_cast %100 : vector<5xf32> to vector<5x1xf32>
    %102 = vector.broadcast %101 : vector<5x1xf32> to vector<5x5xf32>
    %103 = arith.divf %99, %102 : vector<5x5xf32>
    %cst_85 = arith.constant dense<0.000000e+00> : vector<5x32xf32>
    %104 = tpu.matmul %103, %92, %cst_85 {dimension_numbers = #tpu.dot_dimension_numbers<[1], [0], [0], [1], [0, 0, 1, 1], [], []>} : vector<5x5xf32>, vector<5x32xf32>, vector<5x32xf32> -> vector<5x32xf32>
    %c0_86 = arith.constant 0 : index
    %c1_87 = arith.constant 1 : index
    %c0_88 = arith.constant 0 : index
    %c0_89 = arith.constant 0 : index
    %105 = vector.load %arg12[%c0_86, %c1_87, %c0_88, %c0_89] : memref<2x4x32x128xf32, #tpu.memory_space<vmem>>, vector<1x1x32x128xf32>
    %106 = vector.shape_cast %105 : vector<1x1x32x128xf32> to vector<32x128xf32>
    %cst_90 = arith.constant dense<0.000000e+00> : vector<5x128xf32>
    %107 = tpu.matmul %104, %106, %cst_90 {dimension_numbers = #tpu.dot_dimension_numbers<[1], [0], [0], [1], [0, 0, 1, 1], [], []>} : vector<5x32xf32>, vector<32x128xf32>, vector<5x128xf32> -> vector<5x128xf32>
    %108 = arith.addf %69, %107 : vector<5x128xf32>
    %c0_91 = arith.constant 0 : index
    %c2 = arith.constant 2 : index
    %c0_92 = arith.constant 0 : index
    %c0_93 = arith.constant 0 : index
    %109 = vector.load %arg6[%c0_91, %c2, %c0_92, %c0_93] : memref<2x4x128x32xf32, #tpu.memory_space<vmem>>, vector<1x1x128x32xf32>
    %110 = vector.shape_cast %109 : vector<1x1x128x32xf32> to vector<128x32xf32>
    %cst_94 = arith.constant dense<0.000000e+00> : vector<5x32xf32>
    %111 = tpu.matmul %29, %110, %cst_94 {dimension_numbers = #tpu.dot_dimension_numbers<[1], [0], [0], [1], [0, 0, 1, 1], [], []>} : vector<5x128xf32>, vector<128x32xf32>, vector<5x32xf32> -> vector<5x32xf32>
    %c0_95 = arith.constant 0 : index
    %c2_96 = arith.constant 2 : index
    %c0_97 = arith.constant 0 : index
    %c0_98 = arith.constant 0 : index
    %112 = vector.load %arg7[%c0_95, %c2_96, %c0_97, %c0_98] : memref<2x4x1x32xf32, #tpu.memory_space<vmem>>, vector<1x1x1x32xf32>
    %113 = vector.shape_cast %112 : vector<1x1x1x32xf32> to vector<1x32xf32>
    %114 = vector.broadcast %113 : vector<1x32xf32> to vector<5x32xf32>
    %115 = arith.addf %111, %114 : vector<5x32xf32>
    %cst_99 = arith.constant 0.176776692 : f32
    %116 = vector.broadcast %cst_99 : f32 to vector<5x32xf32>
    %117 = arith.mulf %115, %116 : vector<5x32xf32>
    %c0_100 = arith.constant 0 : index
    %c2_101 = arith.constant 2 : index
    %c0_102 = arith.constant 0 : index
    %c0_103 = arith.constant 0 : index
    %118 = vector.load %arg8[%c0_100, %c2_101, %c0_102, %c0_103] : memref<2x4x128x32xf32, #tpu.memory_space<vmem>>, vector<1x1x128x32xf32>
    %119 = vector.shape_cast %118 : vector<1x1x128x32xf32> to vector<128x32xf32>
    %cst_104 = arith.constant dense<0.000000e+00> : vector<5x32xf32>
    %120 = tpu.matmul %29, %119, %cst_104 {dimension_numbers = #tpu.dot_dimension_numbers<[1], [0], [0], [1], [0, 0, 1, 1], [], []>} : vector<5x128xf32>, vector<128x32xf32>, vector<5x32xf32> -> vector<5x32xf32>
    %c0_105 = arith.constant 0 : index
    %c2_106 = arith.constant 2 : index
    %c0_107 = arith.constant 0 : index
    %c0_108 = arith.constant 0 : index
    %121 = vector.load %arg9[%c0_105, %c2_106, %c0_107, %c0_108] : memref<2x4x1x32xf32, #tpu.memory_space<vmem>>, vector<1x1x1x32xf32>
    %122 = vector.shape_cast %121 : vector<1x1x1x32xf32> to vector<1x32xf32>
    %123 = vector.broadcast %122 : vector<1x32xf32> to vector<5x32xf32>
    %124 = arith.addf %120, %123 : vector<5x32xf32>
    %c0_109 = arith.constant 0 : index
    %c2_110 = arith.constant 2 : index
    %c0_111 = arith.constant 0 : index
    %c0_112 = arith.constant 0 : index
    %125 = vector.load %arg10[%c0_109, %c2_110, %c0_111, %c0_112] : memref<2x4x128x32xf32, #tpu.memory_space<vmem>>, vector<1x1x128x32xf32>
    %126 = vector.shape_cast %125 : vector<1x1x128x32xf32> to vector<128x32xf32>
    %cst_113 = arith.constant dense<0.000000e+00> : vector<5x32xf32>
    %127 = tpu.matmul %29, %126, %cst_113 {dimension_numbers = #tpu.dot_dimension_numbers<[1], [0], [0], [1], [0, 0, 1, 1], [], []>} : vector<5x128xf32>, vector<128x32xf32>, vector<5x32xf32> -> vector<5x32xf32>
    %c0_114 = arith.constant 0 : index
    %c2_115 = arith.constant 2 : index
    %c0_116 = arith.constant 0 : index
    %c0_117 = arith.constant 0 : index
    %128 = vector.load %arg11[%c0_114, %c2_115, %c0_116, %c0_117] : memref<2x4x1x32xf32, #tpu.memory_space<vmem>>, vector<1x1x1x32xf32>
    %129 = vector.shape_cast %128 : vector<1x1x1x32xf32> to vector<1x32xf32>
    %130 = vector.broadcast %129 : vector<1x32xf32> to vector<5x32xf32>
    %131 = arith.addf %127, %130 : vector<5x32xf32>
    %132 = tpu.transpose %124, [1, 0] : vector<5x32xf32> -> vector<32x5xf32>
    %cst_118 = arith.constant dense<0.000000e+00> : vector<5x5xf32>
    %133 = tpu.matmul %117, %132, %cst_118 {dimension_numbers = #tpu.dot_dimension_numbers<[1], [0], [0], [1], [0, 0, 1, 1], [], []>} : vector<5x32xf32>, vector<32x5xf32>, vector<5x5xf32> -> vector<5x5xf32>
    %cst_119 = arith.constant dense<0xFF800000> : vector<5xf32>
    %134 = vector.multi_reduction <maximumf>, %133, %cst_119 [1] : vector<5x5xf32> to vector<5xf32>
    %135 = vector.shape_cast %134 : vector<5xf32> to vector<5x1xf32>
    %136 = vector.broadcast %135 : vector<5x1xf32> to vector<5x5xf32>
    %137 = arith.subf %133, %136 : vector<5x5xf32>
    %138 = math.exp %137 : vector<5x5xf32>
    %cst_120 = arith.constant dense<0.000000e+00> : vector<5xf32>
    %139 = vector.multi_reduction <add>, %138, %cst_120 [1] : vector<5x5xf32> to vector<5xf32>
    %140 = vector.shape_cast %139 : vector<5xf32> to vector<5x1xf32>
    %141 = vector.broadcast %140 : vector<5x1xf32> to vector<5x5xf32>
    %142 = arith.divf %138, %141 : vector<5x5xf32>
    %cst_121 = arith.constant dense<0.000000e+00> : vector<5x32xf32>
    %143 = tpu.matmul %142, %131, %cst_121 {dimension_numbers = #tpu.dot_dimension_numbers<[1], [0], [0], [1], [0, 0, 1, 1], [], []>} : vector<5x5xf32>, vector<5x32xf32>, vector<5x32xf32> -> vector<5x32xf32>
    %c0_122 = arith.constant 0 : index
    %c2_123 = arith.constant 2 : index
    %c0_124 = arith.constant 0 : index
    %c0_125 = arith.constant 0 : index
    %144 = vector.load %arg12[%c0_122, %c2_123, %c0_124, %c0_125] : memref<2x4x32x128xf32, #tpu.memory_space<vmem>>, vector<1x1x32x128xf32>
    %145 = vector.shape_cast %144 : vector<1x1x32x128xf32> to vector<32x128xf32>
    %cst_126 = arith.constant dense<0.000000e+00> : vector<5x128xf32>
    %146 = tpu.matmul %143, %145, %cst_126 {dimension_numbers = #tpu.dot_dimension_numbers<[1], [0], [0], [1], [0, 0, 1, 1], [], []>} : vector<5x32xf32>, vector<32x128xf32>, vector<5x128xf32> -> vector<5x128xf32>
    %147 = arith.addf %108, %146 : vector<5x128xf32>
    %c0_127 = arith.constant 0 : index
    %c3 = arith.constant 3 : index
    %c0_128 = arith.constant 0 : index
    %c0_129 = arith.constant 0 : index
    %148 = vector.load %arg6[%c0_127, %c3, %c0_128, %c0_129] : memref<2x4x128x32xf32, #tpu.memory_space<vmem>>, vector<1x1x128x32xf32>
    %149 = vector.shape_cast %148 : vector<1x1x128x32xf32> to vector<128x32xf32>
    %cst_130 = arith.constant dense<0.000000e+00> : vector<5x32xf32>
    %150 = tpu.matmul %29, %149, %cst_130 {dimension_numbers = #tpu.dot_dimension_numbers<[1], [0], [0], [1], [0, 0, 1, 1], [], []>} : vector<5x128xf32>, vector<128x32xf32>, vector<5x32xf32> -> vector<5x32xf32>
    %c0_131 = arith.constant 0 : index
    %c3_132 = arith.constant 3 : index
    %c0_133 = arith.constant 0 : index
    %c0_134 = arith.constant 0 : index
    %151 = vector.load %arg7[%c0_131, %c3_132, %c0_133, %c0_134] : memref<2x4x1x32xf32, #tpu.memory_space<vmem>>, vector<1x1x1x32xf32>
    %152 = vector.shape_cast %151 : vector<1x1x1x32xf32> to vector<1x32xf32>
    %153 = vector.broadcast %152 : vector<1x32xf32> to vector<5x32xf32>
    %154 = arith.addf %150, %153 : vector<5x32xf32>
    %cst_135 = arith.constant 0.176776692 : f32
    %155 = vector.broadcast %cst_135 : f32 to vector<5x32xf32>
    %156 = arith.mulf %154, %155 : vector<5x32xf32>
    %c0_136 = arith.constant 0 : index
    %c3_137 = arith.constant 3 : index
    %c0_138 = arith.constant 0 : index
    %c0_139 = arith.constant 0 : index
    %157 = vector.load %arg8[%c0_136, %c3_137, %c0_138, %c0_139] : memref<2x4x128x32xf32, #tpu.memory_space<vmem>>, vector<1x1x128x32xf32>
    %158 = vector.shape_cast %157 : vector<1x1x128x32xf32> to vector<128x32xf32>
    %cst_140 = arith.constant dense<0.000000e+00> : vector<5x32xf32>
    %159 = tpu.matmul %29, %158, %cst_140 {dimension_numbers = #tpu.dot_dimension_numbers<[1], [0], [0], [1], [0, 0, 1, 1], [], []>} : vector<5x128xf32>, vector<128x32xf32>, vector<5x32xf32> -> vector<5x32xf32>
    %c0_141 = arith.constant 0 : index
    %c3_142 = arith.constant 3 : index
    %c0_143 = arith.constant 0 : index
    %c0_144 = arith.constant 0 : index
    %160 = vector.load %arg9[%c0_141, %c3_142, %c0_143, %c0_144] : memref<2x4x1x32xf32, #tpu.memory_space<vmem>>, vector<1x1x1x32xf32>
    %161 = vector.shape_cast %160 : vector<1x1x1x32xf32> to vector<1x32xf32>
    %162 = vector.broadcast %161 : vector<1x32xf32> to vector<5x32xf32>
    %163 = arith.addf %159, %162 : vector<5x32xf32>
    %c0_145 = arith.constant 0 : index
    %c3_146 = arith.constant 3 : index
    %c0_147 = arith.constant 0 : index
    %c0_148 = arith.constant 0 : index
    %164 = vector.load %arg10[%c0_145, %c3_146, %c0_147, %c0_148] : memref<2x4x128x32xf32, #tpu.memory_space<vmem>>, vector<1x1x128x32xf32>
    %165 = vector.shape_cast %164 : vector<1x1x128x32xf32> to vector<128x32xf32>
    %cst_149 = arith.constant dense<0.000000e+00> : vector<5x32xf32>
    %166 = tpu.matmul %29, %165, %cst_149 {dimension_numbers = #tpu.dot_dimension_numbers<[1], [0], [0], [1], [0, 0, 1, 1], [], []>} : vector<5x128xf32>, vector<128x32xf32>, vector<5x32xf32> -> vector<5x32xf32>
    %c0_150 = arith.constant 0 : index
    %c3_151 = arith.constant 3 : index
    %c0_152 = arith.constant 0 : index
    %c0_153 = arith.constant 0 : index
    %167 = vector.load %arg11[%c0_150, %c3_151, %c0_152, %c0_153] : memref<2x4x1x32xf32, #tpu.memory_space<vmem>>, vector<1x1x1x32xf32>
    %168 = vector.shape_cast %167 : vector<1x1x1x32xf32> to vector<1x32xf32>
    %169 = vector.broadcast %168 : vector<1x32xf32> to vector<5x32xf32>
    %170 = arith.addf %166, %169 : vector<5x32xf32>
    %171 = tpu.transpose %163, [1, 0] : vector<5x32xf32> -> vector<32x5xf32>
    %cst_154 = arith.constant dense<0.000000e+00> : vector<5x5xf32>
    %172 = tpu.matmul %156, %171, %cst_154 {dimension_numbers = #tpu.dot_dimension_numbers<[1], [0], [0], [1], [0, 0, 1, 1], [], []>} : vector<5x32xf32>, vector<32x5xf32>, vector<5x5xf32> -> vector<5x5xf32>
    %cst_155 = arith.constant dense<0xFF800000> : vector<5xf32>
    %173 = vector.multi_reduction <maximumf>, %172, %cst_155 [1] : vector<5x5xf32> to vector<5xf32>
    %174 = vector.shape_cast %173 : vector<5xf32> to vector<5x1xf32>
    %175 = vector.broadcast %174 : vector<5x1xf32> to vector<5x5xf32>
    %176 = arith.subf %172, %175 : vector<5x5xf32>
    %177 = math.exp %176 : vector<5x5xf32>
    %cst_156 = arith.constant dense<0.000000e+00> : vector<5xf32>
    %178 = vector.multi_reduction <add>, %177, %cst_156 [1] : vector<5x5xf32> to vector<5xf32>
    %179 = vector.shape_cast %178 : vector<5xf32> to vector<5x1xf32>
    %180 = vector.broadcast %179 : vector<5x1xf32> to vector<5x5xf32>
    %181 = arith.divf %177, %180 : vector<5x5xf32>
    %cst_157 = arith.constant dense<0.000000e+00> : vector<5x32xf32>
    %182 = tpu.matmul %181, %170, %cst_157 {dimension_numbers = #tpu.dot_dimension_numbers<[1], [0], [0], [1], [0, 0, 1, 1], [], []>} : vector<5x5xf32>, vector<5x32xf32>, vector<5x32xf32> -> vector<5x32xf32>
    %c0_158 = arith.constant 0 : index
    %c3_159 = arith.constant 3 : index
    %c0_160 = arith.constant 0 : index
    %c0_161 = arith.constant 0 : index
    %183 = vector.load %arg12[%c0_158, %c3_159, %c0_160, %c0_161] : memref<2x4x32x128xf32, #tpu.memory_space<vmem>>, vector<1x1x32x128xf32>
    %184 = vector.shape_cast %183 : vector<1x1x32x128xf32> to vector<32x128xf32>
    %cst_162 = arith.constant dense<0.000000e+00> : vector<5x128xf32>
    %185 = tpu.matmul %182, %184, %cst_162 {dimension_numbers = #tpu.dot_dimension_numbers<[1], [0], [0], [1], [0, 0, 1, 1], [], []>} : vector<5x32xf32>, vector<32x128xf32>, vector<5x128xf32> -> vector<5x128xf32>
    %186 = arith.addf %147, %185 : vector<5x128xf32>
    %187 = arith.addf %5, %186 : vector<5x128xf32>
    %c0_163 = arith.constant 0 : index
    %c0_164 = arith.constant 0 : index
    %c0_165 = arith.constant 0 : index
    %188 = vector.load %arg13[%c0_163, %c0_164, %c0_165] : memref<2x1x128xf32, #tpu.memory_space<vmem>>, vector<1x1x128xf32>
    %189 = vector.shape_cast %188 : vector<1x1x128xf32> to vector<1x128xf32>
    %190 = vector.broadcast %189 : vector<1x128xf32> to vector<5x128xf32>
    %191 = arith.addf %187, %190 : vector<5x128xf32>
    %c0_166 = arith.constant 0 : index
    %c0_167 = arith.constant 0 : index
    %c0_168 = arith.constant 0 : index
    %192 = vector.load %arg14[%c0_166, %c0_167, %c0_168] : memref<2x1x128xf32, #tpu.memory_space<vmem>>, vector<1x1x128xf32>
    %193 = vector.shape_cast %192 : vector<1x1x128xf32> to vector<1x128xf32>
    %c0_169 = arith.constant 0 : index
    %c0_170 = arith.constant 0 : index
    %c0_171 = arith.constant 0 : index
    %194 = vector.load %arg15[%c0_169, %c0_170, %c0_171] : memref<2x1x128xf32, #tpu.memory_space<vmem>>, vector<1x1x128xf32>
    %195 = vector.shape_cast %194 : vector<1x1x128xf32> to vector<1x128xf32>
    %cst_172 = arith.constant dense<0.000000e+00> : vector<5xf32>
    %196 = vector.multi_reduction <add>, %191, %cst_172 [1] : vector<5x128xf32> to vector<5xf32>
    %197 = vector.shape_cast %196 : vector<5xf32> to vector<5x1xf32>
    %cst_173 = arith.constant 1.280000e+02 : f32
    %198 = vector.broadcast %cst_173 : f32 to vector<5x1xf32>
    %199 = arith.divf %197, %198 : vector<5x1xf32>
    %200 = vector.broadcast %199 : vector<5x1xf32> to vector<5x128xf32>
    %201 = arith.subf %191, %200 : vector<5x128xf32>
    %202 = arith.mulf %201, %201 : vector<5x128xf32>
    %cst_174 = arith.constant dense<0.000000e+00> : vector<5xf32>
    %203 = vector.multi_reduction <add>, %202, %cst_174 [1] : vector<5x128xf32> to vector<5xf32>
    %204 = vector.shape_cast %203 : vector<5xf32> to vector<5x1xf32>
    %cst_175 = arith.constant 1.280000e+02 : f32
    %205 = vector.broadcast %cst_175 : f32 to vector<5x1xf32>
    %206 = arith.divf %204, %205 : vector<5x1xf32>
    %cst_176 = arith.constant 9.99999997E-7 : f32
    %207 = vector.broadcast %cst_176 : f32 to vector<5x1xf32>
    %208 = arith.addf %206, %207 : vector<5x1xf32>
    %209 = math.rsqrt %208 : vector<5x1xf32>
    %210 = vector.broadcast %209 : vector<5x1xf32> to vector<5x128xf32>
    %211 = arith.mulf %201, %210 : vector<5x128xf32>
    %212 = vector.broadcast %193 : vector<1x128xf32> to vector<5x128xf32>
    %213 = arith.mulf %211, %212 : vector<5x128xf32>
    %214 = vector.broadcast %195 : vector<1x128xf32> to vector<5x128xf32>
    %215 = arith.addf %213, %214 : vector<5x128xf32>
    %c0_177 = arith.constant 0 : index
    %c0_178 = arith.constant 0 : index
    %c0_179 = arith.constant 0 : index
    %216 = vector.load %arg16[%c0_177, %c0_178, %c0_179] : memref<2x128x512xf32, #tpu.memory_space<vmem>>, vector<1x128x512xf32>
    %217 = vector.shape_cast %216 : vector<1x128x512xf32> to vector<128x512xf32>
    %cst_180 = arith.constant dense<0.000000e+00> : vector<5x512xf32>
    %218 = tpu.matmul %215, %217, %cst_180 {dimension_numbers = #tpu.dot_dimension_numbers<[1], [0], [0], [1], [0, 0, 1, 1], [], []>} : vector<5x128xf32>, vector<128x512xf32>, vector<5x512xf32> -> vector<5x512xf32>
    %c0_181 = arith.constant 0 : index
    %c0_182 = arith.constant 0 : index
    %c0_183 = arith.constant 0 : index
    %219 = vector.load %arg17[%c0_181, %c0_182, %c0_183] : memref<2x1x512xf32, #tpu.memory_space<vmem>>, vector<1x1x512xf32>
    %220 = vector.shape_cast %219 : vector<1x1x512xf32> to vector<1x512xf32>
    %221 = vector.broadcast %220 : vector<1x512xf32> to vector<5x512xf32>
    %222 = arith.addf %218, %221 : vector<5x512xf32>
    %cst_184 = arith.constant 5.000000e-01 : f32
    %223 = vector.broadcast %cst_184 : f32 to vector<5x512xf32>
    %224 = arith.mulf %223, %222 : vector<5x512xf32>
    %cst_185 = arith.constant 0.707106769 : f32
    %225 = vector.broadcast %cst_185 : f32 to vector<5x512xf32>
    %226 = arith.mulf %222, %225 : vector<5x512xf32>
    %cst_186 = arith.constant 0.000000e+00 : f32
    %227 = vector.broadcast %cst_186 : f32 to vector<5x512xf32>
    %228 = arith.cmpf oge, %226, %227 : vector<5x512xf32>
    %cst_187 = arith.constant 1.000000e+00 : f32
    %cst_188 = arith.constant -1.000000e+00 : f32
    %229 = vector.broadcast %cst_187 : f32 to vector<5x512xf32>
    %230 = vector.broadcast %cst_188 : f32 to vector<5x512xf32>
    %231 = arith.select %228, %229, %230 : vector<5x512xi1>, vector<5x512xf32>
    %232 = math.absf %226 : vector<5x512xf32>
    %cst_189 = arith.constant 0.327591091 : f32
    %233 = vector.broadcast %cst_189 : f32 to vector<5x512xf32>
    %234 = arith.mulf %233, %232 : vector<5x512xf32>
    %cst_190 = arith.constant 1.000000e+00 : f32
    %235 = vector.broadcast %cst_190 : f32 to vector<5x512xf32>
    %236 = arith.addf %235, %234 : vector<5x512xf32>
    %cst_191 = arith.constant 1.000000e+00 : f32
    %237 = vector.broadcast %cst_191 : f32 to vector<5x512xf32>
    %238 = arith.divf %237, %236 : vector<5x512xf32>
    %cst_192 = arith.constant 1.06140542 : f32
    %239 = vector.broadcast %cst_192 : f32 to vector<5x512xf32>
    %240 = arith.mulf %239, %238 : vector<5x512xf32>
    %cst_193 = arith.constant -1.45315206 : f32
    %241 = vector.broadcast %cst_193 : f32 to vector<5x512xf32>
    %242 = arith.addf %240, %241 : vector<5x512xf32>
    %243 = arith.mulf %242, %238 : vector<5x512xf32>
    %cst_194 = arith.constant 1.42141378 : f32
    %244 = vector.broadcast %cst_194 : f32 to vector<5x512xf32>
    %245 = arith.addf %243, %244 : vector<5x512xf32>
    %246 = arith.mulf %245, %238 : vector<5x512xf32>
    %cst_195 = arith.constant -0.284496725 : f32
    %247 = vector.broadcast %cst_195 : f32 to vector<5x512xf32>
    %248 = arith.addf %246, %247 : vector<5x512xf32>
    %249 = arith.mulf %248, %238 : vector<5x512xf32>
    %cst_196 = arith.constant 0.254829586 : f32
    %250 = vector.broadcast %cst_196 : f32 to vector<5x512xf32>
    %251 = arith.addf %249, %250 : vector<5x512xf32>
    %252 = arith.mulf %251, %238 : vector<5x512xf32>
    %cst_197 = arith.constant 0.000000e+00 : f32
    %253 = vector.broadcast %cst_197 : f32 to vector<5x512xf32>
    %254 = arith.subf %253, %232 : vector<5x512xf32>
    %255 = arith.mulf %254, %232 : vector<5x512xf32>
    %256 = math.exp %255 : vector<5x512xf32>
    %257 = arith.mulf %252, %256 : vector<5x512xf32>
    %cst_198 = arith.constant 1.000000e+00 : f32
    %258 = vector.broadcast %cst_198 : f32 to vector<5x512xf32>
    %259 = arith.subf %258, %257 : vector<5x512xf32>
    %260 = arith.mulf %231, %259 : vector<5x512xf32>
    %cst_199 = arith.constant 1.000000e+00 : f32
    %261 = vector.broadcast %cst_199 : f32 to vector<5x512xf32>
    %262 = arith.addf %261, %260 : vector<5x512xf32>
    %263 = arith.mulf %224, %262 : vector<5x512xf32>
    %c0_200 = arith.constant 0 : index
    %c0_201 = arith.constant 0 : index
    %c0_202 = arith.constant 0 : index
    %264 = vector.load %arg18[%c0_200, %c0_201, %c0_202] : memref<2x512x128xf32, #tpu.memory_space<vmem>>, vector<1x512x128xf32>
    %265 = vector.shape_cast %264 : vector<1x512x128xf32> to vector<512x128xf32>
    %cst_203 = arith.constant dense<0.000000e+00> : vector<5x128xf32>
    %266 = tpu.matmul %263, %265, %cst_203 {dimension_numbers = #tpu.dot_dimension_numbers<[1], [0], [0], [1], [0, 0, 1, 1], [], []>} : vector<5x512xf32>, vector<512x128xf32>, vector<5x128xf32> -> vector<5x128xf32>
    %c0_204 = arith.constant 0 : index
    %c0_205 = arith.constant 0 : index
    %c0_206 = arith.constant 0 : index
    %267 = vector.load %arg19[%c0_204, %c0_205, %c0_206] : memref<2x1x128xf32, #tpu.memory_space<vmem>>, vector<1x1x128xf32>
    %268 = vector.shape_cast %267 : vector<1x1x128xf32> to vector<1x128xf32>
    %269 = vector.broadcast %268 : vector<1x128xf32> to vector<5x128xf32>
    %270 = arith.addf %266, %269 : vector<5x128xf32>
    %271 = arith.addf %191, %270 : vector<5x128xf32>
    %c1_207 = arith.constant 1 : index
    %c0_208 = arith.constant 0 : index
    %c0_209 = arith.constant 0 : index
    %272 = vector.load %arg4[%c1_207, %c0_208, %c0_209] : memref<2x1x128xf32, #tpu.memory_space<vmem>>, vector<1x1x128xf32>
    %273 = vector.shape_cast %272 : vector<1x1x128xf32> to vector<1x128xf32>
    %c1_210 = arith.constant 1 : index
    %c0_211 = arith.constant 0 : index
    %c0_212 = arith.constant 0 : index
    %274 = vector.load %arg5[%c1_210, %c0_211, %c0_212] : memref<2x1x128xf32, #tpu.memory_space<vmem>>, vector<1x1x128xf32>
    %275 = vector.shape_cast %274 : vector<1x1x128xf32> to vector<1x128xf32>
    %cst_213 = arith.constant dense<0.000000e+00> : vector<5xf32>
    %276 = vector.multi_reduction <add>, %271, %cst_213 [1] : vector<5x128xf32> to vector<5xf32>
    %277 = vector.shape_cast %276 : vector<5xf32> to vector<5x1xf32>
    %cst_214 = arith.constant 1.280000e+02 : f32
    %278 = vector.broadcast %cst_214 : f32 to vector<5x1xf32>
    %279 = arith.divf %277, %278 : vector<5x1xf32>
    %280 = vector.broadcast %279 : vector<5x1xf32> to vector<5x128xf32>
    %281 = arith.subf %271, %280 : vector<5x128xf32>
    %282 = arith.mulf %281, %281 : vector<5x128xf32>
    %cst_215 = arith.constant dense<0.000000e+00> : vector<5xf32>
    %283 = vector.multi_reduction <add>, %282, %cst_215 [1] : vector<5x128xf32> to vector<5xf32>
    %284 = vector.shape_cast %283 : vector<5xf32> to vector<5x1xf32>
    %cst_216 = arith.constant 1.280000e+02 : f32
    %285 = vector.broadcast %cst_216 : f32 to vector<5x1xf32>
    %286 = arith.divf %284, %285 : vector<5x1xf32>
    %cst_217 = arith.constant 9.99999997E-7 : f32
    %287 = vector.broadcast %cst_217 : f32 to vector<5x1xf32>
    %288 = arith.addf %286, %287 : vector<5x1xf32>
    %289 = math.rsqrt %288 : vector<5x1xf32>
    %290 = vector.broadcast %289 : vector<5x1xf32> to vector<5x128xf32>
    %291 = arith.mulf %281, %290 : vector<5x128xf32>
    %292 = vector.broadcast %273 : vector<1x128xf32> to vector<5x128xf32>
    %293 = arith.mulf %291, %292 : vector<5x128xf32>
    %294 = vector.broadcast %275 : vector<1x128xf32> to vector<5x128xf32>
    %295 = arith.addf %293, %294 : vector<5x128xf32>
    %cst_218 = arith.constant 0.000000e+00 : f32
    %296 = vector.broadcast %cst_218 : f32 to vector<5x128xf32>
    %c1_219 = arith.constant 1 : index
    %c0_220 = arith.constant 0 : index
    %c0_221 = arith.constant 0 : index
    %c0_222 = arith.constant 0 : index
    %297 = vector.load %arg6[%c1_219, %c0_220, %c0_221, %c0_222] : memref<2x4x128x32xf32, #tpu.memory_space<vmem>>, vector<1x1x128x32xf32>
    %298 = vector.shape_cast %297 : vector<1x1x128x32xf32> to vector<128x32xf32>
    %cst_223 = arith.constant dense<0.000000e+00> : vector<5x32xf32>
    %299 = tpu.matmul %295, %298, %cst_223 {dimension_numbers = #tpu.dot_dimension_numbers<[1], [0], [0], [1], [0, 0, 1, 1], [], []>} : vector<5x128xf32>, vector<128x32xf32>, vector<5x32xf32> -> vector<5x32xf32>
    %c1_224 = arith.constant 1 : index
    %c0_225 = arith.constant 0 : index
    %c0_226 = arith.constant 0 : index
    %c0_227 = arith.constant 0 : index
    %300 = vector.load %arg7[%c1_224, %c0_225, %c0_226, %c0_227] : memref<2x4x1x32xf32, #tpu.memory_space<vmem>>, vector<1x1x1x32xf32>
    %301 = vector.shape_cast %300 : vector<1x1x1x32xf32> to vector<1x32xf32>
    %302 = vector.broadcast %301 : vector<1x32xf32> to vector<5x32xf32>
    %303 = arith.addf %299, %302 : vector<5x32xf32>
    %cst_228 = arith.constant 0.176776692 : f32
    %304 = vector.broadcast %cst_228 : f32 to vector<5x32xf32>
    %305 = arith.mulf %303, %304 : vector<5x32xf32>
    %c1_229 = arith.constant 1 : index
    %c0_230 = arith.constant 0 : index
    %c0_231 = arith.constant 0 : index
    %c0_232 = arith.constant 0 : index
    %306 = vector.load %arg8[%c1_229, %c0_230, %c0_231, %c0_232] : memref<2x4x128x32xf32, #tpu.memory_space<vmem>>, vector<1x1x128x32xf32>
    %307 = vector.shape_cast %306 : vector<1x1x128x32xf32> to vector<128x32xf32>
    %cst_233 = arith.constant dense<0.000000e+00> : vector<5x32xf32>
    %308 = tpu.matmul %295, %307, %cst_233 {dimension_numbers = #tpu.dot_dimension_numbers<[1], [0], [0], [1], [0, 0, 1, 1], [], []>} : vector<5x128xf32>, vector<128x32xf32>, vector<5x32xf32> -> vector<5x32xf32>
    %c1_234 = arith.constant 1 : index
    %c0_235 = arith.constant 0 : index
    %c0_236 = arith.constant 0 : index
    %c0_237 = arith.constant 0 : index
    %309 = vector.load %arg9[%c1_234, %c0_235, %c0_236, %c0_237] : memref<2x4x1x32xf32, #tpu.memory_space<vmem>>, vector<1x1x1x32xf32>
    %310 = vector.shape_cast %309 : vector<1x1x1x32xf32> to vector<1x32xf32>
    %311 = vector.broadcast %310 : vector<1x32xf32> to vector<5x32xf32>
    %312 = arith.addf %308, %311 : vector<5x32xf32>
    %c1_238 = arith.constant 1 : index
    %c0_239 = arith.constant 0 : index
    %c0_240 = arith.constant 0 : index
    %c0_241 = arith.constant 0 : index
    %313 = vector.load %arg10[%c1_238, %c0_239, %c0_240, %c0_241] : memref<2x4x128x32xf32, #tpu.memory_space<vmem>>, vector<1x1x128x32xf32>
    %314 = vector.shape_cast %313 : vector<1x1x128x32xf32> to vector<128x32xf32>
    %cst_242 = arith.constant dense<0.000000e+00> : vector<5x32xf32>
    %315 = tpu.matmul %295, %314, %cst_242 {dimension_numbers = #tpu.dot_dimension_numbers<[1], [0], [0], [1], [0, 0, 1, 1], [], []>} : vector<5x128xf32>, vector<128x32xf32>, vector<5x32xf32> -> vector<5x32xf32>
    %c1_243 = arith.constant 1 : index
    %c0_244 = arith.constant 0 : index
    %c0_245 = arith.constant 0 : index
    %c0_246 = arith.constant 0 : index
    %316 = vector.load %arg11[%c1_243, %c0_244, %c0_245, %c0_246] : memref<2x4x1x32xf32, #tpu.memory_space<vmem>>, vector<1x1x1x32xf32>
    %317 = vector.shape_cast %316 : vector<1x1x1x32xf32> to vector<1x32xf32>
    %318 = vector.broadcast %317 : vector<1x32xf32> to vector<5x32xf32>
    %319 = arith.addf %315, %318 : vector<5x32xf32>
    %320 = tpu.transpose %312, [1, 0] : vector<5x32xf32> -> vector<32x5xf32>
    %cst_247 = arith.constant dense<0.000000e+00> : vector<5x5xf32>
    %321 = tpu.matmul %305, %320, %cst_247 {dimension_numbers = #tpu.dot_dimension_numbers<[1], [0], [0], [1], [0, 0, 1, 1], [], []>} : vector<5x32xf32>, vector<32x5xf32>, vector<5x5xf32> -> vector<5x5xf32>
    %cst_248 = arith.constant dense<0xFF800000> : vector<5xf32>
    %322 = vector.multi_reduction <maximumf>, %321, %cst_248 [1] : vector<5x5xf32> to vector<5xf32>
    %323 = vector.shape_cast %322 : vector<5xf32> to vector<5x1xf32>
    %324 = vector.broadcast %323 : vector<5x1xf32> to vector<5x5xf32>
    %325 = arith.subf %321, %324 : vector<5x5xf32>
    %326 = math.exp %325 : vector<5x5xf32>
    %cst_249 = arith.constant dense<0.000000e+00> : vector<5xf32>
    %327 = vector.multi_reduction <add>, %326, %cst_249 [1] : vector<5x5xf32> to vector<5xf32>
    %328 = vector.shape_cast %327 : vector<5xf32> to vector<5x1xf32>
    %329 = vector.broadcast %328 : vector<5x1xf32> to vector<5x5xf32>
    %330 = arith.divf %326, %329 : vector<5x5xf32>
    %cst_250 = arith.constant dense<0.000000e+00> : vector<5x32xf32>
    %331 = tpu.matmul %330, %319, %cst_250 {dimension_numbers = #tpu.dot_dimension_numbers<[1], [0], [0], [1], [0, 0, 1, 1], [], []>} : vector<5x5xf32>, vector<5x32xf32>, vector<5x32xf32> -> vector<5x32xf32>
    %c1_251 = arith.constant 1 : index
    %c0_252 = arith.constant 0 : index
    %c0_253 = arith.constant 0 : index
    %c0_254 = arith.constant 0 : index
    %332 = vector.load %arg12[%c1_251, %c0_252, %c0_253, %c0_254] : memref<2x4x32x128xf32, #tpu.memory_space<vmem>>, vector<1x1x32x128xf32>
    %333 = vector.shape_cast %332 : vector<1x1x32x128xf32> to vector<32x128xf32>
    %cst_255 = arith.constant dense<0.000000e+00> : vector<5x128xf32>
    %334 = tpu.matmul %331, %333, %cst_255 {dimension_numbers = #tpu.dot_dimension_numbers<[1], [0], [0], [1], [0, 0, 1, 1], [], []>} : vector<5x32xf32>, vector<32x128xf32>, vector<5x128xf32> -> vector<5x128xf32>
    %335 = arith.addf %296, %334 : vector<5x128xf32>
    %c1_256 = arith.constant 1 : index
    %c1_257 = arith.constant 1 : index
    %c0_258 = arith.constant 0 : index
    %c0_259 = arith.constant 0 : index
    %336 = vector.load %arg6[%c1_256, %c1_257, %c0_258, %c0_259] : memref<2x4x128x32xf32, #tpu.memory_space<vmem>>, vector<1x1x128x32xf32>
    %337 = vector.shape_cast %336 : vector<1x1x128x32xf32> to vector<128x32xf32>
    %cst_260 = arith.constant dense<0.000000e+00> : vector<5x32xf32>
    %338 = tpu.matmul %295, %337, %cst_260 {dimension_numbers = #tpu.dot_dimension_numbers<[1], [0], [0], [1], [0, 0, 1, 1], [], []>} : vector<5x128xf32>, vector<128x32xf32>, vector<5x32xf32> -> vector<5x32xf32>
    %c1_261 = arith.constant 1 : index
    %c1_262 = arith.constant 1 : index
    %c0_263 = arith.constant 0 : index
    %c0_264 = arith.constant 0 : index
    %339 = vector.load %arg7[%c1_261, %c1_262, %c0_263, %c0_264] : memref<2x4x1x32xf32, #tpu.memory_space<vmem>>, vector<1x1x1x32xf32>
    %340 = vector.shape_cast %339 : vector<1x1x1x32xf32> to vector<1x32xf32>
    %341 = vector.broadcast %340 : vector<1x32xf32> to vector<5x32xf32>
    %342 = arith.addf %338, %341 : vector<5x32xf32>
    %cst_265 = arith.constant 0.176776692 : f32
    %343 = vector.broadcast %cst_265 : f32 to vector<5x32xf32>
    %344 = arith.mulf %342, %343 : vector<5x32xf32>
    %c1_266 = arith.constant 1 : index
    %c1_267 = arith.constant 1 : index
    %c0_268 = arith.constant 0 : index
    %c0_269 = arith.constant 0 : index
    %345 = vector.load %arg8[%c1_266, %c1_267, %c0_268, %c0_269] : memref<2x4x128x32xf32, #tpu.memory_space<vmem>>, vector<1x1x128x32xf32>
    %346 = vector.shape_cast %345 : vector<1x1x128x32xf32> to vector<128x32xf32>
    %cst_270 = arith.constant dense<0.000000e+00> : vector<5x32xf32>
    %347 = tpu.matmul %295, %346, %cst_270 {dimension_numbers = #tpu.dot_dimension_numbers<[1], [0], [0], [1], [0, 0, 1, 1], [], []>} : vector<5x128xf32>, vector<128x32xf32>, vector<5x32xf32> -> vector<5x32xf32>
    %c1_271 = arith.constant 1 : index
    %c1_272 = arith.constant 1 : index
    %c0_273 = arith.constant 0 : index
    %c0_274 = arith.constant 0 : index
    %348 = vector.load %arg9[%c1_271, %c1_272, %c0_273, %c0_274] : memref<2x4x1x32xf32, #tpu.memory_space<vmem>>, vector<1x1x1x32xf32>
    %349 = vector.shape_cast %348 : vector<1x1x1x32xf32> to vector<1x32xf32>
    %350 = vector.broadcast %349 : vector<1x32xf32> to vector<5x32xf32>
    %351 = arith.addf %347, %350 : vector<5x32xf32>
    %c1_275 = arith.constant 1 : index
    %c1_276 = arith.constant 1 : index
    %c0_277 = arith.constant 0 : index
    %c0_278 = arith.constant 0 : index
    %352 = vector.load %arg10[%c1_275, %c1_276, %c0_277, %c0_278] : memref<2x4x128x32xf32, #tpu.memory_space<vmem>>, vector<1x1x128x32xf32>
    %353 = vector.shape_cast %352 : vector<1x1x128x32xf32> to vector<128x32xf32>
    %cst_279 = arith.constant dense<0.000000e+00> : vector<5x32xf32>
    %354 = tpu.matmul %295, %353, %cst_279 {dimension_numbers = #tpu.dot_dimension_numbers<[1], [0], [0], [1], [0, 0, 1, 1], [], []>} : vector<5x128xf32>, vector<128x32xf32>, vector<5x32xf32> -> vector<5x32xf32>
    %c1_280 = arith.constant 1 : index
    %c1_281 = arith.constant 1 : index
    %c0_282 = arith.constant 0 : index
    %c0_283 = arith.constant 0 : index
    %355 = vector.load %arg11[%c1_280, %c1_281, %c0_282, %c0_283] : memref<2x4x1x32xf32, #tpu.memory_space<vmem>>, vector<1x1x1x32xf32>
    %356 = vector.shape_cast %355 : vector<1x1x1x32xf32> to vector<1x32xf32>
    %357 = vector.broadcast %356 : vector<1x32xf32> to vector<5x32xf32>
    %358 = arith.addf %354, %357 : vector<5x32xf32>
    %359 = tpu.transpose %351, [1, 0] : vector<5x32xf32> -> vector<32x5xf32>
    %cst_284 = arith.constant dense<0.000000e+00> : vector<5x5xf32>
    %360 = tpu.matmul %344, %359, %cst_284 {dimension_numbers = #tpu.dot_dimension_numbers<[1], [0], [0], [1], [0, 0, 1, 1], [], []>} : vector<5x32xf32>, vector<32x5xf32>, vector<5x5xf32> -> vector<5x5xf32>
    %cst_285 = arith.constant dense<0xFF800000> : vector<5xf32>
    %361 = vector.multi_reduction <maximumf>, %360, %cst_285 [1] : vector<5x5xf32> to vector<5xf32>
    %362 = vector.shape_cast %361 : vector<5xf32> to vector<5x1xf32>
    %363 = vector.broadcast %362 : vector<5x1xf32> to vector<5x5xf32>
    %364 = arith.subf %360, %363 : vector<5x5xf32>
    %365 = math.exp %364 : vector<5x5xf32>
    %cst_286 = arith.constant dense<0.000000e+00> : vector<5xf32>
    %366 = vector.multi_reduction <add>, %365, %cst_286 [1] : vector<5x5xf32> to vector<5xf32>
    %367 = vector.shape_cast %366 : vector<5xf32> to vector<5x1xf32>
    %368 = vector.broadcast %367 : vector<5x1xf32> to vector<5x5xf32>
    %369 = arith.divf %365, %368 : vector<5x5xf32>
    %cst_287 = arith.constant dense<0.000000e+00> : vector<5x32xf32>
    %370 = tpu.matmul %369, %358, %cst_287 {dimension_numbers = #tpu.dot_dimension_numbers<[1], [0], [0], [1], [0, 0, 1, 1], [], []>} : vector<5x5xf32>, vector<5x32xf32>, vector<5x32xf32> -> vector<5x32xf32>
    %c1_288 = arith.constant 1 : index
    %c1_289 = arith.constant 1 : index
    %c0_290 = arith.constant 0 : index
    %c0_291 = arith.constant 0 : index
    %371 = vector.load %arg12[%c1_288, %c1_289, %c0_290, %c0_291] : memref<2x4x32x128xf32, #tpu.memory_space<vmem>>, vector<1x1x32x128xf32>
    %372 = vector.shape_cast %371 : vector<1x1x32x128xf32> to vector<32x128xf32>
    %cst_292 = arith.constant dense<0.000000e+00> : vector<5x128xf32>
    %373 = tpu.matmul %370, %372, %cst_292 {dimension_numbers = #tpu.dot_dimension_numbers<[1], [0], [0], [1], [0, 0, 1, 1], [], []>} : vector<5x32xf32>, vector<32x128xf32>, vector<5x128xf32> -> vector<5x128xf32>
    %374 = arith.addf %335, %373 : vector<5x128xf32>
    %c1_293 = arith.constant 1 : index
    %c2_294 = arith.constant 2 : index
    %c0_295 = arith.constant 0 : index
    %c0_296 = arith.constant 0 : index
    %375 = vector.load %arg6[%c1_293, %c2_294, %c0_295, %c0_296] : memref<2x4x128x32xf32, #tpu.memory_space<vmem>>, vector<1x1x128x32xf32>
    %376 = vector.shape_cast %375 : vector<1x1x128x32xf32> to vector<128x32xf32>
    %cst_297 = arith.constant dense<0.000000e+00> : vector<5x32xf32>
    %377 = tpu.matmul %295, %376, %cst_297 {dimension_numbers = #tpu.dot_dimension_numbers<[1], [0], [0], [1], [0, 0, 1, 1], [], []>} : vector<5x128xf32>, vector<128x32xf32>, vector<5x32xf32> -> vector<5x32xf32>
    %c1_298 = arith.constant 1 : index
    %c2_299 = arith.constant 2 : index
    %c0_300 = arith.constant 0 : index
    %c0_301 = arith.constant 0 : index
    %378 = vector.load %arg7[%c1_298, %c2_299, %c0_300, %c0_301] : memref<2x4x1x32xf32, #tpu.memory_space<vmem>>, vector<1x1x1x32xf32>
    %379 = vector.shape_cast %378 : vector<1x1x1x32xf32> to vector<1x32xf32>
    %380 = vector.broadcast %379 : vector<1x32xf32> to vector<5x32xf32>
    %381 = arith.addf %377, %380 : vector<5x32xf32>
    %cst_302 = arith.constant 0.176776692 : f32
    %382 = vector.broadcast %cst_302 : f32 to vector<5x32xf32>
    %383 = arith.mulf %381, %382 : vector<5x32xf32>
    %c1_303 = arith.constant 1 : index
    %c2_304 = arith.constant 2 : index
    %c0_305 = arith.constant 0 : index
    %c0_306 = arith.constant 0 : index
    %384 = vector.load %arg8[%c1_303, %c2_304, %c0_305, %c0_306] : memref<2x4x128x32xf32, #tpu.memory_space<vmem>>, vector<1x1x128x32xf32>
    %385 = vector.shape_cast %384 : vector<1x1x128x32xf32> to vector<128x32xf32>
    %cst_307 = arith.constant dense<0.000000e+00> : vector<5x32xf32>
    %386 = tpu.matmul %295, %385, %cst_307 {dimension_numbers = #tpu.dot_dimension_numbers<[1], [0], [0], [1], [0, 0, 1, 1], [], []>} : vector<5x128xf32>, vector<128x32xf32>, vector<5x32xf32> -> vector<5x32xf32>
    %c1_308 = arith.constant 1 : index
    %c2_309 = arith.constant 2 : index
    %c0_310 = arith.constant 0 : index
    %c0_311 = arith.constant 0 : index
    %387 = vector.load %arg9[%c1_308, %c2_309, %c0_310, %c0_311] : memref<2x4x1x32xf32, #tpu.memory_space<vmem>>, vector<1x1x1x32xf32>
    %388 = vector.shape_cast %387 : vector<1x1x1x32xf32> to vector<1x32xf32>
    %389 = vector.broadcast %388 : vector<1x32xf32> to vector<5x32xf32>
    %390 = arith.addf %386, %389 : vector<5x32xf32>
    %c1_312 = arith.constant 1 : index
    %c2_313 = arith.constant 2 : index
    %c0_314 = arith.constant 0 : index
    %c0_315 = arith.constant 0 : index
    %391 = vector.load %arg10[%c1_312, %c2_313, %c0_314, %c0_315] : memref<2x4x128x32xf32, #tpu.memory_space<vmem>>, vector<1x1x128x32xf32>
    %392 = vector.shape_cast %391 : vector<1x1x128x32xf32> to vector<128x32xf32>
    %cst_316 = arith.constant dense<0.000000e+00> : vector<5x32xf32>
    %393 = tpu.matmul %295, %392, %cst_316 {dimension_numbers = #tpu.dot_dimension_numbers<[1], [0], [0], [1], [0, 0, 1, 1], [], []>} : vector<5x128xf32>, vector<128x32xf32>, vector<5x32xf32> -> vector<5x32xf32>
    %c1_317 = arith.constant 1 : index
    %c2_318 = arith.constant 2 : index
    %c0_319 = arith.constant 0 : index
    %c0_320 = arith.constant 0 : index
    %394 = vector.load %arg11[%c1_317, %c2_318, %c0_319, %c0_320] : memref<2x4x1x32xf32, #tpu.memory_space<vmem>>, vector<1x1x1x32xf32>
    %395 = vector.shape_cast %394 : vector<1x1x1x32xf32> to vector<1x32xf32>
    %396 = vector.broadcast %395 : vector<1x32xf32> to vector<5x32xf32>
    %397 = arith.addf %393, %396 : vector<5x32xf32>
    %398 = tpu.transpose %390, [1, 0] : vector<5x32xf32> -> vector<32x5xf32>
    %cst_321 = arith.constant dense<0.000000e+00> : vector<5x5xf32>
    %399 = tpu.matmul %383, %398, %cst_321 {dimension_numbers = #tpu.dot_dimension_numbers<[1], [0], [0], [1], [0, 0, 1, 1], [], []>} : vector<5x32xf32>, vector<32x5xf32>, vector<5x5xf32> -> vector<5x5xf32>
    %cst_322 = arith.constant dense<0xFF800000> : vector<5xf32>
    %400 = vector.multi_reduction <maximumf>, %399, %cst_322 [1] : vector<5x5xf32> to vector<5xf32>
    %401 = vector.shape_cast %400 : vector<5xf32> to vector<5x1xf32>
    %402 = vector.broadcast %401 : vector<5x1xf32> to vector<5x5xf32>
    %403 = arith.subf %399, %402 : vector<5x5xf32>
    %404 = math.exp %403 : vector<5x5xf32>
    %cst_323 = arith.constant dense<0.000000e+00> : vector<5xf32>
    %405 = vector.multi_reduction <add>, %404, %cst_323 [1] : vector<5x5xf32> to vector<5xf32>
    %406 = vector.shape_cast %405 : vector<5xf32> to vector<5x1xf32>
    %407 = vector.broadcast %406 : vector<5x1xf32> to vector<5x5xf32>
    %408 = arith.divf %404, %407 : vector<5x5xf32>
    %cst_324 = arith.constant dense<0.000000e+00> : vector<5x32xf32>
    %409 = tpu.matmul %408, %397, %cst_324 {dimension_numbers = #tpu.dot_dimension_numbers<[1], [0], [0], [1], [0, 0, 1, 1], [], []>} : vector<5x5xf32>, vector<5x32xf32>, vector<5x32xf32> -> vector<5x32xf32>
    %c1_325 = arith.constant 1 : index
    %c2_326 = arith.constant 2 : index
    %c0_327 = arith.constant 0 : index
    %c0_328 = arith.constant 0 : index
    %410 = vector.load %arg12[%c1_325, %c2_326, %c0_327, %c0_328] : memref<2x4x32x128xf32, #tpu.memory_space<vmem>>, vector<1x1x32x128xf32>
    %411 = vector.shape_cast %410 : vector<1x1x32x128xf32> to vector<32x128xf32>
    %cst_329 = arith.constant dense<0.000000e+00> : vector<5x128xf32>
    %412 = tpu.matmul %409, %411, %cst_329 {dimension_numbers = #tpu.dot_dimension_numbers<[1], [0], [0], [1], [0, 0, 1, 1], [], []>} : vector<5x32xf32>, vector<32x128xf32>, vector<5x128xf32> -> vector<5x128xf32>
    %413 = arith.addf %374, %412 : vector<5x128xf32>
    %c1_330 = arith.constant 1 : index
    %c3_331 = arith.constant 3 : index
    %c0_332 = arith.constant 0 : index
    %c0_333 = arith.constant 0 : index
    %414 = vector.load %arg6[%c1_330, %c3_331, %c0_332, %c0_333] : memref<2x4x128x32xf32, #tpu.memory_space<vmem>>, vector<1x1x128x32xf32>
    %415 = vector.shape_cast %414 : vector<1x1x128x32xf32> to vector<128x32xf32>
    %cst_334 = arith.constant dense<0.000000e+00> : vector<5x32xf32>
    %416 = tpu.matmul %295, %415, %cst_334 {dimension_numbers = #tpu.dot_dimension_numbers<[1], [0], [0], [1], [0, 0, 1, 1], [], []>} : vector<5x128xf32>, vector<128x32xf32>, vector<5x32xf32> -> vector<5x32xf32>
    %c1_335 = arith.constant 1 : index
    %c3_336 = arith.constant 3 : index
    %c0_337 = arith.constant 0 : index
    %c0_338 = arith.constant 0 : index
    %417 = vector.load %arg7[%c1_335, %c3_336, %c0_337, %c0_338] : memref<2x4x1x32xf32, #tpu.memory_space<vmem>>, vector<1x1x1x32xf32>
    %418 = vector.shape_cast %417 : vector<1x1x1x32xf32> to vector<1x32xf32>
    %419 = vector.broadcast %418 : vector<1x32xf32> to vector<5x32xf32>
    %420 = arith.addf %416, %419 : vector<5x32xf32>
    %cst_339 = arith.constant 0.176776692 : f32
    %421 = vector.broadcast %cst_339 : f32 to vector<5x32xf32>
    %422 = arith.mulf %420, %421 : vector<5x32xf32>
    %c1_340 = arith.constant 1 : index
    %c3_341 = arith.constant 3 : index
    %c0_342 = arith.constant 0 : index
    %c0_343 = arith.constant 0 : index
    %423 = vector.load %arg8[%c1_340, %c3_341, %c0_342, %c0_343] : memref<2x4x128x32xf32, #tpu.memory_space<vmem>>, vector<1x1x128x32xf32>
    %424 = vector.shape_cast %423 : vector<1x1x128x32xf32> to vector<128x32xf32>
    %cst_344 = arith.constant dense<0.000000e+00> : vector<5x32xf32>
    %425 = tpu.matmul %295, %424, %cst_344 {dimension_numbers = #tpu.dot_dimension_numbers<[1], [0], [0], [1], [0, 0, 1, 1], [], []>} : vector<5x128xf32>, vector<128x32xf32>, vector<5x32xf32> -> vector<5x32xf32>
    %c1_345 = arith.constant 1 : index
    %c3_346 = arith.constant 3 : index
    %c0_347 = arith.constant 0 : index
    %c0_348 = arith.constant 0 : index
    %426 = vector.load %arg9[%c1_345, %c3_346, %c0_347, %c0_348] : memref<2x4x1x32xf32, #tpu.memory_space<vmem>>, vector<1x1x1x32xf32>
    %427 = vector.shape_cast %426 : vector<1x1x1x32xf32> to vector<1x32xf32>
    %428 = vector.broadcast %427 : vector<1x32xf32> to vector<5x32xf32>
    %429 = arith.addf %425, %428 : vector<5x32xf32>
    %c1_349 = arith.constant 1 : index
    %c3_350 = arith.constant 3 : index
    %c0_351 = arith.constant 0 : index
    %c0_352 = arith.constant 0 : index
    %430 = vector.load %arg10[%c1_349, %c3_350, %c0_351, %c0_352] : memref<2x4x128x32xf32, #tpu.memory_space<vmem>>, vector<1x1x128x32xf32>
    %431 = vector.shape_cast %430 : vector<1x1x128x32xf32> to vector<128x32xf32>
    %cst_353 = arith.constant dense<0.000000e+00> : vector<5x32xf32>
    %432 = tpu.matmul %295, %431, %cst_353 {dimension_numbers = #tpu.dot_dimension_numbers<[1], [0], [0], [1], [0, 0, 1, 1], [], []>} : vector<5x128xf32>, vector<128x32xf32>, vector<5x32xf32> -> vector<5x32xf32>
    %c1_354 = arith.constant 1 : index
    %c3_355 = arith.constant 3 : index
    %c0_356 = arith.constant 0 : index
    %c0_357 = arith.constant 0 : index
    %433 = vector.load %arg11[%c1_354, %c3_355, %c0_356, %c0_357] : memref<2x4x1x32xf32, #tpu.memory_space<vmem>>, vector<1x1x1x32xf32>
    %434 = vector.shape_cast %433 : vector<1x1x1x32xf32> to vector<1x32xf32>
    %435 = vector.broadcast %434 : vector<1x32xf32> to vector<5x32xf32>
    %436 = arith.addf %432, %435 : vector<5x32xf32>
    %437 = tpu.transpose %429, [1, 0] : vector<5x32xf32> -> vector<32x5xf32>
    %cst_358 = arith.constant dense<0.000000e+00> : vector<5x5xf32>
    %438 = tpu.matmul %422, %437, %cst_358 {dimension_numbers = #tpu.dot_dimension_numbers<[1], [0], [0], [1], [0, 0, 1, 1], [], []>} : vector<5x32xf32>, vector<32x5xf32>, vector<5x5xf32> -> vector<5x5xf32>
    %cst_359 = arith.constant dense<0xFF800000> : vector<5xf32>
    %439 = vector.multi_reduction <maximumf>, %438, %cst_359 [1] : vector<5x5xf32> to vector<5xf32>
    %440 = vector.shape_cast %439 : vector<5xf32> to vector<5x1xf32>
    %441 = vector.broadcast %440 : vector<5x1xf32> to vector<5x5xf32>
    %442 = arith.subf %438, %441 : vector<5x5xf32>
    %443 = math.exp %442 : vector<5x5xf32>
    %cst_360 = arith.constant dense<0.000000e+00> : vector<5xf32>
    %444 = vector.multi_reduction <add>, %443, %cst_360 [1] : vector<5x5xf32> to vector<5xf32>
    %445 = vector.shape_cast %444 : vector<5xf32> to vector<5x1xf32>
    %446 = vector.broadcast %445 : vector<5x1xf32> to vector<5x5xf32>
    %447 = arith.divf %443, %446 : vector<5x5xf32>
    %cst_361 = arith.constant dense<0.000000e+00> : vector<5x32xf32>
    %448 = tpu.matmul %447, %436, %cst_361 {dimension_numbers = #tpu.dot_dimension_numbers<[1], [0], [0], [1], [0, 0, 1, 1], [], []>} : vector<5x5xf32>, vector<5x32xf32>, vector<5x32xf32> -> vector<5x32xf32>
    %c1_362 = arith.constant 1 : index
    %c3_363 = arith.constant 3 : index
    %c0_364 = arith.constant 0 : index
    %c0_365 = arith.constant 0 : index
    %449 = vector.load %arg12[%c1_362, %c3_363, %c0_364, %c0_365] : memref<2x4x32x128xf32, #tpu.memory_space<vmem>>, vector<1x1x32x128xf32>
    %450 = vector.shape_cast %449 : vector<1x1x32x128xf32> to vector<32x128xf32>
    %cst_366 = arith.constant dense<0.000000e+00> : vector<5x128xf32>
    %451 = tpu.matmul %448, %450, %cst_366 {dimension_numbers = #tpu.dot_dimension_numbers<[1], [0], [0], [1], [0, 0, 1, 1], [], []>} : vector<5x32xf32>, vector<32x128xf32>, vector<5x128xf32> -> vector<5x128xf32>
    %452 = arith.addf %413, %451 : vector<5x128xf32>
    %453 = arith.addf %271, %452 : vector<5x128xf32>
    %c1_367 = arith.constant 1 : index
    %c0_368 = arith.constant 0 : index
    %c0_369 = arith.constant 0 : index
    %454 = vector.load %arg13[%c1_367, %c0_368, %c0_369] : memref<2x1x128xf32, #tpu.memory_space<vmem>>, vector<1x1x128xf32>
    %455 = vector.shape_cast %454 : vector<1x1x128xf32> to vector<1x128xf32>
    %456 = vector.broadcast %455 : vector<1x128xf32> to vector<5x128xf32>
    %457 = arith.addf %453, %456 : vector<5x128xf32>
    %c1_370 = arith.constant 1 : index
    %c0_371 = arith.constant 0 : index
    %c0_372 = arith.constant 0 : index
    %458 = vector.load %arg14[%c1_370, %c0_371, %c0_372] : memref<2x1x128xf32, #tpu.memory_space<vmem>>, vector<1x1x128xf32>
    %459 = vector.shape_cast %458 : vector<1x1x128xf32> to vector<1x128xf32>
    %c1_373 = arith.constant 1 : index
    %c0_374 = arith.constant 0 : index
    %c0_375 = arith.constant 0 : index
    %460 = vector.load %arg15[%c1_373, %c0_374, %c0_375] : memref<2x1x128xf32, #tpu.memory_space<vmem>>, vector<1x1x128xf32>
    %461 = vector.shape_cast %460 : vector<1x1x128xf32> to vector<1x128xf32>
    %cst_376 = arith.constant dense<0.000000e+00> : vector<5xf32>
    %462 = vector.multi_reduction <add>, %457, %cst_376 [1] : vector<5x128xf32> to vector<5xf32>
    %463 = vector.shape_cast %462 : vector<5xf32> to vector<5x1xf32>
    %cst_377 = arith.constant 1.280000e+02 : f32
    %464 = vector.broadcast %cst_377 : f32 to vector<5x1xf32>
    %465 = arith.divf %463, %464 : vector<5x1xf32>
    %466 = vector.broadcast %465 : vector<5x1xf32> to vector<5x128xf32>
    %467 = arith.subf %457, %466 : vector<5x128xf32>
    %468 = arith.mulf %467, %467 : vector<5x128xf32>
    %cst_378 = arith.constant dense<0.000000e+00> : vector<5xf32>
    %469 = vector.multi_reduction <add>, %468, %cst_378 [1] : vector<5x128xf32> to vector<5xf32>
    %470 = vector.shape_cast %469 : vector<5xf32> to vector<5x1xf32>
    %cst_379 = arith.constant 1.280000e+02 : f32
    %471 = vector.broadcast %cst_379 : f32 to vector<5x1xf32>
    %472 = arith.divf %470, %471 : vector<5x1xf32>
    %cst_380 = arith.constant 9.99999997E-7 : f32
    %473 = vector.broadcast %cst_380 : f32 to vector<5x1xf32>
    %474 = arith.addf %472, %473 : vector<5x1xf32>
    %475 = math.rsqrt %474 : vector<5x1xf32>
    %476 = vector.broadcast %475 : vector<5x1xf32> to vector<5x128xf32>
    %477 = arith.mulf %467, %476 : vector<5x128xf32>
    %478 = vector.broadcast %459 : vector<1x128xf32> to vector<5x128xf32>
    %479 = arith.mulf %477, %478 : vector<5x128xf32>
    %480 = vector.broadcast %461 : vector<1x128xf32> to vector<5x128xf32>
    %481 = arith.addf %479, %480 : vector<5x128xf32>
    %c1_381 = arith.constant 1 : index
    %c0_382 = arith.constant 0 : index
    %c0_383 = arith.constant 0 : index
    %482 = vector.load %arg16[%c1_381, %c0_382, %c0_383] : memref<2x128x512xf32, #tpu.memory_space<vmem>>, vector<1x128x512xf32>
    %483 = vector.shape_cast %482 : vector<1x128x512xf32> to vector<128x512xf32>
    %cst_384 = arith.constant dense<0.000000e+00> : vector<5x512xf32>
    %484 = tpu.matmul %481, %483, %cst_384 {dimension_numbers = #tpu.dot_dimension_numbers<[1], [0], [0], [1], [0, 0, 1, 1], [], []>} : vector<5x128xf32>, vector<128x512xf32>, vector<5x512xf32> -> vector<5x512xf32>
    %c1_385 = arith.constant 1 : index
    %c0_386 = arith.constant 0 : index
    %c0_387 = arith.constant 0 : index
    %485 = vector.load %arg17[%c1_385, %c0_386, %c0_387] : memref<2x1x512xf32, #tpu.memory_space<vmem>>, vector<1x1x512xf32>
    %486 = vector.shape_cast %485 : vector<1x1x512xf32> to vector<1x512xf32>
    %487 = vector.broadcast %486 : vector<1x512xf32> to vector<5x512xf32>
    %488 = arith.addf %484, %487 : vector<5x512xf32>
    %cst_388 = arith.constant 5.000000e-01 : f32
    %489 = vector.broadcast %cst_388 : f32 to vector<5x512xf32>
    %490 = arith.mulf %489, %488 : vector<5x512xf32>
    %cst_389 = arith.constant 0.707106769 : f32
    %491 = vector.broadcast %cst_389 : f32 to vector<5x512xf32>
    %492 = arith.mulf %488, %491 : vector<5x512xf32>
    %cst_390 = arith.constant 0.000000e+00 : f32
    %493 = vector.broadcast %cst_390 : f32 to vector<5x512xf32>
    %494 = arith.cmpf oge, %492, %493 : vector<5x512xf32>
    %cst_391 = arith.constant 1.000000e+00 : f32
    %cst_392 = arith.constant -1.000000e+00 : f32
    %495 = vector.broadcast %cst_391 : f32 to vector<5x512xf32>
    %496 = vector.broadcast %cst_392 : f32 to vector<5x512xf32>
    %497 = arith.select %494, %495, %496 : vector<5x512xi1>, vector<5x512xf32>
    %498 = math.absf %492 : vector<5x512xf32>
    %cst_393 = arith.constant 0.327591091 : f32
    %499 = vector.broadcast %cst_393 : f32 to vector<5x512xf32>
    %500 = arith.mulf %499, %498 : vector<5x512xf32>
    %cst_394 = arith.constant 1.000000e+00 : f32
    %501 = vector.broadcast %cst_394 : f32 to vector<5x512xf32>
    %502 = arith.addf %501, %500 : vector<5x512xf32>
    %cst_395 = arith.constant 1.000000e+00 : f32
    %503 = vector.broadcast %cst_395 : f32 to vector<5x512xf32>
    %504 = arith.divf %503, %502 : vector<5x512xf32>
    %cst_396 = arith.constant 1.06140542 : f32
    %505 = vector.broadcast %cst_396 : f32 to vector<5x512xf32>
    %506 = arith.mulf %505, %504 : vector<5x512xf32>
    %cst_397 = arith.constant -1.45315206 : f32
    %507 = vector.broadcast %cst_397 : f32 to vector<5x512xf32>
    %508 = arith.addf %506, %507 : vector<5x512xf32>
    %509 = arith.mulf %508, %504 : vector<5x512xf32>
    %cst_398 = arith.constant 1.42141378 : f32
    %510 = vector.broadcast %cst_398 : f32 to vector<5x512xf32>
    %511 = arith.addf %509, %510 : vector<5x512xf32>
    %512 = arith.mulf %511, %504 : vector<5x512xf32>
    %cst_399 = arith.constant -0.284496725 : f32
    %513 = vector.broadcast %cst_399 : f32 to vector<5x512xf32>
    %514 = arith.addf %512, %513 : vector<5x512xf32>
    %515 = arith.mulf %514, %504 : vector<5x512xf32>
    %cst_400 = arith.constant 0.254829586 : f32
    %516 = vector.broadcast %cst_400 : f32 to vector<5x512xf32>
    %517 = arith.addf %515, %516 : vector<5x512xf32>
    %518 = arith.mulf %517, %504 : vector<5x512xf32>
    %cst_401 = arith.constant 0.000000e+00 : f32
    %519 = vector.broadcast %cst_401 : f32 to vector<5x512xf32>
    %520 = arith.subf %519, %498 : vector<5x512xf32>
    %521 = arith.mulf %520, %498 : vector<5x512xf32>
    %522 = math.exp %521 : vector<5x512xf32>
    %523 = arith.mulf %518, %522 : vector<5x512xf32>
    %cst_402 = arith.constant 1.000000e+00 : f32
    %524 = vector.broadcast %cst_402 : f32 to vector<5x512xf32>
    %525 = arith.subf %524, %523 : vector<5x512xf32>
    %526 = arith.mulf %497, %525 : vector<5x512xf32>
    %cst_403 = arith.constant 1.000000e+00 : f32
    %527 = vector.broadcast %cst_403 : f32 to vector<5x512xf32>
    %528 = arith.addf %527, %526 : vector<5x512xf32>
    %529 = arith.mulf %490, %528 : vector<5x512xf32>
    %c1_404 = arith.constant 1 : index
    %c0_405 = arith.constant 0 : index
    %c0_406 = arith.constant 0 : index
    %530 = vector.load %arg18[%c1_404, %c0_405, %c0_406] : memref<2x512x128xf32, #tpu.memory_space<vmem>>, vector<1x512x128xf32>
    %531 = vector.shape_cast %530 : vector<1x512x128xf32> to vector<512x128xf32>
    %cst_407 = arith.constant dense<0.000000e+00> : vector<5x128xf32>
    %532 = tpu.matmul %529, %531, %cst_407 {dimension_numbers = #tpu.dot_dimension_numbers<[1], [0], [0], [1], [0, 0, 1, 1], [], []>} : vector<5x512xf32>, vector<512x128xf32>, vector<5x128xf32> -> vector<5x128xf32>
    %c1_408 = arith.constant 1 : index
    %c0_409 = arith.constant 0 : index
    %c0_410 = arith.constant 0 : index
    %533 = vector.load %arg19[%c1_408, %c0_409, %c0_410] : memref<2x1x128xf32, #tpu.memory_space<vmem>>, vector<1x1x128xf32>
    %534 = vector.shape_cast %533 : vector<1x1x128xf32> to vector<1x128xf32>
    %535 = vector.broadcast %534 : vector<1x128xf32> to vector<5x128xf32>
    %536 = arith.addf %532, %535 : vector<5x128xf32>
    %537 = arith.addf %457, %536 : vector<5x128xf32>
    %c0_411 = arith.constant 0 : index
    %c0_412 = arith.constant 0 : index
    %538 = vector.load %arg20[%c0_411, %c0_412] : memref<1x128xf32, #tpu.memory_space<vmem>>, vector<1x128xf32>
    %c0_413 = arith.constant 0 : index
    %c0_414 = arith.constant 0 : index
    %539 = vector.load %arg21[%c0_413, %c0_414] : memref<1x128xf32, #tpu.memory_space<vmem>>, vector<1x128xf32>
    %cst_415 = arith.constant dense<0.000000e+00> : vector<5xf32>
    %540 = vector.multi_reduction <add>, %537, %cst_415 [1] : vector<5x128xf32> to vector<5xf32>
    %541 = vector.shape_cast %540 : vector<5xf32> to vector<5x1xf32>
    %cst_416 = arith.constant 1.280000e+02 : f32
    %542 = vector.broadcast %cst_416 : f32 to vector<5x1xf32>
    %543 = arith.divf %541, %542 : vector<5x1xf32>
    %544 = vector.broadcast %543 : vector<5x1xf32> to vector<5x128xf32>
    %545 = arith.subf %537, %544 : vector<5x128xf32>
    %546 = arith.mulf %545, %545 : vector<5x128xf32>
    %cst_417 = arith.constant dense<0.000000e+00> : vector<5xf32>
    %547 = vector.multi_reduction <add>, %546, %cst_417 [1] : vector<5x128xf32> to vector<5xf32>
    %548 = vector.shape_cast %547 : vector<5xf32> to vector<5x1xf32>
    %cst_418 = arith.constant 1.280000e+02 : f32
    %549 = vector.broadcast %cst_418 : f32 to vector<5x1xf32>
    %550 = arith.divf %548, %549 : vector<5x1xf32>
    %cst_419 = arith.constant 9.99999997E-7 : f32
    %551 = vector.broadcast %cst_419 : f32 to vector<5x1xf32>
    %552 = arith.addf %550, %551 : vector<5x1xf32>
    %553 = math.rsqrt %552 : vector<5x1xf32>
    %554 = vector.broadcast %553 : vector<5x1xf32> to vector<5x128xf32>
    %555 = arith.mulf %545, %554 : vector<5x128xf32>
    %556 = vector.broadcast %538 : vector<1x128xf32> to vector<5x128xf32>
    %557 = arith.mulf %555, %556 : vector<5x128xf32>
    %558 = vector.broadcast %539 : vector<1x128xf32> to vector<5x128xf32>
    %559 = arith.addf %557, %558 : vector<5x128xf32>
    %560 = vector.extract_strided_slice %559 {offsets = [0, 0], sizes = [1, 128], strides = [1, 1]} : vector<5x128xf32> to vector<1x128xf32>
    %c0_420 = arith.constant 0 : index
    %c0_421 = arith.constant 0 : index
    %561 = vector.load %arg22[%c0_420, %c0_421] : memref<128x1024xf32, #tpu.memory_space<vmem>>, vector<128x1024xf32>
    %cst_422 = arith.constant dense<0.000000e+00> : vector<1x1024xf32>
    %562 = tpu.matmul %560, %561, %cst_422 {dimension_numbers = #tpu.dot_dimension_numbers<[1], [0], [0], [1], [0, 0, 1, 1], [], []>} : vector<1x128xf32>, vector<128x1024xf32>, vector<1x1024xf32> -> vector<1x1024xf32>
    %c0_423 = arith.constant 0 : index
    %c0_424 = arith.constant 0 : index
    %563 = vector.load %arg23[%c0_423, %c0_424] : memref<1x1024xf32, #tpu.memory_space<vmem>>, vector<1x1024xf32>
    %564 = arith.addf %562, %563 : vector<1x1024xf32>
    %c0_425 = arith.constant 0 : index
    %c0_426 = arith.constant 0 : index
    %c0_427 = arith.constant 0 : index
    %565 = vector.load %arg24[%c0_425, %c0_426, %c0_427] : memref<1x1x1024xf32, #tpu.memory_space<vmem>>, vector<1x1x1024xf32>
    %566 = vector.shape_cast %565 : vector<1x1x1024xf32> to vector<1x1024xf32>
    %567 = vector.shape_cast %564 : vector<1x1024xf32> to vector<1x1x1024xf32>
    tpu.vector_store %arg24[%c0_425, %c0_426, %c0_427], %567 {strides = array<i32>} : memref<1x1x1024xf32, #tpu.memory_space<vmem>>, vector<1x1x1024xf32>,
    return
  }
  func.func @transform_0(%arg0: i32) -> (i32, i32, i32) {
    %c0_i32 = arith.constant 0 : i32
    %c0_i32_0 = arith.constant 0 : i32
    %c0_i32_1 = arith.constant 0 : i32
    return %arg0, %c0_i32, %c0_i32_0 : i32, i32, i32
  }
  func.func @transform_1(%arg0: i32) -> (i32, i32) {
    %c0_i32 = arith.constant 0 : i32
    %c0_i32_0 = arith.constant 0 : i32
    %c0_i32_1 = arith.constant 0 : i32
    return %c0_i32, %c0_i32_0 : i32, i32
  }
  func.func @transform_2(%arg0: i32) -> (i32, i32) {
    %c0_i32 = arith.constant 0 : i32
    %c0_i32_0 = arith.constant 0 : i32
    %c0_i32_1 = arith.constant 0 : i32
    return %c0_i32, %c0_i32_0 : i32, i32
  }
  func.func @transform_3(%arg0: i32) -> (i32, i32, i32) {
    %c0_i32 = arith.constant 0 : i32
    %c0_i32_0 = arith.constant 0 : i32
    %c0_i32_1 = arith.constant 0 : i32
    %c0_i32_2 = arith.constant 0 : i32
    return %c0_i32, %c0_i32_0, %c0_i32_1 : i32, i32, i32
  }
  func.func @transform_4(%arg0: i32) -> (i32, i32, i32) {
    %c0_i32 = arith.constant 0 : i32
    %c0_i32_0 = arith.constant 0 : i32
    %c0_i32_1 = arith.constant 0 : i32
    %c0_i32_2 = arith.constant 0 : i32
    return %c0_i32, %c0_i32_0, %c0_i32_1 : i32, i32, i32
  }
  func.func @transform_5(%arg0: i32) -> (i32, i32, i32, i32) {
    %c0_i32 = arith.constant 0 : i32
    %c0_i32_0 = arith.constant 0 : i32
    %c0_i32_1 = arith.constant 0 : i32
    %c0_i32_2 = arith.constant 0 : i32
    %c0_i32_3 = arith.constant 0 : i32
    return %c0_i32, %c0_i32_0, %c0_i32_1, %c0_i32_2 : i32, i32, i32, i32
  }
  func.func @transform_6(%arg0: i32) -> (i32, i32, i32, i32) {
    %c0_i32 = arith.constant 0 : i32
    %c0_i32_0 = arith.constant 0 : i32
    %c0_i32_1 = arith.constant 0 : i32
    %c0_i32_2 = arith.constant 0 : i32
    %c0_i32_3 = arith.constant 0 : i32
    return %c0_i32, %c0_i32_0, %c0_i32_1, %c0_i32_2 : i32, i32, i32, i32
  }
  func.func @transform_7(%arg0: i32) -> (i32, i32, i32, i32) {
    %c0_i32 = arith.constant 0 : i32
    %c0_i32_0 = arith.constant 0 : i32
    %c0_i32_1 = arith.constant 0 : i32
    %c0_i32_2 = arith.constant 0 : i32
    %c0_i32_3 = arith.constant 0 : i32
    return %c0_i32, %c0_i32_0, %c0_i32_1, %c0_i32_2 : i32, i32, i32, i32
  }
  func.func @transform_8(%arg0: i32) -> (i32, i32, i32, i32) {
    %c0_i32 = arith.constant 0 : i32
    %c0_i32_0 = arith.constant 0 : i32
    %c0_i32_1 = arith.constant 0 : i32
    %c0_i32_2 = arith.constant 0 : i32
    %c0_i32_3 = arith.constant 0 : i32
    return %c0_i32, %c0_i32_0, %c0_i32_1, %c0_i32_2 : i32, i32, i32, i32
  }
  func.func @transform_9(%arg0: i32) -> (i32, i32, i32, i32) {
    %c0_i32 = arith.constant 0 : i32
    %c0_i32_0 = arith.constant 0 : i32
    %c0_i32_1 = arith.constant 0 : i32
    %c0_i32_2 = arith.constant 0 : i32
    %c0_i32_3 = arith.constant 0 : i32
    return %c0_i32, %c0_i32_0, %c0_i32_1, %c0_i32_2 : i32, i32, i32, i32
  }
  func.func @transform_10(%arg0: i32) -> (i32, i32, i32, i32) {
    %c0_i32 = arith.constant 0 : i32
    %c0_i32_0 = arith.constant 0 : i32
    %c0_i32_1 = arith.constant 0 : i32
    %c0_i32_2 = arith.constant 0 : i32
    %c0_i32_3 = arith.constant 0 : i32
    return %c0_i32, %c0_i32_0, %c0_i32_1, %c0_i32_2 : i32, i32, i32, i32
  }
  func.func @transform_11(%arg0: i32) -> (i32, i32, i32, i32) {
    %c0_i32 = arith.constant 0 : i32
    %c0_i32_0 = arith.constant 0 : i32
    %c0_i32_1 = arith.constant 0 : i32
    %c0_i32_2 = arith.constant 0 : i32
    %c0_i32_3 = arith.constant 0 : i32
    return %c0_i32, %c0_i32_0, %c0_i32_1, %c0_i32_2 : i32, i32, i32, i32
  }
  func.func @transform_12(%arg0: i32) -> (i32, i32, i32) {
    %c0_i32 = arith.constant 0 : i32
    %c0_i32_0 = arith.constant 0 : i32
    %c0_i32_1 = arith.constant 0 : i32
    %c0_i32_2 = arith.constant 0 : i32
    return %c0_i32, %c0_i32_0, %c0_i32_1 : i32, i32, i32
  }
  func.func @transform_13(%arg0: i32) -> (i32, i32, i32) {
    %c0_i32 = arith.constant 0 : i32
    %c0_i32_0 = arith.constant 0 : i32
    %c0_i32_1 = arith.constant 0 : i32
    %c0_i32_2 = arith.constant 0 : i32
    return %c0_i32, %c0_i32_0, %c0_i32_1 : i32, i32, i32
  }
  func.func @transform_14(%arg0: i32) -> (i32, i32, i32) {
    %c0_i32 = arith.constant 0 : i32
    %c0_i32_0 = arith.constant 0 : i32
    %c0_i32_1 = arith.constant 0 : i32
    %c0_i32_2 = arith.constant 0 : i32
    return %c0_i32, %c0_i32_0, %c0_i32_1 : i32, i32, i32
  }
  func.func @transform_15(%arg0: i32) -> (i32, i32, i32) {
    %c0_i32 = arith.constant 0 : i32
    %c0_i32_0 = arith.constant 0 : i32
    %c0_i32_1 = arith.constant 0 : i32
    %c0_i32_2 = arith.constant 0 : i32
    return %c0_i32, %c0_i32_0, %c0_i32_1 : i32, i32, i32
  }
  func.func @transform_16(%arg0: i32) -> (i32, i32, i32) {
    %c0_i32 = arith.constant 0 : i32
    %c0_i32_0 = arith.constant 0 : i32
    %c0_i32_1 = arith.constant 0 : i32
    %c0_i32_2 = arith.constant 0 : i32
    return %c0_i32, %c0_i32_0, %c0_i32_1 : i32, i32, i32
  }
  func.func @transform_17(%arg0: i32) -> (i32, i32, i32) {
    %c0_i32 = arith.constant 0 : i32
    %c0_i32_0 = arith.constant 0 : i32
    %c0_i32_1 = arith.constant 0 : i32
    %c0_i32_2 = arith.constant 0 : i32
    return %c0_i32, %c0_i32_0, %c0_i32_1 : i32, i32, i32
  }
  func.func @transform_18(%arg0: i32) -> (i32, i32, i32) {
    %c0_i32 = arith.constant 0 : i32
    %c0_i32_0 = arith.constant 0 : i32
    %c0_i32_1 = arith.constant 0 : i32
    %c0_i32_2 = arith.constant 0 : i32
    return %c0_i32, %c0_i32_0, %c0_i32_1 : i32, i32, i32
  }
  func.func @transform_19(%arg0: i32) -> (i32, i32) {
    %c0_i32 = arith.constant 0 : i32
    %c0_i32_0 = arith.constant 0 : i32
    %c0_i32_1 = arith.constant 0 : i32
    return %c0_i32, %c0_i32_0 : i32, i32
  }
  func.func @transform_20(%arg0: i32) -> (i32, i32) {
    %c0_i32 = arith.constant 0 : i32
    %c0_i32_0 = arith.constant 0 : i32
    %c0_i32_1 = arith.constant 0 : i32
    return %c0_i32, %c0_i32_0 : i32, i32
  }
  func.func @transform_21(%arg0: i32) -> (i32, i32) {
    %c0_i32 = arith.constant 0 : i32
    %c0_i32_0 = arith.constant 0 : i32
    %c0_i32_1 = arith.constant 0 : i32
    return %c0_i32, %c0_i32_0 : i32, i32
  }
  func.func @transform_22(%arg0: i32) -> (i32, i32) {
    %c0_i32 = arith.constant 0 : i32
    %c0_i32_0 = arith.constant 0 : i32
    %c0_i32_1 = arith.constant 0 : i32
    return %c0_i32, %c0_i32_0 : i32, i32
  }
  func.func @transform_23(%arg0: i32) -> (i32, i32, i32) {
    %c0_i32 = arith.constant 0 : i32
    %c0_i32_0 = arith.constant 0 : i32
    %c0_i32_1 = arith.constant 0 : i32
    return %arg0, %c0_i32, %c0_i32_0 : i32, i32, i32
  }
}

</mosaic_0001>

<bundles_post_ra>
// kernel: vit_with_denoise_forward.2
= control target key start
LH: loop header
LB: loop body
LE: loop exit
PB: predicated region body
PF: predicated region fallthrough
CT: control target
= control target key end

     0   :  { %s2043_s18 = smov 0   ;;  %s3523_s0 = inlined_call_operand.vmem [shape: f32[2,34,96], index: 0, kind: input, shape index: {}]   ;;  %s3524_s1 = inlined_call_operand.vmem [shape: f32[3,96,512], index: 1, kind: input, shape index: {}]   ;;  %s3525_s2 = inlined_call_operand.vmem [shape: f32[1,512], index: 2, kind: input, shape index: {}]   ;;  %s3526_s3 = inlined_call_operand.vmem [shape: f32[3,512,96], index: 3, kind: input, shape index: {}]   ;;  %s3527_s4 = inlined_call_operand.vmem [shape: f32[1,96], index: 4, kind: input, shape index: {}]   ;;  %s3528_s5 = inlined_call_operand.vmem [shape: f32[2,32,96], index: 5, kind: output, shape index: {}]  }
   0x1 LB: > { %s1710_s19 = sadd.s32 4294967295, %s2010_s18   ;;  %p1714_p0 = scmp.ge.s32.totalorder %s2010_s18, 1  ;;  %s2010_s18 = sphi %s2043_s18, %s15_s18  }
   0x2   : > { %p187_p1 = scmp.lt.s32.totalorder %s2010_s18, 3 }
   0x4   : > { %p188_p2 = pnand %p1714_p0, %p187_p1 }
   0x5   : > { %p2113_p3 = scmp.lt.s32.totalorder (!%p188_p2), %s1710_s19, 1 }
   0x6   : > { %191 = sbr.rel (%p188_p2) target bundleno = 483 (0x1e3), region = 40 }
   0xb   : > { %v1762_v0 = vld [vmem:[%s3524_s1 + $0x2e0] sm:$0xff]  ;;  %v1763_v1 = vld [vmem:[%s3524_s1 + $0x2e8] sm:$0xff]  ;;  %v1764_v2 = vld [vmem:[%s3524_s1 + $0x2f0] sm:$0xff]  ;;  %s3531_s19 = smov (!%p2113_p3, %s1710_s19), 1  ;;  %vm350_vm0 = vcmask 785408   ;;  %vm862_vm1 = vcmask 1040384  }
   0xc   : > { %367 = vmatpush.msra.mxu0 %v1762_v0  ;;  %396 = vmatpush.msra.mxu1 %v1763_v1  ;;  %v1765_v3 = vld [vmem:[%s3524_s1 + $0x2f8] sm:$0xff]  ;;  %v1758_v4 = vld [vmem:[%s3524_s1 + $0x2c0] sm:$0xff]  ;;  %v1759_v5 = vld [vmem:[%s3524_s1 + $0x2c8] sm:$0xff]  ;;  %s1993_s24 = smul.u32 40, %s3531_s19  ;;  %vm1104_vm2 = vcmask 1046528   ;;  %vm1470_vm3 = vcmask 1045504  }
   0xd   : > { %425 = vmatpush.msra.mxu2 %v1764_v2  ;;  %454 = vmatpush.msra.mxu3 %v1765_v3  ;;  %v1760_v6 = vld [vmem:[%s3524_s1 + $0x2d0] sm:$0xff]  ;;  %v1761_v7 = vld [vmem:[%s3524_s1 + $0x2d8] sm:$0xff]  ;;  %v1754_v8 = vld [vmem:[%s3524_s1 + $0x2a0] sm:$0xff]  ;;  %s1992_s15 = sshll.u32 %s3531_s19, 5 }
   0xe   : > { %368 = vmatpush.msra.mxu0 %v1758_v4  ;;  %397 = vmatpush.msra.mxu1 %v1759_v5  ;;  %v1755_v9 = vld [vmem:[%s3524_s1 + $0x2a8] sm:$0xff]  ;;  %v1756_v10 = vld [vmem:[%s3524_s1 + $0x2b0] sm:$0xff]  ;;  %v1757_v11 = vld [vmem:[%s3524_s1 + $0x2b8] sm:$0xff]  ;;  %s2199_s20 = scalar_lea.vmem %s3523_s0, %s1993_s24 }
   0xf   : > { %426 = vmatpush.msra.mxu2 %v1760_v6  ;;  %455 = vmatpush.msra.mxu3 %v1761_v7  ;;  %v1750_v12 = vld [vmem:[%s3524_s1 + $0x280] sm:$0xff]  ;;  %v1751_v13 = vld [vmem:[%s3524_s1 + $0x288] sm:$0xff]  ;;  %v1752_v14 = vld [vmem:[%s3524_s1 + $0x290] sm:$0xff] }
  0x10   : > { %369 = vmatpush.msra.mxu0 %v1754_v8  ;;  %398 = vmatpush.msra.mxu1 %v1755_v9  ;;  %v1753_v15 = vld [vmem:[%s3524_s1 + $0x298] sm:$0xff]  ;;  %v1746_v16 = vld [vmem:[%s3524_s1 + $0x260] sm:$0xff]  ;;  %v1747_v17 = vld [vmem:[%s3524_s1 + $0x268] sm:$0xff] }
  0x11   : > { %427 = vmatpush.msra.mxu2 %v1756_v10  ;;  %456 = vmatpush.msra.mxu3 %v1757_v11  ;;  %v1748_v18 = vld [vmem:[%s3524_s1 + $0x270] sm:$0xff]  ;;  %v1749_v19 = vld [vmem:[%s3524_s1 + $0x278] sm:$0xff]  ;;  %v1742_v20 = vld [vmem:[%s3524_s1 + $0x240] sm:$0xff] }
  0x12   : > { %370 = vmatpush.msra.mxu0 %v1750_v12  ;;  %399 = vmatpush.msra.mxu1 %v1751_v13  ;;  %v1743_v21 = vld [vmem:[%s3524_s1 + $0x248] sm:$0xff]  ;;  %v1744_v22 = vld [vmem:[%s3524_s1 + $0x250] sm:$0xff]  ;;  %v1745_v23 = vld [vmem:[%s3524_s1 + $0x258] sm:$0xff] }
  0x13   : > { %428 = vmatpush.msra.mxu2 %v1752_v14  ;;  %457 = vmatpush.msra.mxu3 %v1753_v15  ;;  %v1738_v24 = vld [vmem:[%s3524_s1 + $0x220] sm:$0xff]  ;;  %v1739_v25 = vld [vmem:[%s3524_s1 + $0x228] sm:$0xff]  ;;  %v1740_v26 = vld [vmem:[%s3524_s1 + $0x230] sm:$0xff] }
  0x14   : > { %371 = vmatpush.msra.mxu0 %v1746_v16  ;;  %400 = vmatpush.msra.mxu1 %v1747_v17  ;;  %v1741_v27 = vld [vmem:[%s3524_s1 + $0x238] sm:$0xff]  ;;  %v1734_v28 = vld [vmem:[%s3524_s1 + $0x200] sm:$0xff]  ;;  %v1735_v29 = vld [vmem:[%s3524_s1 + $0x208] sm:$0xff] }
  0x15   : > { %429 = vmatpush.msra.mxu2 %v1748_v18  ;;  %458 = vmatpush.msra.mxu3 %v1749_v19  ;;  %v1736_v30 = vld [vmem:[%s3524_s1 + $0x210] sm:$0xff]  ;;  %v1737_v31 = vld [vmem:[%s3524_s1 + $0x218] sm:$0xff]  ;;  %v1730_v32 = vld [vmem:[%s3524_s1 + $0x1e0] sm:$0xff] }
  0x16   : > { %372 = vmatpush.msra.mxu0 %v1742_v20  ;;  %401 = vmatpush.msra.mxu1 %v1743_v21  ;;  %v1731_v33 = vld [vmem:[%s3524_s1 + $0x1e8] sm:$0xff]  ;;  %v1732_v34 = vld [vmem:[%s3524_s1 + $0x1f0] sm:$0xff]  ;;  %v1733_v35 = vld [vmem:[%s3524_s1 + $0x1f8] sm:$0xff] }
  0x17   : > { %430 = vmatpush.msra.mxu2 %v1744_v22  ;;  %459 = vmatpush.msra.mxu3 %v1745_v23  ;;  %v1726_v36 = vld [vmem:[%s3524_s1 + $0x1c0] sm:$0xff]  ;;  %v1727_v37 = vld [vmem:[%s3524_s1 + $0x1c8] sm:$0xff]  ;;  %v1728_v38 = vld [vmem:[%s3524_s1 + $0x1d0] sm:$0xff] }
  0x18   : > { %373 = vmatpush.msra.mxu0 %v1738_v24  ;;  %402 = vmatpush.msra.mxu1 %v1739_v25  ;;  %v1729_v39 = vld [vmem:[%s3524_s1 + $0x1d8] sm:$0xff]  ;;  %v1722_v40 = vld [vmem:[%s3524_s1 + $0x1a0] sm:$0xff]  ;;  %v1723_v41 = vld [vmem:[%s3524_s1 + $0x1a8] sm:$0xff] }
  0x19   : > { %431 = vmatpush.msra.mxu2 %v1740_v26  ;;  %460 = vmatpush.msra.mxu3 %v1741_v27  ;;  %v1724_v42 = vld [vmem:[%s3524_s1 + $0x1b0] sm:$0xff]  ;;  %v1725_v43 = vld [vmem:[%s3524_s1 + $0x1b8] sm:$0xff]  ;;  %v1718_v44 = vld [vmem:[%s3524_s1 + $0x180] sm:$0xff] }
  0x1a   : > { %374 = vmatpush.msra.mxu0 %v1734_v28  ;;  %403 = vmatpush.msra.mxu1 %v1735_v29  ;;  %v1719_v45 = vld [vmem:[%s3524_s1 + $0x188] sm:$0xff]  ;;  %v1720_v46 = vld [vmem:[%s3524_s1 + $0x190] sm:$0xff]  ;;  %v1721_v47 = vld [vmem:[%s3524_s1 + $0x198] sm:$0xff] }
  0x1b   : > { %432 = vmatpush.msra.mxu2 %v1736_v30  ;;  %461 = vmatpush.msra.mxu3 %v1737_v31  ;;  %v297_v48 = vld [vmem:[%s2199_s20 + $0x1] sm:$0xff]  ;;  %v295_v49 = vld [vmem:[%s3524_s1 + $0x170] sm:$0xff]  ;;  %v296_v50 = vld [vmem:[%s3524_s1 + $0x178] sm:$0xff] }
  0x1c   : > { %375 = vmatpush.msra.mxu0 %v1730_v32  ;;  %404 = vmatpush.msra.mxu1 %v1731_v33  ;;  %v293_v51 = vld [vmem:[%s3524_s1 + $0x160] sm:$0xff]  ;;  %v294_v52 = vld [vmem:[%s3524_s1 + $0x168] sm:$0xff]  ;;  %v291_v53 = vld [vmem:[%s3524_s1 + $0x150] sm:$0xff] }
  0x1d   : > { %433 = vmatpush.msra.mxu2 %v1732_v34  ;;  %462 = vmatpush.msra.mxu3 %v1733_v35  ;;  %v292_v54 = vld [vmem:[%s3524_s1 + $0x158] sm:$0xff]  ;;  %v289_v55 = vld [vmem:[%s3524_s1 + $0x140] sm:$0xff]  ;;  %v290_v56 = vld [vmem:[%s3524_s1 + $0x148] sm:$0xff] }
  0x1e   : > { %376 = vmatpush.msra.mxu0 %v1726_v36  ;;  %405 = vmatpush.msra.mxu1 %v1727_v37  ;;  %v287_v57 = vld [vmem:[%s3524_s1 + $0x130] sm:$0xff]  ;;  %v288_v58 = vld [vmem:[%s3524_s1 + $0x138] sm:$0xff]  ;;  %v285_v59 = vld [vmem:[%s3524_s1 + $0x120] sm:$0xff] }
  0x1f   : > { %434 = vmatpush.msra.mxu2 %v1728_v38  ;;  %463 = vmatpush.msra.mxu3 %v1729_v39  ;;  %v286_v60 = vld [vmem:[%s3524_s1 + $0x128] sm:$0xff]  ;;  %v283_v62 = vld [vmem:[%s3524_s1 + $0x110] sm:$0xff]  ;;  %v284_v63 = vld [vmem:[%s3524_s1 + $0x118] sm:$0xff] }
  0x20   : > { %377 = vmatpush.msra.mxu0 %v1722_v40  ;;  %406 = vmatpush.msra.mxu1 %v1723_v41  ;;  %v298_v61 = vld [vmem:[%s2199_s20 + $0x9] sm:$0xff]  ;;  %v281_v0 = vld [vmem:[%s3524_s1 + $0x100] sm:$0xff]  ;;  %v280_v3 = vld [vmem:[%s3524_s1 + $0xf8] sm:$0xff] }
  0x21   : > { %435 = vmatpush.msra.mxu2 %v1724_v42  ;;  %464 = vmatpush.msra.mxu3 %v1725_v43  ;;  %v282_v1 = vld [vmem:[%s3524_s1 + $0x108] sm:$0xff]  ;;  %v279_v2 = vld [vmem:[%s3524_s1 + $0xf0] sm:$0xff]  ;;  %v277_v4 = vld [vmem:[%s3524_s1 + $0xe0] sm:$0xff] }
  0x22   : > { %378 = vmatpush.msra.mxu0 %v1718_v44  ;;  %407 = vmatpush.msra.mxu1 %v1719_v45  ;;  %v278_v5 = vld [vmem:[%s3524_s1 + $0xe8] sm:$0xff]  ;;  %v275_v6 = vld [vmem:[%s3524_s1 + $0xd0] sm:$0xff]  ;;  %v276_v7 = vld [vmem:[%s3524_s1 + $0xd8] sm:$0xff] }
  0x23   : > { %436 = vmatpush.msra.mxu2 %v1720_v46  ;;  %465 = vmatpush.msra.mxu3 %v1721_v47  ;;  %v273_v8 = vld [vmem:[%s3524_s1 + $0xc0] sm:$0xff]  ;;  %v274_v9 = vld [vmem:[%s3524_s1 + $0xc8] sm:$0xff]  ;;  %v299_v10 = vld [vmem:[%s2199_s20 + $0x11] sm:$0xff] }
  0x24   : > { %1766 = vmatmul.msk.f32.vlgmr.msra.gmra.mxu0 %vm350_vm0, %v297_v48  ;;  %1770 = vmatmul.msk.f32.vlgmr.msra.gmra.mxu1 %vm350_vm0, %v297_v48  ;;  %v271_v11 = vld [vmem:[%s3524_s1 + $0xb0] sm:$0xff]  ;;  %v272_v12 = vld [vmem:[%s3524_s1 + $0xb8] sm:$0xff]  ;;  %v269_v13 = vld [vmem:[%s3524_s1 + $0xa0] sm:$0xff] }
  0x25   : > { %1774 = vmatmul.msk.f32.vlgmr.msra.gmra.mxu2 %vm350_vm0, %v297_v48  ;;  %1778 = vmatmul.msk.f32.vlgmr.msra.gmra.mxu3 %vm350_vm0, %v297_v48  ;;  %v270_v14 = vld [vmem:[%s3524_s1 + $0xa8] sm:$0xff]  ;;  %v267_v15 = vld [vmem:[%s3524_s1 + $0x90] sm:$0xff]  ;;  %v268_v16 = vld [vmem:[%s3524_s1 + $0x98] sm:$0xff] }
  0x26   : > { %553 = vmatpush.msrb.mxu2 %v295_v49  ;;  %582 = vmatpush.msrb.mxu3 %v296_v50  ;;  %v265_v17 = vld [vmem:[%s3524_s1 + $0x80] sm:$0xff]  ;;  %v266_v18 = vld [vmem:[%s3524_s1 + $0x88] sm:$0xff]  ;;  %v263_v19 = vld [vmem:[%s3524_s1 + $0x70] sm:$0xff] }
  0x27   : > { %495 = vmatpush.msrb.mxu0 %v293_v51  ;;  %524 = vmatpush.msrb.mxu1 %v294_v52  ;;  %v264_v20 = vld [vmem:[%s3524_s1 + $0x78] sm:$0xff]  ;;  %v261_v21 = vld [vmem:[%s3524_s1 + $0x60] sm:$0xff]  ;;  %v262_v22 = vld [vmem:[%s3524_s1 + $0x68] sm:$0xff] }
  0x28   : > { %554 = vmatpush.msrb.mxu2 %v291_v53  ;;  %583 = vmatpush.msrb.mxu3 %v292_v54  ;;  %v300_v23 = vld [vmem:[%s2199_s20 + $0x19] sm:$0xff]  ;;  %v259_v24 = vld [vmem:[%s3524_s1 + $0x50] sm:$0xff]  ;;  %v258_v27 = vld [vmem:[%s3524_s1 + $0x48] sm:$0xff] }
  0x29   : > { %496 = vmatpush.msrb.mxu0 %v289_v55  ;;  %525 = vmatpush.msrb.mxu1 %v290_v56  ;;  %v260_v25 = vld [vmem:[%s3524_s1 + $0x58] sm:$0xff]  ;;  %v257_v26 = vld [vmem:[%s3524_s1 + $0x40] sm:$0xff]  ;;  %v255_v28 = vld [vmem:[%s3524_s1 + $0x30] sm:$0xff] }
  0x2a   : > { %555 = vmatpush.msrb.mxu2 %v287_v57  ;;  %584 = vmatpush.msrb.mxu3 %v288_v58  ;;  %v256_v29 = vld [vmem:[%s3524_s1 + $0x38] sm:$0xff]  ;;  %v253_v30 = vld [vmem:[%s3524_s1 + $0x20] sm:$0xff]  ;;  %v254_v31 = vld [vmem:[%s3524_s1 + $0x28] sm:$0xff] }
  0x2b   : > { %497 = vmatpush.msrb.mxu0 %v285_v59  ;;  %526 = vmatpush.msrb.mxu1 %v286_v60  ;;  %v251_v32 = vld [vmem:[%s3524_s1 + $0x10] sm:$0xff]  ;;  %v252_v33 = vld [vmem:[%s3524_s1 + $0x18] sm:$0xff]  ;;  %v249_v34 = vld [vmem:[%s3524_s1] sm:$0xff] }
  0x2c   : > { %1767 = vmatmul.msk.f32.gmra.mxu0 %vm350_vm0, %v298_v61  ;;  %1771 = vmatmul.msk.f32.gmra.mxu1 %vm350_vm0, %v298_v61  ;;  %v250_v35 = vld [vmem:[%s3524_s1 + $0x8] sm:$0xff]  ;;  %v245_v36 = vld [vmem:[%s2199_s20] sm:$0xff]  ;;  %v1844_v37 = vld [vmem:[%s3524_s1 + $0x470] sm:$0xff] }
  0x2d   : > { %1775 = vmatmul.msk.f32.gmra.mxu2 %vm350_vm0, %v298_v61  ;;  %1779 = vmatmul.msk.f32.gmra.mxu3 %vm350_vm0, %v298_v61  ;;  %v1845_v38 = vld [vmem:[%s3524_s1 + $0x478] sm:$0xff]  ;;  %v1842_v39 = vld [vmem:[%s3524_s1 + $0x460] sm:$0xff]  ;;  %v1843_v40 = vld [vmem:[%s3524_s1 + $0x468] sm:$0xff] }
  0x2e   : > { %556 = vmatpush.msrb.mxu2 %v283_v62  ;;  %585 = vmatpush.msrb.mxu3 %v284_v63  ;;  %v1840_v41 = vld [vmem:[%s3524_s1 + $0x450] sm:$0xff]  ;;  %v1841_v42 = vld [vmem:[%s3524_s1 + $0x458] sm:$0xff]  ;;  %v1838_v43 = vld [vmem:[%s3524_s1 + $0x440] sm:$0xff] }
  0x2f   : > { %498 = vmatpush.msrb.mxu0 %v281_v0  ;;  %527 = vmatpush.msrb.mxu1 %v282_v1  ;;  %v1839_v44 = vld [vmem:[%s3524_s1 + $0x448] sm:$0xff]  ;;  %v1836_v45 = vld [vmem:[%s3524_s1 + $0x430] sm:$0xff]  ;;  %v1837_v46 = vld [vmem:[%s3524_s1 + $0x438] sm:$0xff] }
  0x30   : > { %557 = vmatpush.msrb.mxu2 %v279_v2  ;;  %586 = vmatpush.msrb.mxu3 %v280_v3  ;;  %v1834_v47 = vld [vmem:[%s3524_s1 + $0x420] sm:$0xff]  ;;  %v1835_v48 = vld [vmem:[%s3524_s1 + $0x428] sm:$0xff]  ;;  %v1832_v50 = vld [vmem:[%s3524_s1 + $0x410] sm:$0xff] }
  0x31   : > { %499 = vmatpush.msrb.mxu0 %v277_v4  ;;  %528 = vmatpush.msrb.mxu1 %v278_v5  ;;  %v246_v49 = vld [vmem:[%s2199_s20 + $0x8] sm:$0xff]  ;;  %v1833_v51 = vld [vmem:[%s3524_s1 + $0x418] sm:$0xff]  ;;  %v1830_v52 = vld [vmem:[%s3524_s1 + $0x400] sm:$0xff] }
  0x32   : > { %558 = vmatpush.msrb.mxu2 %v275_v6  ;;  %587 = vmatpush.msrb.mxu3 %v276_v7  ;;  %v1831_v53 = vld [vmem:[%s3524_s1 + $0x408] sm:$0xff]  ;;  %v1828_v54 = vld [vmem:[%s3524_s1 + $0x3f0] sm:$0xff]  ;;  %v1829_v55 = vld [vmem:[%s3524_s1 + $0x3f8] sm:$0xff] }
  0x33   : > { %500 = vmatpush.msrb.mxu0 %v273_v8  ;;  %529 = vmatpush.msrb.mxu1 %v274_v9  ;;  %v1826_v56 = vld [vmem:[%s3524_s1 + $0x3e0] sm:$0xff]  ;;  %v1827_v57 = vld [vmem:[%s3524_s1 + $0x3e8] sm:$0xff]  ;;  %v1824_v58 = vld [vmem:[%s3524_s1 + $0x3d0] sm:$0xff] }
  0x34   : > { %1768 = vmatmul.msk.f32.gmra.mxu0 %vm350_vm0, %v299_v10  ;;  %1772 = vmatmul.msk.f32.gmra.mxu1 %vm350_vm0, %v299_v10  ;;  %v1825_v59 = vld [vmem:[%s3524_s1 + $0x3d8] sm:$0xff]  ;;  %v1822_v60 = vld [vmem:[%s3524_s1 + $0x3c0] sm:$0xff]  ;;  %v1823_v61 = vld [vmem:[%s3524_s1 + $0x3c8] sm:$0xff] }
  0x35   : > { %1776 = vmatmul.msk.f32.gmra.mxu2 %vm350_vm0, %v299_v10  ;;  %1780 = vmatmul.msk.f32.gmra.mxu3 %vm350_vm0, %v299_v10  ;;  %v247_v62 = vld [vmem:[%s2199_s20 + $0x10] sm:$0xff]  ;;  %v1821_v0 = vld [vmem:[%s3524_s1 + $0x3b8] sm:$0xff]  ;;  %v1818_v1 = vld [vmem:[%s3524_s1 + $0x3a0] sm:$0xff] }
  0x36   : > { %559 = vmatpush.msrb.mxu2 %v271_v11  ;;  %588 = vmatpush.msrb.mxu3 %v272_v12  ;;  %v1820_v63 = vld [vmem:[%s3524_s1 + $0x3b0] sm:$0xff]  ;;  %v1819_v2 = vld [vmem:[%s3524_s1 + $0x3a8] sm:$0xff]  ;;  %v1817_v4 = vld [vmem:[%s3524_s1 + $0x398] sm:$0xff] }
  0x37   : > { %501 = vmatpush.msrb.mxu0 %v269_v13  ;;  %530 = vmatpush.msrb.mxu1 %v270_v14  ;;  %v1816_v3 = vld [vmem:[%s3524_s1 + $0x390] sm:$0xff]  ;;  %v1814_v5 = vld [vmem:[%s3524_s1 + $0x380] sm:$0xff]  ;;  %v1815_v6 = vld [vmem:[%s3524_s1 + $0x388] sm:$0xff] }
  0x38   : > { %560 = vmatpush.msrb.mxu2 %v267_v15  ;;  %589 = vmatpush.msrb.mxu3 %v268_v16  ;;  %v1812_v7 = vld [vmem:[%s3524_s1 + $0x370] sm:$0xff]  ;;  %v1813_v8 = vld [vmem:[%s3524_s1 + $0x378] sm:$0xff]  ;;  %v1810_v9 = vld [vmem:[%s3524_s1 + $0x360] sm:$0xff] }
  0x39   : > { %502 = vmatpush.msrb.mxu0 %v265_v17  ;;  %531 = vmatpush.msrb.mxu1 %v266_v18  ;;  %v1811_v10 = vld [vmem:[%s3524_s1 + $0x368] sm:$0xff]  ;;  %v248_v11 = vld [vmem:[%s2199_s20 + $0x18] sm:$0xff]  ;;  %v1808_v12 = vld [vmem:[%s3524_s1 + $0x350] sm:$0xff] }
  0x3a   : > { %561 = vmatpush.msrb.mxu2 %v263_v19  ;;  %590 = vmatpush.msrb.mxu3 %v264_v20  ;;  %v1809_v13 = vld [vmem:[%s3524_s1 + $0x358] sm:$0xff]  ;;  %v1806_v14 = vld [vmem:[%s3524_s1 + $0x340] sm:$0xff]  ;;  %v1807_v15 = vld [vmem:[%s3524_s1 + $0x348] sm:$0xff] }
  0x3b   : > { %503 = vmatpush.msrb.mxu0 %v261_v21  ;;  %532 = vmatpush.msrb.mxu1 %v262_v22  ;;  %v1804_v16 = vld [vmem:[%s3524_s1 + $0x330] sm:$0xff]  ;;  %v1805_v17 = vld [vmem:[%s3524_s1 + $0x338] sm:$0xff]  ;;  %v1802_v18 = vld [vmem:[%s3524_s1 + $0x320] sm:$0xff] }
  0x3c   : > { %1769 = vmatmul.msk.f32.gmra.mxu0 %vm350_vm0, %v300_v23  ;;  %1773 = vmatmul.msk.f32.gmra.mxu1 %vm350_vm0, %v300_v23  ;;  %v1803_v19 = vld [vmem:[%s3524_s1 + $0x328] sm:$0xff]  ;;  %v1800_v20 = vld [vmem:[%s3524_s1 + $0x310] sm:$0xff]  ;;  %v1801_v21 = vld [vmem:[%s3524_s1 + $0x318] sm:$0xff] }
  0x3d   : > { %1777 = vmatmul.msk.f32.gmra.mxu2 %vm350_vm0, %v300_v23  ;;  %1781 = vmatmul.msk.f32.gmra.mxu3 %vm350_vm0, %v300_v23  ;;  %v1798_v22 = vld [vmem:[%s3524_s1 + $0x300] sm:$0xff]  ;;  %v1799_v23 = vld [vmem:[%s3524_s1 + $0x308] sm:$0xff] }
  0x3e   : > { %562 = vmatpush.msrb.mxu2 %v259_v24  ;;  %591 = vmatpush.msrb.mxu3 %v260_v25  ;;  %v607_v24 = vld [vmem:[%s2199_s20 + $0x2] sm:$0xff]  ;;  %v608_v25 = vld [vmem:[%s2199_s20 + $0xa] sm:$0xff] }
  0x3f   : > { %504 = vmatpush.msrb.mxu0 %v257_v26  ;;  %533 = vmatpush.msrb.mxu1 %v258_v27  ;;  %v609_v26 = vld [vmem:[%s2199_s20 + $0x12] sm:$0xff]  ;;  %v610_v27 = vld [vmem:[%s2199_s20 + $0x1a] sm:$0xff]  ;;  %s3510_s20 = scalar_lea.vmem %s3528_s5, %s1992_s15 }
  0x40   : > { %563 = vmatpush.msrb.mxu2 %v255_v28  ;;  %592 = vmatpush.msrb.mxu3 %v256_v29 }
  0x41   : > { %505 = vmatpush.msrb.mxu0 %v253_v30  ;;  %534 = vmatpush.msrb.mxu1 %v254_v31 }
  0x42   : > { %564 = vmatpush.msrb.mxu2 %v251_v32  ;;  %593 = vmatpush.msrb.mxu3 %v252_v33 }
  0x43   : > { %506 = vmatpush.msrb.mxu0 %v249_v34  ;;  %535 = vmatpush.msrb.mxu1 %v250_v35 }
  0x44   : > { %1782 = vmatmul.msk.f32.vlgmr.msrb.gmra.mxu0 %vm350_vm0, %v245_v36  ;;  %1786 = vmatmul.msk.f32.vlgmr.msrb.gmra.mxu1 %vm350_vm0, %v245_v36 }
  0x45   : > { %1790 = vmatmul.msk.f32.vlgmr.msrb.gmra.mxu2 %vm350_vm0, %v245_v36  ;;  %1794 = vmatmul.msk.f32.vlgmr.msrb.gmra.mxu3 %vm350_vm0, %v245_v36 }
  0x46   : > { %734 = vmatpush.msra.mxu2 %v1844_v37  ;;  %763 = vmatpush.msra.mxu3 %v1845_v38  ;;  %v1877_v38 = vld [vmem:[%s3526_s3 + $0x278] sm:$0xff] }
  0x47   : > { %676 = vmatpush.msra.mxu0 %v1842_v39  ;;  %705 = vmatpush.msra.mxu1 %v1843_v40  ;;  %v1893_v39 = vld [vmem:[%s3526_s3 + $0x2f8] sm:$0xff] }
  0x48   : > { %735 = vmatpush.msra.mxu2 %v1840_v41  ;;  %764 = vmatpush.msra.mxu3 %v1841_v42 }
  0x49   : > { %677 = vmatpush.msra.mxu0 %v1838_v43  ;;  %706 = vmatpush.msra.mxu1 %v1839_v44  ;;  %v1876_v44 = vld [vmem:[%s3526_s3 + $0x270] sm:$0xff] }
  0x4a   : > { %736 = vmatpush.msra.mxu2 %v1836_v45  ;;  %765 = vmatpush.msra.mxu3 %v1837_v46  ;;  %v1892_v45 = vld [vmem:[%s3526_s3 + $0x2f0] sm:$0xff]  ;;  %v1875_v46 = vld [vmem:[%s3526_s3 + $0x268] sm:$0xff] }
  0x4b   : > { %678 = vmatpush.msra.mxu0 %v1834_v47  ;;  %707 = vmatpush.msra.mxu1 %v1835_v48  ;;  %v1891_v47 = vld [vmem:[%s3526_s3 + $0x2e8] sm:$0xff]  ;;  %v1909_v48 = vld [vmem:[%s3526_s3 + $0x378] sm:$0xff] }
  0x4c   : > { %1783 = vmatmul.msk.f32.gmra.mxu0 %vm350_vm0, %v246_v49  ;;  %1787 = vmatmul.msk.f32.gmra.mxu1 %vm350_vm0, %v246_v49 }
  0x4d   : > { %1791 = vmatmul.msk.f32.gmra.mxu2 %vm350_vm0, %v246_v49  ;;  %1795 = vmatmul.msk.f32.gmra.mxu3 %vm350_vm0, %v246_v49  ;;  %v1874_v49 = vld [vmem:[%s3526_s3 + $0x260] sm:$0xff] }
  0x4e   : > { %737 = vmatpush.msra.mxu2 %v1832_v50  ;;  %766 = vmatpush.msra.mxu3 %v1833_v51  ;;  %v1890_v50 = vld [vmem:[%s3526_s3 + $0x2e0] sm:$0xff]  ;;  %v1925_v51 = vld [vmem:[%s3526_s3 + $0x3f8] sm:$0xff] }
  0x4f   : > { %679 = vmatpush.msra.mxu0 %v1830_v52  ;;  %708 = vmatpush.msra.mxu1 %v1831_v53  ;;  %v1908_v52 = vld [vmem:[%s3526_s3 + $0x370] sm:$0xff] }
  0x50   : > { %738 = vmatpush.msra.mxu2 %v1828_v54  ;;  %767 = vmatpush.msra.mxu3 %v1829_v55  ;;  %v1873_v55 = vld [vmem:[%s3526_s3 + $0x258] sm:$0xff] }
  0x51   : > { %680 = vmatpush.msra.mxu0 %v1826_v56  ;;  %709 = vmatpush.msra.mxu1 %v1827_v57  ;;  %v1889_v56 = vld [vmem:[%s3526_s3 + $0x2d8] sm:$0xff]  ;;  %v1924_v57 = vld [vmem:[%s3526_s3 + $0x3f0] sm:$0xff] }
  0x52   : > { %739 = vmatpush.msra.mxu2 %v1824_v58  ;;  %768 = vmatpush.msra.mxu3 %v1825_v59 }
  0x53   : > { %681 = vmatpush.msra.mxu0 %v1822_v60  ;;  %710 = vmatpush.msra.mxu1 %v1823_v61  ;;  %v2012_v60 = vmov 0.0   ;;  %v1907_v61 = vld [vmem:[%s3526_s3 + $0x368] sm:$0xff] }
  0x54   : > { %1784 = vmatmul.msk.f32.gmra.mxu0 %vm350_vm0, %v247_v62  ;;  %1788 = vmatmul.msk.f32.gmra.mxu1 %vm350_vm0, %v247_v62  ;;  %225 = vst [vmem:[#allocation2] sm:$0xff] %v2012_v60 }
  0x55   : > { %1792 = vmatmul.msk.f32.gmra.mxu2 %vm350_vm0, %v247_v62  ;;  %1796 = vmatmul.msk.f32.gmra.mxu3 %vm350_vm0, %v247_v62  ;;  %v1872_v62 = vld [vmem:[%s3526_s3 + $0x250] sm:$0xff]  ;;  %226 = vst [vmem:[#allocation2 + $0x38] sm:$0xff] %v2012_v60 }
  0x56   : > { %740 = vmatpush.msra.mxu2 %v1820_v63  ;;  %769 = vmatpush.msra.mxu3 %v1821_v0  ;;  %v1888_v63 = vld [vmem:[%s3526_s3 + $0x2d0] sm:$0xff]  ;;  %v1923_v0 = vld [vmem:[%s3526_s3 + $0x3e8] sm:$0xff]  ;;  %227 = vst [vmem:[#allocation2 + $0x50] sm:$0xff] %v2012_v60 }
  0x57   : > { %682 = vmatpush.msra.mxu0 %v1818_v1  ;;  %711 = vmatpush.msra.mxu1 %v1819_v2  ;;  %v1906_v1 = vld [vmem:[%s3526_s3 + $0x360] sm:$0xff]  ;;  %v1871_v2 = vld [vmem:[%s3526_s3 + $0x248] sm:$0xff]  ;;  %228 = vst [vmem:[#allocation2 + $0x18] sm:$0xff] %v2012_v60 }
  0x58   : > { %741 = vmatpush.msra.mxu2 %v1816_v3  ;;  %770 = vmatpush.msra.mxu3 %v1817_v4  ;;  %v1887_v3 = vld [vmem:[%s3526_s3 + $0x2c8] sm:$0xff]  ;;  %v1922_v4 = vld [vmem:[%s3526_s3 + $0x3e0] sm:$0xff]  ;;  %241 = vst [vmem:[#allocation2 + $0x20] sm:$0x3] %v2012_v60 }
  0x59   : > { %683 = vmatpush.msra.mxu0 %v1814_v5  ;;  %712 = vmatpush.msra.mxu1 %v1815_v6  ;;  %v1905_v5 = vld [vmem:[%s3526_s3 + $0x358] sm:$0xff]  ;;  %v1870_v6 = vld [vmem:[%s3526_s3 + $0x240] sm:$0xff]  ;;  %242 = vst [vmem:[#allocation2 + $0x48] sm:$0x3] %v2012_v60 }
  0x5a   : > { %742 = vmatpush.msra.mxu2 %v1812_v7  ;;  %771 = vmatpush.msra.mxu3 %v1813_v8  ;;  %v1886_v7 = vld [vmem:[%s3526_s3 + $0x2c0] sm:$0xff]  ;;  %v1921_v8 = vld [vmem:[%s3526_s3 + $0x3d8] sm:$0xff]  ;;  %243 = vst [vmem:[#allocation2 + $0x70] sm:$0x3] %v2012_v60 }
  0x5b   : > { %684 = vmatpush.msra.mxu0 %v1810_v9  ;;  %713 = vmatpush.msra.mxu1 %v1811_v10  ;;  %244 = vst [vmem:[#allocation2 + $0x90] sm:$0x3] %v2012_v60  ;;  %v1863_v60 = vld [vmem:[%s3526_s3 + $0x208] sm:$0xff] }
  0x5c   : > { %1785 = vmatmul.msk.f32.gmra.mxu0 %vm350_vm0, %v248_v11  ;;  %1789 = vmatmul.msk.f32.gmra.mxu1 %vm350_vm0, %v248_v11 }
  0x5d   : > { %1793 = vmatmul.msk.f32.gmra.mxu2 %vm350_vm0, %v248_v11  ;;  %1797 = vmatmul.msk.f32.gmra.mxu3 %vm350_vm0, %v248_v11  ;;  %v1904_v11 = vld [vmem:[%s3526_s3 + $0x350] sm:$0xff] }
  0x5e   : > { %743 = vmatpush.msra.mxu2 %v1808_v12  ;;  %772 = vmatpush.msra.mxu3 %v1809_v13  ;;  %v1869_v12 = vld [vmem:[%s3526_s3 + $0x238] sm:$0xff] }
  0x5f   : > { %685 = vmatpush.msra.mxu0 %v1806_v14  ;;  %714 = vmatpush.msra.mxu1 %v1807_v15  ;;  %v1885_v13 = vld [vmem:[%s3526_s3 + $0x2b8] sm:$0xff] }
  0x60   : > { %744 = vmatpush.msra.mxu2 %v1804_v16  ;;  %773 = vmatpush.msra.mxu3 %v1805_v17  ;;  %v1920_v16 = vld [vmem:[%s3526_s3 + $0x3d0] sm:$0xff]  ;;  %v1903_v17 = vld [vmem:[%s3526_s3 + $0x348] sm:$0xff] }
  0x61   : > { %686 = vmatpush.msra.mxu0 %v1802_v18  ;;  %715 = vmatpush.msra.mxu1 %v1803_v19  ;;  %v1868_v18 = vld [vmem:[%s3526_s3 + $0x230] sm:$0xff] }
  0x62   : > { %745 = vmatpush.msra.mxu2 %v1800_v20  ;;  %774 = vmatpush.msra.mxu3 %v1801_v21  ;;  %v1884_v19 = vld [vmem:[%s3526_s3 + $0x2b0] sm:$0xff]  ;;  %v1919_v20 = vld [vmem:[%s3526_s3 + $0x3c8] sm:$0xff]  ;;  %v1902_v21 = vld [vmem:[%s3526_s3 + $0x340] sm:$0xff] }
  0x63   : > { %687 = vmatpush.msra.mxu0 %v1798_v22  ;;  %716 = vmatpush.msra.mxu1 %v1799_v23  ;;  %v1867_v22 = vld [vmem:[%s3526_s3 + $0x228] sm:$0xff] }
  0x64   : > { %1846 = vmatmul.msk.f32.vlgmr.msra.gmra.mxu0 %vm350_vm0, %v607_v24  ;;  %1850 = vmatmul.msk.f32.vlgmr.msra.gmra.mxu1 %vm350_vm0, %v607_v24  ;;  %v1883_v23 = vld [vmem:[%s3526_s3 + $0x2a8] sm:$0xff] }
  0x65   : > { %1854 = vmatmul.msk.f32.vlgmr.msra.gmra.mxu2 %vm350_vm0, %v607_v24  ;;  %1858 = vmatmul.msk.f32.vlgmr.msra.gmra.mxu3 %vm350_vm0, %v607_v24  ;;  %v1918_v24 = vld [vmem:[%s3526_s3 + $0x3c0] sm:$0xff] }
  0x66   : > { %1157 = vmatpush.msrb.mxu0 %v1877_v38  ;;  %1186 = vmatpush.msrb.mxu1 %v1893_v39  ;;  %v1917_v38 = vld [vmem:[%s3526_s3 + $0x3b8] sm:$0xff] }
  0x67   : > { %1215 = vmatpush.msrb.mxu2 %v1909_v48  ;;  %1244 = vmatpush.msrb.mxu3 %v1925_v51  ;;  %v1899_v51 = vld [vmem:[%s3526_s3 + $0x328] sm:$0xff] }
  0x68   : > { %1158 = vmatpush.msrb.mxu0 %v1876_v44  ;;  %1187 = vmatpush.msrb.mxu1 %v1892_v45  ;;  %v1900_v45 = vld [vmem:[%s3526_s3 + $0x330] sm:$0xff] }
  0x69   : > { %1216 = vmatpush.msrb.mxu2 %v1908_v52  ;;  %1245 = vmatpush.msrb.mxu3 %v1924_v57  ;;  %v1864_v52 = vld [vmem:[%s3526_s3 + $0x210] sm:$0xff]  ;;  %v1898_v57 = vld [vmem:[%s3526_s3 + $0x320] sm:$0xff] }
  0x6a   : > { %1159 = vmatpush.msrb.mxu0 %v1875_v46  ;;  %1188 = vmatpush.msrb.mxu1 %v1891_v47  ;;  %v1865_v46 = vld [vmem:[%s3526_s3 + $0x218] sm:$0xff] }
  0x6b   : > { %1217 = vmatpush.msrb.mxu2 %v1907_v61  ;;  %1246 = vmatpush.msrb.mxu3 %v1923_v0  ;;  %v1881_v47 = vld [vmem:[%s3526_s3 + $0x298] sm:$0xff]  ;;  %v1879_v61 = vld [vmem:[%s3526_s3 + $0x288] sm:$0xff]  ;;  %v1914_v0 = vld [vmem:[%s3526_s3 + $0x3a0] sm:$0xff] }
  0x6c   : > { %1847 = vmatmul.msk.f32.gmra.mxu0 %vm350_vm0, %v608_v25  ;;  %1851 = vmatmul.msk.f32.gmra.mxu1 %vm350_vm0, %v608_v25 }
  0x6d   : > { %1855 = vmatmul.msk.f32.gmra.mxu2 %vm350_vm0, %v608_v25  ;;  %1859 = vmatmul.msk.f32.gmra.mxu3 %vm350_vm0, %v608_v25  ;;  %v1901_v25 = vld [vmem:[%s3526_s3 + $0x338] sm:$0xff] }
  0x6e   : > { %1160 = vmatpush.msrb.mxu0 %v1874_v49  ;;  %1189 = vmatpush.msrb.mxu1 %v1890_v50  ;;  %v1916_v50 = vld [vmem:[%s3526_s3 + $0x3b0] sm:$0xff] }
  0x6f   : > { %1218 = vmatpush.msrb.mxu2 %v1906_v1  ;;  %1247 = vmatpush.msrb.mxu3 %v1922_v4  ;;  %v1862_v4 = vld [vmem:[%s3526_s3 + $0x200] sm:$0xff] }
  0x70   : > { %1161 = vmatpush.msrb.mxu0 %v1873_v55  ;;  %1190 = vmatpush.msrb.mxu1 %v1889_v56  ;;  %v1880_v55 = vld [vmem:[%s3526_s3 + $0x290] sm:$0xff]  ;;  %v1915_v56 = vld [vmem:[%s3526_s3 + $0x3a8] sm:$0xff] }
  0x71   : > { %1219 = vmatpush.msrb.mxu2 %v1905_v5  ;;  %1248 = vmatpush.msrb.mxu3 %v1921_v8  ;;  %v1878_v5 = vld [vmem:[%s3526_s3 + $0x280] sm:$0xff]  ;;  %v1912_v8 = vld [vmem:[%s3526_s3 + $0x390] sm:$0xff] }
  0x72   : > { %1162 = vmatpush.msrb.mxu0 %v1872_v62  ;;  %1191 = vmatpush.msrb.mxu1 %v1888_v63 }
  0x73   : > { %1220 = vmatpush.msrb.mxu2 %v1904_v11  ;;  %1249 = vmatpush.msrb.mxu3 %v1920_v16  ;;  %v962_v11 = vld [vmem:[%s3526_s3 + $0x78] sm:$0xff]  ;;  %v1895_v16 = vld [vmem:[%s3526_s3 + $0x308] sm:$0xff] }
  0x74   : > { %1848 = vmatmul.msk.f32.gmra.mxu0 %vm350_vm0, %v609_v26  ;;  %1852 = vmatmul.msk.f32.gmra.mxu1 %vm350_vm0, %v609_v26 }
  0x75   : > { %1856 = vmatmul.msk.f32.gmra.mxu2 %vm350_vm0, %v609_v26  ;;  %1860 = vmatmul.msk.f32.gmra.mxu3 %vm350_vm0, %v609_v26  ;;  %v1866_v26 = vld [vmem:[%s3526_s3 + $0x220] sm:$0xff] }
  0x76   : > { %1163 = vmatpush.msrb.mxu0 %v1871_v2  ;;  %1192 = vmatpush.msrb.mxu1 %v1887_v3  ;;  %v1897_v3 = vld [vmem:[%s3526_s3 + $0x318] sm:$0xff] }
  0x77   : > { %1221 = vmatpush.msrb.mxu2 %v1903_v17  ;;  %1250 = vmatpush.msrb.mxu3 %v1919_v20  ;;  %v1911_v17 = vld [vmem:[%s3526_s3 + $0x388] sm:$0xff]  ;;  %v1894_v20 = vld [vmem:[%s3526_s3 + $0x300] sm:$0xff] }
  0x78   : > { %1164 = vmatpush.msrb.mxu0 %v1870_v6  ;;  %1193 = vmatpush.msrb.mxu1 %v1886_v7  ;;  %v1913_v6 = vld [vmem:[%s3526_s3 + $0x398] sm:$0xff]  ;;  %v1896_v7 = vld [vmem:[%s3526_s3 + $0x310] sm:$0xff] }
  0x79   : > { %1222 = vmatpush.msrb.mxu2 %v1902_v21  ;;  %1251 = vmatpush.msrb.mxu3 %v1918_v24  ;;  %v1910_v21 = vld [vmem:[%s3526_s3 + $0x380] sm:$0xff] }
  0x7a   : > { %1165 = vmatpush.msrb.mxu0 %v1869_v12  ;;  %1194 = vmatpush.msrb.mxu1 %v1885_v13  ;;  %v804_v12 = vld [vmem:[%s3525_s2] sm:$0xf]  ;;  %v978_v13 = vld [vmem:[%s3526_s3 + $0xf8] sm:$0xff] }
  0x7b   : > { %1223 = vmatpush.msrb.mxu2 %v1901_v25  ;;  %1252 = vmatpush.msrb.mxu3 %v1917_v38  ;;  %v2841_v38 = vperm.slane %v804_v12, 1 }
  0x7c   : > { %1849 = vmatmul.msk.f32.gmra.mxu0 %vm350_vm0, %v610_v27  ;;  %1853 = vmatmul.msk.f32.gmra.mxu1 %vm350_vm0, %v610_v27 }
  0x7d   : > { %1857 = vmatmul.msk.f32.gmra.mxu2 %vm350_vm0, %v610_v27  ;;  %1861 = vmatmul.msk.f32.gmra.mxu3 %vm350_vm0, %v610_v27  ;;  %v1882_v27 = vld [vmem:[%s3526_s3 + $0x2a0] sm:$0xff] }
  0x7e   : > { %1166 = vmatpush.msrb.mxu0 %v1868_v18  ;;  %1195 = vmatpush.msrb.mxu1 %v1884_v19  ;;  %v961_v18 = vld [vmem:[%s3526_s3 + $0x70] sm:$0xff] }
  0x7f   : > { %1224 = vmatpush.msrb.mxu2 %v1900_v45  ;;  %1253 = vmatpush.msrb.mxu3 %v1916_v50  ;;  %v977_v19 = vld [vmem:[%s3526_s3 + $0xf0] sm:$0xff]  ;;  %v976_v45 = vld [vmem:[%s3526_s3 + $0xe8] sm:$0xff] }
  0x80   : > { %1167 = vmatpush.msrb.mxu0 %v1867_v22  ;;  %1196 = vmatpush.msrb.mxu1 %v1883_v23  ;;  %v960_v22 = vld [vmem:[%s3526_s3 + $0x68] sm:$0xff] }
  0x81   : > { %1225 = vmatpush.msrb.mxu2 %v1899_v51  ;;  %1254 = vmatpush.msrb.mxu3 %v1915_v56  ;;  %v1010_v51 = vld [vmem:[%s3526_s3 + $0x1f8] sm:$0xff] }
  0x82   : > { %1168 = vmatpush.msrb.mxu0 %v1866_v26  ;;  %1197 = vmatpush.msrb.mxu1 %v1882_v27  ;;  %v2839_v27 = vperm.slane %v804_v12, 0  ;;  %v974_v56 = vld [vmem:[%s3526_s3 + $0xd8] sm:$0xff] }
  0x83   : > { %1226 = vmatpush.msrb.mxu2 %v1898_v57  ;;  %1255 = vmatpush.msrb.mxu3 %v1914_v0  ;;  %v992_v0 = vld [vmem:[%s3526_s3 + $0x168] sm:$0xff] }
  0x84   : > { %1169 = vmatpush.msrb.mxu0 %v1865_v46  ;;  %1198 = vmatpush.msrb.mxu1 %v1881_v47 }
  0x85   : > { %1227 = vmatpush.msrb.mxu2 %v1897_v3  ;;  %1256 = vmatpush.msrb.mxu3 %v1913_v6  ;;  %v957_v3 = vld [vmem:[%s3526_s3 + $0x50] sm:$0xff] }
  0x86   : > { %1170 = vmatpush.msrb.mxu0 %v1864_v52  ;;  %1199 = vmatpush.msrb.mxu1 %v1880_v55  ;;  %v993_v52 = vld [vmem:[%s3526_s3 + $0x170] sm:$0xff]  ;;  %v958_v55 = vld [vmem:[%s3526_s3 + $0x58] sm:$0xff] }
  0x87   : > { %1228 = vmatpush.msrb.mxu2 %v1896_v7  ;;  %1257 = vmatpush.msrb.mxu3 %v1912_v8  ;;  %v1008_v7 = vld [vmem:[%s3526_s3 + $0x1e8] sm:$0xff] }
  0x88   : > { %1171 = vmatpush.msrb.mxu0 %v1863_v60  ;;  %1200 = vmatpush.msrb.mxu1 %v1879_v61  ;;  %v1009_v61 = vld [vmem:[%s3526_s3 + $0x1f0] sm:$0xff] }
  0x89   : > { %1229 = vmatpush.msrb.mxu2 %v1895_v16  ;;  %1258 = vmatpush.msrb.mxu3 %v1911_v17  ;;  %v2890_v16 = vperm.slane %v804_v12, 3  ;;  %v991_v17 = vld [vmem:[%s3526_s3 + $0x160] sm:$0xff] }
  0x8a   : > { %1172 = vmatpush.msrb.mxu0 %v1862_v4  ;;  %1201 = vmatpush.msrb.mxu1 %v1878_v5  ;;  %v973_v4 = vld [vmem:[%s3526_s3 + $0xd0] sm:$0xff] }
  0x8b   : > { %1230 = vmatpush.msrb.mxu2 %v1894_v20  ;;  %1259 = vmatpush.msrb.mxu3 %v1910_v21  ;;  %v1007_v21 = vld [vmem:[%s3526_s3 + $0x1e0] sm:$0xff] }
  0x8c   : > { %1273 = vmatpush.msra.mxu0 %v962_v11  ;;  %1302 = vmatpush.msra.mxu1 %v978_v13  ;;  %v2888_v13 = vperm.slane %v804_v12, 2 }
  0x8d   : > { %1360 = vmatpush.msra.mxu3 %v1010_v51 }
  0x8e   : > { %1274 = vmatpush.msra.mxu0 %v961_v18  ;;  %1303 = vmatpush.msra.mxu1 %v977_v19  ;;  %v956_v18 = vld [vmem:[%s3526_s3 + $0x48] sm:$0xff] }
  0x8f   : > { %1361 = vmatpush.msra.mxu3 %v1009_v61 }
  0x90   : > { %1275 = vmatpush.msra.mxu0 %v960_v22  ;;  %1304 = vmatpush.msra.mxu1 %v976_v45 }
  0x91   : > { %1362 = vmatpush.msra.mxu3 %v1008_v7 }
  0x93   : > { %1363 = vmatpush.msra.mxu3 %v1007_v21 }
  0xa1   : > { %v2561_v28 = vpop.f32.mrf.mxu0  ;;  %v2563_v29 = vpop.f32.mrf.mxu1 }
  0xa8   : > { %v2565_v30 = vpop.f32.mrf.mxu2  ;;  %v2567_v31 = vpop.f32.mrf.mxu3 }
  0xa9   : > { %v2569_v32 = vpop.f32.mrf.mxu0  ;;  %v2571_v33 = vpop.f32.mrf.mxu1 }
  0xb0   : > { %v2573_v34 = vpop.f32.mrf.mxu2  ;;  %v2575_v35 = vpop.f32.mrf.mxu3 }
  0xb1   : > { %v2577_v36 = vpop.f32.mrf.mxu0  ;;  %v2579_v37 = vpop.f32.mrf.mxu1 }
  0xb8   : > { %v2587_v40 = vpop.f32.mrf.mxu2  ;;  %v2589_v41 = vpop.f32.mrf.mxu3 }
  0xb9   : > { %v2591_v42 = vpop.f32.mrf.mxu0  ;;  %v2593_v43 = vpop.f32.mrf.mxu1 }
  0xc0   : > { %v2622_v53 = vpop.f32.mrf.mxu2  ;;  %v2624_v54 = vpop.f32.mrf.mxu3 }
  0xc1   : > { %v2635_v58 = vpop.f32.mrf.mxu0  ;;  %v2637_v59 = vpop.f32.mrf.mxu1 }
  0xc2   : > { %v509_v23 = vadd.f32 %v2635_v58, %v2561_v28  ;;  %v538_v24 = vadd.f32 %v2637_v59, %v2563_v29  ;;  %v994_v28 = vld [vmem:[%s3526_s3 + $0x178] sm:$0xff]  ;;  %v959_v29 = vld [vmem:[%s3526_s3 + $0x60] sm:$0xff] }
  0xc3   : > { %v975_v58 = vld [vmem:[%s3526_s3 + $0xe0] sm:$0xff]  ;;  %1331 = vmatpush.msra.mxu2 %v994_v28  ;;  %1276 = vmatpush.msra.mxu0 %v959_v29 }
  0xc4   : > { %1305 = vmatpush.msra.mxu1 %v975_v58  ;;  %v989_v58 = vld [vmem:[%s3526_s3 + $0x150] sm:$0xff] }
  0xc5   : > { %1332 = vmatpush.msra.mxu2 %v993_v52  ;;  %1277 = vmatpush.msra.mxu0 %v958_v55  ;;  %v1005_v55 = vld [vmem:[%s3526_s3 + $0x1d0] sm:$0xff] }
  0xc6   : > { %1306 = vmatpush.msra.mxu1 %v974_v56  ;;  %v988_v56 = vld [vmem:[%s3526_s3 + $0x148] sm:$0xff] }
  0xc7   : > { %1333 = vmatpush.msra.mxu2 %v992_v0  ;;  %1278 = vmatpush.msra.mxu0 %v957_v3  ;;  %v969_v0 = vld [vmem:[%s3526_s3 + $0xb0] sm:$0xff]  ;;  %v1004_v3 = vld [vmem:[%s3526_s3 + $0x1c8] sm:$0xff] }
  0xc8   : > { %v2675_v9 = vpop.f32.mrf.mxu2  ;;  %v2677_v10 = vpop.f32.mrf.mxu3  ;;  %1307 = vmatpush.msra.mxu1 %v973_v4  ;;  %v987_v4 = vld [vmem:[%s3526_s3 + $0x140] sm:$0xff] }
  0xc9   : > { %v2688_v14 = vpop.f32.mrf.mxu0  ;;  %v2690_v15 = vpop.f32.mrf.mxu1  ;;  %v567_v8 = vadd.f32 %v2675_v9, %v2565_v30  ;;  %v596_v11 = vadd.f32 %v2677_v10, %v2567_v31  ;;  %v972_v30 = vld [vmem:[%s3526_s3 + $0xc8] sm:$0xff]  ;;  %1334 = vmatpush.msra.mxu2 %v991_v17  ;;  %1279 = vmatpush.msra.mxu0 %v956_v18  ;;  %v1003_v18 = vld [vmem:[%s3526_s3 + $0x1c0] sm:$0xff] }
  0xca   : > { %v512_v31 = vadd.f32 %v2688_v14, %v2569_v32  ;;  %v541_v9 = vadd.f32 %v2690_v15, %v2571_v33  ;;  %1308 = vmatpush.msra.mxu1 %v972_v30  ;;  %v990_v32 = vld [vmem:[%s3526_s3 + $0x158] sm:$0xff]  ;;  %v955_v33 = vld [vmem:[%s3526_s3 + $0x40] sm:$0xff]  ;;  %v968_v17 = vld [vmem:[%s3526_s3 + $0xa8] sm:$0xff] }
  0xcb   : > { %v971_v14 = vld [vmem:[%s3526_s3 + $0xc0] sm:$0xff]  ;;  %1335 = vmatpush.msra.mxu2 %v990_v32  ;;  %1280 = vmatpush.msra.mxu0 %v955_v33 }
  0xcc   : > { %1309 = vmatpush.msra.mxu1 %v971_v14 }
  0xcd   : > { %1336 = vmatpush.msra.mxu2 %v989_v58 }
  0xcf   : > { %1337 = vmatpush.msra.mxu2 %v988_v56 }
  0xd0   : > { %v2731_v39 = vpop.f32.mrf.mxu2  ;;  %v2733_v44 = vpop.f32.mrf.mxu3 }
  0xd1   : > { %v2744_v48 = vpop.f32.mrf.mxu0  ;;  %v2746_v49 = vpop.f32.mrf.mxu1  ;;  %1338 = vmatpush.msra.mxu2 %v987_v4 }
  0xd8   : > { %v2772_v62 = vpop.f32.mrf.mxu2  ;;  %v2774_v63 = vpop.f32.mrf.mxu3 }
  0xd9   : > { %v2779_v1 = vpop.f32.mrf.mxu0  ;;  %v2781_v2 = vpop.f32.mrf.mxu1 }
  0xe0   : > { %v2835_v25 = vpop.f32.mrf.mxu2  ;;  %v2837_v26 = vpop.f32.mrf.mxu3 }
  0xe1   : > { %v689_v46 = vpop.f32.mrf.mxu0  ;;  %v718_v47 = vpop.f32.mrf.mxu1 }
  0xe2   : > { %v788_v59 = vadd.f32 %v689_v46, %v509_v23  ;;  %v789_v50 = vadd.f32 %v718_v47, %v538_v24  ;;  %v1006_v47 = vld [vmem:[%s3526_s3 + $0x1d8] sm:$0xff] }
  0xe3   : > { %1364 = vmatpush.msra.mxu3 %v1006_v47  ;;  %v950_v47 = vld [vmem:[%s3526_s3 + $0x18] sm:$0xff] }
  0xe4   : > { %v814_v57 = vadd.f32 %v2839_v27, %v788_v59  ;;  %v815_v60 = vadd.f32 %v2841_v38, %v789_v50  ;;  %v954_v59 = vld [vmem:[%s3526_s3 + $0x38] sm:$0xff] }
  0xe5   : > { %v970_v50 = vld [vmem:[%s3526_s3 + $0xb8] sm:$0xff]  ;;  %1281 = vmatpush.msra.mxu0 %v954_v59  ;;  %1365 = vmatpush.msra.mxu3 %v1005_v55  ;;  %v1001_v55 = vld [vmem:[%s3526_s3 + $0x1b0] sm:$0xff] }
  0xe6   : > { %v830_v5 = vmax.f32 %v814_v57, 0.0  ;;  %v831_v6 = vmax.f32 %v815_v60, 0.0  ;;  %v953_v57 = vld [vmem:[%s3526_s3 + $0x30] sm:$0xff]  ;;  %1310 = vmatpush.msra.mxu1 %v970_v50 }
  0xe7   : > { %1282 = vmatpush.msra.mxu0 %v953_v57  ;;  %1366 = vmatpush.msra.mxu3 %v1004_v3  ;;  %v573_v3 = vadd.f32 %v2772_v62, %v2587_v40  ;;  %v547_v62 = vadd.f32 %v2781_v2, %v2593_v43  ;;  %v983_v43 = vld [vmem:[%s3526_s3 + $0x120] sm:$0xff] }
  0xe8   : > { %v2905_v10 = vrot.slane %v830_v5, 7  ;;  %v2907_v12 = vrot.slane %v831_v6, 7  ;;  %v747_v19 = vpop.f32.mrf.mxu2  ;;  %v776_v20 = vpop.f32.mrf.mxu3  ;;  %v570_v5 = vadd.f32 %v2731_v39, %v2573_v34  ;;  %v599_v6 = vadd.f32 %v2733_v44, %v2575_v35  ;;  %1311 = vmatpush.msra.mxu1 %v969_v0  ;;  %v949_v0 = vld [vmem:[%s3526_s3 + $0x10] sm:$0xff] }
  0xe9   : > { %v790_v22 = vadd.f32 %v747_v19, %v567_v8  ;;  %v791_v23 = vadd.f32 %v776_v20, %v596_v11  ;;  %v692_v24 = vpop.f32.mrf.mxu0  ;;  %v721_v45 = vpop.f32.mrf.mxu1  ;;  %v952_v11 = vld [vmem:[%s3526_s3 + $0x28] sm:$0xff]  ;;  %v515_v34 = vadd.f32 %v2744_v48, %v2577_v36  ;;  %v544_v44 = vadd.f32 %v2746_v49, %v2579_v37  ;;  %v986_v36 = vld [vmem:[%s3526_s3 + $0x138] sm:$0xff]  ;;  %v951_v48 = vld [vmem:[%s3526_s3 + $0x20] sm:$0xff]  ;;  %1367 = vmatpush.msra.mxu3 %v1003_v18 }
  0xea   : > { %911 = vst [vmem:[#allocation2] sm:$0xfe] %v2905_v10  ;;  %v792_v15 = vadd.f32 %v692_v24, %v512_v31  ;;  %v793_v46 = vadd.f32 %v721_v45, %v541_v9  ;;  %1283 = vmatpush.msra.mxu0 %v952_v11  ;;  %1312 = vmatpush.msra.mxu1 %v968_v17  ;;  %v1002_v24 = vld [vmem:[%s3526_s3 + $0x1b8] sm:$0xff] }
  0xeb   : > { %912 = vst [vmem:[#allocation2 + $0x38] sm:$0xfe] %v2907_v12  ;;  %v816_v28 = vadd.f32 %v2888_v13, %v790_v22  ;;  %v817_v29 = vadd.f32 %v2890_v16, %v791_v23  ;;  %v967_v23 = vld [vmem:[%s3526_s3 + $0xa0] sm:$0xff]  ;;  %1339 = vmatpush.msra.mxu2 %v986_v36  ;;  %1368 = vmatpush.msra.mxu3 %v1002_v24 }
  0xec   : > { %v818_v51 = vadd.f32 %v2839_v27, %v792_v15  ;;  %v819_v52 = vadd.f32 %v2841_v38, %v793_v46  ;;  %v985_v46 = vld [vmem:[%s3526_s3 + $0x130] sm:$0xff]  ;;  %1284 = vmatpush.msra.mxu0 %v951_v48  ;;  %1313 = vmatpush.msra.mxu1 %v967_v23  ;;  %v518_v11 = vadd.f32 %v2779_v1, %v2591_v42  ;;  %v1000_v1 = vld [vmem:[%s3526_s3 + $0x1a8] sm:$0xff]  ;;  %v982_v23 = vld [vmem:[%s3526_s3 + $0x118] sm:$0xff] }
  0xed   : > { %v832_v60 = vmax.f32 %v816_v28, 0.0  ;;  %v833_v61 = vmax.f32 %v817_v29, 0.0  ;;  %1340 = vmatpush.msra.mxu2 %v985_v46  ;;  %1369 = vmatpush.msra.mxu3 %v1001_v55  ;;  %v3053_v18 = vadd.f32 %v2835_v25, %v2622_v53 }
  0xee   : > { %v834_v7 = vmax.f32 %v818_v51, 0.0  ;;  %v835_v8 = vmax.f32 %v819_v52, 0.0  ;;  %1285 = vmatpush.msra.mxu0 %v950_v47 }
  0xef   : > { %v2972_v35 = vrot.slane %v832_v60, 7  ;;  %v2974_v39 = vrot.slane %v833_v61, 7  ;;  %v984_v61 = vld [vmem:[%s3526_s3 + $0x128] sm:$0xff]  ;;  %1370 = vmatpush.msra.mxu3 %v1000_v1 }
  0xf0   : > { %v2978_v30 = vrot.slane %v834_v7, 7  ;;  %v2980_v31 = vrot.slane %v835_v8, 7  ;;  %v750_v9 = vpop.f32.mrf.mxu2  ;;  %v779_v19 = vpop.f32.mrf.mxu3  ;;  %v965_v7 = vld [vmem:[%s3526_s3 + $0x90] sm:$0xff]  ;;  %v602_v8 = vadd.f32 %v2774_v63, %v2589_v41  ;;  %1341 = vmatpush.msra.mxu2 %v984_v61  ;;  %1286 = vmatpush.msra.mxu0 %v949_v0 }
  0xf1   : > { %913 = vst [vmem:[#allocation2 + $0x50] sm:$0xfe] %v2972_v35  ;;  %v794_v37 = vadd.f32 %v750_v9, %v570_v5  ;;  %v795_v49 = vadd.f32 %v779_v19, %v599_v6  ;;  %v695_v20 = vpop.f32.mrf.mxu0  ;;  %v724_v21 = vpop.f32.mrf.mxu1  ;;  %v1011_v22 = vld [vmem:[#allocation2] sm:$0xfe] }
  0xf2   : > { %914 = vst [vmem:[#allocation2 + $0x18] sm:$0xfe] %v2974_v39  ;;  %v2999_v45 = vsel %vm862_vm1, %v2905_v10, %v2978_v30  ;;  %v3004_v32 = vsel %vm862_vm1, %v2907_v12, %v2980_v31  ;;  %v796_v33 = vadd.f32 %v695_v20, %v515_v34  ;;  %v797_v14 = vadd.f32 %v724_v21, %v544_v44  ;;  %v1012_v15 = vld [vmem:[#allocation2 + $0x38] sm:$0xfe] }
  0xf3   : > { %v820_v28 = vadd.f32 %v2888_v13, %v794_v37  ;;  %v821_v10 = vadd.f32 %v2890_v16, %v795_v49  ;;  %v1105_v29 = vrot.slane %v1011_v22, 1  ;;  %v1106_v58 = vrot.slane %v2999_v45, 1  ;;  %v966_v12 = vld [vmem:[%s3526_s3 + $0x98] sm:$0xff]  ;;  %v948_v37 = vld [vmem:[%s3526_s3 + $0x8] sm:$0xff]  ;;  %v999_v22 = vld [vmem:[%s3526_s3 + $0x1a0] sm:$0xff]  ;;  %1342 = vmatpush.msra.mxu2 %v983_v43 }
  0xf4   : > { %v822_v59 = vadd.f32 %v2839_v27, %v796_v33  ;;  %v823_v50 = vadd.f32 %v2841_v38, %v797_v14  ;;  %v1108_v51 = vrot.slane %v1012_v15, 1  ;;  %v1109_v52 = vrot.slane %v3004_v32, 1  ;;  %1314 = vmatpush.msra.mxu1 %v966_v12  ;;  %1287 = vmatpush.msra.mxu0 %v948_v37  ;;  %v1940_v43 = vld [vmem:[%s3526_s3 + $0x470] sm:$0xff] }
  0xf5   : > { %v836_v56 = vmax.f32 %v820_v28, 0.0  ;;  %v837_v57 = vmax.f32 %v821_v10, 0.0  ;;  %v1107_v60 = vsel %vm1104_vm2, %v1105_v29, %v1106_v58  ;;  %v963_v10 = vld [vmem:[%s3526_s3 + $0x80] sm:$0xff]  ;;  %1371 = vmatpush.msra.mxu3 %v999_v22  ;;  %1343 = vmatpush.msra.mxu2 %v982_v23  ;;  %v1939_v23 = vld [vmem:[%s3526_s3 + $0x468] sm:$0xff] }
  0xf6   : > { %v838_v4 = vmax.f32 %v822_v59, 0.0  ;;  %v839_v5 = vmax.f32 %v823_v50, 0.0  ;;  %1173 = vmatmul.f32.vlgmr.msrb.gmra.mxu0 %v1107_v60  ;;  %v1110_v6 = vsel %vm1104_vm2, %v1108_v51, %v1109_v52  ;;  %1315 = vmatpush.msra.mxu1 %v965_v7 }
  0xf7   : > { %v3045_v17 = vrot.slane %v836_v56, 7  ;;  %v3047_v40 = vrot.slane %v837_v57, 7  ;;  %1202 = vmatmul.f32.vlgmr.msrb.gmra.mxu1 %v1110_v6  ;;  %v605_v57 = vadd.f32 %v2837_v26, %v2624_v54 }
  0xf8   : > { %v3055_v34 = vrot.slane %v838_v4, 7  ;;  %v3057_v44 = vrot.slane %v839_v5, 7  ;;  %v753_v41 = vpop.f32.mrf.mxu2  ;;  %v782_v63 = vpop.f32.mrf.mxu3  ;;  %v1013_v42 = vld [vmem:[#allocation2 + $0x50] sm:$0xfe] }
  0xf9   : > { %v3068_v53 = vsel %vm862_vm1, %v2972_v35, %v3045_v17  ;;  %v3073_v2 = vsel %vm862_vm1, %v2974_v39, %v3047_v40  ;;  %v798_v25 = vadd.f32 %v753_v41, %v573_v3  ;;  %v799_v9 = vadd.f32 %v782_v63, %v602_v8  ;;  %v698_v19 = vpop.f32.mrf.mxu0  ;;  %v727_v36 = vpop.f32.mrf.mxu1  ;;  %v1014_v48 = vld [vmem:[#allocation2 + $0x18] sm:$0xfe]  ;;  %v964_v35 = vld [vmem:[%s3526_s3 + $0x88] sm:$0xff]  ;;  %v981_v3 = vld [vmem:[%s3526_s3 + $0x110] sm:$0xff] }
  0xfa   : > { %v3084_v49 = vsel %vm862_vm1, %v2978_v30, %v3055_v34  ;;  %v3089_v39 = vsel %vm862_vm1, %v2980_v31, %v3057_v44  ;;  %v800_v20 = vadd.f32 %v698_v19, %v518_v11  ;;  %v801_v21 = vadd.f32 %v727_v36, %v547_v62  ;;  %v947_v31 = vld [vmem:[%s3526_s3] sm:$0xff]  ;;  %1316 = vmatpush.msra.mxu1 %v964_v35  ;;  %v997_v4 = vld [vmem:[%s3526_s3 + $0x190] sm:$0xff]  ;;  %v1957_v8 = vld [vmem:[%s3526_s3 + $0x4f8] sm:$0xff] }
  0xfb   : > { %v824_v24 = vadd.f32 %v2888_v13, %v798_v25  ;;  %v825_v30 = vadd.f32 %v2890_v16, %v799_v9  ;;  %v1111_v33 = vrot.slane %v1013_v42, 1  ;;  %v1112_v14 = vrot.slane %v3068_v53, 1  ;;  %1288 = vmatpush.msra.mxu0 %v947_v31  ;;  %v980_v63 = vld [vmem:[%s3526_s3 + $0x108] sm:$0xff]  ;;  %1344 = vmatpush.msra.mxu2 %v981_v3  ;;  %v1956_v25 = vld [vmem:[%s3526_s3 + $0x4f0] sm:$0xff]  ;;  %v995_v36 = vld [vmem:[%s3526_s3 + $0x180] sm:$0xff] }
  0xfc   : > { %v826_v15 = vadd.f32 %v2839_v27, %v800_v20  ;;  %v827_v46 = vadd.f32 %v2841_v38, %v801_v21  ;;  %v1114_v47 = vrot.slane %v1014_v48, 1  ;;  %v1115_v28 = vrot.slane %v3073_v2, 1  ;;  %v998_v27 = vld [vmem:[%s3526_s3 + $0x198] sm:$0xff]  ;;  %1317 = vmatpush.msra.mxu1 %v963_v10  ;;  %v996_v42 = vld [vmem:[%s3526_s3 + $0x188] sm:$0xff]  ;;  %v1954_v31 = vld [vmem:[%s3526_s3 + $0x4e0] sm:$0xff] }
  0xfd   : > { %v840_v29 = vmax.f32 %v824_v24, 0.0  ;;  %v841_v12 = vmax.f32 %v825_v30, 0.0  ;;  %v1113_v59 = vsel %vm1104_vm2, %v1111_v33, %v1112_v14  ;;  %v1117_v50 = vrot.slane %v3084_v49, 1  ;;  %1372 = vmatpush.msra.mxu3 %v998_v27  ;;  %1345 = vmatpush.msra.mxu2 %v980_v63  ;;  %v1955_v21 = vld [vmem:[%s3526_s3 + $0x4e8] sm:$0xff]  ;;  %v1973_v24 = vld [vmem:[%s3526_s3 + $0x578] sm:$0xff]  ;;  %v1972_v27 = vld [vmem:[%s3526_s3 + $0x570] sm:$0xff] }
  0xfe   : > { %v842_v38 = vmax.f32 %v826_v15, 0.0  ;;  %v843_v51 = vmax.f32 %v827_v46, 0.0  ;;  %1231 = vmatmul.f32.vlgmr.msrb.gmra.mxu2 %v1113_v59  ;;  %v1116_v55 = vsel %vm1104_vm2, %v1114_v47, %v1115_v28  ;;  %v1119_v56 = vrot.slane %v3089_v39, 1  ;;  %1552 = vmatpush.msrb.mxu1 %v1957_v8  ;;  %v1938_v46 = vld [vmem:[%s3526_s3 + $0x460] sm:$0xff]  ;;  %v1989_v47 = vld [vmem:[%s3526_s3 + $0x5f8] sm:$0xff]  ;;  %v1987_v63 = vld [vmem:[%s3526_s3 + $0x5e8] sm:$0xff] }
  0xff   : > { %v3120_v60 = vrot.slane %v840_v29, 7  ;;  %v3122_v61 = vrot.slane %v841_v12, 7  ;;  %1260 = vmatmul.f32.vlgmr.msrb.gmra.mxu3 %v1116_v55  ;;  %v1118_v0 = vsel %vm1104_vm2, %v1106_v58, %v1117_v50  ;;  %v1941_v58 = vld [vmem:[%s3526_s3 + $0x478] sm:$0xff]  ;;  %v1472_v30 = vrot.slane %v2999_v45, 2 }
 0x100   : > { %v883_v5 = vrot.slane %v842_v38, 7  ;;  %v885_v54 = vrot.slane %v843_v51, 7  ;;  %v756_v26 = vpop.f32.mrf.mxu2  ;;  %v785_v6 = vpop.f32.mrf.mxu3  ;;  %1176 = vmatmul.f32.gmra.mxu0 %v1118_v0  ;;  %v1120_v7 = vsel %vm1104_vm2, %v1109_v52, %v1119_v56  ;;  %1373 = vmatpush.msra.mxu3 %v997_v4  ;;  %v1475_v15 = vrot.slane %v3004_v32, 2  ;;  %v1953_v38 = vld [vmem:[%s3526_s3 + $0x4d8] sm:$0xff]  ;;  %v1952_v4 = vld [vmem:[%s3526_s3 + $0x4d0] sm:$0xff] }
 0x101   : > { %v3145_v11 = vsel %vm862_vm1, %v3045_v17, %v3120_v60  ;;  %v3150_v62 = vsel %vm862_vm1, %v3047_v40, %v3122_v61  ;;  %v802_v52 = vadd.f32 %v756_v26, %v3053_v18  ;;  %v803_v41 = vadd.f32 %v785_v6, %v605_v57  ;;  %1205 = vmatmul.f32.gmra.mxu1 %v1120_v7 }
 0x102   : > { %v3161_v17 = vsel %vm862_vm1, %v3055_v34, %v883_v5  ;;  %v3165_v40 = vsel %vm862_vm1, %v3057_v44, %v885_v54  ;;  %v1121_v18 = vrot.slane %v3145_v11, 1  ;;  %v1123_v1 = vrot.slane %v3150_v62, 1  ;;  %1523 = vmatpush.msrb.mxu0 %v1941_v58  ;;  %1374 = vmatpush.msra.mxu3 %v996_v42  ;;  %927 = vst [vmem:[#allocation2 + $0x20] sm:$0x1] %v883_v5 }
 0x103   : > { %v828_v34 = vadd.f32 %v2888_v13, %v802_v52  ;;  %v829_v9 = vadd.f32 %v2890_v16, %v803_v41  ;;  %v1125_v44 = vrot.slane %v3161_v17, 1  ;;  %v1127_v19 = vrot.slane %v3165_v40, 1  ;;  %v979_v16 = vld [vmem:[%s3526_s3 + $0x100] sm:$0xff]  ;;  %1553 = vmatpush.msrb.mxu1 %v1956_v25  ;;  %928 = vst [vmem:[#allocation2 + $0x48] sm:$0x1] %v885_v54  ;;  %v1971_v52 = vld [vmem:[%s3526_s3 + $0x568] sm:$0xff] }
 0x104   : > { %v1122_v48 = vsel %vm1104_vm2, %v1112_v14, %v1121_v18  ;;  %v1124_v13 = vsel %vm1104_vm2, %v1115_v28, %v1123_v1  ;;  %1524 = vmatpush.msrb.mxu0 %v1940_v43  ;;  %1375 = vmatpush.msra.mxu3 %v995_v36  ;;  %v1478_v28 = vrot.slane %v3068_v53, 2  ;;  %v1481_v10 = vrot.slane %v3073_v2, 2  ;;  %v1936_v25 = vld [vmem:[%s3526_s3 + $0x450] sm:$0xff] }
 0x105   : > { %v844_v37 = vmax.f32 %v828_v34, 0.0  ;;  %v845_v35 = vmax.f32 %v829_v9, 0.0  ;;  %v1126_v20 = vsel %vm1104_vm2, %v1117_v50, %v1125_v44  ;;  %v1128_v22 = vsel %vm1104_vm2, %v1119_v56, %v1127_v19  ;;  %1346 = vmatpush.msra.mxu2 %v979_v16  ;;  %1554 = vmatpush.msrb.mxu1 %v1955_v21  ;;  %v1970_v34 = vld [vmem:[%s3526_s3 + $0x560] sm:$0xff] }
 0x106   : > { %1234 = vmatmul.f32.gmra.mxu2 %v1122_v48  ;;  %v1483_v29 = vrot.slane %v3084_v49, 2  ;;  %v1485_v12 = vrot.slane %v3089_v39, 2  ;;  %1525 = vmatpush.msrb.mxu0 %v1939_v23  ;;  %v1487_v51 = vrot.slane %v3145_v11, 2  ;;  %v1489_v55 = vrot.slane %v3150_v62, 2  ;;  %v1969_v23 = vld [vmem:[%s3526_s3 + $0x558] sm:$0xff] }
 0x107   : > { %v887_v33 = vrot.slane %v844_v37, 7  ;;  %v889_v14 = vrot.slane %v845_v35, 7  ;;  %1263 = vmatmul.f32.gmra.mxu3 %v1124_v13  ;;  %1581 = vmatpush.msrb.mxu2 %v1973_v24  ;;  %v1491_v26 = vrot.slane %v3161_v17, 2  ;;  %v1493_v6 = vrot.slane %v3165_v40, 2  ;;  %v1986_v13 = vld [vmem:[%s3526_s3 + $0x5e0] sm:$0xff]  ;;  %v1935_v35 = vld [vmem:[%s3526_s3 + $0x448] sm:$0xff] }
 0x108   : > { %1179 = vmatmul.f32.gmra.mxu0 %v1126_v20  ;;  %1555 = vmatpush.msrb.mxu1 %v1954_v31  ;;  %v3250_v0 = vsel %vm1470_vm3, %v1472_v30, %v1483_v29  ;;  %v3255_v3 = vsel %vm1470_vm3, %v1475_v15, %v1485_v12  ;;  %v3263_v5 = vsel %vm1470_vm3, %v1478_v28, %v1487_v51  ;;  %v1985_v24 = vld [vmem:[%s3526_s3 + $0x5d8] sm:$0xff] }
 0x109   : > { %v3225_v59 = vsel %vm862_vm1, %v3120_v60, %v887_v33  ;;  %929 = vst [vmem:[#allocation2 + $0x70] sm:$0x1] %v887_v33  ;;  %v3229_v50 = vsel %vm862_vm1, %v3122_v61, %v889_v14  ;;  %1208 = vmatmul.f32.gmra.mxu1 %v1128_v22  ;;  %v1937_v60 = vld [vmem:[%s3526_s3 + $0x458] sm:$0xff]  ;;  %v1988_v61 = vld [vmem:[%s3526_s3 + $0x5f0] sm:$0xff]  ;;  %1526 = vmatpush.msrb.mxu0 %v1938_v46  ;;  %v1015_v8 = vld [vmem:[#allocation2 + $0x20] sm:$0x1] }
 0x10a   : > { %v1129_v56 = vrot.slane %v3225_v59, 1  ;;  %v1131_v57 = vrot.slane %v3229_v50, 1  ;;  %1610 = vmatpush.msrb.mxu3 %v1989_v47  ;;  %v3268_v54 = vsel %vm1470_vm3, %v1481_v10, %v1489_v55  ;;  %930 = vst [vmem:[#allocation2 + $0x90] sm:$0x1] %v889_v14  ;;  %1582 = vmatpush.msrb.mxu2 %v1972_v27  ;;  %v1133_v41 = vrot.slane %v1015_v8, 1  ;;  %v1934_v33 = vld [vmem:[%s3526_s3 + $0x440] sm:$0xff] }
 0x10b   : > { %1556 = vmatpush.msrb.mxu1 %v1953_v38  ;;  %1527 = vmatpush.msrb.mxu0 %v1937_v60  ;;  %v3289_v42 = vsel %vm1470_vm3, %v1483_v29, %v1491_v26  ;;  %v1016_v43 = vld [vmem:[#allocation2 + $0x48] sm:$0x1]  ;;  %v1497_v9 = vrot.slane %v3229_v50, 2  ;;  %v1984_v46 = vld [vmem:[%s3526_s3 + $0x5d0] sm:$0xff]  ;;  %v1933_v38 = vld [vmem:[%s3526_s3 + $0x438] sm:$0xff] }
 0x10c   : > { %v1130_v7 = vsel %vm1104_vm2, %v1121_v18, %v1129_v56  ;;  %v1132_v58 = vsel %vm1104_vm2, %v1123_v1, %v1131_v57  ;;  %1611 = vmatpush.msrb.mxu3 %v1988_v61  ;;  %v3294_v18 = vsel %vm1470_vm3, %v1485_v12, %v1493_v6  ;;  %v1495_v1 = vrot.slane %v3225_v59, 2  ;;  %1583 = vmatpush.msrb.mxu2 %v1971_v52  ;;  %v1968_v29 = vld [vmem:[%s3526_s3 + $0x550] sm:$0xff]  ;;  %v1949_v12 = vld [vmem:[%s3526_s3 + $0x4b8] sm:$0xff]  ;;  %v1947_v8 = vld [vmem:[%s3526_s3 + $0x4a8] sm:$0xff] }
 0x10d   : > { %1557 = vmatpush.msrb.mxu1 %v1952_v4  ;;  %v1134_v36 = vsel %vm1104_vm2, %v1125_v44, %v1133_v41  ;;  %v1135_v48 = vrot.slane %v1016_v43, 1  ;;  %v1951_v44 = vld [vmem:[%s3526_s3 + $0x4c8] sm:$0xff]  ;;  %v3324_v20 = vsel %vm1470_vm3, %v1489_v55, %v1497_v9  ;;  %1528 = vmatpush.msrb.mxu0 %v1936_v25  ;;  %v931_v55 = vld [vmem:[#allocation2] sm:$0xff]  ;;  %v1948_v60 = vld [vmem:[%s3526_s3 + $0x4b0] sm:$0xff] }
 0x10e   : > { %1237 = vmatmul.f32.gmra.mxu2 %v1130_v7  ;;  %v3313_v16 = vsel %vm1470_vm3, %v1487_v51, %v1495_v1  ;;  %1612 = vmatpush.msrb.mxu3 %v1987_v63  ;;  %v1967_v51 = vld [vmem:[%s3526_s3 + $0x548] sm:$0xff]  ;;  %v932_v61 = vld [vmem:[#allocation2 + $0x38] sm:$0xff]  ;;  %v1966_v4 = vld [vmem:[%s3526_s3 + $0x540] sm:$0xff] }
 0x10f   : > { %1266 = vmatmul.f32.gmra.mxu3 %v1132_v58  ;;  %v1136_v21 = vsel %vm1104_vm2, %v1127_v19, %v1135_v48  ;;  %1584 = vmatpush.msrb.mxu2 %v1970_v34  ;;  %v1950_v19 = vld [vmem:[%s3526_s3 + $0x4c0] sm:$0xff]  ;;  %v1931_v58 = vld [vmem:[%s3526_s3 + $0x428] sm:$0xff]  ;;  %v1981_v52 = vld [vmem:[%s3526_s3 + $0x5b8] sm:$0xff] }
 0x110   : > { %1182 = vmatmul.f32.gmra.mxu0 %v1134_v36  ;;  %v1017_v37 = vld [vmem:[#allocation2 + $0x70] sm:$0x1]  ;;  %1613 = vmatpush.msrb.mxu3 %v1986_v13  ;;  %v1982_v7 = vld [vmem:[%s3526_s3 + $0x5c0] sm:$0xff]  ;;  %v1965_v41 = vld [vmem:[%s3526_s3 + $0x538] sm:$0xff] }
 0x111   : > { %v1137_v22 = vrot.slane %v1017_v37, 1  ;;  %1211 = vmatmul.f32.gmra.mxu1 %v1136_v21  ;;  %v1018_v31 = vld [vmem:[#allocation2 + $0x90] sm:$0x1]  ;;  %1529 = vmatpush.msrb.mxu0 %v1935_v35  ;;  %v1946_v43 = vld [vmem:[%s3526_s3 + $0x4a0] sm:$0xff]  ;;  %v934_v25 = vld [vmem:[#allocation2 + $0x18] sm:$0xff] }
 0x112   : > { %1558 = vmatpush.msrb.mxu1 %v1951_v44  ;;  %v1139_v47 = vrot.slane %v1018_v31, 1  ;;  %1585 = vmatpush.msrb.mxu2 %v1969_v23  ;;  %v933_v63 = vld [vmem:[#allocation2 + $0x50] sm:$0xff]  ;;  %v1930_v34 = vld [vmem:[%s3526_s3 + $0x420] sm:$0xff]  ;;  %v1929_v13 = vld [vmem:[%s3526_s3 + $0x418] sm:$0xff] }
 0x113   : > { %v1138_v14 = vsel %vm1104_vm2, %v1129_v56, %v1137_v22  ;;  %1614 = vmatpush.msrb.mxu3 %v1985_v24  ;;  %1530 = vmatpush.msrb.mxu0 %v1934_v33  ;;  %v1983_v56 = vld [vmem:[%s3526_s3 + $0x5c8] sm:$0xff]  ;;  %v1964_v36 = vld [vmem:[%s3526_s3 + $0x530] sm:$0xff]  ;;  %v1945_v37 = vld [vmem:[%s3526_s3 + $0x498] sm:$0xff] }
 0x114   : > { %1559 = vmatpush.msrb.mxu1 %v1950_v19  ;;  %v1140_v27 = vsel %vm1104_vm2, %v1131_v57, %v1139_v47  ;;  %1586 = vmatpush.msrb.mxu2 %v1968_v29  ;;  %v1932_v57 = vld [vmem:[%s3526_s3 + $0x430] sm:$0xff]  ;;  %v1963_v35 = vld [vmem:[%s3526_s3 + $0x528] sm:$0xff]  ;;  %v1978_v23 = vld [vmem:[%s3526_s3 + $0x5a0] sm:$0xff] }
 0x115   : > { %1615 = vmatpush.msrb.mxu3 %v1984_v46  ;;  %1531 = vmatpush.msrb.mxu0 %v1933_v38  ;;  %v1980_v48 = vld [vmem:[%s3526_s3 + $0x5b0] sm:$0xff]  ;;  %v1979_v44 = vld [vmem:[%s3526_s3 + $0x5a8] sm:$0xff]  ;;  %v1962_v24 = vld [vmem:[%s3526_s3 + $0x520] sm:$0xff] }
 0x116   : > { %1240 = vmatmul.f32.gmra.mxu2 %v1138_v14  ;;  %1560 = vmatpush.msrb.mxu1 %v1949_v12  ;;  %v1928_v21 = vld [vmem:[%s3526_s3 + $0x410] sm:$0xff]  ;;  %v1943_v33 = vld [vmem:[%s3526_s3 + $0x488] sm:$0xff]  ;;  %v1961_v14 = vld [vmem:[%s3526_s3 + $0x518] sm:$0xff] }
 0x117   : > { %1269 = vmatmul.f32.gmra.mxu3 %v1140_v27  ;;  %1587 = vmatpush.msrb.mxu2 %v1967_v51  ;;  %v1944_v22 = vld [vmem:[%s3526_s3 + $0x490] sm:$0xff]  ;;  %v1927_v19 = vld [vmem:[%s3526_s3 + $0x408] sm:$0xff]  ;;  %v1977_v31 = vld [vmem:[%s3526_s3 + $0x598] sm:$0xff] }
 0x118   : > { %1289 = vmatmul.f32.vlgmr.msra.gmra.mxu0 %v931_v55  ;;  %1616 = vmatpush.msrb.mxu3 %v1983_v56  ;;  %v1926_v46 = vld [vmem:[%s3526_s3 + $0x400] sm:$0xff]  ;;  %v1960_v29 = vld [vmem:[%s3526_s3 + $0x510] sm:$0xff]  ;;  %v1959_v27 = vld [vmem:[%s3526_s3 + $0x508] sm:$0xff] }
 0x119   : > { %1318 = vmatmul.f32.vlgmr.msra.gmra.mxu1 %v932_v61  ;;  %1532 = vmatpush.msrb.mxu0 %v1932_v57  ;;  %v1942_v47 = vld [vmem:[%s3526_s3 + $0x480] sm:$0xff]  ;;  %v1976_v12 = vld [vmem:[%s3526_s3 + $0x590] sm:$0xff]  ;;  %v1390_v55 = vld [vmem:[#allocation2 + $0x38] sm:$0xfc] }
 0x11a   : > { %1561 = vmatpush.msrb.mxu1 %v1948_v60  ;;  %1588 = vmatpush.msrb.mxu2 %v1966_v4  ;;  %v1974_v38 = vld [vmem:[%s3526_s3 + $0x580] sm:$0xff]  ;;  %v1474_v57 = vrot.slane %v1390_v55, 2  ;;  %v1392_v60 = vld [vmem:[#allocation2 + $0x18] sm:$0xfc] }
 0x11b   : > { %1617 = vmatpush.msrb.mxu3 %v1982_v7  ;;  %1533 = vmatpush.msrb.mxu0 %v1931_v58  ;;  %v1389_v51 = vld [vmem:[#allocation2] sm:$0xfc]  ;;  %v1480_v7 = vrot.slane %v1392_v60, 2 }
 0x11c   : > { %1562 = vmatpush.msrb.mxu1 %v1947_v8  ;;  %1589 = vmatpush.msrb.mxu2 %v1965_v41  ;;  %v1471_v56 = vrot.slane %v1389_v51, 2  ;;  %v1476_v61 = vsel %vm1470_vm3, %v1474_v57, %v1475_v15 }
 0x11d   : > { %1618 = vmatpush.msrb.mxu3 %v1981_v52  ;;  %1534 = vmatpush.msrb.mxu0 %v1930_v34 }
 0x11e   : > { %1347 = vmatmul.f32.vlgmr.msra.gmra.mxu2 %v933_v63  ;;  %1563 = vmatpush.msrb.mxu1 %v1946_v43 }
 0x11f   : > { %1376 = vmatmul.f32.vlgmr.msra.gmra.mxu3 %v934_v25  ;;  %1590 = vmatpush.msrb.mxu2 %v1964_v36 }
 0x120   : > { %1292 = vmatmul.f32.gmra.mxu0 %v2999_v45  ;;  %1619 = vmatpush.msrb.mxu3 %v1980_v48  ;;  %v1482_v45 = vsel %vm1470_vm3, %v1480_v7, %v1481_v10  ;;  %v1396_v10 = vld [vmem:[#allocation2 + $0x90] sm:$0x3] }
 0x121   : > { %1321 = vmatmul.f32.gmra.mxu1 %v3004_v32  ;;  %1535 = vmatpush.msrb.mxu0 %v1929_v13  ;;  %v1393_v32 = vld [vmem:[#allocation2 + $0x20] sm:$0x3] }
 0x122   : > { %1564 = vmatpush.msrb.mxu1 %v1945_v37  ;;  %1591 = vmatpush.msrb.mxu2 %v1963_v35 }
 0x123   : > { %1620 = vmatpush.msrb.mxu3 %v1979_v44  ;;  %1536 = vmatpush.msrb.mxu0 %v1928_v21 }
 0x124   : > { %1565 = vmatpush.msrb.mxu1 %v1944_v22  ;;  %1592 = vmatpush.msrb.mxu2 %v1962_v24 }
 0x125   : > { %1621 = vmatpush.msrb.mxu3 %v1978_v23  ;;  %1537 = vmatpush.msrb.mxu0 %v1927_v19 }
 0x126   : > { %1350 = vmatmul.f32.gmra.mxu2 %v3068_v53  ;;  %1566 = vmatpush.msrb.mxu1 %v1943_v33  ;;  %v1394_v53 = vld [vmem:[#allocation2 + $0x48] sm:$0x3] }
 0x127   : > { %1379 = vmatmul.f32.gmra.mxu3 %v3073_v2  ;;  %1593 = vmatpush.msrb.mxu2 %v1961_v14  ;;  %v1501_v15 = vrot.slane %v1394_v53, 2  ;;  %v1395_v2 = vld [vmem:[#allocation2 + $0x70] sm:$0x3] }
 0x128   : > { %1295 = vmatmul.f32.gmra.mxu0 %v3084_v49  ;;  %1622 = vmatpush.msrb.mxu3 %v1977_v31  ;;  %v1975_v49 = vld [vmem:[%s3526_s3 + $0x588] sm:$0xff] }
 0x129   : > { %1324 = vmatmul.f32.gmra.mxu1 %v3089_v39  ;;  %1538 = vmatpush.msrb.mxu0 %v1926_v46  ;;  %v1958_v39 = vld [vmem:[%s3526_s3 + $0x500] sm:$0xff] }
 0x12a   : > { %1567 = vmatpush.msrb.mxu1 %v1942_v47  ;;  %1594 = vmatpush.msrb.mxu2 %v1960_v29 }
 0x12b   : > { %1623 = vmatpush.msrb.mxu3 %v1976_v12 }
 0x12c   : > { %1595 = vmatpush.msrb.mxu2 %v1959_v27 }
 0x12d   : > { %1624 = vmatpush.msrb.mxu3 %v1975_v49 }
 0x12e   : > { %1353 = vmatmul.f32.gmra.mxu2 %v3145_v11  ;;  %v1391_v11 = vld [vmem:[#allocation2 + $0x50] sm:$0xfc] }
 0x12f   : > { %1382 = vmatmul.f32.gmra.mxu3 %v3150_v62  ;;  %1596 = vmatpush.msrb.mxu2 %v1958_v39  ;;  %v1473_v62 = vsel %vm1470_vm3, %v1471_v56, %v1472_v30  ;;  %v1477_v4 = vrot.slane %v1391_v11, 2  ;;  %v1499_v30 = vrot.slane %v1393_v32, 2 }
 0x130   : > { %1298 = vmatmul.f32.gmra.mxu0 %v3161_v17  ;;  %1625 = vmatpush.msrb.mxu3 %v1974_v38 }
 0x131   : > { %1327 = vmatmul.f32.gmra.mxu1 %v3165_v40  ;;  %v1479_v58 = vsel %vm1470_vm3, %v1477_v4, %v1478_v28  ;;  %v1500_v28 = vsel %vm1470_vm3, %v1491_v26, %v1499_v30  ;;  %v2003_v30 = vld [vmem:[%s3527_s4] ss:$0 sm:$0xff] }
 0x136   : > { %1356 = vmatmul.f32.gmra.mxu2 %v3225_v59 }
 0x137   : > { %1385 = vmatmul.f32.gmra.mxu3 %v3229_v50 }
 0x138   : > { %1539 = vmatmul.f32.vlgmr.msrb.gmra.mxu0 %v1473_v62 }
 0x139   : > { %1568 = vmatmul.f32.vlgmr.msrb.gmra.mxu1 %v1476_v61 }
 0x13e   : > { %1597 = vmatmul.f32.vlgmr.msrb.gmra.mxu2 %v1479_v58 }
 0x13f   : > { %1626 = vmatmul.f32.vlgmr.msrb.gmra.mxu3 %v1482_v45 }
 0x140   : > { %1542 = vmatmul.f32.gmra.mxu0 %v3250_v0  ;;  %v1502_v0 = vsel %vm1470_vm3, %v1493_v6, %v1501_v15 }
 0x141   : > { %1571 = vmatmul.f32.gmra.mxu1 %v3255_v3  ;;  %v1503_v3 = vrot.slane %v1395_v2, 2 }
 0x146   : > { %1600 = vmatmul.f32.gmra.mxu2 %v3263_v5  ;;  %v1505_v5 = vrot.slane %v1396_v10, 2 }
 0x147   : > { %1629 = vmatmul.f32.gmra.mxu3 %v3268_v54  ;;  %v1504_v54 = vsel %vm1470_vm3, %v1495_v1, %v1503_v3 }
 0x148   : > { %1545 = vmatmul.f32.gmra.mxu0 %v3289_v42  ;;  %v1506_v17 = vsel %vm1470_vm3, %v1497_v9, %v1505_v5 }
 0x149   : > { %1574 = vmatmul.f32.gmra.mxu1 %v3294_v18 }
 0x14e   : > { %1603 = vmatmul.f32.gmra.mxu2 %v3313_v16 }
 0x14f   : > { %1632 = vmatmul.f32.gmra.mxu3 %v3324_v20 }
 0x150   : > { %1548 = vmatmul.f32.gmra.mxu0 %v1500_v28 }
 0x151   : > { %1577 = vmatmul.f32.gmra.mxu1 %v1502_v0 }
 0x156   : > { %1606 = vmatmul.f32.gmra.mxu2 %v1504_v54 }
 0x157   : > { %1635 = vmatmul.f32.gmra.mxu3 %v1506_v17 }
 0x173   : > { %v1174_v26 = vpop.f32.mrf.mxu0 }
 0x174   : > { %v1203_v42 = vpop.f32.mrf.mxu1 }
 0x175   : > { %v1204_v19 = vadd.f32 %v1203_v42, %v1174_v26 }
 0x17d   : > { %v1177_v18 = vpop.f32.mrf.mxu0 }
 0x17e   : > { %v1206_v16 = vpop.f32.mrf.mxu1 }
 0x17f   : > { %v1207_v49 = vadd.f32 %v1206_v16, %v1177_v18 }
 0x181   : > { %v1232_v40 = vpop.f32.mrf.mxu2 }
 0x182   : > { %v1261_v20 = vpop.f32.mrf.mxu3  ;;  %v1233_v31 = vadd.f32 %v1232_v40, %v1204_v19 }
 0x184   : > { %v1262_v29 = vadd.f32 %v1261_v20, %v1233_v31 }
 0x185   : > { %v1180_v6 = vpop.f32.mrf.mxu0 }
 0x186   : > { %v1209_v8 = vpop.f32.mrf.mxu1 }
 0x187   : > { %v1210_v61 = vadd.f32 %v1209_v8, %v1180_v6 }
 0x189   : > { %v1235_v52 = vpop.f32.mrf.mxu2 }
 0x18a   : > { %v1264_v41 = vpop.f32.mrf.mxu3  ;;  %v1236_v39 = vadd.f32 %v1235_v52, %v1207_v49 }
 0x18c   : > { %v1265_v55 = vadd.f32 %v1264_v41, %v1236_v39 }
 0x18d   : > { %v1183_v63 = vpop.f32.mrf.mxu0 }
 0x18e   : > { %v1212_v59 = vpop.f32.mrf.mxu1 }
 0x18f   : > { %v1213_v54 = vadd.f32 %v1212_v59, %v1183_v63 }
 0x191   : > { %v1238_v43 = vpop.f32.mrf.mxu2 }
 0x192   : > { %v1267_v1 = vpop.f32.mrf.mxu3  ;;  %v1239_v45 = vadd.f32 %v1238_v43, %v1210_v61 }
 0x194   : > { %v1268_v28 = vadd.f32 %v1267_v1, %v1239_v45 }
 0x195   : > { %v1290_v25 = vpop.f32.mrf.mxu0 }
 0x196   : > { %v1319_v34 = vpop.f32.mrf.mxu1  ;;  %v1291_v27 = vadd.f32 %v1290_v25, %v1262_v29 }
 0x198   : > { %v1320_v51 = vadd.f32 %v1319_v34, %v1291_v27 }
 0x199   : > { %v1241_v50 = vpop.f32.mrf.mxu2 }
 0x19a   : > { %v1270_v36 = vpop.f32.mrf.mxu3  ;;  %v1242_v40 = vadd.f32 %v1241_v50, %v1213_v54 }
 0x19c   : > { %v1271_v41 = vadd.f32 %v1270_v36, %v1242_v40 }
 0x19d   : > { %v1293_v9 = vpop.f32.mrf.mxu0 }
 0x19e   : > { %v1322_v48 = vpop.f32.mrf.mxu1  ;;  %v1294_v4 = vadd.f32 %v1293_v9, %v1265_v55 }
 0x1a0   : > { %v1323_v15 = vadd.f32 %v1322_v48, %v1294_v4 }
 0x1a1   : > { %v1348_v13 = vpop.f32.mrf.mxu2 }
 0x1a2   : > { %v1377_v37 = vpop.f32.mrf.mxu3  ;;  %v1349_v56 = vadd.f32 %v1348_v13, %v1320_v51 }
 0x1a4   : > { %v1378_v32 = vadd.f32 %v1377_v37, %v1349_v56 }
 0x1a5   : > { %v1296_v35 = vpop.f32.mrf.mxu0 }
 0x1a6   : > { %v1325_v44 = vpop.f32.mrf.mxu1  ;;  %v1297_v17 = vadd.f32 %v1296_v35, %v1268_v28 }
 0x1a8   : > { %v1326_v8 = vadd.f32 %v1325_v44, %v1297_v17 }
 0x1a9   : > { %v1351_v21 = vpop.f32.mrf.mxu2 }
 0x1aa   : > { %v1380_v22 = vpop.f32.mrf.mxu3  ;;  %v1352_v10 = vadd.f32 %v1351_v21, %v1323_v15 }
 0x1ac   : > { %v1381_v20 = vadd.f32 %v1380_v22, %v1352_v10 }
 0x1ad   : > { %v1299_v23 = vpop.f32.mrf.mxu0 }
 0x1ae   : > { %v1328_v24 = vpop.f32.mrf.mxu1  ;;  %v1300_v63 = vadd.f32 %v1299_v23, %v1271_v41 }
 0x1b0   : > { %v1329_v35 = vadd.f32 %v1328_v24, %v1300_v63 }
 0x1b1   : > { %v1354_v33 = vpop.f32.mrf.mxu2 }
 0x1b2   : > { %v1383_v14 = vpop.f32.mrf.mxu3  ;;  %v1355_v43 = vadd.f32 %v1354_v33, %v1326_v8 }
 0x1b4   : > { %v1384_v48 = vadd.f32 %v1383_v14, %v1355_v43 }
 0x1b5   : > { %v1540_v46 = vpop.f32.mrf.mxu0 }
 0x1b6   : > { %v1569_v47 = vpop.f32.mrf.mxu1 }
 0x1b7   : > { %v1570_v57 = vadd.f32 %v1569_v47, %v1540_v46 }
 0x1b9   : > { %v1357_v12 = vpop.f32.mrf.mxu2 }
 0x1ba   : > { %v1386_v38 = vpop.f32.mrf.mxu3  ;;  %v1358_v44 = vadd.f32 %v1357_v12, %v1329_v35 }
 0x1bc   : > { %v1387_v23 = vadd.f32 %v1386_v38, %v1358_v44 }
 0x1bd   : > { %v1543_v11 = vpop.f32.mrf.mxu0 }
 0x1be   : > { %v1572_v62 = vpop.f32.mrf.mxu1 }
 0x1bf   : > { %v1573_v0 = vadd.f32 %v1572_v62, %v1543_v11 }
 0x1c1   : > { %v1598_v60 = vpop.f32.mrf.mxu2 }
 0x1c2   : > { %v1599_v7 = vadd.f32 %v1598_v60, %v1570_v57  ;;  %v1627_v58 = vpop.f32.mrf.mxu3 }
 0x1c4   : > { %v1628_v53 = vadd.f32 %v1627_v58, %v1599_v7 }
 0x1c5   : > { %v1546_v18 = vpop.f32.mrf.mxu0 }
 0x1c6   : > { %v1639_v2 = vadd.f32 %v1628_v53, %v1378_v32  ;;  %v1575_v16 = vpop.f32.mrf.mxu1 }
 0x1c7   : > { %v1576_v1 = vadd.f32 %v1575_v16, %v1546_v18 }
 0x1c8   : > { %v1647_v3 = vadd.f32 %v2003_v30, %v1639_v2 }
 0x1c9   : > { %v1601_v5 = vpop.f32.mrf.mxu2 }
 0x1ca   : > { %1651 = vst.msk [vmem:[%s3510_s20] sm:$0xff] %vm350_vm0, %v1647_v3  ;;  %v1602_v26 = vadd.f32 %v1601_v5, %v1573_v0  ;;  %v1630_v42 = vpop.f32.mrf.mxu3 }
 0x1cc   : > { %v1631_v6 = vadd.f32 %v1630_v42, %v1602_v26 }
 0x1cd   : > { %v1549_v37 = vpop.f32.mrf.mxu0 }
 0x1ce   : > { %v1640_v52 = vadd.f32 %v1631_v6, %v1381_v20  ;;  %v1578_v50 = vpop.f32.mrf.mxu1 }
 0x1cf   : > { %v1579_v22 = vadd.f32 %v1578_v50, %v1549_v37 }
 0x1d0   : > { %v1648_v25 = vadd.f32 %v2003_v30, %v1640_v52 }
 0x1d1   : > { %v1604_v34 = vpop.f32.mrf.mxu2 }
 0x1d2   : > { %1652 = vst.msk [vmem:[%s3510_s20 + $0x8] sm:$0xff] %vm350_vm0, %v1648_v25  ;;  %v1605_v59 = vadd.f32 %v1604_v34, %v1576_v1  ;;  %v1633_v9 = vpop.f32.mrf.mxu3 }
 0x1d4   : > { %v1634_v13 = vadd.f32 %v1633_v9, %v1605_v59 }
 0x1d6   : > { %v1641_v21 = vadd.f32 %v1634_v13, %v1384_v48 }
 0x1d8   : > { %v1649_v36 = vadd.f32 %v2003_v30, %v1641_v21 }
 0x1d9   : > { %v1607_v33 = vpop.f32.mrf.mxu2 }
 0x1da   : > { %1653 = vst.msk [vmem:[%s3510_s20 + $0x10] sm:$0xff] %vm350_vm0, %v1649_v36  ;;  %v1608_v19 = vadd.f32 %v1607_v33, %v1579_v22  ;;  %v1636_v31 = vpop.f32.mrf.mxu3 }
 0x1dc   : > { %v1637_v46 = vadd.f32 %v1636_v31, %v1608_v19 }
 0x1de   : > { %v1642_v47 = vadd.f32 %v1637_v46, %v1387_v23 }
 0x1e0   : > { %v1650_v29 = vadd.f32 %v2003_v30, %v1642_v47 }
 0x1e2   : > { %1654 = vst.msk [vmem:[%s3510_s20 + $0x18] sm:$0xff] %vm350_vm0, %v1650_v29 }
 0x1e3 PF: > { %s15_s18 = sadd.s32 1, %s2010_s18  }
 0x1e4   : > { %p12_p4 = scmp.ge.s32.totalorder %s15_s18, 4  }
 0x1e6   :  { %14 = sbr.rel (!%p12_p4) target bundleno = 1 (0x1), region = 74 }

// kernel: vit_with_denoise_forward.3
= control target key start
LH: loop header
LB: loop body
LE: loop exit
PB: predicated region body
PF: predicated region fallthrough
CT: control target
= control target key end

     0   :  { %s8449_s0 = inlined_call_operand.vmem [shape: f32[2,5,768], index: 0, kind: input, shape index: {}]   ;;  %s8450_s1 = inlined_call_operand.vmem [shape: f32[768,128], index: 1, kind: input, shape index: {}]   ;;  %s8451_s2 = inlined_call_operand.vmem [shape: f32[5,128], index: 2, kind: input, shape index: {}]   ;;  %s8452_s3 = inlined_call_operand.vmem [shape: f32[2,1,128], index: 3, kind: input, shape index: {}]   ;;  %s8453_s4 = inlined_call_operand.vmem [shape: f32[2,1,128], index: 4, kind: input, shape index: {}]   ;;  %s8454_s5 = inlined_call_operand.vmem [shape: f32[2,4,128,32], index: 5, kind: input, shape index: {}]   ;;  %s8455_s6 = inlined_call_operand.vmem [shape: f32[2,4,1,32], index: 6, kind: input, shape index: {}]   ;;  %s8456_s7 = inlined_call_operand.vmem [shape: f32[2,4,128,32], index: 7, kind: input, shape index: {}]   ;;  %s8457_s8 = inlined_call_operand.vmem [shape: f32[2,4,1,32], index: 8, kind: input, shape index: {}]   ;;  %s8458_s9 = inlined_call_operand.vmem [shape: f32[2,4,128,32], index: 9, kind: input, shape index: {}]   ;;  %s8459_s10 = inlined_call_operand.vmem [shape: f32[2,4,1,32], index: 10, kind: input, shape index: {}]   ;;  %s8460_s11 = inlined_call_operand.vmem [shape: f32[2,4,32,128], index: 11, kind: input, shape index: {}]   ;;  %s8461_s12 = inlined_call_operand.vmem [shape: f32[2,1,128], index: 12, kind: input, shape index: {}]   ;;  %s8462_s13 = inlined_call_operand.vmem [shape: f32[2,1,128], index: 13, kind: input, shape index: {}]   ;;  %s8463_s14 = inlined_call_operand.vmem [shape: f32[2,1,128], index: 14, kind: input, shape index: {}]   ;;  %s8464_s15 = inlined_call_operand.vmem [shape: f32[2,128,512], index: 15, kind: input, shape index: {}]   ;;  %s8465_s16 = inlined_call_operand.vmem [shape: f32[2,1,512], index: 16, kind: input, shape index: {}]   ;;  %s8466_s17 = inlined_call_operand.vmem [shape: f32[2,512,128], index: 17, kind: input, shape index: {}]   ;;  %s8467_s18 = inlined_call_operand.vmem [shape: f32[2,1,128], index: 18, kind: input, shape index: {}]   ;;  %s8468_s19 = inlined_call_operand.vmem [shape: f32[1,128], index: 19, kind: input, shape index: {}]   ;;  %s8469_s20 = inlined_call_operand.vmem [shape: f32[1,128], index: 20, kind: input, shape index: {}]   ;;  %s8470_s21 = inlined_call_operand.vmem [shape: f32[128,1024], index: 21, kind: input, shape index: {}]   ;;  %s8471_s22 = inlined_call_operand.vmem [shape: f32[1,1024], index: 22, kind: input, shape index: {}]   ;;  %s8472_s23 = inlined_call_operand.vmem [shape: f32[2,1,1024], index: 23, kind: output, shape index: {}]  }
   0x1   :  { %8481 = sst [smem:[#allocation3_spill]] %s8449_s0 }
   0x2   :  { %8482 = sst [smem:[#allocation4_spill]] %s8450_s1 }
   0x3   :  { %8483 = sst [smem:[#allocation5_spill]] %s8451_s2 }
   0x4   :  { %8484 = sst [smem:[#allocation6_spill]] %s8452_s3 }
   0x5   :  { %8485 = sst [smem:[#allocation7_spill]] %s8453_s4  ;;  %s5109_s4 = smov 0  }
   0x6   :  { %8486 = sst [smem:[#allocation8_spill]] %s8454_s5 }
   0x7   :  { %8487 = sst [smem:[#allocation9_spill]] %s8455_s6 }
   0x8   :  { %8488 = sst [smem:[#allocation10_spill]] %s8456_s7 }
   0x9   :  { %8489 = sst [smem:[#allocation11_spill]] %s8472_s23 }
   0xa LB: > { %8490 = sst [smem:[#allocation2_spill]] %s4985_s4  ;;  %s4285_s30 = sadd.s32 4294967295, %s4985_s4   ;;  %s4985_s4 = sphi %s5109_s4, %s33_s4  }
   0xb   : > { %p4289_p0 = scmp.ge.s32.totalorder %s4985_s4, 1  ;;  %p637_p1 = scmp.lt.s32.totalorder %s4985_s4, 3 }
   0xd   : > { %p638_p2 = pnand %p4289_p0, %p637_p1 }
   0xe   : > { %s8491_s5 = sld [smem:[#allocation4_spill]] (!%p638_p2)  ;;  %p5242_p3 = scmp.lt.s32.totalorder (!%p638_p2), %s4285_s30, 1 }
   0xf   : > { %641 = sbr.rel (%p638_p2) target bundleno = 7141 (0x1be5), region = 112  ;;  %s8493_s25 = sld [smem:[#allocation3_spill]] (!%p638_p2) }
  0x10   : > { %s8494_s3 = sld [smem:[#allocation5_spill]] (!%p638_p2) }
  0x11   : > { %s8495_s24 = sld [smem:[#allocation10_spill]] (!%p638_p2) }
  0x12   : > { %s8497_s29 = sld [smem:[#allocation6_spill]] (!%p638_p2) }
  0x13   : > { %s8498_s0 = sld [smem:[#allocation7_spill]] (!%p638_p2) }
  0x14   : > { %v730_v0 = vld [vmem:[%s8491_s5 + $0x78] sm:$0xff]  ;;  %v729_v1 = vld [vmem:[%s8491_s5 + $0x70] sm:$0xff]  ;;  %v728_v4 = vld [vmem:[%s8491_s5 + $0x68] sm:$0xff]  ;;  %s8515_s30 = smov (!%p5242_p3, %s4285_s30), 1  ;;  %vm934_vm0 = vcmask 1044480   ;;  %s8499_s6 = sld [smem:[#allocation9_spill]] }
  0x15   : > { %v746_v2 = vld [vmem:[%s8491_s5 + $0xf8] sm:$0xff]  ;;  %812 = vmatpush.msra.mxu0 %v730_v0  ;;  %v745_v3 = vld [vmem:[%s8491_s5 + $0xf0] sm:$0xff]  ;;  %v744_v5 = vld [vmem:[%s8491_s5 + $0xe8] sm:$0xff]  ;;  %s4854_s28 = smul.u32 48, %s8515_s30  ;;  %vm1093_vm5 = vcmask 261120   ;;  %vm1120_vm6 = vcmask 36864  }
  0x16   : > { %832 = vmatpush.msra.mxu1 %v746_v2  ;;  %v727_v6 = vld [vmem:[%s8491_s5 + $0x60] sm:$0xff]  ;;  %v726_v8 = vld [vmem:[%s8491_s5 + $0x58] sm:$0xff]  ;;  %v725_v10 = vld [vmem:[%s8491_s5 + $0x50] sm:$0xff]  ;;  %vm1145_vm11 = vcmask 39936   ;;  %s4291_s26 = sshll.u32 %s8515_s30, 3  ;;  %s8512_s7 = sld [smem:[#allocation11_spill]] }
  0x17   : > { %813 = vmatpush.msra.mxu0 %v729_v1  ;;  %v743_v7 = vld [vmem:[%s8491_s5 + $0xe0] sm:$0xff]  ;;  %v742_v9 = vld [vmem:[%s8491_s5 + $0xd8] sm:$0xff]  ;;  %v741_v12 = vld [vmem:[%s8491_s5 + $0xd0] sm:$0xff]  ;;  %s5340_s4 = scalar_lea.vmem %s8493_s25, %s4854_s28  ;;  %s8496_s28 = sld [smem:[#allocation8_spill]] }
  0x18   : > { %833 = vmatpush.msra.mxu1 %v745_v3  ;;  %v762_v11 = vld [vmem:[%s8491_s5 + $0x178] sm:$0xff]  ;;  %v761_v13 = vld [vmem:[%s8491_s5 + $0x170] sm:$0xff]  ;;  %v760_v15 = vld [vmem:[%s8491_s5 + $0x168] sm:$0xff] }
  0x19   : > { %814 = vmatpush.msra.mxu0 %v728_v4  ;;  %852 = vmatpush.msra.mxu2 %v762_v11  ;;  %v778_v14 = vld [vmem:[%s8491_s5 + $0x1f8] sm:$0xff]  ;;  %v777_v16 = vld [vmem:[%s8491_s5 + $0x1f0] sm:$0xff]  ;;  %v724_v17 = vld [vmem:[%s8491_s5 + $0x48] sm:$0xff] }
  0x1a   : > { %834 = vmatpush.msra.mxu1 %v744_v5  ;;  %v740_v18 = vld [vmem:[%s8491_s5 + $0xc8] sm:$0xff]  ;;  %872 = vmatpush.msra.mxu3 %v778_v14  ;;  %v759_v19 = vld [vmem:[%s8491_s5 + $0x160] sm:$0xff]  ;;  %v758_v23 = vld [vmem:[%s8491_s5 + $0x158] sm:$0xff] }
  0x1b   : > { %815 = vmatpush.msra.mxu0 %v727_v6  ;;  %853 = vmatpush.msra.mxu2 %v761_v13  ;;  %v776_v20 = vld [vmem:[%s8491_s5 + $0x1e8] sm:$0xff]  ;;  %v723_v21 = vld [vmem:[%s8491_s5 + $0x40] sm:$0xff]  ;;  %v722_v25 = vld [vmem:[%s8491_s5 + $0x38] sm:$0xff] }
  0x1c   : > { %835 = vmatpush.msra.mxu1 %v743_v7  ;;  %v739_v22 = vld [vmem:[%s8491_s5 + $0xc0] sm:$0xff]  ;;  %873 = vmatpush.msra.mxu3 %v777_v16  ;;  %v738_v26 = vld [vmem:[%s8491_s5 + $0xb8] sm:$0xff]  ;;  %v757_v27 = vld [vmem:[%s8491_s5 + $0x150] sm:$0xff] }
  0x1d   : > { %816 = vmatpush.msra.mxu0 %v726_v8  ;;  %854 = vmatpush.msra.mxu2 %v760_v15  ;;  %v775_v24 = vld [vmem:[%s8491_s5 + $0x1e0] sm:$0xff]  ;;  %v774_v28 = vld [vmem:[%s8491_s5 + $0x1d8] sm:$0xff]  ;;  %v721_v29 = vld [vmem:[%s8491_s5 + $0x30] sm:$0xff] }
  0x1e   : > { %836 = vmatpush.msra.mxu1 %v742_v9  ;;  %874 = vmatpush.msra.mxu3 %v776_v20  ;;  %v737_v30 = vld [vmem:[%s8491_s5 + $0xb0] sm:$0xff]  ;;  %v756_v31 = vld [vmem:[%s8491_s5 + $0x148] sm:$0xff]  ;;  %v755_v35 = vld [vmem:[%s8491_s5 + $0x140] sm:$0xff] }
  0x1f   : > { %817 = vmatpush.msra.mxu0 %v725_v10  ;;  %855 = vmatpush.msra.mxu2 %v759_v19  ;;  %v773_v32 = vld [vmem:[%s8491_s5 + $0x1d0] sm:$0xff]  ;;  %v720_v33 = vld [vmem:[%s8491_s5 + $0x28] sm:$0xff]  ;;  %v719_v37 = vld [vmem:[%s8491_s5 + $0x20] sm:$0xff] }
  0x20   : > { %837 = vmatpush.msra.mxu1 %v741_v12  ;;  %875 = vmatpush.msra.mxu3 %v775_v24  ;;  %v736_v34 = vld [vmem:[%s8491_s5 + $0xa8] sm:$0xff]  ;;  %v735_v38 = vld [vmem:[%s8491_s5 + $0xa0] sm:$0xff]  ;;  %v754_v39 = vld [vmem:[%s8491_s5 + $0x138] sm:$0xff] }
  0x21   : > { %818 = vmatpush.msra.mxu0 %v724_v17  ;;  %856 = vmatpush.msra.mxu2 %v758_v23  ;;  %v772_v36 = vld [vmem:[%s8491_s5 + $0x1c8] sm:$0xff]  ;;  %v771_v40 = vld [vmem:[%s8491_s5 + $0x1c0] sm:$0xff]  ;;  %v718_v41 = vld [vmem:[%s8491_s5 + $0x18] sm:$0xff] }
  0x22   : > { %838 = vmatpush.msra.mxu1 %v740_v18  ;;  %876 = vmatpush.msra.mxu3 %v774_v28  ;;  %v734_v42 = vld [vmem:[%s8491_s5 + $0x98] sm:$0xff]  ;;  %v753_v43 = vld [vmem:[%s8491_s5 + $0x130] sm:$0xff]  ;;  %v752_v47 = vld [vmem:[%s8491_s5 + $0x128] sm:$0xff] }
  0x23   : > { %819 = vmatpush.msra.mxu0 %v723_v21  ;;  %857 = vmatpush.msra.mxu2 %v757_v27  ;;  %v770_v44 = vld [vmem:[%s8491_s5 + $0x1b8] sm:$0xff]  ;;  %v717_v45 = vld [vmem:[%s8491_s5 + $0x10] sm:$0xff]  ;;  %v716_v49 = vld [vmem:[%s8491_s5 + $0x8] sm:$0xff] }
  0x24   : > { %839 = vmatpush.msra.mxu1 %v739_v22  ;;  %877 = vmatpush.msra.mxu3 %v773_v32  ;;  %v733_v46 = vld [vmem:[%s8491_s5 + $0x90] sm:$0xff]  ;;  %v732_v50 = vld [vmem:[%s8491_s5 + $0x88] sm:$0xff]  ;;  %v751_v51 = vld [vmem:[%s8491_s5 + $0x120] sm:$0xff] }
  0x25   : > { %820 = vmatpush.msra.mxu0 %v722_v25  ;;  %858 = vmatpush.msra.mxu2 %v756_v31  ;;  %v769_v48 = vld [vmem:[%s8491_s5 + $0x1b0] sm:$0xff]  ;;  %v768_v52 = vld [vmem:[%s8491_s5 + $0x1a8] sm:$0xff]  ;;  %v715_v53 = vld [vmem:[%s8491_s5] sm:$0xff] }
  0x26   : > { %840 = vmatpush.msra.mxu1 %v738_v26  ;;  %878 = vmatpush.msra.mxu3 %v772_v36  ;;  %v731_v54 = vld [vmem:[%s8491_s5 + $0x80] sm:$0xff]  ;;  %v794_v55 = vld [vmem:[%s8491_s5 + $0x278] sm:$0xff]  ;;  %v793_v59 = vld [vmem:[%s8491_s5 + $0x270] sm:$0xff] }
  0x27   : > { %821 = vmatpush.msra.mxu0 %v721_v29  ;;  %859 = vmatpush.msra.mxu2 %v755_v35  ;;  %v810_v56 = vld [vmem:[%s8491_s5 + $0x2f8] sm:$0xff]  ;;  %v767_v58 = vld [vmem:[%s8491_s5 + $0x1a0] sm:$0xff]  ;;  %v792_v60 = vld [vmem:[%s8491_s5 + $0x268] sm:$0xff] }
  0x28   : > { %841 = vmatpush.msra.mxu1 %v737_v30  ;;  %879 = vmatpush.msra.mxu3 %v771_v40  ;;  %v750_v57 = vld [vmem:[%s8491_s5 + $0x118] sm:$0xff]  ;;  %v809_v61 = vld [vmem:[%s8491_s5 + $0x2f0] sm:$0xff]  ;;  %v808_v62 = vld [vmem:[%s8491_s5 + $0x2e8] sm:$0xff] }
  0x29   : > { %822 = vmatpush.msra.mxu0 %v720_v33  ;;  %860 = vmatpush.msra.mxu2 %v754_v39  ;;  %v749_v63 = vld [vmem:[%s8491_s5 + $0x110] sm:$0xff]  ;;  %v766_v0 = vld [vmem:[%s8491_s5 + $0x198] sm:$0xff]  ;;  %v791_v1 = vld [vmem:[%s8491_s5 + $0x260] sm:$0xff] }
  0x2a   : > { %842 = vmatpush.msra.mxu1 %v736_v34  ;;  %880 = vmatpush.msra.mxu3 %v770_v44  ;;  %v807_v2 = vld [vmem:[%s8491_s5 + $0x2e0] sm:$0xff]  ;;  %v748_v3 = vld [vmem:[%s8491_s5 + $0x108] sm:$0xff]  ;;  %v765_v4 = vld [vmem:[%s8491_s5 + $0x190] sm:$0xff] }
  0x2b   : > { %823 = vmatpush.msra.mxu0 %v719_v37  ;;  %861 = vmatpush.msra.mxu2 %v753_v43  ;;  %v747_v5 = vld [vmem:[%s8491_s5 + $0x100] sm:$0xff]  ;;  %v764_v6 = vld [vmem:[%s8491_s5 + $0x188] sm:$0xff]  ;;  %v790_v7 = vld [vmem:[%s8491_s5 + $0x258] sm:$0xff] }
  0x2c   : > { %843 = vmatpush.msra.mxu1 %v735_v38  ;;  %881 = vmatpush.msra.mxu3 %v769_v48  ;;  %v806_v8 = vld [vmem:[%s8491_s5 + $0x2d8] sm:$0xff]  ;;  %v711_v9 = vld [vmem:[%s5340_s4 + $0x10] sm:$0x1f]  ;;  %v763_v10 = vld [vmem:[%s8491_s5 + $0x180] sm:$0xff] }
  0x2d   : > { %824 = vmatpush.msra.mxu0 %v718_v41  ;;  %862 = vmatpush.msra.mxu2 %v752_v47  ;;  %v789_v11 = vld [vmem:[%s8491_s5 + $0x250] sm:$0xff]  ;;  %v709_v13 = vld [vmem:[%s5340_s4] sm:$0x1f]  ;;  %v712_v14 = vld [vmem:[%s5340_s4 + $0x18] sm:$0x1f] }
  0x2e   : > { %844 = vmatpush.msra.mxu1 %v734_v42  ;;  %882 = vmatpush.msra.mxu3 %v768_v52  ;;  %v805_v12 = vld [vmem:[%s8491_s5 + $0x2d0] sm:$0xff]  ;;  %v788_v15 = vld [vmem:[%s8491_s5 + $0x248] sm:$0xff]  ;;  %v787_v18 = vld [vmem:[%s8491_s5 + $0x240] sm:$0xff]  ;;  %v4987_v52 = vmov 128.0  }
  0x2f   : > { %825 = vmatpush.msra.mxu0 %v717_v45  ;;  %863 = vmatpush.msra.mxu2 %v751_v51  ;;  %v804_v16 = vld [vmem:[%s8491_s5 + $0x2c8] sm:$0xff]  ;;  %v803_v19 = vld [vmem:[%s8491_s5 + $0x2c0] sm:$0xff]  ;;  %v786_v20 = vld [vmem:[%s8491_s5 + $0x238] sm:$0xff]  ;;  %4903 = vrcp.f32 %v4987_v52 }
  0x30   : > { %845 = vmatpush.msra.mxu1 %v733_v46  ;;  %883 = vmatpush.msra.mxu3 %v767_v58  ;;  %v710_v17 = vld [vmem:[%s5340_s4 + $0x8] sm:$0x1f]  ;;  %v802_v21 = vld [vmem:[%s8491_s5 + $0x2b8] sm:$0xff]  ;;  %v785_v22 = vld [vmem:[%s8491_s5 + $0x230] sm:$0xff] }
  0x31   : > { %826 = vmatpush.msra.mxu0 %v716_v49  ;;  %864 = vmatpush.msra.mxu2 %v750_v57  ;;  %v801_v23 = vld [vmem:[%s8491_s5 + $0x2b0] sm:$0xff]  ;;  %v784_v24 = vld [vmem:[%s8491_s5 + $0x228] sm:$0xff]  ;;  %v783_v26 = vld [vmem:[%s8491_s5 + $0x220] sm:$0xff] }
  0x32   : > { %846 = vmatpush.msra.mxu1 %v732_v50  ;;  %884 = vmatpush.msra.mxu3 %v766_v0  ;;  %v800_v25 = vld [vmem:[%s8491_s5 + $0x2a8] sm:$0xff]  ;;  %v799_v27 = vld [vmem:[%s8491_s5 + $0x2a0] sm:$0xff]  ;;  %v782_v28 = vld [vmem:[%s8491_s5 + $0x218] sm:$0xff] }
  0x33   : > { %827 = vmatpush.msra.mxu0 %v715_v53  ;;  %865 = vmatpush.msra.mxu2 %v749_v63  ;;  %v798_v29 = vld [vmem:[%s8491_s5 + $0x298] sm:$0xff]  ;;  %v781_v30 = vld [vmem:[%s8491_s5 + $0x210] sm:$0xff]  ;;  %v780_v32 = vld [vmem:[%s8491_s5 + $0x208] sm:$0xff] }
  0x34   : > { %847 = vmatpush.msra.mxu1 %v731_v54  ;;  %885 = vmatpush.msra.mxu3 %v765_v4  ;;  %v797_v31 = vld [vmem:[%s8491_s5 + $0x290] sm:$0xff]  ;;  %v796_v33 = vld [vmem:[%s8491_s5 + $0x288] sm:$0xff]  ;;  %v779_v34 = vld [vmem:[%s8491_s5 + $0x200] sm:$0xff] }
  0x35   : > { %892 = vmatpush.msrb.mxu0 %v794_v55  ;;  %866 = vmatpush.msra.mxu2 %v748_v3  ;;  %v795_v35 = vld [vmem:[%s8491_s5 + $0x280] sm:$0xff]  ;;  %v714_v37 = vld [vmem:[%s5340_s4 + $0x28] sm:$0x1f]  ;;  %v1028_v53 = vld [vmem:[%s8495_s24 + $0x78] sm:$0xff] }
  0x36   : > { %912 = vmatpush.msrb.mxu1 %v810_v56  ;;  %886 = vmatpush.msra.mxu3 %v764_v6  ;;  %v713_v36 = vld [vmem:[%s5340_s4 + $0x20] sm:$0x1f]  ;;  %v1027_v54 = vld [vmem:[%s8495_s24 + $0x70] sm:$0xff]  ;;  %v1026_v55 = vld [vmem:[%s8495_s24 + $0x68] sm:$0xff]  ;;  %v4904_v56 = vpop.eup %4903 }
  0x37   : > { %893 = vmatpush.msrb.mxu0 %v793_v59  ;;  %867 = vmatpush.msra.mxu2 %v747_v5  ;;  %v811_v38 = vld [vmem:[%s8494_s3] sm:$0x1f]  ;;  %v987_v58 = vld [vmem:[%s8496_s28 + $0x78] sm:$0xff]  ;;  %v1023_v0 = vld [vmem:[%s8495_s24 + $0x50] sm:$0xff]  ;;  %vm943_vm1 = vweird.f32 %v4904_v56  ;;  %s708_s3 = scalar_lea.vmem %s8512_s7, %s4291_s26 }
  0x38   : > { %913 = vmatpush.msrb.mxu1 %v809_v61  ;;  %868 = vmatmul.f32.vlgmr.msra.gmra.mxu2 %v711_v9  ;;  %v1025_v57 = vld [vmem:[%s8495_s24 + $0x60] sm:$0xff]  ;;  %v1068_v59 = vld [vmem:[%s8458_s9 + $0x78] sm:$0xff]  ;;  %v1067_v61 = vld [vmem:[%s8458_s9 + $0x70] sm:$0xff] }
  0x39   : > { %894 = vmatpush.msrb.mxu0 %v792_v60  ;;  %887 = vmatpush.msra.mxu3 %v763_v10  ;;  %v986_v60 = vld [vmem:[%s8496_s28 + $0x70] sm:$0xff]  ;;  %v1024_v63 = vld [vmem:[%s8495_s24 + $0x58] sm:$0xff]  ;;  %v1021_v3 = vld [vmem:[%s8495_s24 + $0x40] sm:$0xff] }
  0x3a   : > { %914 = vmatpush.msrb.mxu1 %v808_v62  ;;  %828 = vmatmul.f32.vlgmr.msra.gmra.mxu0 %v709_v13  ;;  %v939_v62 = vmul.f32 128.0, %v4904_v56  ;;  %v1020_v5 = vld [vmem:[%s8495_s24 + $0x38] sm:$0xff]  ;;  %v1019_v6 = vld [vmem:[%s8495_s24 + $0x30] sm:$0xff]  ;;  %v1017_v9 = vld [vmem:[%s8495_s24 + $0x20] sm:$0xff] }
  0x3b   : > { %895 = vmatpush.msrb.mxu0 %v791_v1  ;;  %888 = vmatmul.f32.vlgmr.msra.gmra.mxu3 %v712_v14  ;;  %v974_v52 = vld [vmem:[%s8496_s28 + $0x10] sm:$0xff] }
  0x3c   : > { %915 = vmatpush.msrb.mxu1 %v807_v2  ;;  %1033 = vmatpush.msrb.mxu3 %v1028_v53  ;;  %v940_v1 = vsub.f32 1.0, %v939_v62  ;;  %v1022_v2 = vld [vmem:[%s8495_s24 + $0x48] sm:$0xff]  ;;  %v1055_v53 = vld [vmem:[%s8458_s9 + $0x10] sm:$0xff] }
  0x3d   : > { %896 = vmatpush.msrb.mxu0 %v790_v7  ;;  %848 = vmatmul.f32.vlgmr.msra.gmra.mxu1 %v710_v17  ;;  %v1015_v17 = vld [vmem:[%s8495_s24 + $0x10] sm:$0xff] }
  0x3e   : > { %916 = vmatpush.msrb.mxu1 %v806_v8  ;;  %1034 = vmatpush.msrb.mxu3 %v1027_v54  ;;  %v941_v4 = vmul.f32 %v4904_v56, %v940_v1  ;;  %v1018_v8 = vld [vmem:[%s8495_s24 + $0x28] sm:$0xff]  ;;  %v4302_v54 = vld [vmem:[%s8496_s28 + $0xb0] sm:$0xff] }
  0x3f   : > { %897 = vmatpush.msrb.mxu0 %v789_v11  ;;  %992 = vmatpush.msrb.mxu2 %v987_v58  ;;  %v1016_v11 = vld [vmem:[%s8495_s24 + $0x18] sm:$0xff]  ;;  %v972_v58 = vld [vmem:[%s8496_s28] sm:$0xff]  ;;  %v4298_v62 = vld [vmem:[%s8496_s28 + $0x90] sm:$0xff] }
  0x40   : > { %917 = vmatpush.msrb.mxu1 %v805_v12  ;;  %1035 = vmatpush.msrb.mxu3 %v1026_v55  ;;  %v942_v7 = vadd.f32 %v4904_v56, %v941_v4  ;;  %v973_v55 = vld [vmem:[%s8496_s28 + $0x8] sm:$0xff] }
  0x41   : > { %898 = vmatpush.msrb.mxu0 %v788_v15  ;;  %993 = vmatpush.msrb.mxu2 %v986_v60  ;;  %v4300_v60 = vld [vmem:[%s8496_s28 + $0xa0] sm:$0xff] }
  0x42   : > { %918 = vmatpush.msrb.mxu1 %v804_v16  ;;  %1036 = vmatpush.msrb.mxu3 %v1025_v57  ;;  %v5484_v10 = vsel %vm943_vm1, %v4904_v56, %v942_v7  ;;  %v1054_v56 = vld [vmem:[%s8458_s9 + $0x8] sm:$0xff] }
  0x43   : > { %899 = vmatpush.msrb.mxu0 %v787_v18  ;;  %v985_v18 = vld [vmem:[%s8496_s28 + $0x68] sm:$0xff] }
  0x44   : > { %919 = vmatpush.msrb.mxu1 %v803_v19  ;;  %1037 = vmatpush.msrb.mxu3 %v1024_v63  ;;  %v1066_v19 = vld [vmem:[%s8458_s9 + $0x68] sm:$0xff] }
  0x45   : > { %900 = vmatpush.msrb.mxu0 %v786_v20  ;;  %994 = vmatpush.msrb.mxu2 %v985_v18  ;;  %v1014_v20 = vld [vmem:[%s8495_s24 + $0x8] sm:$0xff]  ;;  %v4867_v18 = vld [vmem:[%s8459_s10] ss:$0 sm:$0xff] }
  0x46   : > { %920 = vmatpush.msrb.mxu1 %v802_v21  ;;  %1038 = vmatpush.msrb.mxu3 %v1023_v0  ;;  %v984_v21 = vld [vmem:[%s8496_s28 + $0x60] sm:$0xff]  ;;  %v4301_v57 = vld [vmem:[%s8496_s28 + $0xa8] sm:$0xff] }
  0x47   : > { %901 = vmatpush.msrb.mxu0 %v785_v22  ;;  %v1065_v22 = vld [vmem:[%s8458_s9 + $0x60] sm:$0xff]  ;;  %995 = vmatpush.msrb.mxu2 %v984_v21  ;;  %v4297_v0 = vld [vmem:[%s8496_s28 + $0x88] sm:$0xff] }
  0x48   : > { %921 = vmatpush.msrb.mxu1 %v801_v23  ;;  %1039 = vmatpush.msrb.mxu3 %v1022_v2  ;;  %v1013_v23 = vld [vmem:[%s8495_s24] sm:$0xff] }
  0x49   : > { %902 = vmatpush.msrb.mxu0 %v784_v24  ;;  %v983_v24 = vld [vmem:[%s8496_s28 + $0x58] sm:$0xff]  ;;  %v4296_v2 = vld [vmem:[%s8496_s28 + $0x80] sm:$0xff] }
  0x4a   : > { %922 = vmatpush.msrb.mxu1 %v800_v25  ;;  %1040 = vmatpush.msrb.mxu3 %v1021_v3  ;;  %v1064_v25 = vld [vmem:[%s8458_s9 + $0x58] sm:$0xff]  ;;  %v4869_v21 = vld [vmem:[%s8457_s8] ss:$0 sm:$0xff] }
  0x4b   : > { %903 = vmatpush.msrb.mxu0 %v783_v26  ;;  %v4311_v26 = vld [vmem:[%s8496_s28 + $0xf8] sm:$0xff]  ;;  %996 = vmatpush.msrb.mxu2 %v983_v24 }
  0x4c   : > { %923 = vmatpush.msrb.mxu1 %v799_v27  ;;  %1041 = vmatpush.msrb.mxu3 %v1020_v5  ;;  %v982_v27 = vld [vmem:[%s8496_s28 + $0x50] sm:$0xff] }
  0x4d   : > { %904 = vmatpush.msrb.mxu0 %v782_v28  ;;  %v1063_v28 = vld [vmem:[%s8458_s9 + $0x50] sm:$0xff]  ;;  %997 = vmatpush.msrb.mxu2 %v982_v27 }
  0x4e   : > { %924 = vmatpush.msrb.mxu1 %v798_v29  ;;  %1042 = vmatpush.msrb.mxu3 %v1019_v6  ;;  %v4310_v29 = vld [vmem:[%s8496_s28 + $0xf0] sm:$0xff] }
  0x4f   : > { %905 = vmatpush.msrb.mxu0 %v781_v30  ;;  %v981_v30 = vld [vmem:[%s8496_s28 + $0x48] sm:$0xff] }
  0x50   : > { %925 = vmatpush.msrb.mxu1 %v797_v31  ;;  %1043 = vmatpush.msrb.mxu3 %v1018_v8  ;;  %v1062_v31 = vld [vmem:[%s8458_s9 + $0x48] sm:$0xff] }
  0x51   : > { %906 = vmatpush.msrb.mxu0 %v780_v32  ;;  %v4309_v32 = vld [vmem:[%s8496_s28 + $0xe8] sm:$0xff]  ;;  %998 = vmatpush.msrb.mxu2 %v981_v30  ;;  %v4325_v30 = vld [vmem:[%s8495_s24 + $0xe0] sm:$0xff] }
  0x52   : > { %926 = vmatpush.msrb.mxu1 %v796_v33  ;;  %1044 = vmatpush.msrb.mxu3 %v1017_v9  ;;  %v980_v33 = vld [vmem:[%s8496_s28 + $0x40] sm:$0xff] }
  0x53   : > { %907 = vmatpush.msrb.mxu0 %v779_v34  ;;  %v1061_v34 = vld [vmem:[%s8458_s9 + $0x40] sm:$0xff]  ;;  %999 = vmatpush.msrb.mxu2 %v980_v33  ;;  %v4322_v33 = vld [vmem:[%s8495_s24 + $0xc8] sm:$0xff] }
  0x54   : > { %927 = vmatpush.msrb.mxu1 %v795_v35  ;;  %908 = vmatmul.f32.vlgmr.msrb.gmra.mxu0 %v713_v36  ;;  %v4308_v35 = vld [vmem:[%s8496_s28 + $0xe0] sm:$0xff]  ;;  %v979_v36 = vld [vmem:[%s8496_s28 + $0x38] sm:$0xff] }
  0x55   : > { %928 = vmatmul.f32.vlgmr.msrb.gmra.mxu1 %v714_v37  ;;  %1073 = vmatpush.msra.mxu0 %v1068_v59  ;;  %v1060_v37 = vld [vmem:[%s8458_s9 + $0x38] sm:$0xff]  ;;  %v1053_v59 = vld [vmem:[%s8458_s9] sm:$0xff] }
  0x56   : > { %1045 = vmatpush.msrb.mxu3 %v1016_v11  ;;  %1000 = vmatpush.msrb.mxu2 %v979_v36  ;;  %v4865_v11 = vld [vmem:[%s8497_s29] ss:$0 sm:$0xff]  ;;  %v4319_v36 = vld [vmem:[%s8495_s24 + $0xb0] sm:$0xff] }
  0x57   : > { %1074 = vmatpush.msra.mxu0 %v1067_v61  ;;  %v4299_v61 = vld [vmem:[%s8496_s28 + $0x98] sm:$0xff] }
  0x58   : > { %1046 = vmatpush.msrb.mxu3 %v1015_v17 }
  0x59   : > { %1075 = vmatpush.msra.mxu0 %v1066_v19 }
  0x5a   : > { %1047 = vmatpush.msrb.mxu3 %v1014_v20 }
  0x5b   : > { %1076 = vmatpush.msra.mxu0 %v1065_v22 }
  0x5c   : > { %1048 = vmatpush.msrb.mxu3 %v1013_v23 }
  0x5d   : > { %1077 = vmatpush.msra.mxu0 %v1064_v25 }
  0x5e   : > { %1198 = vmatpush.msra.mxu3 %v4311_v26  ;;  %v4328_v26 = vld [vmem:[%s8495_s24 + $0xf8] sm:$0xff] }
  0x5f   : > { %1078 = vmatpush.msra.mxu0 %v1063_v28  ;;  %v4327_v28 = vld [vmem:[%s8495_s24 + $0xf0] sm:$0xff] }
  0x60   : > { %1199 = vmatpush.msra.mxu3 %v4310_v29  ;;  %v4326_v29 = vld [vmem:[%s8495_s24 + $0xe8] sm:$0xff] }
  0x61   : > { %1079 = vmatpush.msra.mxu0 %v1062_v31  ;;  %v4324_v31 = vld [vmem:[%s8495_s24 + $0xd8] sm:$0xff] }
  0x62   : > { %1200 = vmatpush.msra.mxu3 %v4309_v32  ;;  %v4323_v32 = vld [vmem:[%s8495_s24 + $0xd0] sm:$0xff] }
  0x63   : > { %1080 = vmatpush.msra.mxu0 %v1061_v34  ;;  %v4321_v34 = vld [vmem:[%s8495_s24 + $0xc0] sm:$0xff] }
  0x64   : > { %1201 = vmatpush.msra.mxu3 %v4308_v35  ;;  %v4320_v35 = vld [vmem:[%s8495_s24 + $0xb8] sm:$0xff] }
  0x65   : > { %1081 = vmatpush.msra.mxu0 %v1060_v37  ;;  %v4318_v37 = vld [vmem:[%s8495_s24 + $0xa8] sm:$0xff] }
  0xb7   : > { %v829_v39 = vpop.f32.mrf.mxu0 }
  0xb8   : > { %v830_v40 = vadd.f32 %v829_v39, %v811_v38  ;;  %v4307_v38 = vld [vmem:[%s8496_s28 + $0xd8] sm:$0xff]  ;;  %v978_v39 = vld [vmem:[%s8496_s28 + $0x30] sm:$0xff] }
  0xb9   : > { %1202 = vmatpush.msra.mxu3 %v4307_v38  ;;  %1001 = vmatpush.msrb.mxu2 %v978_v39  ;;  %v4317_v38 = vld [vmem:[%s8495_s24 + $0xa0] sm:$0xff]  ;;  %v4316_v39 = vld [vmem:[%s8495_s24 + $0x98] sm:$0xff] }
  0xba   : > { %v849_v41 = vpop.f32.mrf.mxu1 }
  0xbb   : > { %v850_v42 = vadd.f32 %v849_v41, %v830_v40  ;;  %v869_v43 = vpop.f32.mrf.mxu2  ;;  %v1059_v40 = vld [vmem:[%s8458_s9 + $0x30] sm:$0xff] }
  0xbc   : > { %v4306_v41 = vld [vmem:[%s8496_s28 + $0xd0] sm:$0xff]  ;;  %1082 = vmatpush.msra.mxu0 %v1059_v40 }
  0xbd   : > { %v870_v44 = vadd.f32 %v869_v43, %v850_v42  ;;  %1203 = vmatpush.msra.mxu3 %v4306_v41  ;;  %v977_v42 = vld [vmem:[%s8496_s28 + $0x28] sm:$0xff]  ;;  %v4315_v40 = vld [vmem:[%s8495_s24 + $0x90] sm:$0xff] }
  0xbe   : > { %v889_v45 = vpop.f32.mrf.mxu3  ;;  %v1058_v43 = vld [vmem:[%s8458_s9 + $0x28] sm:$0xff]  ;;  %1002 = vmatpush.msrb.mxu2 %v977_v42  ;;  %v4313_v42 = vld [vmem:[%s8495_s24 + $0x80] sm:$0xff] }
  0xbf   : > { %v890_v46 = vadd.f32 %v889_v45, %v870_v44  ;;  %v4305_v44 = vld [vmem:[%s8496_s28 + $0xc8] sm:$0xff]  ;;  %1083 = vmatpush.msra.mxu0 %v1058_v43  ;;  %v976_v45 = vld [vmem:[%s8496_s28 + $0x20] sm:$0xff] }
  0xc0   : > { %1204 = vmatpush.msra.mxu3 %v4305_v44  ;;  %1003 = vmatpush.msrb.mxu2 %v976_v45  ;;  %v4314_v41 = vld [vmem:[%s8495_s24 + $0x88] sm:$0xff]  ;;  %v4870_v45 = vld [vmem:[%s8499_s6 + $0x1] ss:$0 sm:$0xff] }
  0xd1   : > { %v909_v47 = vpop.f32.mrf.mxu0 }
  0xd2   : > { %v929_v48 = vpop.f32.mrf.mxu1  ;;  %v910_v49 = vadd.f32 %v909_v47, %v890_v46  ;;  %v1057_v46 = vld [vmem:[%s8458_s9 + $0x20] sm:$0xff] }
  0xd3   : > { %v4304_v47 = vld [vmem:[%s8496_s28 + $0xc0] sm:$0xff]  ;;  %1084 = vmatpush.msra.mxu0 %v1057_v46 }
  0xd4   : > { %v5432_v50 = vadd.f32 %v929_v48, %v910_v49  ;;  %1205 = vmatpush.msra.mxu3 %v4304_v47  ;;  %v975_v48 = vld [vmem:[%s8496_s28 + $0x18] sm:$0xff]  ;;  %v4871_v47 = vld [vmem:[%s8457_s8 + $0x1] ss:$0 sm:$0xff] }
  0xd5   : > { %v1056_v49 = vld [vmem:[%s8458_s9 + $0x18] sm:$0xff]  ;;  %1004 = vmatpush.msrb.mxu2 %v975_v48 }
  0xd6   : > { %v935_v51 = vsel %vm934_vm0, %v5432_v50, 0.0  ;;  %1085 = vmatpush.msra.mxu0 %v1056_v49 }
  0xd7   : > { %936 = vadd.xlane.f32.xlu0 %v935_v51  ;;  %v4303_v51 = vld [vmem:[%s8496_s28 + $0xb8] sm:$0xff]  ;;  %1005 = vmatpush.msrb.mxu2 %v974_v52 }
  0xd8   : > { %1206 = vmatpush.msra.mxu3 %v4303_v51  ;;  %1086 = vmatpush.msra.mxu0 %v1055_v53 }
  0xd9   : > { %1006 = vmatpush.msrb.mxu2 %v973_v55 }
  0xda   : > { %1207 = vmatpush.msra.mxu3 %v4302_v54  ;;  %1087 = vmatpush.msra.mxu0 %v1054_v56 }
  0xdb   : > { %1007 = vmatpush.msrb.mxu2 %v972_v58  ;;  %v4345_v58 = vld [vmem:[%s8458_s9 + $0xf8] sm:$0xff] }
  0xdc   : > { %1208 = vmatpush.msra.mxu3 %v4301_v57  ;;  %1088 = vmatpush.msra.mxu0 %v1053_v59  ;;  %v4344_v59 = vld [vmem:[%s8458_s9 + $0xf0] sm:$0xff] }
  0xde   : > { %1209 = vmatpush.msra.mxu3 %v4300_v60  ;;  %v4343_v60 = vld [vmem:[%s8458_s9 + $0xe8] sm:$0xff] }
  0xe0   : > { %1210 = vmatpush.msra.mxu3 %v4299_v61  ;;  %v4342_v61 = vld [vmem:[%s8458_s9 + $0xe0] sm:$0xff] }
  0xe2   : > { %1211 = vmatpush.msra.mxu3 %v4298_v62  ;;  %v4341_v62 = vld [vmem:[%s8458_s9 + $0xd8] sm:$0xff] }
  0xe4   : > { %1212 = vmatpush.msra.mxu3 %v4297_v0 }
  0xe6   : > { %1213 = vmatpush.msra.mxu3 %v4296_v2  ;;  %v4339_v2 = vld [vmem:[%s8458_s9 + $0xc8] sm:$0xff] }
 0x14a   : > { %v937_v12 = vpop.xlane.xlu0 %936 }
 0x14b   : > { %v945_v13 = vmul.f32 %v5484_v10, %v937_v12 }
 0x14d   : > { %v5491_v14 = vsub.f32 %v5432_v50, %v945_v13  ;;  %v4866_v13 = vld [vmem:[%s8498_s0] ss:$0 sm:$0xff] }
 0x14f   : > { %v947_v15 = vmul.f32 %v5491_v14, %v5491_v14 }
 0x151   : > { %v948_v16 = vsel %vm934_vm0, %v947_v15, 0.0 }
 0x152   : > { %949 = vadd.xlane.f32.xlu0 %v948_v16 }
 0x1c5   : > { %v950_v63 = vpop.xlane.xlu0 %949 }
 0x1c6   : > { %v951_v1 = vmul.f32 %v950_v63, %v5484_v10  ;;  %v4340_v63 = vld [vmem:[%s8458_s9 + $0xd0] sm:$0xff] }
 0x1c8   : > { %v952_v3 = vadd.f32 1e-06, %v951_v1 }
 0x1ca   : > { %4905 = vrsqrt.f32 %v952_v3  ;;  %vm959_vm3 = vweird.f32 %v952_v3 }
 0x1d0   : > { %v4906_v4 = vpop.eup %4905 }
 0x1d1   : > { %v954_v5 = vmul.f32 %v4906_v4, %v952_v3  ;;  %vm960_vm2 = vweird.f32 %v4906_v4  ;;  %v4338_v3 = vld [vmem:[%s8458_s9 + $0xc0] sm:$0xff] }
 0x1d2   : > { %vm961_vm4 = vmor %vm959_vm3, %vm960_vm2 }
 0x1d3   : > { %v955_v6 = vmul.f32 %v4906_v4, %v954_v5  ;;  %v4336_v5 = vld [vmem:[%s8458_s9 + $0xb0] sm:$0xff] }
 0x1d5   : > { %v956_v7 = vmul.f32 0.5, %v955_v6  ;;  %v4335_v6 = vld [vmem:[%s8458_s9 + $0xa8] sm:$0xff] }
 0x1d7   : > { %v957_v8 = vsub.f32 1.5, %v956_v7  ;;  %v4334_v7 = vld [vmem:[%s8458_s9 + $0xa0] sm:$0xff] }
 0x1d9   : > { %v958_v9 = vmul.f32 %v4906_v4, %v957_v8  ;;  %v4333_v8 = vld [vmem:[%s8458_s9 + $0x98] sm:$0xff] }
 0x1db   : > { %v962_v12 = vsel %vm961_vm4, %v4906_v4, %v958_v9  ;;  %v4337_v4 = vld [vmem:[%s8458_s9 + $0xb8] sm:$0xff]  ;;  %v4332_v9 = vld [vmem:[%s8458_s9 + $0x90] sm:$0xff] }
 0x1dc   : > { %v963_v15 = vmul.f32 %v962_v12, %v5491_v14  ;;  %v4868_v14 = vld [vmem:[%s8499_s6] ss:$0 sm:$0xff] }
 0x1dd   : > { %v4330_v12 = vld [vmem:[%s8458_s9 + $0x80] sm:$0xff] }
 0x1de   : > { %v967_v16 = vmul.f32 %v4865_v11, %v963_v15  ;;  %v4331_v11 = vld [vmem:[%s8458_s9 + $0x88] sm:$0xff] }
 0x1e0   : > { %v5645_v17 = vadd.f32 %v4866_v13, %v967_v16 }
 0x1e2   : > { %1008 = vmatmul.f32.vlgmr.msrb.gmra.mxu2 %v5645_v17  ;;  %1049 = vmatmul.f32.vlgmr.msrb.gmra.mxu3 %v5645_v17 }
 0x1e3   : > { %1089 = vmatmul.f32.vlgmr.msra.gmra.mxu0 %v5645_v17 }
 0x1ea   : > { %1214 = vmatmul.f32.vlgmr.msra.gmra.mxu3 %v5645_v17 }
 0x260   : > { %v1090_v19 = vpop.f32.mrf.mxu0 }
 0x261   : > { %v1091_v20 = vadd.f32 %v4867_v18, %v1090_v19 }
 0x263   : > { %4294 = vmatpush.msk.msra.mxu2 %vm934_vm0, %v1091_v20 }
 0x265   : > { %v1009_v22 = vpop.f32.mrf.mxu2  ;;  %v1050_v23 = vpop.f32.mrf.mxu3  ;;  %1283 = vmatpush.msrb.mxu2 %v4345_v58  ;;  %v4442_v58 = vld [vmem:[%s8495_s24 + $0x1c0] sm:$0xff] }
 0x266   : > { %v1010_v24 = vadd.f32 %v4868_v14, %v1009_v22  ;;  %v1051_v25 = vadd.f32 %v4869_v21, %v1050_v23 }
 0x267   : > { %1284 = vmatpush.msrb.mxu2 %v4344_v59  ;;  %v4441_v59 = vld [vmem:[%s8495_s24 + $0x1b8] sm:$0xff] }
 0x268   : > { %v1012_v27 = vmul.f32 0.17677669, %v1010_v24  ;;  %4292 = vmatpush.xpose.msk.msra.mxu1 %vm1093_vm5, %v1051_v25 }
 0x269   : > { %1285 = vmatpush.msrb.mxu2 %v4343_v60  ;;  %v4440_v60 = vld [vmem:[%s8495_s24 + $0x1b0] sm:$0xff] }
 0x26b   : > { %4293 = vmatmul.msk.f32.vlgmr.msra.gmra.mxu1 %vm1093_vm5, %v1012_v27  ;;  %1286 = vmatpush.msrb.mxu2 %v4342_v61  ;;  %v4371_v27 = vld [vmem:[%s8496_s28 + $0x170] sm:$0xff]  ;;  %v4439_v61 = vld [vmem:[%s8495_s24 + $0x1a8] sm:$0xff] }
 0x26c   : > { %1241 = vmatpush.msrb.mxu1 %v4328_v26  ;;  %v4372_v26 = vld [vmem:[%s8496_s28 + $0x178] sm:$0xff] }
 0x26d   : > { %v1215_v46 = vpop.f32.mrf.mxu3  ;;  %1287 = vmatpush.msrb.mxu2 %v4341_v62  ;;  %v4438_v62 = vld [vmem:[%s8495_s24 + $0x1a0] sm:$0xff] }
 0x26e   : > { %1242 = vmatpush.msrb.mxu1 %v4327_v28  ;;  %v1216_v48 = vadd.f32 %v4870_v45, %v1215_v46  ;;  %v4370_v28 = vld [vmem:[%s8496_s28 + $0x168] sm:$0xff]  ;;  %v4357_v46 = vld [vmem:[%s8496_s28 + $0x100] sm:$0xff] }
 0x26f   : > { %1288 = vmatpush.msrb.mxu2 %v4340_v63  ;;  %v4358_v45 = vld [vmem:[%s8496_s28 + $0x108] sm:$0xff]  ;;  %v4437_v63 = vld [vmem:[%s8495_s24 + $0x198] sm:$0xff] }
 0x270   : > { %1243 = vmatpush.msrb.mxu1 %v4326_v29  ;;  %v1218_v52 = vmul.f32 0.17677669, %v1216_v48  ;;  %v4369_v29 = vld [vmem:[%s8496_s28 + $0x160] sm:$0xff]  ;;  %v4448_v48 = vld [vmem:[%s8495_s24 + $0x1f0] sm:$0xff] }
 0x271   : > { %1289 = vmatpush.msrb.mxu2 %v4339_v2  ;;  %v4434_v2 = vld [vmem:[%s8495_s24 + $0x180] sm:$0xff] }
 0x272   : > { %1244 = vmatpush.msrb.mxu1 %v4325_v30  ;;  %v4368_v30 = vld [vmem:[%s8496_s28 + $0x158] sm:$0xff] }
 0x273   : > { %1290 = vmatpush.msrb.mxu2 %v4338_v3  ;;  %v1172_v3 = vld [vmem:[%s8460_s11] sm:$0xff] }
 0x274   : > { %1245 = vmatpush.msrb.mxu1 %v4324_v31  ;;  %v4367_v31 = vld [vmem:[%s8496_s28 + $0x150] sm:$0xff] }
 0x275   : > { %1291 = vmatpush.msrb.mxu2 %v4337_v4 }
 0x276   : > { %1246 = vmatpush.msrb.mxu1 %v4323_v32  ;;  %v4366_v32 = vld [vmem:[%s8496_s28 + $0x148] sm:$0xff] }
 0x277   : > { %1292 = vmatpush.msrb.mxu2 %v4336_v5  ;;  %v4872_v5 = vld [vmem:[%s8459_s10 + $0x1] ss:$0 sm:$0xff] }
 0x278   : > { %1247 = vmatpush.msrb.mxu1 %v4322_v33  ;;  %v4365_v33 = vld [vmem:[%s8496_s28 + $0x140] sm:$0xff] }
 0x279   : > { %1293 = vmatpush.msrb.mxu2 %v4335_v6 }
 0x27a   : > { %1248 = vmatpush.msrb.mxu1 %v4321_v34 }
 0x27b   : > { %1294 = vmatpush.msrb.mxu2 %v4334_v7 }
 0x27c   : > { %1249 = vmatpush.msrb.mxu1 %v4320_v35 }
 0x27d   : > { %1295 = vmatpush.msrb.mxu2 %v4333_v8  ;;  %v4389_v8 = vld [vmem:[%s8495_s24 + $0x178] sm:$0xff] }
 0x27e   : > { %1250 = vmatpush.msrb.mxu1 %v4319_v36  ;;  %v4364_v36 = vld [vmem:[%s8496_s28 + $0x138] sm:$0xff] }
 0x27f   : > { %1296 = vmatpush.msrb.mxu2 %v4332_v9 }
 0x280   : > { %1251 = vmatpush.msrb.mxu1 %v4318_v37 }
 0x281   : > { %1297 = vmatpush.msrb.mxu2 %v4331_v11  ;;  %v4388_v11 = vld [vmem:[%s8495_s24 + $0x170] sm:$0xff] }
 0x282   : > { %1252 = vmatpush.msrb.mxu1 %v4317_v38  ;;  %v4363_v38 = vld [vmem:[%s8496_s28 + $0x130] sm:$0xff] }
 0x283   : > { %1298 = vmatpush.msrb.mxu2 %v4330_v12  ;;  %v4387_v12 = vld [vmem:[%s8495_s24 + $0x168] sm:$0xff] }
 0x284   : > { %1253 = vmatpush.msrb.mxu1 %v4316_v39  ;;  %v4362_v39 = vld [vmem:[%s8496_s28 + $0x128] sm:$0xff] }
 0x286   : > { %1254 = vmatpush.msrb.mxu1 %v4315_v40  ;;  %v4361_v40 = vld [vmem:[%s8496_s28 + $0x120] sm:$0xff] }
 0x288   : > { %1255 = vmatpush.msrb.mxu1 %v4314_v41  ;;  %v4360_v41 = vld [vmem:[%s8496_s28 + $0x118] sm:$0xff] }
 0x28a   : > { %1256 = vmatpush.msrb.mxu1 %v4313_v42 }
 0x28b   : > { %1257 = vmatmul.f32.vlgmr.msrb.gmra.mxu1 %v5645_v17 }
 0x2e8   : > { %v1117_v43 = vpop.f32.mrf.mxu1 }
 0x2e9   : > { %v1121_v44 = vsel %vm1120_vm6, %v1117_v43, -inf }
 0x2ea   : > { %1122 = vmax.xlane.f32.xlu1 %v1121_v44 }
 0x308   : > { %v1258_v49 = vpop.f32.mrf.mxu1 }
 0x309   : > { %v1259_v51 = vadd.f32 %v4871_v47, %v1258_v49  ;;  %v4449_v47 = vld [vmem:[%s8495_s24 + $0x1f8] sm:$0xff] }
 0x30a   : > { %v1175_v49 = vld [vmem:[%s8460_s11 + $0x18] sm:$0xff] }
 0x30b   : > { %4347 = vmatpush.xpose.msk.msrb.mxu0 %vm1093_vm5, %v1259_v51  ;;  %v1174_v51 = vld [vmem:[%s8460_s11 + $0x10] sm:$0xff]  ;;  %1422 = vmatpush.msra.mxu1 %v1175_v49 }
 0x30c   : > { %v4457_v49 = vld [vmem:[%s8458_s9 + $0x1b0] sm:$0xff] }
 0x30d   : > { %1423 = vmatpush.msra.mxu1 %v1174_v51  ;;  %v4456_v51 = vld [vmem:[%s8458_s9 + $0x1a8] sm:$0xff] }
 0x30e   : > { %4348 = vmatmul.msk.f32.vlgmr.msrb.gmra.mxu0 %vm1093_vm5, %v1218_v52  ;;  %v4447_v52 = vld [vmem:[%s8495_s24 + $0x1e8] sm:$0xff] }
 0x35d   : > { %v1123_v53 = vpop.xlane.xlu1 %1122 }
 0x35e   : > { %v1124_v54 = vsub.f32 %v1117_v43, %v1123_v53  ;;  %v4359_v43 = vld [vmem:[%s8496_s28 + $0x110] sm:$0xff]  ;;  %v1173_v53 = vld [vmem:[%s8460_s11 + $0x8] sm:$0xff] }
 0x35f   : > { %1424 = vmatpush.msra.mxu1 %v1173_v53  ;;  %v4454_v53 = vld [vmem:[%s8458_s9 + $0x198] sm:$0xff] }
 0x360   : > { %v1125_v55 = vmul.f32 1.442695, %v1124_v54  ;;  %v4446_v54 = vld [vmem:[%s8495_s24 + $0x1e0] sm:$0xff] }
 0x361   : > { %1425 = vmatpush.msra.mxu1 %v1172_v3  ;;  %v4398_v3 = vld [vmem:[%s8458_s9 + $0x138] sm:$0xff] }
 0x362   : > { %4907 = vpow2.f32 %v1125_v55  ;;  %v4445_v55 = vld [vmem:[%s8495_s24 + $0x1d8] sm:$0xff] }
 0x368   : > { %v4908_v56 = vpop.eup %4907 }
 0x369   : > { %v1127_v57 = vsel %vm1120_vm6, %v4908_v56, 0.0 }
 0x36a   : > { %1128 = vadd.xlane.f32.xlu1 %v1127_v57  ;;  %v4443_v57 = vld [vmem:[%s8495_s24 + $0x1c8] sm:$0xff] }
 0x38b   : > { %v1326_v0 = vpop.f32.mrf.mxu0 }
 0x38c   : > { %v1329_v1 = vsel %vm1120_vm6, %v1326_v0, -inf }
 0x38d   : > { %1330 = vmax.xlane.f32.xlu2 %v1329_v1  ;;  %v4435_v1 = vld [vmem:[%s8495_s24 + $0x188] sm:$0xff] }
 0x3dd   : > { %v1129_v13 = vpop.xlane.xlu1 %1128 }
 0x3de   : > { %4909 = vrcp.f32 %v1129_v13  ;;  %v1141_v19 = vand.u32 2147483648, %v1129_v13  ;;  %v1139_v14 = vand.u32 2147483647, %v1129_v13  ;;  %vm1135_vm8 = vweird.f32 %v1129_v13 }
 0x3e0   : > { %v1142_v22 = vor.u32 1.1754944e-38, %v1141_v19  ;;  %vm1140_vm10 = vcmp.eq.f32.partialorder %v1139_v14, 8.507059e+37  ;;  %v4384_v19 = vld [vmem:[%s8495_s24 + $0x150] sm:$0xff] }
 0x3e4   : > { %v4910_v15 = vpop.eup %4909 }
 0x3e5   : > { %v1131_v16 = vmul.f32 %v4910_v15, %v1129_v13  ;;  %vm1136_vm7 = vweird.f32 %v4910_v15  ;;  %v4386_v13 = vld [vmem:[%s8495_s24 + $0x160] sm:$0xff] }
 0x3e6   : > { %vm1137_vm9 = vmor %vm1135_vm8, %vm1136_vm7 }
 0x3e7   : > { %v1132_v18 = vsub.f32 1.0, %v1131_v16  ;;  %v4385_v16 = vld [vmem:[%s8495_s24 + $0x158] sm:$0xff] }
 0x3e9   : > { %v1133_v20 = vmul.f32 %v4910_v15, %v1132_v18 }
 0x3eb   : > { %v1134_v21 = vadd.f32 %v4910_v15, %v1133_v20 }
 0x3ed   : > { %v1138_v23 = vsel %vm1137_vm9, %v4910_v15, %v1134_v21  ;;  %v4383_v21 = vld [vmem:[%s8495_s24 + $0x148] sm:$0xff] }
 0x3ee   : > { %v1143_v24 = vsel %vm1140_vm10, %v1142_v22, %v1138_v23 }
 0x3ef   : > { %v1144_v25 = vmul.f32 %v4908_v56, %v1143_v24  ;;  %v4444_v56 = vld [vmem:[%s8495_s24 + $0x1d0] sm:$0xff]  ;;  %v4382_v24 = vld [vmem:[%s8495_s24 + $0x140] sm:$0xff] }
 0x3f1   : > { %4295 = vmatmul.msk.f32.vlgmr.msra.gmra.mxu2 %vm1145_vm11, %v1144_v25 }
 0x3f2   : > { %1452 = vmatpush.msra.mxu2 %v4372_v26 }
 0x3f4   : > { %1453 = vmatpush.msra.mxu2 %v4371_v27  ;;  %v4381_v27 = vld [vmem:[%s8495_s24 + $0x138] sm:$0xff] }
 0x3f6   : > { %1454 = vmatpush.msra.mxu2 %v4370_v28 }
 0x3f8   : > { %1455 = vmatpush.msra.mxu2 %v4369_v29 }
 0x3f9   : > { %1299 = vmatmul.f32.vlgmr.msrb.gmra.mxu2 %v5645_v17 }
 0x3fa   : > { %1456 = vmatpush.msra.mxu2 %v4368_v30 }
 0x3fc   : > { %1457 = vmatpush.msra.mxu2 %v4367_v31  ;;  %v4380_v31 = vld [vmem:[%s8495_s24 + $0x130] sm:$0xff] }
 0x3fe   : > { %1458 = vmatpush.msra.mxu2 %v4366_v32  ;;  %v4379_v32 = vld [vmem:[%s8495_s24 + $0x128] sm:$0xff] }
 0x400   : > { %v1331_v34 = vpop.xlane.xlu2 %1330  ;;  %1459 = vmatpush.msra.mxu2 %v4365_v33  ;;  %v4378_v33 = vld [vmem:[%s8495_s24 + $0x120] sm:$0xff] }
 0x401   : > { %v1332_v35 = vsub.f32 %v1326_v0, %v1331_v34  ;;  %v4436_v0 = vld [vmem:[%s8495_s24 + $0x190] sm:$0xff]  ;;  %v4377_v34 = vld [vmem:[%s8495_s24 + $0x118] sm:$0xff] }
 0x402   : > { %1460 = vmatpush.msra.mxu2 %v4364_v36  ;;  %v4375_v36 = vld [vmem:[%s8495_s24 + $0x108] sm:$0xff] }
 0x403   : > { %v1333_v37 = vmul.f32 1.442695, %v1332_v35  ;;  %v4376_v35 = vld [vmem:[%s8495_s24 + $0x110] sm:$0xff] }
 0x404   : > { %1461 = vmatpush.msra.mxu2 %v4363_v38  ;;  %v4466_v38 = vld [vmem:[%s8458_s9 + $0x1f8] sm:$0xff] }
 0x405   : > { %4911 = vpow2.f32 %v1333_v37  ;;  %v4374_v37 = vld [vmem:[%s8495_s24 + $0x100] sm:$0xff] }
 0x406   : > { %1462 = vmatpush.msra.mxu2 %v4362_v39  ;;  %v4465_v39 = vld [vmem:[%s8458_s9 + $0x1f0] sm:$0xff] }
 0x408   : > { %1463 = vmatpush.msra.mxu2 %v4361_v40  ;;  %v4354_v40 = vld [vmem:[%s8460_s11 + $0x38] sm:$0xff] }
 0x409   : > { %1399 = vmatpush.msra.mxu0 %v4354_v40  ;;  %v4415_v40 = vld [vmem:[%s8460_s11 + $0x58] sm:$0xff] }
 0x40a   : > { %1464 = vmatpush.msra.mxu2 %v4360_v41  ;;  %v4353_v41 = vld [vmem:[%s8460_s11 + $0x30] sm:$0xff] }
 0x40b   : > { %v5812_v42 = vpop.eup %4911  ;;  %1400 = vmatpush.msra.mxu0 %v4353_v41  ;;  %v4414_v41 = vld [vmem:[%s8460_s11 + $0x50] sm:$0xff] }
 0x40c   : > { %v1335_v44 = vsel %vm1120_vm6, %v5812_v42, 0.0  ;;  %1465 = vmatpush.msra.mxu2 %v4359_v43  ;;  %v4463_v43 = vld [vmem:[%s8458_s9 + $0x1e0] sm:$0xff] }
 0x40d   : > { %1336 = vadd.xlane.f32.xlu2 %v1335_v44  ;;  %v4462_v44 = vld [vmem:[%s8458_s9 + $0x1d8] sm:$0xff] }
 0x40e   : > { %1466 = vmatpush.msra.mxu2 %v4358_v45  ;;  %v4461_v45 = vld [vmem:[%s8458_s9 + $0x1d0] sm:$0xff] }
 0x410   : > { %1467 = vmatpush.msra.mxu2 %v4357_v46  ;;  %v4460_v46 = vld [vmem:[%s8458_s9 + $0x1c8] sm:$0xff] }
 0x411   : > { %1468 = vmatmul.f32.vlgmr.msra.gmra.mxu2 %v5645_v17 }
 0x412   : > { %1727 = vmatpush.msrb.mxu2 %v4449_v47  ;;  %v4459_v47 = vld [vmem:[%s8458_s9 + $0x1c0] sm:$0xff] }
 0x414   : > { %1728 = vmatpush.msrb.mxu2 %v4448_v48  ;;  %v4458_v48 = vld [vmem:[%s8458_s9 + $0x1b8] sm:$0xff] }
 0x416   : > { %1729 = vmatpush.msrb.mxu2 %v4447_v52  ;;  %v4455_v52 = vld [vmem:[%s8458_s9 + $0x1a0] sm:$0xff] }
 0x418   : > { %1730 = vmatpush.msrb.mxu2 %v4446_v54  ;;  %v4453_v54 = vld [vmem:[%s8458_s9 + $0x190] sm:$0xff] }
 0x41a   : > { %1731 = vmatpush.msrb.mxu2 %v4445_v55  ;;  %v4452_v55 = vld [vmem:[%s8458_s9 + $0x188] sm:$0xff] }
 0x41c   : > { %1732 = vmatpush.msrb.mxu2 %v4444_v56  ;;  %v4451_v56 = vld [vmem:[%s8458_s9 + $0x180] sm:$0xff] }
 0x41e   : > { %1733 = vmatpush.msrb.mxu2 %v4443_v57  ;;  %v4352_v57 = vld [vmem:[%s8460_s11 + $0x28] sm:$0xff] }
 0x41f   : > { %1401 = vmatpush.msra.mxu0 %v4352_v57  ;;  %v4432_v57 = vld [vmem:[%s8496_s28 + $0x1f8] sm:$0xff] }
 0x420   : > { %1734 = vmatpush.msrb.mxu2 %v4442_v58  ;;  %v4351_v58 = vld [vmem:[%s8460_s11 + $0x20] sm:$0xff] }
 0x421   : > { %1402 = vmatpush.msra.mxu0 %v4351_v58  ;;  %v4431_v58 = vld [vmem:[%s8496_s28 + $0x1f0] sm:$0xff] }
 0x422   : > { %1735 = vmatpush.msrb.mxu2 %v4441_v59  ;;  %v4406_v59 = vld [vmem:[%s8458_s9 + $0x178] sm:$0xff] }
 0x423   : > { %1537 = vmatpush.msrb.mxu0 %v4406_v59  ;;  %v4430_v59 = vld [vmem:[%s8496_s28 + $0x1e8] sm:$0xff] }
 0x424   : > { %1736 = vmatpush.msrb.mxu2 %v4440_v60  ;;  %v4405_v60 = vld [vmem:[%s8458_s9 + $0x170] sm:$0xff] }
 0x425   : > { %1538 = vmatpush.msrb.mxu0 %v4405_v60  ;;  %v4429_v60 = vld [vmem:[%s8496_s28 + $0x1e0] sm:$0xff] }
 0x426   : > { %1737 = vmatpush.msrb.mxu2 %v4439_v61  ;;  %v4404_v61 = vld [vmem:[%s8458_s9 + $0x168] sm:$0xff] }
 0x427   : > { %1539 = vmatpush.msrb.mxu0 %v4404_v61  ;;  %v4428_v61 = vld [vmem:[%s8496_s28 + $0x1d8] sm:$0xff] }
 0x428   : > { %1738 = vmatpush.msrb.mxu2 %v4438_v62  ;;  %v4403_v62 = vld [vmem:[%s8458_s9 + $0x160] sm:$0xff] }
 0x429   : > { %1540 = vmatpush.msrb.mxu0 %v4403_v62  ;;  %v4427_v62 = vld [vmem:[%s8496_s28 + $0x1d0] sm:$0xff] }
 0x42a   : > { %1739 = vmatpush.msrb.mxu2 %v4437_v63  ;;  %v4402_v63 = vld [vmem:[%s8458_s9 + $0x158] sm:$0xff] }
 0x42b   : > { %1541 = vmatpush.msrb.mxu0 %v4402_v63  ;;  %v4426_v63 = vld [vmem:[%s8496_s28 + $0x1c8] sm:$0xff] }
 0x42c   : > { %1740 = vmatpush.msrb.mxu2 %v4436_v0  ;;  %v4401_v0 = vld [vmem:[%s8458_s9 + $0x150] sm:$0xff] }
 0x42d   : > { %1542 = vmatpush.msrb.mxu0 %v4401_v0  ;;  %v4425_v0 = vld [vmem:[%s8496_s28 + $0x1c0] sm:$0xff] }
 0x42e   : > { %1741 = vmatpush.msrb.mxu2 %v4435_v1  ;;  %v4400_v1 = vld [vmem:[%s8458_s9 + $0x148] sm:$0xff] }
 0x42f   : > { %1543 = vmatpush.msrb.mxu0 %v4400_v1  ;;  %v4424_v1 = vld [vmem:[%s8496_s28 + $0x1b8] sm:$0xff] }
 0x430   : > { %1742 = vmatpush.msrb.mxu2 %v4434_v2  ;;  %v4399_v2 = vld [vmem:[%s8458_s9 + $0x140] sm:$0xff] }
 0x431   : > { %1743 = vmatmul.f32.vlgmr.msrb.gmra.mxu2 %v5645_v17  ;;  %1544 = vmatpush.msrb.mxu0 %v4399_v2  ;;  %v4423_v2 = vld [vmem:[%s8496_s28 + $0x1b0] sm:$0xff] }
 0x433   : > { %1545 = vmatpush.msrb.mxu0 %v4398_v3  ;;  %v4422_v3 = vld [vmem:[%s8496_s28 + $0x1a8] sm:$0xff] }
 0x474   : > { %v1169_v4 = vpop.f32.mrf.mxu2 }
 0x475   : > { %4356 = vmatmul.msk.f32.vlgmr.msra.gmra.mxu1 %vm1093_vm5, %v1169_v4  ;;  %v4397_v4 = vld [vmem:[%s8458_s9 + $0x130] sm:$0xff] }
 0x476   : > { %1546 = vmatpush.msrb.mxu0 %v4397_v4  ;;  %v4421_v4 = vld [vmem:[%s8496_s28 + $0x1a0] sm:$0xff] }
 0x47c   : > { %v1300_v6 = vpop.f32.mrf.mxu2 }
 0x47d   : > { %v1301_v7 = vadd.f32 %v4872_v5, %v1300_v6  ;;  %v4396_v5 = vld [vmem:[%s8458_s9 + $0x128] sm:$0xff]  ;;  %v4395_v6 = vld [vmem:[%s8458_s9 + $0x120] sm:$0xff] }
 0x47e   : > { %1547 = vmatpush.msrb.mxu0 %v4396_v5  ;;  %v4420_v5 = vld [vmem:[%s8496_s28 + $0x198] sm:$0xff] }
 0x47f   : > { %4349 = vmatpush.msk.msrb.mxu3 %vm934_vm0, %v1301_v7  ;;  %v4394_v7 = vld [vmem:[%s8458_s9 + $0x118] sm:$0xff] }
 0x480   : > { %v1337_v9 = vpop.xlane.xlu2 %1336  ;;  %1548 = vmatpush.msrb.mxu0 %v4395_v6  ;;  %v4419_v6 = vld [vmem:[%s8496_s28 + $0x190] sm:$0xff] }
 0x481   : > { %4913 = vrcp.f32 %v1337_v9  ;;  %1495 = vmatpush.msra.mxu3 %v4389_v8  ;;  %v1349_v14 = vand.u32 2147483648, %v1337_v9  ;;  %v1347_v23 = vand.u32 2147483647, %v1337_v9  ;;  %vm1343_vm13 = vweird.f32 %v1337_v9  ;;  %v4393_v8 = vld [vmem:[%s8458_s9 + $0x110] sm:$0xff] }
 0x482   : > { %1549 = vmatpush.msrb.mxu0 %v4394_v7  ;;  %v4418_v7 = vld [vmem:[%s8496_s28 + $0x188] sm:$0xff] }
 0x483   : > { %1496 = vmatpush.msra.mxu3 %v4388_v11  ;;  %v1350_v26 = vor.u32 1.1754944e-38, %v1349_v14  ;;  %vm1348_vm15 = vcmp.eq.f32.partialorder %v1347_v23, 8.507059e+37  ;;  %v4391_v11 = vld [vmem:[%s8458_s9 + $0x100] sm:$0xff] }
 0x484   : > { %1550 = vmatpush.msrb.mxu0 %v4393_v8  ;;  %v4417_v8 = vld [vmem:[%s8496_s28 + $0x180] sm:$0xff] }
 0x485   : > { %1497 = vmatpush.msra.mxu3 %v4387_v12 }
 0x487   : > { %v4914_v15 = vpop.eup %4913  ;;  %1498 = vmatpush.msra.mxu3 %v4386_v13  ;;  %v4874_v13 = vld [vmem:[%s8457_s8 + $0x3] ss:$0 sm:$0xff] }
 0x488   : > { %v1339_v18 = vmul.f32 %v4914_v15, %v1337_v9  ;;  %vm1344_vm12 = vweird.f32 %v4914_v15  ;;  %v4392_v9 = vld [vmem:[%s8458_s9 + $0x108] sm:$0xff] }
 0x489   : > { %1499 = vmatpush.msra.mxu3 %v4385_v16  ;;  %vm1345_vm14 = vmor %vm1343_vm13, %vm1344_vm12  ;;  %1551 = vmatpush.msrb.mxu0 %v4392_v9 }
 0x48a   : > { %v1340_v20 = vsub.f32 1.0, %v1339_v18 }
 0x48b   : > { %1500 = vmatpush.msra.mxu3 %v4384_v19  ;;  %1552 = vmatpush.msrb.mxu0 %v4391_v11  ;;  %v4873_v19 = vld [vmem:[%s8499_s6 + $0x2] ss:$0 sm:$0xff] }
 0x48c   : > { %v1341_v22 = vmul.f32 %v4914_v15, %v1340_v20  ;;  %v4875_v20 = vld [vmem:[%s8457_s8 + $0x2] ss:$0 sm:$0xff] }
 0x48d   : > { %1501 = vmatpush.msra.mxu3 %v4383_v21 }
 0x48e   : > { %v1342_v25 = vadd.f32 %v4914_v15, %v1341_v22 }
 0x48f   : > { %1502 = vmatpush.msra.mxu3 %v4382_v24  ;;  %v4876_v24 = vld [vmem:[%s8459_s10 + $0x3] ss:$0 sm:$0xff] }
 0x490   : > { %v1346_v28 = vsel %vm1345_vm14, %v4914_v15, %v1342_v25 }
 0x491   : > { %v1351_v29 = vsel %vm1348_vm15, %v1350_v26, %v1346_v28  ;;  %1503 = vmatpush.msra.mxu3 %v4381_v27 }
 0x492   : > { %v1352_v30 = vmul.f32 %v5812_v42, %v1351_v29  ;;  %v4464_v42 = vld [vmem:[%s8458_s9 + $0x1e8] sm:$0xff] }
 0x493   : > { %1504 = vmatpush.msra.mxu3 %v4380_v31 }
 0x494   : > { %4350 = vmatmul.msk.f32.vlgmr.msrb.gmra.mxu3 %vm1145_vm11, %v1352_v30  ;;  %v1469_v12 = vpop.f32.mrf.mxu2  ;;  %v4877_v30 = vld [vmem:[%s8459_s10 + $0x2] ss:$0 sm:$0xff] }
 0x495   : > { %1505 = vmatpush.msra.mxu3 %v4379_v32  ;;  %v1470_v14 = vadd.f32 %v4873_v19, %v1469_v12 }
 0x497   : > { %1506 = vmatpush.msra.mxu3 %v4378_v33  ;;  %v1472_v23 = vmul.f32 0.17677669, %v1470_v14 }
 0x499   : > { %1507 = vmatpush.msra.mxu3 %v4377_v34 }
 0x49b   : > { %1508 = vmatpush.msra.mxu3 %v4376_v35 }
 0x49d   : > { %1509 = vmatpush.msra.mxu3 %v4375_v36 }
 0x49f   : > { %1510 = vmatpush.msra.mxu3 %v4374_v37 }
 0x4a0   : > { %1511 = vmatmul.f32.vlgmr.msra.gmra.mxu3 %v5645_v17 }
 0x4a1   : > { %1769 = vmatpush.msrb.mxu3 %v4466_v38 }
 0x4a3   : > { %1770 = vmatpush.msrb.mxu3 %v4465_v39 }
 0x4a5   : > { %1771 = vmatpush.msrb.mxu3 %v4464_v42  ;;  %v4413_v42 = vld [vmem:[%s8460_s11 + $0x48] sm:$0xff] }
 0x4a7   : > { %1772 = vmatpush.msrb.mxu3 %v4463_v43  ;;  %v4412_v43 = vld [vmem:[%s8460_s11 + $0x40] sm:$0xff] }
 0x4a9   : > { %1773 = vmatpush.msrb.mxu3 %v4462_v44 }
 0x4ab   : > { %1774 = vmatpush.msrb.mxu3 %v4461_v45 }
 0x4ad   : > { %1775 = vmatpush.msrb.mxu3 %v4460_v46 }
 0x4af   : > { %1776 = vmatpush.msrb.mxu3 %v4459_v47 }
 0x4b1   : > { %1777 = vmatpush.msrb.mxu3 %v4458_v48 }
 0x4b3   : > { %1778 = vmatpush.msrb.mxu3 %v4457_v49 }
 0x4b4   : > { %v1744_v15 = vpop.f32.mrf.mxu2 }
 0x4b5   : > { %1779 = vmatpush.msrb.mxu3 %v4456_v51  ;;  %v1745_v16 = vadd.f32 %v4874_v13, %v1744_v15  ;;  %v4878_v13 = vld [vmem:[%s8499_s6 + $0x3] ss:$0 sm:$0xff] }
 0x4b7   : > { %1780 = vmatpush.msrb.mxu3 %v4455_v52 }
 0x4b9   : > { %1781 = vmatpush.msrb.mxu3 %v4454_v53 }
 0x4bb   : > { %1782 = vmatpush.msrb.mxu3 %v4453_v54 }
 0x4bd   : > { %1783 = vmatpush.msrb.mxu3 %v4452_v55 }
 0x4bf   : > { %1784 = vmatpush.msrb.mxu3 %v4451_v56 }
 0x4c0   : > { %1785 = vmatmul.f32.vlgmr.msrb.gmra.mxu3 %v5645_v17 }
 0x4f2   : > { %v1427_v27 = vpop.f32.mrf.mxu1 }
 0x517   : > { %v1376_v18 = vpop.f32.mrf.mxu3 }
 0x518   : > { %4355 = vmatmul.msk.f32.vlgmr.msra.gmra.mxu0 %vm1093_vm5, %v1376_v18 }
 0x519   : > { %4468 = vmatpush.xpose.msk.msra.mxu0 %vm1093_vm5, %v1745_v16 }
 0x520   : > { %1553 = vmatmul.f32.vlgmr.msrb.gmra.mxu0 %v5645_v17 }
 0x523   : > { %v1512_v21 = vpop.f32.mrf.mxu3 }
 0x524   : > { %v1513_v22 = vadd.f32 %v4875_v20, %v1512_v21 }
 0x526   : > { %4408 = vmatpush.xpose.msk.msrb.mxu1 %vm1093_vm5, %v1513_v22 }
 0x529   : > { %4409 = vmatmul.msk.f32.vlgmr.msrb.gmra.mxu1 %vm1093_vm5, %v1472_v23 }
 0x543   : > { %v1786_v25 = vpop.f32.mrf.mxu3 }
 0x544   : > { %v1787_v26 = vadd.f32 %v4876_v24, %v1786_v25  ;;  %v4475_v24 = vld [vmem:[%s8460_s11 + $0x78] sm:$0xff]  ;;  %v4474_v25 = vld [vmem:[%s8460_s11 + $0x70] sm:$0xff] }
 0x546   : > { %4470 = vmatpush.msk.msrb.mxu0 %vm934_vm0, %v1787_v26  ;;  %v4473_v26 = vld [vmem:[%s8460_s11 + $0x68] sm:$0xff] }
 0x595   : > { %v1404_v28 = vpop.f32.mrf.mxu0 }
 0x596   : > { %v6070_v29 = vadd.f32 %v1427_v27, %v1404_v28 }
 0x59d   : > { %v1554_v31 = vpop.f32.mrf.mxu0 }
 0x59e   : > { %v1555_v32 = vadd.f32 %v4877_v30, %v1554_v31 }
 0x5a0   : > { %4410 = vmatpush.msk.msra.mxu1 %vm934_vm0, %v1555_v32 }
 0x5a2   : > { %1653 = vmatpush.msrb.mxu1 %v4415_v40 }
 0x5a4   : > { %1654 = vmatpush.msrb.mxu1 %v4414_v41 }
 0x5a6   : > { %v1580_v33 = vpop.f32.mrf.mxu1  ;;  %1655 = vmatpush.msrb.mxu1 %v4413_v42 }
 0x5a7   : > { %v1583_v34 = vsel %vm1120_vm6, %v1580_v33, -inf }
 0x5a8   : > { %1584 = vmax.xlane.f32.xlu0 %v1583_v34  ;;  %1656 = vmatpush.msrb.mxu1 %v4412_v43  ;;  %v4879_v43 = vld [vmem:[%s8461_s12] ss:$0 sm:$0xff] }
 0x61b   : > { %v1585_v35 = vpop.xlane.xlu0 %1584 }
 0x61c   : > { %v1586_v36 = vsub.f32 %v1580_v33, %v1585_v35 }
 0x61e   : > { %v1587_v37 = vmul.f32 1.442695, %v1586_v36 }
 0x620   : > { %4915 = vpow2.f32 %v1587_v37 }
 0x626   : > { %v4916_v38 = vpop.eup %4915 }
 0x627   : > { %v1589_v39 = vsel %vm1120_vm6, %v4916_v38, 0.0 }
 0x628   : > { %1590 = vadd.xlane.f32.xlu1 %v1589_v39  ;;  %v4472_v39 = vld [vmem:[%s8460_s11 + $0x60] sm:$0xff] }
 0x69b   : > { %v1591_v44 = vpop.xlane.xlu1 %1590 }
 0x69c   : > { %4917 = vrcp.f32 %v1591_v44  ;;  %v1603_v48 = vand.u32 2147483648, %v1591_v44  ;;  %v1601_v51 = vand.u32 2147483647, %v1591_v44  ;;  %vm1597_vm2 = vweird.f32 %v1591_v44 }
 0x69e   : > { %v1604_v53 = vor.u32 1.1754944e-38, %v1603_v48  ;;  %vm1602_vm4 = vcmp.eq.f32.partialorder %v1601_v51, 8.507059e+37  ;;  %v1993_v48 = vld [vmem:[%s8464_s15 + $0x1e8] sm:$0xff]  ;;  %v1988_v51 = vld [vmem:[%s8464_s15 + $0x1c0] sm:$0xff] }
 0x6a2   : > { %v4918_v45 = vpop.eup %4917 }
 0x6a3   : > { %v1593_v46 = vmul.f32 %v4918_v45, %v1591_v44  ;;  %vm1598_vm1 = vweird.f32 %v4918_v45 }
 0x6a4   : > { %vm1599_vm3 = vmor %vm1597_vm2, %vm1598_vm1 }
 0x6a5   : > { %v1594_v47 = vsub.f32 1.0, %v1593_v46 }
 0x6a7   : > { %v1595_v49 = vmul.f32 %v4918_v45, %v1594_v47  ;;  %v1992_v47 = vld [vmem:[%s8464_s15 + $0x1e0] sm:$0xff] }
 0x6a9   : > { %v1596_v52 = vadd.f32 %v4918_v45, %v1595_v49  ;;  %v1994_v49 = vld [vmem:[%s8464_s15 + $0x1f0] sm:$0xff] }
 0x6aa   : > { %2046 = vmatpush.msra.mxu2 %v1994_v49  ;;  %v1939_v49 = vld [vmem:[%s8464_s15 + $0x38] sm:$0xff] }
 0x6ab   : > { %v1600_v54 = vsel %vm1599_vm3, %v4918_v45, %v1596_v52  ;;  %v1989_v52 = vld [vmem:[%s8464_s15 + $0x1c8] sm:$0xff] }
 0x6ac   : > { %v1605_v55 = vsel %vm1602_vm4, %v1604_v53, %v1600_v54  ;;  %v1990_v53 = vld [vmem:[%s8464_s15 + $0x1d0] sm:$0xff]  ;;  %v1991_v54 = vld [vmem:[%s8464_s15 + $0x1d8] sm:$0xff] }
 0x6ad   : > { %v1606_v56 = vmul.f32 %v4916_v38, %v1605_v55  ;;  %2047 = vmatpush.msra.mxu2 %v1990_v53  ;;  %v1935_v53 = vld [vmem:[%s8464_s15 + $0x18] sm:$0xff] }
 0x6af   : > { %4411 = vmatmul.msk.f32.vlgmr.msra.gmra.mxu1 %vm1145_vm11, %v1606_v56 }
 0x6b0   : > { %1684 = vmatpush.msra.mxu1 %v4432_v57 }
 0x6b2   : > { %1685 = vmatpush.msra.mxu1 %v4431_v58 }
 0x6b4   : > { %1686 = vmatpush.msra.mxu1 %v4430_v59 }
 0x6b6   : > { %1687 = vmatpush.msra.mxu1 %v4429_v60  ;;  %v1984_v60 = vld [vmem:[%s8464_s15 + $0x1a0] sm:$0xff] }
 0x6b8   : > { %1688 = vmatpush.msra.mxu1 %v4428_v61  ;;  %v1985_v61 = vld [vmem:[%s8464_s15 + $0x1a8] sm:$0xff] }
 0x6ba   : > { %1689 = vmatpush.msra.mxu1 %v4427_v62  ;;  %v1986_v62 = vld [vmem:[%s8464_s15 + $0x1b0] sm:$0xff] }
 0x6bb   : > { %2048 = vmatpush.msra.mxu2 %v1986_v62 }
 0x6bc   : > { %1690 = vmatpush.msra.mxu1 %v4426_v63  ;;  %v1987_v63 = vld [vmem:[%s8464_s15 + $0x1b8] sm:$0xff] }
 0x6be   : > { %1691 = vmatpush.msra.mxu1 %v4425_v0  ;;  %v1980_v0 = vld [vmem:[%s8464_s15 + $0x180] sm:$0xff] }
 0x6c0   : > { %1692 = vmatpush.msra.mxu1 %v4424_v1  ;;  %v1981_v1 = vld [vmem:[%s8464_s15 + $0x188] sm:$0xff] }
 0x6c2   : > { %1693 = vmatpush.msra.mxu1 %v4423_v2  ;;  %v1982_v2 = vld [vmem:[%s8464_s15 + $0x190] sm:$0xff] }
 0x6c3   : > { %2049 = vmatpush.msra.mxu2 %v1982_v2 }
 0x6c4   : > { %1694 = vmatpush.msra.mxu1 %v4422_v3  ;;  %v1983_v3 = vld [vmem:[%s8464_s15 + $0x198] sm:$0xff] }
 0x6c6   : > { %1695 = vmatpush.msra.mxu1 %v4421_v4  ;;  %v1976_v4 = vld [vmem:[%s8464_s15 + $0x160] sm:$0xff] }
 0x6c8   : > { %1696 = vmatpush.msra.mxu1 %v4420_v5  ;;  %v1977_v5 = vld [vmem:[%s8464_s15 + $0x168] sm:$0xff] }
 0x6ca   : > { %1697 = vmatpush.msra.mxu1 %v4419_v6  ;;  %v1978_v6 = vld [vmem:[%s8464_s15 + $0x170] sm:$0xff] }
 0x6cb   : > { %2050 = vmatpush.msra.mxu2 %v1978_v6  ;;  %v1996_v6 = vld [vmem:[%s8465_s16] sm:$0xf] }
 0x6cc   : > { %1698 = vmatpush.msra.mxu1 %v4418_v7  ;;  %v1979_v7 = vld [vmem:[%s8464_s15 + $0x178] sm:$0xff] }
 0x6ce   : > { %1699 = vmatpush.msra.mxu1 %v4417_v8  ;;  %v1972_v8 = vld [vmem:[%s8464_s15 + $0x140] sm:$0xff] }
 0x72c   : > { %v1630_v9 = vpop.f32.mrf.mxu1 }
 0x72d   : > { %4416 = vmatmul.msk.f32.vlgmr.msrb.gmra.mxu1 %vm1093_vm5, %v1630_v9  ;;  %v1973_v9 = vld [vmem:[%s8464_s15 + $0x148] sm:$0xff] }
 0x72e   : > { %2026 = vmatpush.msrb.mxu1 %v1993_v48  ;;  %v1938_v48 = vld [vmem:[%s8464_s15 + $0x30] sm:$0xff] }
 0x730   : > { %2027 = vmatpush.msrb.mxu1 %v1989_v52  ;;  %v1934_v52 = vld [vmem:[%s8464_s15 + $0x10] sm:$0xff] }
 0x732   : > { %2028 = vmatpush.msrb.mxu1 %v1985_v61 }
 0x734   : > { %2029 = vmatpush.msrb.mxu1 %v1981_v1 }
 0x735   : > { %1700 = vmatmul.f32.vlgmr.msra.gmra.mxu1 %v5645_v17 }
 0x736   : > { %2030 = vmatpush.msrb.mxu1 %v1977_v5 }
 0x738   : > { %2031 = vmatpush.msrb.mxu1 %v1973_v9 }
 0x7aa   : > { %v1658_v11 = vpop.f32.mrf.mxu1 }
 0x7ab   : > { %v1661_v12 = vadd.f32 %v1658_v11, %v6070_v29  ;;  %v1974_v11 = vld [vmem:[%s8464_s15 + $0x150] sm:$0xff] }
 0x7ac   : > { %2051 = vmatpush.msra.mxu2 %v1974_v11 }
 0x7b2   : > { %v1701_v15 = vpop.f32.mrf.mxu1 }
 0x7b3   : > { %v1702_v16 = vadd.f32 %v4878_v13, %v1701_v15  ;;  %v1968_v13 = vld [vmem:[%s8464_s15 + $0x120] sm:$0xff]  ;;  %v1969_v15 = vld [vmem:[%s8464_s15 + $0x128] sm:$0xff] }
 0x7b4   : > { %2032 = vmatpush.msrb.mxu1 %v1969_v15  ;;  %v2277_v15 = vld [vmem:[%s8466_s17 + $0xf8] sm:$0xff] }
 0x7b5   : > { %v1704_v18 = vmul.f32 0.17677669, %v1702_v16  ;;  %v1970_v16 = vld [vmem:[%s8464_s15 + $0x130] sm:$0xff] }
 0x7b6   : > { %2052 = vmatpush.msra.mxu2 %v1970_v16 }
 0x7b7   : > { %4469 = vmatmul.msk.f32.vlgmr.msra.gmra.mxu0 %vm1093_vm5, %v1704_v18  ;;  %v1971_v18 = vld [vmem:[%s8464_s15 + $0x138] sm:$0xff] }
 0x7b8   : > { %1885 = vmatpush.msra.mxu0 %v4475_v24  ;;  %v1963_v24 = vld [vmem:[%s8464_s15 + $0xf8] sm:$0xff] }
 0x7ba   : > { %1886 = vmatpush.msra.mxu0 %v4474_v25  ;;  %v1956_v25 = vld [vmem:[%s8464_s15 + $0xc0] sm:$0xff] }
 0x7bc   : > { %1887 = vmatpush.msra.mxu0 %v4473_v26  ;;  %v1957_v26 = vld [vmem:[%s8464_s15 + $0xc8] sm:$0xff] }
 0x7be   : > { %1888 = vmatpush.msra.mxu0 %v4472_v39  ;;  %v1946_v39 = vld [vmem:[%s8464_s15 + $0x70] sm:$0xff] }
 0x834   : > { %v1812_v19 = vpop.f32.mrf.mxu0 }
 0x835   : > { %v1815_v20 = vsel %vm1120_vm6, %v1812_v19, -inf }
 0x836   : > { %1816 = vmax.xlane.f32.xlu2 %v1815_v20  ;;  %v1965_v20 = vld [vmem:[%s8464_s15 + $0x108] sm:$0xff] }
 0x837   : > { %2033 = vmatpush.msrb.mxu1 %v1965_v20  ;;  %v2001_v20 = vperm.slane %v1996_v6, 3 }
 0x8a9   : > { %v1817_v14 = vpop.xlane.xlu2 %1816 }
 0x8aa   : > { %v1818_v21 = vsub.f32 %v1812_v19, %v1817_v14  ;;  %v1964_v19 = vld [vmem:[%s8464_s15 + $0x100] sm:$0xff]  ;;  %v1966_v14 = vld [vmem:[%s8464_s15 + $0x110] sm:$0xff] }
 0x8ab   : > { %2053 = vmatpush.msra.mxu2 %v1966_v14  ;;  %v2260_v14 = vld [vmem:[%s8466_s17 + $0x70] sm:$0xff] }
 0x8ac   : > { %v1819_v22 = vmul.f32 1.442695, %v1818_v21  ;;  %v1967_v21 = vld [vmem:[%s8464_s15 + $0x118] sm:$0xff] }
 0x8ae   : > { %4919 = vpow2.f32 %v1819_v22  ;;  %v1960_v22 = vld [vmem:[%s8464_s15 + $0xe0] sm:$0xff] }
 0x8b4   : > { %v4920_v17 = vpop.eup %4919 }
 0x8b5   : > { %v1821_v23 = vsel %vm1120_vm6, %v4920_v17, 0.0 }
 0x8b6   : > { %1822 = vadd.xlane.f32.xlu0 %v1821_v23  ;;  %v1962_v23 = vld [vmem:[%s8464_s15 + $0xf0] sm:$0xff] }
 0x8b7   : > { %2054 = vmatpush.msra.mxu2 %v1962_v23  ;;  %v2259_v23 = vld [vmem:[%s8466_s17 + $0x68] sm:$0xff] }
 0x929   : > { %v1823_v27 = vpop.xlane.xlu0 %1822 }
 0x92a   : > { %4921 = vrcp.f32 %v1823_v27  ;;  %v1835_v31 = vand.u32 2147483648, %v1823_v27  ;;  %v1833_v33 = vand.u32 2147483647, %v1823_v27  ;;  %vm1829_vm8 = vweird.f32 %v1823_v27 }
 0x92c   : > { %v1836_v35 = vor.u32 1.1754944e-38, %v1835_v31  ;;  %vm1834_vm10 = vcmp.eq.f32.partialorder %v1833_v33, 8.507059e+37  ;;  %v1954_v31 = vld [vmem:[%s8464_s15 + $0xb0] sm:$0xff]  ;;  %v1948_v33 = vld [vmem:[%s8464_s15 + $0x80] sm:$0xff] }
 0x930   : > { %v4922_v28 = vpop.eup %4921 }
 0x931   : > { %v1825_v29 = vmul.f32 %v4922_v28, %v1823_v27  ;;  %vm1830_vm7 = vweird.f32 %v4922_v28  ;;  %v1958_v27 = vld [vmem:[%s8464_s15 + $0xd0] sm:$0xff] }
 0x932   : > { %vm1831_vm9 = vmor %vm1829_vm8, %vm1830_vm7  ;;  %2055 = vmatpush.msra.mxu2 %v1958_v27 }
 0x933   : > { %v1826_v30 = vsub.f32 1.0, %v1825_v29  ;;  %v1952_v29 = vld [vmem:[%s8464_s15 + $0xa0] sm:$0xff] }
 0x934   : > { %2056 = vmatpush.msra.mxu2 %v1954_v31  ;;  %v2258_v31 = vld [vmem:[%s8466_s17 + $0x60] sm:$0xff] }
 0x935   : > { %v1827_v32 = vmul.f32 %v4922_v28, %v1826_v30  ;;  %v1953_v30 = vld [vmem:[%s8464_s15 + $0xa8] sm:$0xff] }
 0x937   : > { %v1828_v34 = vadd.f32 %v4922_v28, %v1827_v32  ;;  %v1955_v32 = vld [vmem:[%s8464_s15 + $0xb8] sm:$0xff] }
 0x939   : > { %v1832_v36 = vsel %vm1831_vm9, %v4922_v28, %v1828_v34  ;;  %v1959_v28 = vld [vmem:[%s8464_s15 + $0xd8] sm:$0xff]  ;;  %v1949_v34 = vld [vmem:[%s8464_s15 + $0x88] sm:$0xff] }
 0x93a   : > { %v1837_v37 = vsel %vm1834_vm10, %v1836_v35, %v1832_v36  ;;  %v1950_v35 = vld [vmem:[%s8464_s15 + $0x90] sm:$0xff]  ;;  %v1951_v36 = vld [vmem:[%s8464_s15 + $0x98] sm:$0xff] }
 0x93b   : > { %v1838_v38 = vmul.f32 %v4920_v17, %v1837_v37  ;;  %v1961_v17 = vld [vmem:[%s8464_s15 + $0xe8] sm:$0xff]  ;;  %2057 = vmatpush.msra.mxu2 %v1950_v35  ;;  %v1944_v37 = vld [vmem:[%s8464_s15 + $0x60] sm:$0xff] }
 0x93c   : > { %2034 = vmatpush.msrb.mxu1 %v1961_v17 }
 0x93d   : > { %4471 = vmatmul.msk.f32.vlgmr.msrb.gmra.mxu0 %vm1145_vm11, %v1838_v38  ;;  %v1945_v38 = vld [vmem:[%s8464_s15 + $0x68] sm:$0xff]  ;;  %2058 = vmatpush.msra.mxu2 %v1946_v39 }
 0x93e   : > { %2006 = vmatpush.msrb.mxu0 %v1992_v47  ;;  %2035 = vmatpush.msrb.mxu1 %v1957_v26  ;;  %v1937_v47 = vld [vmem:[%s8464_s15 + $0x28] sm:$0xff] }
 0x940   : > { %2007 = vmatpush.msrb.mxu0 %v1988_v51  ;;  %2036 = vmatpush.msrb.mxu1 %v1953_v30  ;;  %v1933_v51 = vld [vmem:[%s8464_s15 + $0x8] sm:$0xff] }
 0x942   : > { %2008 = vmatpush.msrb.mxu0 %v1984_v60  ;;  %2037 = vmatpush.msrb.mxu1 %v1949_v34 }
 0x944   : > { %2009 = vmatpush.msrb.mxu0 %v1980_v0  ;;  %2038 = vmatpush.msrb.mxu1 %v1945_v38  ;;  %v4880_v0 = vld [vmem:[%s8462_s13] ss:$0 sm:$0xff]  ;;  %v2273_v38 = vld [vmem:[%s8466_s17 + $0xd8] sm:$0xff] }
 0x946   : > { %2010 = vmatpush.msrb.mxu0 %v1976_v4 }
 0x948   : > { %2011 = vmatpush.msrb.mxu0 %v1972_v8  ;;  %v1999_v8 = vperm.slane %v1996_v6, 1 }
 0x94a   : > { %2012 = vmatpush.msrb.mxu0 %v1968_v13  ;;  %v2261_v13 = vld [vmem:[%s8466_s17 + $0x78] sm:$0xff] }
 0x94c   : > { %2013 = vmatpush.msrb.mxu0 %v1964_v19  ;;  %v2000_v19 = vperm.slane %v1996_v6, 2 }
 0x94e   : > { %2014 = vmatpush.msrb.mxu0 %v1960_v22 }
 0x950   : > { %2015 = vmatpush.msrb.mxu0 %v1956_v25 }
 0x952   : > { %2016 = vmatpush.msrb.mxu0 %v1952_v29 }
 0x954   : > { %2017 = vmatpush.msrb.mxu0 %v1948_v33  ;;  %v2293_v33 = vld [vmem:[%s8466_s17 + $0x178] sm:$0xff] }
 0x956   : > { %2018 = vmatpush.msrb.mxu0 %v1944_v37  ;;  %v2257_v37 = vld [vmem:[%s8466_s17 + $0x58] sm:$0xff] }
 0x9ba   : > { %v1862_v40 = vpop.f32.mrf.mxu0 }
 0x9bb   : > { %4476 = vmatmul.msk.f32.vlgmr.msra.gmra.mxu0 %vm1093_vm5, %v1862_v40  ;;  %v1947_v40 = vld [vmem:[%s8464_s15 + $0x78] sm:$0xff] }
 0xa38   : > { %v1890_v41 = vpop.f32.mrf.mxu0 }
 0xa39   : > { %v1893_v42 = vadd.f32 %v1890_v41, %v1661_v12  ;;  %v1975_v12 = vld [vmem:[%s8464_s15 + $0x158] sm:$0xff]  ;;  %v1940_v41 = vld [vmem:[%s8464_s15 + $0x40] sm:$0xff] }
 0xa3a   : > { %2019 = vmatpush.msrb.mxu0 %v1940_v41  ;;  %v2308_v41 = vld [vmem:[%s8466_s17 + $0x1f0] sm:$0xff] }
 0xa3b   : > { %v1894_v44 = vadd.f32 %v1893_v42, %v5432_v50  ;;  %v1995_v50 = vld [vmem:[%s8464_s15 + $0x1f8] sm:$0xff]  ;;  %v1941_v42 = vld [vmem:[%s8464_s15 + $0x48] sm:$0xff] }
 0xa3c   : > { %2066 = vmatpush.msra.mxu3 %v1995_v50  ;;  %2039 = vmatpush.msrb.mxu1 %v1941_v42  ;;  %v1932_v50 = vld [vmem:[%s8464_s15] sm:$0xff]  ;;  %v2256_v42 = vld [vmem:[%s8466_s17 + $0x50] sm:$0xff] }
 0xa3d   : > { %v6166_v45 = vadd.f32 %v4879_v43, %v1894_v44  ;;  %v1942_v43 = vld [vmem:[%s8464_s15 + $0x50] sm:$0xff]  ;;  %v1943_v44 = vld [vmem:[%s8464_s15 + $0x58] sm:$0xff] }
 0xa3e   : > { %2067 = vmatpush.msra.mxu3 %v1991_v54  ;;  %2059 = vmatpush.msra.mxu2 %v1942_v43 }
 0xa3f   : > { %v1902_v46 = vsel %vm934_vm0, %v6166_v45, 0.0  ;;  %2040 = vmatpush.msrb.mxu1 %v1937_v47  ;;  %v2307_v47 = vld [vmem:[%s8466_s17 + $0x1e8] sm:$0xff] }
 0xa40   : > { %1903 = vadd.xlane.f32.xlu1 %v1902_v46  ;;  %2068 = vmatpush.msra.mxu3 %v1987_v63  ;;  %v1936_v46 = vld [vmem:[%s8464_s15 + $0x20] sm:$0xff] }
 0xa41   : > { %2020 = vmatpush.msrb.mxu0 %v1936_v46  ;;  %2060 = vmatpush.msra.mxu2 %v1938_v48  ;;  %v2291_v46 = vld [vmem:[%s8466_s17 + $0x168] sm:$0xff] }
 0xa42   : > { %2069 = vmatpush.msra.mxu3 %v1983_v3  ;;  %2041 = vmatpush.msrb.mxu1 %v1933_v51  ;;  %v4881_v3 = vld [vmem:[%s8463_s14] ss:$0 sm:$0xff] }
 0xa43   : > { %2021 = vmatpush.msrb.mxu0 %v1932_v50  ;;  %2061 = vmatpush.msra.mxu2 %v1934_v52  ;;  %v2271_v50 = vld [vmem:[%s8466_s17 + $0xc8] sm:$0xff]  ;;  %v2290_v51 = vld [vmem:[%s8466_s17 + $0x160] sm:$0xff] }
 0xa44   : > { %2070 = vmatpush.msra.mxu3 %v1979_v7  ;;  %v1998_v7 = vperm.slane %v1996_v6, 0  ;;  %2334 = vmatpush.msra.mxu1 %v2277_v15  ;;  %v2306_v52 = vld [vmem:[%s8466_s17 + $0x1e0] sm:$0xff]  ;;  %v2252_v6 = vld [vmem:[%s8466_s17 + $0x30] sm:$0xff] }
 0xa45   : > { %2314 = vmatpush.msra.mxu0 %v2261_v13  ;;  %2354 = vmatpush.msrb.mxu2 %v2293_v33  ;;  %v2287_v13 = vld [vmem:[%s8466_s17 + $0x148] sm:$0xff]  ;;  %v2250_v33 = vld [vmem:[%s8466_s17 + $0x20] sm:$0xff] }
 0xa46   : > { %2071 = vmatpush.msra.mxu3 %v1975_v12 }
 0xa47   : > { %2315 = vmatpush.msra.mxu0 %v2260_v14  ;;  %v2303_v14 = vld [vmem:[%s8466_s17 + $0x1c8] sm:$0xff] }
 0xa48   : > { %2072 = vmatpush.msra.mxu3 %v1971_v18 }
 0xa49   : > { %2316 = vmatpush.msra.mxu0 %v2259_v23 }
 0xa4a   : > { %2073 = vmatpush.msra.mxu3 %v1967_v21  ;;  %v2276_v21 = vld [vmem:[%s8466_s17 + $0xf0] sm:$0xff] }
 0xa4b   : > { %2335 = vmatpush.msra.mxu1 %v2276_v21  ;;  %2317 = vmatpush.msra.mxu0 %v2258_v31 }
 0xa4c   : > { %2074 = vmatpush.msra.mxu3 %v1963_v24  ;;  %v2275_v24 = vld [vmem:[%s8466_s17 + $0xe8] sm:$0xff] }
 0xa4d   : > { %2336 = vmatpush.msra.mxu1 %v2275_v24  ;;  %2318 = vmatpush.msra.mxu0 %v2257_v37 }
 0xa4e   : > { %2075 = vmatpush.msra.mxu3 %v1959_v28 }
 0xa4f   : > { %2319 = vmatpush.msra.mxu0 %v2256_v42 }
 0xa50   : > { %2076 = vmatpush.msra.mxu3 %v1955_v32  ;;  %v2274_v32 = vld [vmem:[%s8466_s17 + $0xe0] sm:$0xff] }
 0xa51   : > { %2337 = vmatpush.msra.mxu1 %v2274_v32  ;;  %v2302_v32 = vld [vmem:[%s8466_s17 + $0x1c0] sm:$0xff] }
 0xa52   : > { %2077 = vmatpush.msra.mxu3 %v1951_v36  ;;  %v2309_v36 = vld [vmem:[%s8466_s17 + $0x1f8] sm:$0xff] }
 0xa53   : > { %2338 = vmatpush.msra.mxu1 %v2273_v38  ;;  %v2285_v38 = vld [vmem:[%s8466_s17 + $0x138] sm:$0xff] }
 0xa54   : > { %2078 = vmatpush.msra.mxu3 %v1947_v40  ;;  %v2292_v40 = vld [vmem:[%s8466_s17 + $0x170] sm:$0xff] }
 0xa55   : > { %2355 = vmatpush.msrb.mxu2 %v2292_v40  ;;  %v2301_v40 = vld [vmem:[%s8466_s17 + $0x1b8] sm:$0xff] }
 0xa56   : > { %2079 = vmatpush.msra.mxu3 %v1943_v44  ;;  %v2272_v44 = vld [vmem:[%s8466_s17 + $0xd0] sm:$0xff] }
 0xa57   : > { %2339 = vmatpush.msra.mxu1 %v2272_v44  ;;  %2356 = vmatpush.msrb.mxu2 %v2291_v46  ;;  %v2249_v46 = vld [vmem:[%s8466_s17 + $0x18] sm:$0xff] }
 0xa58   : > { %2080 = vmatpush.msra.mxu3 %v1939_v49  ;;  %v2255_v49 = vld [vmem:[%s8466_s17 + $0x48] sm:$0xff] }
 0xa59   : > { %2320 = vmatpush.msra.mxu0 %v2255_v49  ;;  %2340 = vmatpush.msra.mxu1 %v2271_v50  ;;  %v2284_v49 = vld [vmem:[%s8466_s17 + $0x130] sm:$0xff] }
 0xa5a   : > { %2081 = vmatpush.msra.mxu3 %v1935_v53  ;;  %v2254_v53 = vld [vmem:[%s8466_s17 + $0x40] sm:$0xff]  ;;  %2357 = vmatpush.msrb.mxu2 %v2290_v51 }
 0xa5b   : > { %2321 = vmatpush.msra.mxu0 %v2254_v53  ;;  %v2300_v53 = vld [vmem:[%s8466_s17 + $0x1b0] sm:$0xff] }
 0xa5c   : > { %2374 = vmatpush.msrb.mxu3 %v2309_v36 }
 0xa5e   : > { %2375 = vmatpush.msrb.mxu3 %v2308_v41 }
 0xa60   : > { %2376 = vmatpush.msrb.mxu3 %v2307_v47  ;;  %v2265_v47 = vld [vmem:[%s8466_s17 + $0x98] sm:$0xff] }
 0xa62   : > { %2377 = vmatpush.msrb.mxu3 %v2306_v52 }
 0xab3   : > { %v1904_v55 = vpop.xlane.xlu1 %1903 }
 0xab4   : > { %v1905_v56 = vmul.f32 %v1904_v55, %v5484_v10 }
 0xab6   : > { %v6196_v57 = vsub.f32 %v6166_v45, %v1905_v56 }
 0xab8   : > { %v1907_v58 = vmul.f32 %v6196_v57, %v6196_v57 }
 0xaba   : > { %v1908_v59 = vsel %vm934_vm0, %v1907_v58, 0.0 }
 0xabb   : > { %1909 = vadd.xlane.f32.xlu2 %v1908_v59 }
 0xb2e   : > { %v1910_v54 = vpop.xlane.xlu2 %1909 }
 0xb2f   : > { %v1911_v55 = vmul.f32 %v1910_v54, %v5484_v10 }
 0xb31   : > { %v1912_v56 = vadd.f32 1e-06, %v1911_v55 }
 0xb33   : > { %4923 = vrsqrt.f32 %v1912_v56  ;;  %vm1919_vm13 = vweird.f32 %v1912_v56 }
 0xb39   : > { %v4924_v58 = vpop.eup %4923 }
 0xb3a   : > { %v1914_v59 = vmul.f32 %v4924_v58, %v1912_v56  ;;  %vm1920_vm12 = vweird.f32 %v4924_v58 }
 0xb3b   : > { %vm1921_vm14 = vmor %vm1919_vm13, %vm1920_vm12 }
 0xb3c   : > { %v1915_v60 = vmul.f32 %v4924_v58, %v1914_v59  ;;  %v2289_v59 = vld [vmem:[%s8466_s17 + $0x158] sm:$0xff] }
 0xb3d   : > { %2358 = vmatpush.msrb.mxu2 %v2289_v59  ;;  %v2264_v59 = vld [vmem:[%s8466_s17 + $0x90] sm:$0xff] }
 0xb3e   : > { %v1916_v61 = vmul.f32 0.5, %v1915_v60  ;;  %v2305_v60 = vld [vmem:[%s8466_s17 + $0x1d8] sm:$0xff] }
 0xb3f   : > { %2378 = vmatpush.msrb.mxu3 %v2305_v60  ;;  %v2283_v60 = vld [vmem:[%s8466_s17 + $0x128] sm:$0xff] }
 0xb40   : > { %v1917_v62 = vsub.f32 1.5, %v1916_v61 }
 0xb42   : > { %v1918_v63 = vmul.f32 %v4924_v58, %v1917_v62 }
 0xb44   : > { %v1922_v1 = vsel %vm1921_vm14, %v4924_v58, %v1918_v63  ;;  %v2270_v58 = vld [vmem:[%s8466_s17 + $0xc0] sm:$0xff] }
 0xb45   : > { %v1923_v2 = vmul.f32 %v1922_v1, %v6196_v57  ;;  %2341 = vmatpush.msra.mxu1 %v2270_v58  ;;  %v2269_v1 = vld [vmem:[%s8466_s17 + $0xb8] sm:$0xff] }
 0xb47   : > { %v1927_v4 = vmul.f32 %v4880_v0, %v1923_v2  ;;  %v2253_v0 = vld [vmem:[%s8466_s17 + $0x38] sm:$0xff]  ;;  %v2288_v2 = vld [vmem:[%s8466_s17 + $0x150] sm:$0xff]  ;;  %2342 = vmatpush.msra.mxu1 %v2269_v1 }
 0xb48   : > { %2322 = vmatpush.msra.mxu0 %v2253_v0  ;;  %2359 = vmatpush.msrb.mxu2 %v2288_v2  ;;  %v2299_v2 = vld [vmem:[%s8466_s17 + $0x1a8] sm:$0xff] }
 0xb49   : > { %v1931_v5 = vadd.f32 %v4881_v3, %v1927_v4 }
 0xb4a   : > { %2323 = vmatpush.msra.mxu0 %v2252_v6  ;;  %2360 = vmatpush.msrb.mxu2 %v2287_v13  ;;  %v2263_v6 = vld [vmem:[%s8466_s17 + $0x88] sm:$0xff]  ;;  %v2298_v13 = vld [vmem:[%s8466_s17 + $0x1a0] sm:$0xff] }
 0xb4b   : > { %2022 = vmatmul.f32.vlgmr.msrb.gmra.mxu0 %v1931_v5  ;;  %2042 = vmatmul.f32.vlgmr.msrb.gmra.mxu1 %v1931_v5 }
 0xb4c   : > { %2062 = vmatmul.f32.vlgmr.msra.gmra.mxu2 %v1931_v5  ;;  %2082 = vmatmul.f32.vlgmr.msra.gmra.mxu3 %v1931_v5  ;;  %v2304_v5 = vld [vmem:[%s8466_s17 + $0x1d0] sm:$0xff] }
 0xb4d   : > { %2379 = vmatpush.msrb.mxu3 %v2304_v5  ;;  %v2247_v5 = vld [vmem:[%s8466_s17 + $0x8] sm:$0xff] }
 0xb4f   : > { %2380 = vmatpush.msrb.mxu3 %v2303_v14 }
 0xb51   : > { %2381 = vmatpush.msrb.mxu3 %v2302_v32 }
 0xb53   : > { %2382 = vmatpush.msrb.mxu3 %v2301_v40  ;;  %v2296_v40 = vld [vmem:[%s8466_s17 + $0x190] sm:$0xff] }
 0xb55   : > { %2383 = vmatpush.msrb.mxu3 %v2300_v53  ;;  %v2278_v53 = vld [vmem:[%s8466_s17 + $0x100] sm:$0xff] }
 0xb57   : > { %2384 = vmatpush.msrb.mxu3 %v2299_v2 }
 0xb59   : > { %2385 = vmatpush.msrb.mxu3 %v2298_v13 }
 0xbc8   : > { %v2023_v9 = vpop.f32.mrf.mxu0  ;;  %v2043_v11 = vpop.f32.mrf.mxu1 }
 0xbc9   : > { %v6380_v12 = vadd.f32 %v2023_v9, %v1998_v7  ;;  %v6382_v57 = vadd.f32 %v2043_v11, %v1999_v8  ;;  %v2268_v11 = vld [vmem:[%s8466_s17 + $0xb0] sm:$0xff] }
 0xbca   : > { %2343 = vmatpush.msra.mxu1 %v2268_v11 }
 0xbcb   : > { %v6391_v16 = vmul.f32 0.70710677, %v6380_v12  ;;  %v6394_v18 = vmul.f32 0.70710677, %v6382_v57 }
 0xbcd   : > { %v6403_v22 = vand.u32 2147483647, %v6391_v16  ;;  %v6406_v17 = vand.u32 2147483647, %v6394_v18 }
 0xbcf   : > { %v2106_v25 = vmul.f32 0.3275911, %v6403_v22  ;;  %v2107_v26 = vmul.f32 0.3275911, %v6406_v17  ;;  %v2063_v27 = vpop.f32.mrf.mxu2  ;;  %v2083_v28 = vpop.f32.mrf.mxu3  ;;  %v2210_v8 = vsub.f32 0.0, %v6403_v22  ;;  %v2211_v9 = vsub.f32 0.0, %v6406_v17 }
 0xbd0   : > { %v6416_v29 = vadd.f32 %v2063_v27, %v2000_v19  ;;  %v6418_v30 = vadd.f32 %v2083_v28, %v2001_v20  ;;  %v2286_v27 = vld [vmem:[%s8466_s17 + $0x140] sm:$0xff] }
 0xbd1   : > { %v6429_v34 = vadd.f32 1.0, %v2106_v25  ;;  %v6431_v35 = vadd.f32 1.0, %v2107_v26  ;;  %v2251_v25 = vld [vmem:[%s8466_s17 + $0x28] sm:$0xff]  ;;  %2361 = vmatpush.msrb.mxu2 %v2286_v27  ;;  %v2214_v42 = vmul.f32 %v2210_v8, %v6403_v22  ;;  %v2215_v52 = vmul.f32 %v2211_v9, %v6406_v17  ;;  %v2248_v17 = vld [vmem:[%s8466_s17 + $0x10] sm:$0xff] }
 0xbd2   : > { %v6443_v39 = vmul.f32 0.70710677, %v6416_v29  ;;  %v6457_v43 = vmul.f32 0.70710677, %v6418_v30  ;;  %v2267_v26 = vld [vmem:[%s8466_s17 + $0xa8] sm:$0xff]  ;;  %2324 = vmatpush.msra.mxu0 %v2251_v25 }
 0xbd3   : > { %4925 = vrcp.f32 %v6429_v34  ;;  %v2125_v15 = vand.u32 2147483648, %v6429_v34  ;;  %v2123_v23 = vand.u32 2147483647, %v6429_v34  ;;  %v2140_v24 = vand.u32 2147483648, %v6431_v35  ;;  %2344 = vmatpush.msra.mxu1 %v2267_v26  ;;  %2362 = vmatpush.msrb.mxu2 %v2285_v38 }
 0xbd4   : > { %4927 = vrcp.f32 %v6431_v35  ;;  %v6469_v48 = vand.u32 2147483647, %v6443_v39  ;;  %v6488_v55 = vand.u32 2147483647, %v6457_v43  ;;  %vm2119_vm1 = vweird.f32 %v6429_v34  ;;  %2325 = vmatpush.msra.mxu0 %v2250_v33 }
 0xbd5   : > { %v2138_v31 = vand.u32 2147483647, %v6431_v35  ;;  %v2126_v41 = vor.u32 1.1754944e-38, %v2125_v15  ;;  %vm2134_vm4 = vweird.f32 %v6431_v35  ;;  %vm2124_vm7 = vcmp.eq.f32.partialorder %v2123_v23, 8.507059e+37  ;;  %2363 = vmatpush.msrb.mxu2 %v2284_v49  ;;  %v2262_v23 = vld [vmem:[%s8466_s17 + $0x80] sm:$0xff] }
 0xbd6   : > { %v2108_v54 = vmul.f32 0.3275911, %v6469_v48  ;;  %v2109_v4 = vmul.f32 0.3275911, %v6488_v55  ;;  %v2141_v51 = vor.u32 1.1754944e-38, %v2140_v24  ;;  %2326 = vmatpush.msra.mxu0 %v2249_v46  ;;  %v2281_v24 = vld [vmem:[%s8466_s17 + $0x118] sm:$0xff] }
 0xbd7   : > { %vm2139_vm9 = vcmp.eq.f32.partialorder %v2138_v31, 8.507059e+37  ;;  %v2218_v11 = vmul.f32 1.442695, %v2214_v42  ;;  %2364 = vmatpush.msrb.mxu2 %v2283_v60  ;;  %v2220_v26 = vmul.f32 1.442695, %v2215_v52  ;;  %v2279_v46 = vld [vmem:[%s8466_s17 + $0x108] sm:$0xff] }
 0xbd8   : > { %v6505_v63 = vadd.f32 1.0, %v2108_v54  ;;  %v6536_v20 = vadd.f32 1.0, %v2109_v4  ;;  %2327 = vmatpush.msra.mxu0 %v2248_v17  ;;  %v2294_v17 = vld [vmem:[%s8466_s17 + $0x180] sm:$0xff]  ;;  %v2213_v2 = vsub.f32 0.0, %v6488_v55 }
 0xbd9   : > { %v6490_v56 = vpop.eup %4925 }
 0xbda   : > { %v6501_v61 = vpop.eup %4927  ;;  %v2115_v62 = vmul.f32 %v6490_v56, %v6429_v34  ;;  %4929 = vrcp.f32 %v6505_v63  ;;  %vm2120_vm15 = vweird.f32 %v6490_v56  ;;  %v2266_v34 = vld [vmem:[%s8466_s17 + $0xa0] sm:$0xff]  ;;  %v2153_v0 = vand.u32 2147483647, %v6505_v63  ;;  %2328 = vmatpush.msra.mxu0 %v2247_v5 }
 0xbdb   : > { %v2130_v3 = vmul.f32 %v6501_v61, %v6431_v35  ;;  %vm2135_vm2 = vweird.f32 %v6501_v61  ;;  %vm6569_vm3 = vmor %vm2119_vm1, %vm2120_vm15  ;;  %4931 = vrcp.f32 %v6536_v20  ;;  %2345 = vmatpush.msra.mxu1 %v2266_v34  ;;  %v2155_v1 = vand.u32 2147483648, %v6505_v63 }
 0xbdc   : > { %v2116_v7 = vsub.f32 1.0, %v2115_v62  ;;  %vm6599_vm8 = vmor %vm2134_vm4, %vm2135_vm2  ;;  %vm2149_vm12 = vweird.f32 %v6505_v63  ;;  %vm6661_vm13 = vcmp.eq.f32.partialorder %v2153_v0, 8.507059e+37  ;;  %v2168_v37 = vand.u32 2147483647, %v6536_v20 }
 0xbdd   : > { %v2131_v19 = vsub.f32 1.0, %v2130_v3  ;;  %2346 = vmatpush.msra.mxu1 %v2265_v47  ;;  %v2156_v33 = vor.u32 1.1754944e-38, %v2155_v1  ;;  %v2170_v38 = vand.u32 2147483648, %v6536_v20  ;;  %4933 = vpow2.f32 %v2218_v11 }
 0xbde   : > { %v2117_v21 = vmul.f32 %v6490_v56, %v2116_v7  ;;  %v2282_v7 = vld [vmem:[%s8466_s17 + $0x120] sm:$0xff]  ;;  %vm2164_vm1 = vweird.f32 %v6536_v20  ;;  %4935 = vpow2.f32 %v2220_v26  ;;  %vm2094_vm4 = vcmp.ge.f32.partialorder %v6391_v16, 0.0 }
 0xbdf   : > { %v2132_v28 = vmul.f32 %v6501_v61, %v2131_v19  ;;  %2347 = vmatpush.msra.mxu1 %v2264_v59  ;;  %2365 = vmatpush.msrb.mxu2 %v2282_v7 }
 0xbe0   : > { %v2118_v36 = vadd.f32 %v6490_v56, %v2117_v21  ;;  %v6592_v50 = vpop.eup %4929  ;;  %v2246_v21 = vld [vmem:[%s8466_s17] sm:$0xff] }
 0xbe1   : > { %v2133_v44 = vadd.f32 %v6501_v61, %v2132_v28  ;;  %v2145_v58 = vmul.f32 %v6592_v50, %v6505_v63  ;;  %v6641_v8 = vpop.eup %4931  ;;  %vm2150_vm10 = vweird.f32 %v6592_v50  ;;  %2348 = vmatpush.msra.mxu1 %v2263_v6  ;;  %v2297_v28 = vld [vmem:[%s8466_s17 + $0x198] sm:$0xff]  ;;  %2329 = vmatpush.msra.mxu0 %v2246_v21  ;;  %v2280_v63 = vld [vmem:[%s8466_s17 + $0x110] sm:$0xff] }
 0xbe2   : > { %v2122_v22 = vsel %vm6569_vm3, %v6490_v56, %v2118_v36  ;;  %v2160_v14 = vmul.f32 %v6641_v8, %v6536_v20  ;;  %vm2151_vm14 = vmor %vm2149_vm12, %vm2150_vm10  ;;  %2366 = vmatpush.msrb.mxu2 %v2281_v24  ;;  %vm2165_vm15 = vweird.f32 %v6641_v8  ;;  %2386 = vmatpush.msrb.mxu3 %v2297_v28  ;;  %vm2169_vm3 = vcmp.eq.f32.partialorder %v2168_v37, 8.507059e+37 }
 0xbe3   : > { %v6607_v54 = vsel %vm2124_vm7, %v2126_v41, %v2122_v22  ;;  %v2137_v56 = vsel %vm6599_vm8, %v6501_v61, %v2133_v44  ;;  %v2146_v4 = vsub.f32 1.0, %v2145_v58  ;;  %2349 = vmatpush.msra.mxu1 %v2262_v23  ;;  %v2212_v22 = vsub.f32 0.0, %v6469_v48  ;;  %vm2166_vm2 = vmor %vm2164_vm1, %vm2165_vm15  ;;  %v4934_v6 = vpop.eup %4933 }
 0xbe4   : > { %v2174_v61 = vmul.f32 1.0614054, %v6607_v54  ;;  %v6624_v62 = vsel %vm2139_vm9, %v2141_v51, %v2137_v56  ;;  %v2161_v34 = vsub.f32 1.0, %v2160_v14  ;;  %2367 = vmatpush.msrb.mxu2 %v2280_v63  ;;  %2387 = vmatpush.msrb.mxu3 %v2296_v40  ;;  %v2171_v58 = vor.u32 1.1754944e-38, %v2170_v38  ;;  %v4936_v13 = vpop.eup %4935 }
 0xbe5   : > { %v2175_v3 = vmul.f32 1.0614054, %v6624_v62  ;;  %v2147_v19 = vmul.f32 %v6592_v50, %v2146_v4  ;;  %v2216_v0 = vmul.f32 %v2212_v22, %v6469_v48  ;;  %v2217_v48 = vmul.f32 %v2213_v2, %v6488_v55 }
 0xbe6   : > { %v2178_v9 = vadd.f32 -1.4531521, %v2174_v61  ;;  %v2162_v44 = vmul.f32 %v6641_v8, %v2161_v34  ;;  %2368 = vmatpush.msrb.mxu2 %v2279_v46  ;;  %vm2095_vm7 = vcmp.ge.f32.partialorder %v6394_v18, 0.0  ;;  %v2086_v18 = vmul.f32 0.5, %v6380_v12 }
 0xbe7   : > { %v2179_v15 = vadd.f32 -1.4531521, %v2175_v3  ;;  %v2148_v32 = vadd.f32 %v6592_v50, %v2147_v19  ;;  %v2222_v19 = vmul.f32 1.442695, %v2216_v0  ;;  %v2087_v40 = vmul.f32 0.5, %v6382_v57 }
 0xbe8   : > { %v2182_v25 = vmul.f32 %v2178_v9, %v6607_v54  ;;  %v2163_v52 = vadd.f32 %v6641_v8, %v2162_v44  ;;  %2369 = vmatpush.msrb.mxu2 %v2278_v53  ;;  %vm2096_vm8 = vcmp.ge.f32.partialorder %v6443_v39, 0.0  ;;  %vm2097_vm9 = vcmp.ge.f32.partialorder %v6457_v43, 0.0 }
 0xbe9   : > { %v2183_v31 = vmul.f32 %v2179_v15, %v6624_v62  ;;  %v2152_v42 = vsel %vm2151_vm14, %v6592_v50, %v2148_v32  ;;  %v2295_v50 = vld [vmem:[%s8466_s17 + $0x188] sm:$0xff]  ;;  %4937 = vpow2.f32 %v2222_v19 }
 0xbea   : > { %v2186_v36 = vadd.f32 1.4214138, %v2182_v25  ;;  %v6689_v49 = vsel %vm6661_vm13, %v2156_v33, %v2152_v42  ;;  %v2167_v20 = vsel %vm2166_vm2, %v6641_v8, %v2163_v52  ;;  %2388 = vmatpush.msrb.mxu3 %v2295_v50  ;;  %v4509_v19 = vld [vmem:[%s8495_s24 + $0x268] sm:$0xff] }
 0xbeb   : > { %v2187_v41 = vadd.f32 1.4214138, %v2183_v31  ;;  %v2176_v51 = vmul.f32 1.0614054, %v6689_v49  ;;  %v2172_v1 = vsel %vm2169_vm3, %v2171_v58, %v2167_v20  ;;  %v2224_v31 = vmul.f32 1.442695, %v2217_v48 }
 0xbec   : > { %v2190_v47 = vmul.f32 %v2186_v36, %v6607_v54  ;;  %v2177_v5 = vmul.f32 1.0614054, %v2172_v1  ;;  %2389 = vmatpush.msrb.mxu3 %v2294_v17  ;;  %v2089_v20 = vmul.f32 0.5, %v6418_v30  ;;  %v4491_v48 = vld [vmem:[%s8496_s28 + $0x260] sm:$0xff] }
 0xbed   : > { %v2191_v35 = vmul.f32 %v2187_v41, %v6624_v62  ;;  %v2180_v60 = vadd.f32 -1.4531521, %v2176_v51  ;;  %4939 = vpow2.f32 %v2224_v31  ;;  %v4505_v31 = vld [vmem:[%s8495_s24 + $0x248] sm:$0xff] }
 0xbee   : > { %v2194_v56 = vadd.f32 -0.28449672, %v2190_v47  ;;  %v2181_v11 = vadd.f32 -1.4531521, %v2177_v5 }
 0xbef   : > { %v2195_v59 = vadd.f32 -0.28449672, %v2191_v35  ;;  %v2184_v4 = vmul.f32 %v2180_v60, %v6689_v49  ;;  %v4938_v46 = vpop.eup %4937 }
 0xbf0   : > { %v2198_v61 = vmul.f32 %v2194_v56, %v6607_v54  ;;  %v2185_v23 = vmul.f32 %v2181_v11, %v2172_v1  ;;  %v4493_v11 = vld [vmem:[%s8496_s28 + $0x270] sm:$0xff] }
 0xbf1   : > { %v2199_v3 = vmul.f32 %v2195_v59, %v6624_v62  ;;  %v2188_v8 = vadd.f32 1.4214138, %v2184_v4 }
 0xbf2   : > { %v2202_v7 = vadd.f32 0.2548296, %v2198_v61  ;;  %v2189_v27 = vadd.f32 1.4214138, %v2185_v23  ;;  %v4507_v23 = vld [vmem:[%s8495_s24 + $0x258] sm:$0xff] }
 0xbf3   : > { %v2203_v9 = vadd.f32 0.2548296, %v2199_v3  ;;  %v2192_v21 = vmul.f32 %v2188_v8, %v6689_v49  ;;  %v4940_v12 = vpop.eup %4939  ;;  %v4494_v8 = vld [vmem:[%s8496_s28 + $0x278] sm:$0xff] }
 0xbf4   : > { %v2206_v15 = vmul.f32 %v2202_v7, %v6607_v54  ;;  %v4988_v54 = vmov -1.0   ;;  %v2193_v33 = vmul.f32 %v2189_v27, %v2172_v1  ;;  %2451 = vmatpush.msrb.mxu0 %v4494_v8  ;;  %v4488_v27 = vld [vmem:[%s8496_s28 + $0x248] sm:$0xff]  ;;  %v4561_v8 = vld [vmem:[%s8495_s24 + $0x2b0] sm:$0xff] }
 0xbf5   : > { %v2207_v14 = vmul.f32 %v2203_v9, %v6624_v62  ;;  %v2196_v26 = vadd.f32 -0.28449672, %v2192_v21  ;;  %v2098_v32 = vsel %vm2094_vm4, 1.0, %v4988_v54  ;;  %v2099_v63 = vsel %vm2095_vm7, 1.0, %v4988_v54  ;;  %v4490_v21 = vld [vmem:[%s8496_s28 + $0x258] sm:$0xff] }
 0xbf6   : > { %v2226_v24 = vmul.f32 %v4934_v6, %v2206_v15  ;;  %v2197_v37 = vadd.f32 -0.28449672, %v2193_v33  ;;  %v2100_v53 = vsel %vm2096_vm8, 1.0, %v4988_v54  ;;  %v2101_v59 = vsel %vm2097_vm9, 1.0, %v4988_v54  ;;  %v4510_v15 = vld [vmem:[%s8495_s24 + $0x270] sm:$0xff]  ;;  %2452 = vmatpush.msrb.mxu0 %v4493_v11  ;;  %v4503_v33 = vld [vmem:[%s8495_s24 + $0x238] sm:$0xff] }
 0xbf7   : > { %v2227_v25 = vmul.f32 %v4936_v13, %v2207_v14  ;;  %v2200_v62 = vmul.f32 %v2196_v26, %v6689_v49  ;;  %v4511_v13 = vld [vmem:[%s8495_s24 + $0x278] sm:$0xff]  ;;  %v4508_v14 = vld [vmem:[%s8495_s24 + $0x260] sm:$0xff]  ;;  %v4582_v11 = vld [vmem:[%s8458_s9 + $0x2d0] sm:$0xff] }
 0xbf8   : > { %v2230_v28 = vsub.f32 1.0, %v2226_v24  ;;  %v2201_v44 = vmul.f32 %v2197_v37, %v2172_v1  ;;  %2494 = vmatpush.msrb.mxu1 %v4511_v13  ;;  %v4489_v24 = vld [vmem:[%s8496_s28 + $0x250] sm:$0xff]  ;;  %v4528_v26 = vld [vmem:[%s8458_s9 + $0x278] sm:$0xff]  ;;  %v4483_v37 = vld [vmem:[%s8496_s28 + $0x220] sm:$0xff] }
 0xbf9   : > { %v2231_v55 = vsub.f32 1.0, %v2227_v25  ;;  %v2204_v36 = vadd.f32 0.2548296, %v2200_v62  ;;  %v4506_v25 = vld [vmem:[%s8495_s24 + $0x250] sm:$0xff]  ;;  %2536 = vmatpush.msra.mxu2 %v4528_v26  ;;  %v4486_v62 = vld [vmem:[%s8496_s28 + $0x238] sm:$0xff]  ;;  %v4518_v13 = vld [vmem:[%s8458_s9 + $0x228] sm:$0xff] }
 0xbfa   : > { %v2234_v34 = vmul.f32 %v2230_v28, %v2098_v32  ;;  %v2205_v35 = vadd.f32 0.2548296, %v2201_v44  ;;  %2495 = vmatpush.msrb.mxu1 %v4510_v15  ;;  %v4527_v28 = vld [vmem:[%s8458_s9 + $0x270] sm:$0xff]  ;;  %v4487_v32 = vld [vmem:[%s8496_s28 + $0x240] sm:$0xff]  ;;  %v4581_v15 = vld [vmem:[%s8458_s9 + $0x2c8] sm:$0xff] }
 0xbfb   : > { %v2235_v16 = vmul.f32 %v2231_v55, %v2099_v63  ;;  %v2208_v42 = vmul.f32 %v2204_v36, %v6689_v49  ;;  %v2088_v49 = vmul.f32 0.5, %v6416_v29  ;;  %2537 = vmatpush.msra.mxu2 %v4527_v28  ;;  %v4504_v55 = vld [vmem:[%s8495_s24 + $0x240] sm:$0xff]  ;;  %v4502_v63 = vld [vmem:[%s8495_s24 + $0x230] sm:$0xff]  ;;  %v4501_v36 = vld [vmem:[%s8495_s24 + $0x228] sm:$0xff] }
 0xbfc   : > { %v2238_v38 = vadd.f32 1.0, %v2234_v34  ;;  %v2209_v52 = vmul.f32 %v2205_v35, %v2172_v1  ;;  %v4882_v1 = vld [vmem:[%s8467_s18] ss:$0 sm:$0xff]  ;;  %2496 = vmatpush.msrb.mxu1 %v4509_v19  ;;  %v4485_v34 = vld [vmem:[%s8496_s28 + $0x230] sm:$0xff]  ;;  %v4570_v35 = vld [vmem:[%s8495_s24 + $0x2f8] sm:$0xff] }
 0xbfd   : > { %v2239_v41 = vadd.f32 1.0, %v2235_v16  ;;  %v2228_v50 = vmul.f32 %v4938_v46, %v2208_v42  ;;  %v4484_v16 = vld [vmem:[%s8496_s28 + $0x228] sm:$0xff]  ;;  %v4481_v42 = vld [vmem:[%s8496_s28 + $0x210] sm:$0xff]  ;;  %v4517_v19 = vld [vmem:[%s8458_s9 + $0x220] sm:$0xff] }
 0xbfe   : > { %v2242_v47 = vmul.f32 %v2238_v38, %v2086_v18  ;;  %v2229_v57 = vmul.f32 %v4940_v12, %v2209_v52  ;;  %2497 = vmatpush.msrb.mxu1 %v4508_v14  ;;  %v4500_v18 = vld [vmem:[%s8495_s24 + $0x220] sm:$0xff]  ;;  %v4482_v38 = vld [vmem:[%s8496_s28 + $0x218] sm:$0xff]  ;;  %v4480_v46 = vld [vmem:[%s8496_s28 + $0x208] sm:$0xff] }
 0xbff   : > { %v2243_v22 = vmul.f32 %v2239_v41, %v2087_v40  ;;  %v2232_v51 = vsub.f32 1.0, %v2228_v50  ;;  %v4499_v40 = vld [vmem:[%s8495_s24 + $0x218] sm:$0xff]  ;;  %v4569_v52 = vld [vmem:[%s8495_s24 + $0x2f0] sm:$0xff]  ;;  %v4580_v14 = vld [vmem:[%s8458_s9 + $0x2c0] sm:$0xff] }
 0xc00   : > { %2330 = vmatmul.f32.vlgmr.msra.gmra.mxu0 %v2242_v47  ;;  %v2233_v17 = vsub.f32 1.0, %v2229_v57  ;;  %2498 = vmatpush.msrb.mxu1 %v4507_v23  ;;  %v4498_v12 = vld [vmem:[%s8495_s24 + $0x210] sm:$0xff]  ;;  %v4497_v57 = vld [vmem:[%s8495_s24 + $0x208] sm:$0xff]  ;;  %v4558_v23 = vld [vmem:[%s8495_s24 + $0x298] sm:$0xff] }
 0xc01   : > { %2350 = vmatmul.f32.vlgmr.msra.gmra.mxu1 %v2243_v22  ;;  %v2236_v56 = vmul.f32 %v2232_v51, %v2100_v53  ;;  %v4479_v22 = vld [vmem:[%s8496_s28 + $0x200] sm:$0xff]  ;;  %v4526_v53 = vld [vmem:[%s8458_s9 + $0x268] sm:$0xff]  ;;  %v4557_v26 = vld [vmem:[%s8495_s24 + $0x290] sm:$0xff] }
 0xc02   : > { %v2237_v60 = vmul.f32 %v2233_v17, %v2101_v59  ;;  %2499 = vmatpush.msrb.mxu1 %v4506_v25  ;;  %2538 = vmatpush.msra.mxu2 %v4526_v53  ;;  %v4496_v17 = vld [vmem:[%s8495_s24 + $0x200] sm:$0xff]  ;;  %v4524_v59 = vld [vmem:[%s8458_s9 + $0x258] sm:$0xff]  ;;  %v4515_v25 = vld [vmem:[%s8458_s9 + $0x210] sm:$0xff] }
 0xc03   : > { %v2240_v58 = vadd.f32 1.0, %v2236_v56  ;;  %v4568_v56 = vld [vmem:[%s8495_s24 + $0x2e8] sm:$0xff] }
 0xc04   : > { %v2241_v61 = vadd.f32 1.0, %v2237_v60  ;;  %2500 = vmatpush.msrb.mxu1 %v4505_v31  ;;  %v4587_v60 = vld [vmem:[%s8458_s9 + $0x2f8] sm:$0xff]  ;;  %v4514_v28 = vld [vmem:[%s8458_s9 + $0x208] sm:$0xff] }
 0xc05   : > { %v2244_v39 = vmul.f32 %v2240_v58, %v2088_v49  ;;  %v4525_v49 = vld [vmem:[%s8458_s9 + $0x260] sm:$0xff]  ;;  %v4556_v31 = vld [vmem:[%s8495_s24 + $0x288] sm:$0xff] }
 0xc06   : > { %v2245_v0 = vmul.f32 %v2241_v61, %v2089_v20  ;;  %2501 = vmatpush.msrb.mxu1 %v4504_v55  ;;  %v4567_v58 = vld [vmem:[%s8495_s24 + $0x2e0] sm:$0xff]  ;;  %2539 = vmatpush.msra.mxu2 %v4525_v49  ;;  %v4523_v20 = vld [vmem:[%s8458_s9 + $0x250] sm:$0xff] }
 0xc07   : > { %2370 = vmatmul.f32.vlgmr.msrb.gmra.mxu2 %v2244_v39  ;;  %v4566_v39 = vld [vmem:[%s8495_s24 + $0x2d8] sm:$0xff]  ;;  %v4565_v61 = vld [vmem:[%s8495_s24 + $0x2d0] sm:$0xff]  ;;  %v4513_v55 = vld [vmem:[%s8458_s9 + $0x200] sm:$0xff] }
 0xc08   : > { %2390 = vmatmul.f32.vlgmr.msrb.gmra.mxu3 %v2245_v0  ;;  %2502 = vmatpush.msrb.mxu1 %v4503_v33  ;;  %v4586_v0 = vld [vmem:[%s8458_s9 + $0x2f0] sm:$0xff]  ;;  %v4576_v33 = vld [vmem:[%s8458_s9 + $0x2a0] sm:$0xff] }
 0xc09   : > { %2540 = vmatpush.msra.mxu2 %v4524_v59  ;;  %v4645_v49 = vld [vmem:[%s8458_s9 + $0x360] sm:$0xff]  ;;  %v4642_v59 = vld [vmem:[%s8458_s9 + $0x348] sm:$0xff] }
 0xc0a   : > { %2503 = vmatpush.msrb.mxu1 %v4502_v63  ;;  %v4575_v63 = vld [vmem:[%s8458_s9 + $0x298] sm:$0xff] }
 0xc0b   : > { %2541 = vmatpush.msra.mxu2 %v4523_v20  ;;  %v4639_v20 = vld [vmem:[%s8458_s9 + $0x330] sm:$0xff] }
 0xc0c   : > { %2504 = vmatpush.msrb.mxu1 %v4501_v36  ;;  %v4574_v36 = vld [vmem:[%s8458_s9 + $0x290] sm:$0xff] }
 0xc0e   : > { %2505 = vmatpush.msrb.mxu1 %v4500_v18  ;;  %v4573_v18 = vld [vmem:[%s8458_s9 + $0x288] sm:$0xff] }
 0xc10   : > { %2506 = vmatpush.msrb.mxu1 %v4499_v40 }
 0xc12   : > { %2507 = vmatpush.msrb.mxu1 %v4498_v12 }
 0xc14   : > { %2508 = vmatpush.msrb.mxu1 %v4497_v57  ;;  %v4647_v57 = vld [vmem:[%s8458_s9 + $0x370] sm:$0xff] }
 0xc16   : > { %2509 = vmatpush.msrb.mxu1 %v4496_v17  ;;  %v4643_v17 = vld [vmem:[%s8458_s9 + $0x350] sm:$0xff] }
 0xc18   : > { %2744 = vmatpush.msra.mxu1 %v4587_v60  ;;  %v4640_v60 = vld [vmem:[%s8458_s9 + $0x338] sm:$0xff] }
 0xc1a   : > { %2745 = vmatpush.msra.mxu1 %v4586_v0  ;;  %v4637_v0 = vld [vmem:[%s8458_s9 + $0x320] sm:$0xff] }
 0xc7d   : > { %v2331_v43 = vpop.f32.mrf.mxu0 }
 0xc7e   : > { %v2332_v2 = vadd.f32 %v4882_v1, %v2331_v43  ;;  %v2351_v3 = vpop.f32.mrf.mxu1  ;;  %v4522_v1 = vld [vmem:[%s8458_s9 + $0x248] sm:$0xff] }
 0xc7f   : > { %v4564_v43 = vld [vmem:[%s8495_s24 + $0x2c8] sm:$0xff]  ;;  %2542 = vmatpush.msra.mxu2 %v4522_v1  ;;  %v4636_v1 = vld [vmem:[%s8458_s9 + $0x318] sm:$0xff] }
 0xc80   : > { %v2352_v29 = vadd.f32 %v2351_v3, %v2332_v2  ;;  %v4585_v2 = vld [vmem:[%s8458_s9 + $0x2e8] sm:$0xff]  ;;  %v4521_v3 = vld [vmem:[%s8458_s9 + $0x240] sm:$0xff] }
 0xc81   : > { %2746 = vmatpush.msra.mxu1 %v4585_v2  ;;  %2543 = vmatpush.msra.mxu2 %v4521_v3  ;;  %v4634_v2 = vld [vmem:[%s8458_s9 + $0x308] sm:$0xff]  ;;  %v4633_v3 = vld [vmem:[%s8458_s9 + $0x300] sm:$0xff] }
 0xc8a   : > { %v2371_v4 = vpop.f32.mrf.mxu2 }
 0xc8b   : > { %v2372_v5 = vadd.f32 %v2371_v4, %v2352_v29  ;;  %v2391_v6 = vpop.f32.mrf.mxu3  ;;  %v4563_v29 = vld [vmem:[%s8495_s24 + $0x2c0] sm:$0xff] }
 0xc8c   : > { %v4584_v4 = vld [vmem:[%s8458_s9 + $0x2e0] sm:$0xff] }
 0xc8d   : > { %v2392_v7 = vadd.f32 %v2391_v6, %v2372_v5  ;;  %2747 = vmatpush.msra.mxu1 %v4584_v4  ;;  %v4520_v5 = vld [vmem:[%s8458_s9 + $0x238] sm:$0xff]  ;;  %v4886_v4 = vld [vmem:[%s8457_s8 + $0x4] ss:$0 sm:$0xff] }
 0xc8e   : > { %v4562_v6 = vld [vmem:[%s8495_s24 + $0x2b8] sm:$0xff]  ;;  %2544 = vmatpush.msra.mxu2 %v4520_v5 }
 0xc8f   : > { %v6735_v9 = vadd.f32 %v2392_v7, %v6166_v45  ;;  %v4492_v45 = vld [vmem:[%s8496_s28 + $0x268] sm:$0xff]  ;;  %v4583_v7 = vld [vmem:[%s8458_s9 + $0x2d8] sm:$0xff] }
 0xc90   : > { %2453 = vmatpush.msrb.mxu0 %v4492_v45  ;;  %2748 = vmatpush.msra.mxu1 %v4583_v7  ;;  %v4560_v45 = vld [vmem:[%s8495_s24 + $0x2a8] sm:$0xff] }
 0xc91   : > { %v2399_v30 = vsel %vm934_vm0, %v6735_v9, 0.0 }
 0xc92   : > { %2400 = vadd.xlane.f32.xlu0 %v2399_v30  ;;  %2454 = vmatpush.msrb.mxu0 %v4491_v48  ;;  %v4519_v30 = vld [vmem:[%s8458_s9 + $0x230] sm:$0xff]  ;;  %v4559_v48 = vld [vmem:[%s8495_s24 + $0x2a0] sm:$0xff] }
 0xc93   : > { %2545 = vmatpush.msra.mxu2 %v4519_v30  ;;  %2749 = vmatpush.msra.mxu1 %v4582_v11  ;;  %v4887_v11 = vld [vmem:[%s8459_s10 + $0x4] ss:$0 sm:$0xff] }
 0xc94   : > { %2455 = vmatpush.msrb.mxu0 %v4490_v21  ;;  %v4516_v21 = vld [vmem:[%s8458_s9 + $0x218] sm:$0xff] }
 0xc95   : > { %2546 = vmatpush.msra.mxu2 %v4518_v13  ;;  %2750 = vmatpush.msra.mxu1 %v4581_v15  ;;  %v4888_v13 = vld [vmem:[%s8457_s8 + $0x5] ss:$0 sm:$0xff] }
 0xc96   : > { %2456 = vmatpush.msrb.mxu0 %v4489_v24  ;;  %v4579_v24 = vld [vmem:[%s8458_s9 + $0x2b8] sm:$0xff] }
 0xc97   : > { %2547 = vmatpush.msra.mxu2 %v4517_v19  ;;  %2751 = vmatpush.msra.mxu1 %v4580_v14 }
 0xc98   : > { %2457 = vmatpush.msrb.mxu0 %v4488_v27  ;;  %v4578_v27 = vld [vmem:[%s8458_s9 + $0x2b0] sm:$0xff] }
 0xc99   : > { %2548 = vmatpush.msra.mxu2 %v4516_v21  ;;  %2752 = vmatpush.msra.mxu1 %v4579_v24 }
 0xc9a   : > { %2458 = vmatpush.msrb.mxu0 %v4487_v32  ;;  %v4577_v32 = vld [vmem:[%s8458_s9 + $0x2a8] sm:$0xff] }
 0xc9b   : > { %2549 = vmatpush.msra.mxu2 %v4515_v25  ;;  %2753 = vmatpush.msra.mxu1 %v4578_v27  ;;  %v4552_v27 = vld [vmem:[%s8496_s28 + $0x2f0] sm:$0xff] }
 0xc9c   : > { %2459 = vmatpush.msrb.mxu0 %v4486_v62  ;;  %v4555_v62 = vld [vmem:[%s8495_s24 + $0x280] sm:$0xff] }
 0xc9d   : > { %2550 = vmatpush.msra.mxu2 %v4514_v28  ;;  %2754 = vmatpush.msra.mxu1 %v4577_v32 }
 0xc9e   : > { %2460 = vmatpush.msrb.mxu0 %v4485_v34 }
 0xc9f   : > { %2551 = vmatpush.msra.mxu2 %v4513_v55  ;;  %2755 = vmatpush.msra.mxu1 %v4576_v33  ;;  %v4551_v33 = vld [vmem:[%s8496_s28 + $0x2e8] sm:$0xff] }
 0xca0   : > { %2461 = vmatpush.msrb.mxu0 %v4484_v16 }
 0xca1   : > { %2756 = vmatpush.msra.mxu1 %v4575_v63  ;;  %v4549_v63 = vld [vmem:[%s8496_s28 + $0x2d8] sm:$0xff] }
 0xca2   : > { %2462 = vmatpush.msrb.mxu0 %v4483_v37 }
 0xca3   : > { %2757 = vmatpush.msra.mxu1 %v4574_v36  ;;  %v4547_v36 = vld [vmem:[%s8496_s28 + $0x2c8] sm:$0xff] }
 0xca4   : > { %2463 = vmatpush.msrb.mxu0 %v4482_v38  ;;  %v4572_v38 = vld [vmem:[%s8458_s9 + $0x280] sm:$0xff] }
 0xca5   : > { %2758 = vmatpush.msra.mxu1 %v4573_v18  ;;  %v4545_v18 = vld [vmem:[%s8496_s28 + $0x2b8] sm:$0xff] }
 0xca6   : > { %2464 = vmatpush.msrb.mxu0 %v4481_v42 }
 0xca7   : > { %2759 = vmatpush.msra.mxu1 %v4572_v38  ;;  %v4544_v38 = vld [vmem:[%s8496_s28 + $0x2b0] sm:$0xff] }
 0xca8   : > { %2465 = vmatpush.msrb.mxu0 %v4480_v46 }
 0xcaa   : > { %2466 = vmatpush.msrb.mxu0 %v4479_v22 }
 0xcac   : > { %2702 = vmatpush.msra.mxu0 %v4570_v35 }
 0xcae   : > { %2703 = vmatpush.msra.mxu0 %v4569_v52 }
 0xcb0   : > { %2704 = vmatpush.msra.mxu0 %v4568_v56  ;;  %v4648_v56 = vld [vmem:[%s8458_s9 + $0x378] sm:$0xff] }
 0xcb2   : > { %2705 = vmatpush.msra.mxu0 %v4567_v58  ;;  %v4644_v58 = vld [vmem:[%s8458_s9 + $0x358] sm:$0xff] }
 0xcb4   : > { %2706 = vmatpush.msra.mxu0 %v4566_v39  ;;  %v4641_v39 = vld [vmem:[%s8458_s9 + $0x340] sm:$0xff] }
 0xcb6   : > { %2707 = vmatpush.msra.mxu0 %v4565_v61  ;;  %v4638_v61 = vld [vmem:[%s8458_s9 + $0x328] sm:$0xff] }
 0xcb8   : > { %2708 = vmatpush.msra.mxu0 %v4564_v43  ;;  %v4635_v43 = vld [vmem:[%s8458_s9 + $0x310] sm:$0xff] }
 0xcba   : > { %2709 = vmatpush.msra.mxu0 %v4563_v29  ;;  %v4885_v29 = vld [vmem:[%s8499_s6 + $0x4] ss:$0 sm:$0xff] }
 0xcbc   : > { %2710 = vmatpush.msra.mxu0 %v4562_v6 }
 0xcbe   : > { %2711 = vmatpush.msra.mxu0 %v4561_v8 }
 0xcc0   : > { %2712 = vmatpush.msra.mxu0 %v4560_v45  ;;  %v4889_v45 = vld [vmem:[%s8459_s10 + $0x5] ss:$0 sm:$0xff] }
 0xcc2   : > { %2713 = vmatpush.msra.mxu0 %v4559_v48 }
 0xcc4   : > { %2714 = vmatpush.msra.mxu0 %v4558_v23 }
 0xcc6   : > { %2715 = vmatpush.msra.mxu0 %v4557_v26  ;;  %v4553_v26 = vld [vmem:[%s8496_s28 + $0x2f8] sm:$0xff] }
 0xcc8   : > { %2716 = vmatpush.msra.mxu0 %v4556_v31 }
 0xcca   : > { %2717 = vmatpush.msra.mxu0 %v4555_v62 }
 0xd05   : > { %v2401_v41 = vpop.xlane.xlu0 %2400 }
 0xd06   : > { %v2402_v44 = vmul.f32 %v2401_v41, %v5484_v10 }
 0xd08   : > { %v6831_v47 = vsub.f32 %v6735_v9, %v2402_v44 }
 0xd0a   : > { %v2404_v50 = vmul.f32 %v6831_v47, %v6831_v47 }
 0xd0c   : > { %v2405_v51 = vsel %vm934_vm0, %v2404_v50, 0.0  ;;  %v4883_v50 = vld [vmem:[%s8497_s29 + $0x1] ss:$0 sm:$0xff] }
 0xd0d   : > { %2406 = vadd.xlane.f32.xlu1 %v2405_v51  ;;  %v4884_v51 = vld [vmem:[%s8498_s0 + $0x1] ss:$0 sm:$0xff] }
 0xd80   : > { %v2407_v34 = vpop.xlane.xlu1 %2406 }
 0xd81   : > { %v2408_v16 = vmul.f32 %v2407_v34, %v5484_v10  ;;  %v4550_v34 = vld [vmem:[%s8496_s28 + $0x2e0] sm:$0xff] }
 0xd83   : > { %v2409_v37 = vadd.f32 1e-06, %v2408_v16  ;;  %v4548_v16 = vld [vmem:[%s8496_s28 + $0x2d0] sm:$0xff] }
 0xd85   : > { %4941 = vrsqrt.f32 %v2409_v37  ;;  %vm2416_vm12 = vweird.f32 %v2409_v37 }
 0xd8b   : > { %v4942_v40 = vpop.eup %4941 }
 0xd8c   : > { %v2411_v41 = vmul.f32 %v4942_v40, %v2409_v37  ;;  %vm2417_vm10 = vweird.f32 %v4942_v40  ;;  %v4546_v37 = vld [vmem:[%s8496_s28 + $0x2c0] sm:$0xff] }
 0xd8d   : > { %vm2418_vm13 = vmor %vm2416_vm12, %vm2417_vm10 }
 0xd8e   : > { %v2412_v42 = vmul.f32 %v4942_v40, %v2411_v41  ;;  %v4542_v41 = vld [vmem:[%s8496_s28 + $0x2a0] sm:$0xff] }
 0xd90   : > { %v2413_v44 = vmul.f32 0.5, %v2412_v42  ;;  %v4541_v42 = vld [vmem:[%s8496_s28 + $0x298] sm:$0xff] }
 0xd92   : > { %v2414_v46 = vsub.f32 1.5, %v2413_v44  ;;  %v4540_v44 = vld [vmem:[%s8496_s28 + $0x290] sm:$0xff] }
 0xd94   : > { %v2415_v22 = vmul.f32 %v4942_v40, %v2414_v46  ;;  %v4539_v46 = vld [vmem:[%s8496_s28 + $0x288] sm:$0xff] }
 0xd96   : > { %v2419_v35 = vsel %vm2418_vm13, %v4942_v40, %v2415_v22  ;;  %v4543_v40 = vld [vmem:[%s8496_s28 + $0x2a8] sm:$0xff]  ;;  %v4538_v22 = vld [vmem:[%s8496_s28 + $0x280] sm:$0xff] }
 0xd97   : > { %v2420_v52 = vmul.f32 %v2419_v35, %v6831_v47  ;;  %v4646_v47 = vld [vmem:[%s8458_s9 + $0x368] sm:$0xff] }
 0xd99   : > { %v2424_v12 = vmul.f32 %v4883_v50, %v2420_v52 }
 0xd9b   : > { %v6994_v53 = vadd.f32 %v4884_v51, %v2424_v12 }
 0xd9d   : > { %2467 = vmatmul.f32.vlgmr.msrb.gmra.mxu0 %v6994_v53  ;;  %2510 = vmatmul.f32.vlgmr.msrb.gmra.mxu1 %v6994_v53 }
 0xd9e   : > { %2552 = vmatmul.f32.vlgmr.msra.gmra.mxu2 %v6994_v53  ;;  %2998 = vmatpush.msrb.mxu0 %v4648_v56 }
 0xda0   : > { %2999 = vmatpush.msrb.mxu0 %v4647_v57 }
 0xda2   : > { %3000 = vmatpush.msrb.mxu0 %v4646_v47 }
 0xda4   : > { %3001 = vmatpush.msrb.mxu0 %v4645_v49 }
 0xda5   : > { %2718 = vmatmul.f32.vlgmr.msra.gmra.mxu0 %v6994_v53  ;;  %2760 = vmatmul.f32.vlgmr.msra.gmra.mxu1 %v6994_v53 }
 0xda6   : > { %3002 = vmatpush.msrb.mxu0 %v4644_v58 }
 0xda8   : > { %3003 = vmatpush.msrb.mxu0 %v4643_v17 }
 0xdaa   : > { %3004 = vmatpush.msrb.mxu0 %v4642_v59 }
 0xdac   : > { %3005 = vmatpush.msrb.mxu0 %v4641_v39  ;;  %v4537_v39 = vld [vmem:[%s8460_s11 + $0x98] sm:$0xff] }
 0xdae   : > { %3006 = vmatpush.msrb.mxu0 %v4640_v60  ;;  %v4536_v60 = vld [vmem:[%s8460_s11 + $0x90] sm:$0xff] }
 0xdb0   : > { %3007 = vmatpush.msrb.mxu0 %v4639_v20  ;;  %v4535_v20 = vld [vmem:[%s8460_s11 + $0x88] sm:$0xff] }
 0xdb2   : > { %3008 = vmatpush.msrb.mxu0 %v4638_v61  ;;  %v4534_v61 = vld [vmem:[%s8460_s11 + $0x80] sm:$0xff] }
 0xdb4   : > { %3009 = vmatpush.msrb.mxu0 %v4637_v0  ;;  %v4631_v0 = vld [vmem:[%s8495_s24 + $0x378] sm:$0xff] }
 0xdb6   : > { %3010 = vmatpush.msrb.mxu0 %v4636_v1  ;;  %v4630_v1 = vld [vmem:[%s8495_s24 + $0x370] sm:$0xff] }
 0xdb8   : > { %3011 = vmatpush.msrb.mxu0 %v4635_v43  ;;  %v4629_v43 = vld [vmem:[%s8495_s24 + $0x368] sm:$0xff] }
 0xdba   : > { %3012 = vmatpush.msrb.mxu0 %v4634_v2  ;;  %v4628_v2 = vld [vmem:[%s8495_s24 + $0x360] sm:$0xff] }
 0xdbc   : > { %3013 = vmatpush.msrb.mxu0 %v4633_v3  ;;  %v4627_v3 = vld [vmem:[%s8495_s24 + $0x358] sm:$0xff] }
 0xdbd   : > { %3014 = vmatmul.f32.vlgmr.msrb.gmra.mxu0 %v6994_v53 }
 0xe1a   : > { %v2468_v5 = vpop.f32.mrf.mxu0  ;;  %v2511_v6 = vpop.f32.mrf.mxu1 }
 0xe1b   : > { %v2469_v7 = vadd.f32 %v4885_v29, %v2468_v5  ;;  %v2512_v30 = vadd.f32 %v4886_v4, %v2511_v6  ;;  %v4626_v29 = vld [vmem:[%s8495_s24 + $0x350] sm:$0xff]  ;;  %v4625_v4 = vld [vmem:[%s8495_s24 + $0x348] sm:$0xff]  ;;  %v4624_v5 = vld [vmem:[%s8495_s24 + $0x340] sm:$0xff] }
 0xe1c   : > { %v4623_v6 = vld [vmem:[%s8495_s24 + $0x338] sm:$0xff] }
 0xe1d   : > { %v2471_v8 = vmul.f32 0.17677669, %v2469_v7  ;;  %4530 = vmatpush.xpose.msk.msra.mxu3 %vm1093_vm5, %v2512_v30  ;;  %v4622_v7 = vld [vmem:[%s8495_s24 + $0x330] sm:$0xff]  ;;  %v4621_v30 = vld [vmem:[%s8495_s24 + $0x328] sm:$0xff] }
 0xe20   : > { %4531 = vmatmul.msk.f32.vlgmr.msra.gmra.mxu3 %vm1093_vm5, %v2471_v8  ;;  %v4620_v8 = vld [vmem:[%s8495_s24 + $0x320] sm:$0xff] }
 0xe21   : > { %v2553_v15 = vpop.f32.mrf.mxu2 }
 0xe22   : > { %v2554_v19 = vadd.f32 %v4887_v11, %v2553_v15  ;;  %v2719_v48 = vpop.f32.mrf.mxu0  ;;  %v2761_v14 = vpop.f32.mrf.mxu1  ;;  %v4619_v11 = vld [vmem:[%s8495_s24 + $0x318] sm:$0xff]  ;;  %v4616_v15 = vld [vmem:[%s8495_s24 + $0x300] sm:$0xff] }
 0xe23   : > { %v2720_v21 = vadd.f32 %v4888_v13, %v2719_v48  ;;  %v2762_v23 = vadd.f32 %v4889_v45, %v2761_v14  ;;  %v4618_v13 = vld [vmem:[%s8495_s24 + $0x310] sm:$0xff]  ;;  %v4617_v45 = vld [vmem:[%s8495_s24 + $0x308] sm:$0xff] }
 0xe24   : > { %4532 = vmatpush.msk.msrb.mxu3 %vm934_vm0, %v2554_v19  ;;  %v4708_v19 = vld [vmem:[%s8458_s9 + $0x3f8] sm:$0xff]  ;;  %v4707_v14 = vld [vmem:[%s8458_s9 + $0x3f0] sm:$0xff] }
 0xe25   : > { %4589 = vmatpush.xpose.msk.msrb.mxu2 %vm1093_vm5, %v2720_v21  ;;  %v4706_v21 = vld [vmem:[%s8458_s9 + $0x3e8] sm:$0xff] }
 0xe26   : > { %2659 = vmatpush.msra.mxu3 %v4553_v26 }
 0xe28   : > { %2660 = vmatpush.msra.mxu3 %v4552_v27 }
 0xe29   : > { %4591 = vmatpush.msk.msra.mxu2 %vm934_vm0, %v2762_v23  ;;  %v4705_v23 = vld [vmem:[%s8458_s9 + $0x3e0] sm:$0xff] }
 0xe2a   : > { %2661 = vmatpush.msra.mxu3 %v4551_v33  ;;  %v4699_v33 = vld [vmem:[%s8458_s9 + $0x3b0] sm:$0xff] }
 0xe2c   : > { %2662 = vmatpush.msra.mxu3 %v4550_v34  ;;  %v4698_v34 = vld [vmem:[%s8458_s9 + $0x3a8] sm:$0xff] }
 0xe2e   : > { %2663 = vmatpush.msra.mxu3 %v4549_v63  ;;  %v4697_v63 = vld [vmem:[%s8458_s9 + $0x3a0] sm:$0xff] }
 0xe30   : > { %2664 = vmatpush.msra.mxu3 %v4548_v16  ;;  %v4696_v16 = vld [vmem:[%s8458_s9 + $0x398] sm:$0xff] }
 0xe32   : > { %2665 = vmatpush.msra.mxu3 %v4547_v36  ;;  %v4695_v36 = vld [vmem:[%s8458_s9 + $0x390] sm:$0xff] }
 0xe34   : > { %2666 = vmatpush.msra.mxu3 %v4546_v37  ;;  %v4694_v37 = vld [vmem:[%s8458_s9 + $0x388] sm:$0xff] }
 0xe36   : > { %2667 = vmatpush.msra.mxu3 %v4545_v18  ;;  %v4693_v18 = vld [vmem:[%s8458_s9 + $0x380] sm:$0xff] }
 0xe38   : > { %2668 = vmatpush.msra.mxu3 %v4544_v38 }
 0xe3a   : > { %2669 = vmatpush.msra.mxu3 %v4543_v40  ;;  %v4892_v40 = vld [vmem:[%s8457_s8 + $0x6] ss:$0 sm:$0xff] }
 0xe3c   : > { %2670 = vmatpush.msra.mxu3 %v4542_v41  ;;  %v4890_v41 = vld [vmem:[%s8459_s10 + $0x6] ss:$0 sm:$0xff] }
 0xe3e   : > { %2671 = vmatpush.msra.mxu3 %v4541_v42  ;;  %v3015_v42 = vpop.f32.mrf.mxu0 }
 0xe40   : > { %2672 = vmatpush.msra.mxu3 %v4540_v44 }
 0xe42   : > { %2673 = vmatpush.msra.mxu3 %v4539_v46 }
 0xe44   : > { %2674 = vmatpush.msra.mxu3 %v4538_v22  ;;  %v3016_v22 = vadd.f32 %v4890_v41, %v3015_v42  ;;  %v4677_v41 = vld [vmem:[%s8495_s24 + $0x388] sm:$0xff]  ;;  %v4676_v42 = vld [vmem:[%s8495_s24 + $0x380] sm:$0xff] }
 0xea3   : > { %v2579_v24 = vpop.f32.mrf.mxu3 }
 0xea4   : > { %v2582_v25 = vsel %vm1120_vm6, %v2579_v24, -inf }
 0xea5   : > { %2583 = vmax.xlane.f32.xlu2 %v2582_v25  ;;  %v4704_v25 = vld [vmem:[%s8458_s9 + $0x3d8] sm:$0xff] }
 0xf18   : > { %v2584_v28 = vpop.xlane.xlu2 %2583 }
 0xf19   : > { %v2585_v31 = vsub.f32 %v2579_v24, %v2584_v28  ;;  %v4891_v24 = vld [vmem:[%s8499_s6 + $0x5] ss:$0 sm:$0xff]  ;;  %v4703_v28 = vld [vmem:[%s8458_s9 + $0x3d0] sm:$0xff] }
 0xf1b   : > { %v2586_v32 = vmul.f32 1.442695, %v2585_v31 }
 0xf1d   : > { %4943 = vpow2.f32 %v2586_v32  ;;  %v4702_v32 = vld [vmem:[%s8458_s9 + $0x3c8] sm:$0xff] }
 0xf23   : > { %v4944_v55 = vpop.eup %4943 }
 0xf24   : > { %v2588_v62 = vsel %vm1120_vm6, %v4944_v55, 0.0 }
 0xf25   : > { %2589 = vadd.xlane.f32.xlu0 %v2588_v62  ;;  %v4700_v62 = vld [vmem:[%s8458_s9 + $0x3b8] sm:$0xff] }
 0xf98   : > { %v2590_v50 = vpop.xlane.xlu0 %2589 }
 0xf99   : > { %4945 = vrcp.f32 %v2590_v50  ;;  %v2602_v12 = vand.u32 2147483648, %v2590_v50  ;;  %v2600_v57 = vand.u32 2147483647, %v2590_v50  ;;  %vm2596_vm15 = vweird.f32 %v2590_v50 }
 0xf9b   : > { %v2603_v49 = vor.u32 1.1754944e-38, %v2602_v12  ;;  %vm2601_vm2 = vcmp.eq.f32.partialorder %v2600_v57, 8.507059e+37 }
 0xf9f   : > { %v4946_v35 = vpop.eup %4945 }
 0xfa0   : > { %v2592_v51 = vmul.f32 %v4946_v35, %v2590_v50  ;;  %vm2597_vm14 = vweird.f32 %v4946_v35 }
 0xfa1   : > { %vm2598_vm1 = vmor %vm2596_vm15, %vm2597_vm14 }
 0xfa2   : > { %v2593_v52 = vsub.f32 1.0, %v2592_v51 }
 0xfa4   : > { %v2594_v56 = vmul.f32 %v4946_v35, %v2593_v52 }
 0xfa6   : > { %v2595_v47 = vadd.f32 %v4946_v35, %v2594_v56 }
 0xfa8   : > { %v2599_v58 = vsel %vm2598_vm1, %v4946_v35, %v2595_v47  ;;  %v4596_v47 = vld [vmem:[%s8460_s11 + $0xb8] sm:$0xff] }
 0xfa9   : > { %v2604_v17 = vsel %vm2601_vm2, %v2603_v49, %v2599_v58  ;;  %v4595_v49 = vld [vmem:[%s8460_s11 + $0xb0] sm:$0xff]  ;;  %v4594_v58 = vld [vmem:[%s8460_s11 + $0xa8] sm:$0xff] }
 0xfaa   : > { %v2605_v59 = vmul.f32 %v4944_v55, %v2604_v17  ;;  %v4701_v55 = vld [vmem:[%s8458_s9 + $0x3c0] sm:$0xff] }
 0xfab   : > { %v4593_v17 = vld [vmem:[%s8460_s11 + $0xa0] sm:$0xff] }
 0xfac   : > { %4533 = vmatmul.msk.f32.vlgmr.msrb.gmra.mxu3 %vm1145_vm11, %v2605_v59 }
 0xfad   : > { %2883 = vmatpush.msrb.mxu3 %v4537_v39 }
 0xfaf   : > { %2884 = vmatpush.msrb.mxu3 %v4536_v60 }
 0xfb1   : > { %2885 = vmatpush.msrb.mxu3 %v4535_v20 }
 0xfb3   : > { %2886 = vmatpush.msrb.mxu3 %v4534_v61 }
 0xfb4   : > { %2675 = vmatmul.f32.vlgmr.msra.gmra.mxu3 %v6994_v53 }
 0xfb5   : > { %2956 = vmatpush.msra.mxu3 %v4631_v0 }
 0xfb7   : > { %2957 = vmatpush.msra.mxu3 %v4630_v1 }
 0xfb9   : > { %2958 = vmatpush.msra.mxu3 %v4629_v43 }
 0xfbb   : > { %2959 = vmatpush.msra.mxu3 %v4628_v2 }
 0xfbd   : > { %2960 = vmatpush.msra.mxu3 %v4627_v3 }
 0xfbf   : > { %2961 = vmatpush.msra.mxu3 %v4626_v29 }
 0xfc1   : > { %2962 = vmatpush.msra.mxu3 %v4625_v4 }
 0xfc3   : > { %2963 = vmatpush.msra.mxu3 %v4624_v5  ;;  %v4614_v5 = vld [vmem:[%s8496_s28 + $0x378] sm:$0xff] }
 0xfc5   : > { %2964 = vmatpush.msra.mxu3 %v4623_v6  ;;  %v4613_v6 = vld [vmem:[%s8496_s28 + $0x370] sm:$0xff] }
 0xfc7   : > { %2965 = vmatpush.msra.mxu3 %v4622_v7  ;;  %v4612_v7 = vld [vmem:[%s8496_s28 + $0x368] sm:$0xff] }
 0xfc9   : > { %2966 = vmatpush.msra.mxu3 %v4621_v30  ;;  %v4611_v30 = vld [vmem:[%s8496_s28 + $0x360] sm:$0xff] }
 0xfcb   : > { %2967 = vmatpush.msra.mxu3 %v4620_v8  ;;  %v4610_v8 = vld [vmem:[%s8496_s28 + $0x358] sm:$0xff] }
 0xfcd   : > { %2968 = vmatpush.msra.mxu3 %v4619_v11  ;;  %v4609_v11 = vld [vmem:[%s8496_s28 + $0x350] sm:$0xff] }
 0xfcf   : > { %2969 = vmatpush.msra.mxu3 %v4618_v13  ;;  %v4608_v13 = vld [vmem:[%s8496_s28 + $0x348] sm:$0xff] }
 0xfd1   : > { %2970 = vmatpush.msra.mxu3 %v4617_v45  ;;  %v4607_v45 = vld [vmem:[%s8496_s28 + $0x340] sm:$0xff] }
 0xfd3   : > { %2971 = vmatpush.msra.mxu3 %v4616_v15  ;;  %v4606_v15 = vld [vmem:[%s8496_s28 + $0x338] sm:$0xff] }
0x102f   : > { %v2629_v48 = vpop.f32.mrf.mxu3 }
0x1030   : > { %4598 = vmatmul.msk.f32.vlgmr.msrb.gmra.mxu3 %vm1093_vm5, %v2629_v48  ;;  %v4604_v48 = vld [vmem:[%s8496_s28 + $0x328] sm:$0xff] }
0x1031   : > { %3230 = vmatpush.msrb.mxu3 %v4708_v19  ;;  %v4605_v19 = vld [vmem:[%s8496_s28 + $0x330] sm:$0xff] }
0x1033   : > { %3231 = vmatpush.msrb.mxu3 %v4707_v14  ;;  %v4603_v14 = vld [vmem:[%s8496_s28 + $0x320] sm:$0xff] }
0x1035   : > { %3232 = vmatpush.msrb.mxu3 %v4706_v21  ;;  %v4602_v21 = vld [vmem:[%s8496_s28 + $0x318] sm:$0xff] }
0x1037   : > { %3233 = vmatpush.msrb.mxu3 %v4705_v23  ;;  %v2676_v26 = vpop.f32.mrf.mxu3  ;;  %v4601_v23 = vld [vmem:[%s8496_s28 + $0x310] sm:$0xff] }
0x1038   : > { %v2677_v27 = vadd.f32 %v4891_v24, %v2676_v26  ;;  %2972 = vmatmul.f32.vlgmr.msra.gmra.mxu3 %v6994_v53  ;;  %v4600_v24 = vld [vmem:[%s8496_s28 + $0x308] sm:$0xff]  ;;  %v4691_v26 = vld [vmem:[%s8495_s24 + $0x3f8] sm:$0xff] }
0x1039   : > { %3234 = vmatpush.msrb.mxu3 %v4704_v25  ;;  %v4599_v25 = vld [vmem:[%s8496_s28 + $0x300] sm:$0xff] }
0x103a   : > { %v2679_v31 = vmul.f32 0.17677669, %v2677_v27 }
0x103b   : > { %3235 = vmatpush.msrb.mxu3 %v4703_v28  ;;  %v4690_v28 = vld [vmem:[%s8495_s24 + $0x3f0] sm:$0xff] }
0x103c   : > { %4590 = vmatmul.msk.f32.vlgmr.msrb.gmra.mxu2 %vm1093_vm5, %v2679_v31  ;;  %v4689_v31 = vld [vmem:[%s8495_s24 + $0x3e8] sm:$0xff] }
0x103d   : > { %3236 = vmatpush.msrb.mxu3 %v4702_v32  ;;  %2860 = vmatpush.msrb.mxu2 %v4596_v47  ;;  %v4688_v32 = vld [vmem:[%s8495_s24 + $0x3e0] sm:$0xff] }
0x103f   : > { %3237 = vmatpush.msrb.mxu3 %v4701_v55  ;;  %2861 = vmatpush.msrb.mxu2 %v4595_v49  ;;  %v4687_v55 = vld [vmem:[%s8495_s24 + $0x3d8] sm:$0xff] }
0x1041   : > { %3238 = vmatpush.msrb.mxu3 %v4700_v62  ;;  %2862 = vmatpush.msrb.mxu2 %v4594_v58  ;;  %v4686_v62 = vld [vmem:[%s8495_s24 + $0x3d0] sm:$0xff] }
0x1043   : > { %3239 = vmatpush.msrb.mxu3 %v4699_v33  ;;  %2863 = vmatpush.msrb.mxu2 %v4593_v17  ;;  %v4685_v33 = vld [vmem:[%s8495_s24 + $0x3c8] sm:$0xff] }
0x1045   : > { %3240 = vmatpush.msrb.mxu3 %v4698_v34  ;;  %v4684_v34 = vld [vmem:[%s8495_s24 + $0x3c0] sm:$0xff] }
0x1047   : > { %3241 = vmatpush.msrb.mxu3 %v4697_v63  ;;  %v4683_v63 = vld [vmem:[%s8495_s24 + $0x3b8] sm:$0xff] }
0x1049   : > { %3242 = vmatpush.msrb.mxu3 %v4696_v16  ;;  %v4682_v16 = vld [vmem:[%s8495_s24 + $0x3b0] sm:$0xff] }
0x104b   : > { %3243 = vmatpush.msrb.mxu3 %v4695_v36  ;;  %v4681_v36 = vld [vmem:[%s8495_s24 + $0x3a8] sm:$0xff] }
0x104d   : > { %3244 = vmatpush.msrb.mxu3 %v4694_v37  ;;  %v4680_v37 = vld [vmem:[%s8495_s24 + $0x3a0] sm:$0xff] }
0x104f   : > { %3245 = vmatpush.msrb.mxu3 %v4693_v18  ;;  %v4679_v18 = vld [vmem:[%s8495_s24 + $0x398] sm:$0xff] }
0x1050   : > { %3246 = vmatmul.f32.vlgmr.msrb.gmra.mxu3 %v6994_v53 }
0x10b3   : > { %v7237_v38 = vpop.f32.mrf.mxu3 }
0x10bb   : > { %v2973_v44 = vpop.f32.mrf.mxu3 }
0x10bc   : > { %v2974_v46 = vadd.f32 %v4892_v40, %v2973_v44  ;;  %v4678_v40 = vld [vmem:[%s8495_s24 + $0x390] sm:$0xff] }
0x10be   : > { %4650 = vmatpush.xpose.msk.msrb.mxu1 %vm1093_vm5, %v2974_v46  ;;  %v4894_v46 = vld [vmem:[%s8499_s6 + $0x6] ss:$0 sm:$0xff] }
0x10bf   : > { %v2787_v50 = vpop.f32.mrf.mxu2 }
0x10c0   : > { %v2790_v35 = vsel %vm1120_vm6, %v2787_v50, -inf }
0x10c1   : > { %2791 = vmax.xlane.f32.xlu1 %v2790_v35 }
0x10c2   : > { %4652 = vmatpush.msk.msra.mxu1 %vm934_vm0, %v3016_v22 }
0x1134   : > { %v2792_v51 = vpop.xlane.xlu1 %2791 }
0x1135   : > { %v2793_v52 = vsub.f32 %v2787_v50, %v2792_v51  ;;  %v4895_v51 = vld [vmem:[%s8457_s8 + $0x7] ss:$0 sm:$0xff] }
0x1137   : > { %v2794_v12 = vmul.f32 1.442695, %v2793_v52  ;;  %v4893_v52 = vld [vmem:[%s8459_s10 + $0x7] ss:$0 sm:$0xff] }
0x1139   : > { %4947 = vpow2.f32 %v2794_v12  ;;  %v3247_v12 = vpop.f32.mrf.mxu3 }
0x113a   : > { %v3248_v47 = vadd.f32 %v4893_v52, %v3247_v12  ;;  %v4715_v52 = vld [vmem:[%s8460_s11 + $0xe8] sm:$0xff] }
0x113f   : > { %v4948_v56 = vpop.eup %4947 }
0x1140   : > { %v2796_v57 = vsel %vm1120_vm6, %v4948_v56, 0.0 }
0x1141   : > { %2797 = vadd.xlane.f32.xlu2 %v2796_v57 }
0x11b4   : > { %v2798_v59 = vpop.xlane.xlu2 %2797 }
0x11b5   : > { %4949 = vrcp.f32 %v2798_v59  ;;  %v2810_v61 = vand.u32 2147483648, %v2798_v59  ;;  %v2808_v1 = vand.u32 2147483647, %v2798_v59  ;;  %vm2804_vm4 = vweird.f32 %v2798_v59 }
0x11b7   : > { %v2811_v2 = vor.u32 1.1754944e-38, %v2810_v61  ;;  %vm2809_vm8 = vcmp.eq.f32.partialorder %v2808_v1, 8.507059e+37  ;;  %v4657_v61 = vld [vmem:[%s8460_s11 + $0xd8] sm:$0xff]  ;;  %v4655_v1 = vld [vmem:[%s8460_s11 + $0xc8] sm:$0xff] }
0x11bb   : > { %v4950_v39 = vpop.eup %4949 }
0x11bc   : > { %v2800_v60 = vmul.f32 %v4950_v39, %v2798_v59  ;;  %vm2805_vm3 = vweird.f32 %v4950_v39 }
0x11bd   : > { %vm2806_vm7 = vmor %vm2804_vm4, %vm2805_vm3 }
0x11be   : > { %v2801_v20 = vsub.f32 1.0, %v2800_v60 }
0x11c0   : > { %v2802_v0 = vmul.f32 %v4950_v39, %v2801_v20 }
0x11c2   : > { %v2803_v43 = vadd.f32 %v4950_v39, %v2802_v0  ;;  %v4656_v0 = vld [vmem:[%s8460_s11 + $0xd0] sm:$0xff] }
0x11c4   : > { %v2807_v3 = vsel %vm2806_vm7, %v4950_v39, %v2803_v43  ;;  %v4654_v43 = vld [vmem:[%s8460_s11 + $0xc0] sm:$0xff] }
0x11c5   : > { %v2812_v29 = vsel %vm2809_vm8, %v2811_v2, %v2807_v3 }
0x11c6   : > { %v2813_v4 = vmul.f32 %v4948_v56, %v2812_v29 }
0x11c8   : > { %4592 = vmatmul.msk.f32.vlgmr.msra.gmra.mxu2 %vm1145_vm11, %v2813_v4 }
0x11c9   : > { %2913 = vmatpush.msra.mxu2 %v4614_v5 }
0x11cb   : > { %2914 = vmatpush.msra.mxu2 %v4613_v6 }
0x11cd   : > { %2915 = vmatpush.msra.mxu2 %v4612_v7 }
0x11cf   : > { %2916 = vmatpush.msra.mxu2 %v4611_v30 }
0x11d1   : > { %2917 = vmatpush.msra.mxu2 %v4610_v8 }
0x11d3   : > { %2918 = vmatpush.msra.mxu2 %v4609_v11 }
0x11d5   : > { %2919 = vmatpush.msra.mxu2 %v4608_v13 }
0x11d7   : > { %2920 = vmatpush.msra.mxu2 %v4607_v45 }
0x11d9   : > { %2921 = vmatpush.msra.mxu2 %v4606_v15  ;;  %v4674_v15 = vld [vmem:[%s8496_s28 + $0x3f8] sm:$0xff] }
0x11db   : > { %2922 = vmatpush.msra.mxu2 %v4605_v19  ;;  %v4673_v19 = vld [vmem:[%s8496_s28 + $0x3f0] sm:$0xff] }
0x11dd   : > { %2923 = vmatpush.msra.mxu2 %v4604_v48  ;;  %v4672_v48 = vld [vmem:[%s8496_s28 + $0x3e8] sm:$0xff] }
0x11df   : > { %2924 = vmatpush.msra.mxu2 %v4603_v14  ;;  %v4671_v14 = vld [vmem:[%s8496_s28 + $0x3e0] sm:$0xff] }
0x11e1   : > { %2925 = vmatpush.msra.mxu2 %v4602_v21  ;;  %v4670_v21 = vld [vmem:[%s8496_s28 + $0x3d8] sm:$0xff] }
0x11e3   : > { %2926 = vmatpush.msra.mxu2 %v4601_v23  ;;  %v4669_v23 = vld [vmem:[%s8496_s28 + $0x3d0] sm:$0xff] }
0x11e5   : > { %2927 = vmatpush.msra.mxu2 %v4600_v24  ;;  %v4668_v24 = vld [vmem:[%s8496_s28 + $0x3c8] sm:$0xff] }
0x11e7   : > { %2928 = vmatpush.msra.mxu2 %v4599_v25  ;;  %v4667_v25 = vld [vmem:[%s8496_s28 + $0x3c0] sm:$0xff] }
0x124b   : > { %v2837_v27 = vpop.f32.mrf.mxu2 }
0x124c   : > { %4597 = vmatmul.msk.f32.vlgmr.msrb.gmra.mxu2 %vm1093_vm5, %v2837_v27  ;;  %v4665_v27 = vld [vmem:[%s8496_s28 + $0x3b0] sm:$0xff] }
0x124d   : > { %3188 = vmatpush.msrb.mxu2 %v4691_v26  ;;  %v4666_v26 = vld [vmem:[%s8496_s28 + $0x3b8] sm:$0xff] }
0x124f   : > { %3189 = vmatpush.msrb.mxu2 %v4690_v28  ;;  %v4664_v28 = vld [vmem:[%s8496_s28 + $0x3a8] sm:$0xff] }
0x1251   : > { %3190 = vmatpush.msrb.mxu2 %v4689_v31  ;;  %v4663_v31 = vld [vmem:[%s8496_s28 + $0x3a0] sm:$0xff] }
0x1253   : > { %3191 = vmatpush.msrb.mxu2 %v4688_v32  ;;  %v4662_v32 = vld [vmem:[%s8496_s28 + $0x398] sm:$0xff] }
0x1254   : > { %2929 = vmatmul.f32.vlgmr.msra.gmra.mxu2 %v6994_v53 }
0x1255   : > { %3192 = vmatpush.msrb.mxu2 %v4687_v55  ;;  %v4661_v55 = vld [vmem:[%s8496_s28 + $0x390] sm:$0xff] }
0x1257   : > { %3193 = vmatpush.msrb.mxu2 %v4686_v62  ;;  %v4660_v62 = vld [vmem:[%s8496_s28 + $0x388] sm:$0xff] }
0x1259   : > { %3194 = vmatpush.msrb.mxu2 %v4685_v33  ;;  %v4659_v33 = vld [vmem:[%s8496_s28 + $0x380] sm:$0xff] }
0x125b   : > { %3195 = vmatpush.msrb.mxu2 %v4684_v34 }
0x125d   : > { %3196 = vmatpush.msrb.mxu2 %v4683_v63 }
0x125f   : > { %3197 = vmatpush.msrb.mxu2 %v4682_v16 }
0x1261   : > { %3198 = vmatpush.msrb.mxu2 %v4681_v36 }
0x1263   : > { %3199 = vmatpush.msrb.mxu2 %v4680_v37  ;;  %v4896_v37 = vld [vmem:[%s8499_s6 + $0x7] ss:$0 sm:$0xff] }
0x1265   : > { %3200 = vmatpush.msrb.mxu2 %v4679_v18 }
0x1267   : > { %3201 = vmatpush.msrb.mxu2 %v4678_v40 }
0x1269   : > { %3202 = vmatpush.msrb.mxu2 %v4677_v41 }
0x126b   : > { %3203 = vmatpush.msrb.mxu2 %v4676_v42 }
0x126c   : > { %3204 = vmatmul.f32.vlgmr.msrb.gmra.mxu2 %v6994_v53 }
0x12cf   : > { %v7361_v44 = vpop.f32.mrf.mxu2 }
0x12d0   : > { %v2889_v63 = vadd.f32 %v7237_v38, %v7361_v44 }
0x12d7   : > { %v2930_v22 = vpop.f32.mrf.mxu2 }
0x12d8   : > { %v2931_v50 = vadd.f32 %v4894_v46, %v2930_v22 }
0x12da   : > { %v2933_v35 = vmul.f32 0.17677669, %v2931_v50 }
0x12dc   : > { %4651 = vmatmul.msk.f32.vlgmr.msrb.gmra.mxu1 %vm1093_vm5, %v2933_v35  ;;  %v4717_v35 = vld [vmem:[%s8460_s11 + $0xf8] sm:$0xff] }
0x12dd   : > { %3114 = vmatpush.msrb.mxu1 %v4657_v61 }
0x12df   : > { %3115 = vmatpush.msrb.mxu1 %v4656_v0  ;;  %v4714_v0 = vld [vmem:[%s8460_s11 + $0xe0] sm:$0xff] }
0x12e1   : > { %3116 = vmatpush.msrb.mxu1 %v4655_v1 }
0x12e3   : > { %3117 = vmatpush.msrb.mxu1 %v4654_v43 }
0x12ef   : > { %v3205_v56 = vpop.f32.mrf.mxu2 }
0x12f0   : > { %v3206_v57 = vadd.f32 %v4895_v51, %v3205_v56  ;;  %v4716_v51 = vld [vmem:[%s8460_s11 + $0xf0] sm:$0xff] }
0x12f2   : > { %4710 = vmatpush.xpose.msk.msra.mxu0 %vm1093_vm5, %v3206_v57 }
0x12f6   : > { %4712 = vmatpush.msk.msrb.mxu0 %vm934_vm0, %v3248_v47 }
0x1359   : > { %v3041_v49 = vpop.f32.mrf.mxu1 }
0x135a   : > { %v3044_v58 = vsel %vm1120_vm6, %v3041_v49, -inf }
0x135b   : > { %3045 = vmax.xlane.f32.xlu0 %v3044_v58 }
0x13ce   : > { %v3046_v17 = vpop.xlane.xlu0 %3045 }
0x13cf   : > { %v3047_v59 = vsub.f32 %v3041_v49, %v3046_v17 }
0x13d1   : > { %v3048_v39 = vmul.f32 1.442695, %v3047_v59 }
0x13d3   : > { %4951 = vpow2.f32 %v3048_v39 }
0x13d9   : > { %v4952_v60 = vpop.eup %4951 }
0x13da   : > { %v3050_v20 = vsel %vm1120_vm6, %v4952_v60, 0.0 }
0x13db   : > { %3051 = vadd.xlane.f32.xlu1 %v3050_v20 }
0x144e   : > { %v3052_v2 = vpop.xlane.xlu1 %3051 }
0x144f   : > { %4953 = vrcp.f32 %v3052_v2  ;;  %v3064_v5 = vand.u32 2147483648, %v3052_v2  ;;  %v3062_v7 = vand.u32 2147483647, %v3052_v2  ;;  %vm3058_vm10 = vweird.f32 %v3052_v2 }
0x1451   : > { %v3065_v8 = vor.u32 1.1754944e-38, %v3064_v5  ;;  %vm3063_vm13 = vcmp.eq.f32.partialorder %v3062_v7, 8.507059e+37  ;;  %v4783_v7 = vld [vmem:[%s8464_s15 + $0x3e8] sm:$0xff] }
0x1455   : > { %v4954_v3 = vpop.eup %4953 }
0x1456   : > { %v3054_v29 = vmul.f32 %v4954_v3, %v3052_v2  ;;  %vm3059_vm9 = vweird.f32 %v4954_v3 }
0x1457   : > { %vm3060_vm12 = vmor %vm3058_vm10, %vm3059_vm9 }
0x1458   : > { %v3055_v4 = vsub.f32 1.0, %v3054_v29 }
0x145a   : > { %v3056_v6 = vmul.f32 %v4954_v3, %v3055_v4 }
0x145c   : > { %v3057_v30 = vadd.f32 %v4954_v3, %v3056_v6  ;;  %v4782_v6 = vld [vmem:[%s8464_s15 + $0x3e0] sm:$0xff] }
0x145e   : > { %v3061_v11 = vsel %vm3060_vm12, %v4954_v3, %v3057_v30  ;;  %v4897_v3 = vld [vmem:[%s8461_s12 + $0x1] ss:$0 sm:$0xff]  ;;  %v4784_v30 = vld [vmem:[%s8464_s15 + $0x3f0] sm:$0xff] }
0x145f   : > { %v3066_v13 = vsel %vm3063_vm13, %v3065_v8, %v3061_v11  ;;  %v4778_v8 = vld [vmem:[%s8464_s15 + $0x3c0] sm:$0xff]  ;;  %v4779_v11 = vld [vmem:[%s8464_s15 + $0x3c8] sm:$0xff]  ;;  %3512 = vmatpush.msra.mxu2 %v4784_v30  ;;  %v4728_v30 = vld [vmem:[%s8464_s15 + $0x230] sm:$0xff] }
0x1460   : > { %v3067_v45 = vmul.f32 %v4952_v60, %v3066_v13  ;;  %v4780_v13 = vld [vmem:[%s8464_s15 + $0x3d0] sm:$0xff] }
0x1461   : > { %3513 = vmatpush.msra.mxu2 %v4780_v13  ;;  %v4724_v13 = vld [vmem:[%s8464_s15 + $0x210] sm:$0xff] }
0x1462   : > { %4653 = vmatmul.msk.f32.vlgmr.msra.gmra.mxu1 %vm1145_vm11, %v3067_v45  ;;  %v4781_v45 = vld [vmem:[%s8464_s15 + $0x3d8] sm:$0xff] }
0x1463   : > { %3145 = vmatpush.msra.mxu1 %v4674_v15 }
0x1465   : > { %3146 = vmatpush.msra.mxu1 %v4673_v19 }
0x1467   : > { %3147 = vmatpush.msra.mxu1 %v4672_v48 }
0x1469   : > { %3148 = vmatpush.msra.mxu1 %v4671_v14 }
0x146b   : > { %3149 = vmatpush.msra.mxu1 %v4670_v21 }
0x146d   : > { %3150 = vmatpush.msra.mxu1 %v4669_v23  ;;  %v4774_v23 = vld [vmem:[%s8464_s15 + $0x3a0] sm:$0xff] }
0x146f   : > { %3151 = vmatpush.msra.mxu1 %v4668_v24  ;;  %v4775_v24 = vld [vmem:[%s8464_s15 + $0x3a8] sm:$0xff] }
0x1471   : > { %3152 = vmatpush.msra.mxu1 %v4667_v25  ;;  %v4776_v25 = vld [vmem:[%s8464_s15 + $0x3b0] sm:$0xff] }
0x1472   : > { %3514 = vmatpush.msra.mxu2 %v4776_v25 }
0x1473   : > { %3153 = vmatpush.msra.mxu1 %v4666_v26  ;;  %v4777_v26 = vld [vmem:[%s8464_s15 + $0x3b8] sm:$0xff] }
0x1475   : > { %3154 = vmatpush.msra.mxu1 %v4665_v27  ;;  %v4770_v27 = vld [vmem:[%s8464_s15 + $0x380] sm:$0xff] }
0x1477   : > { %3155 = vmatpush.msra.mxu1 %v4664_v28  ;;  %v4771_v28 = vld [vmem:[%s8464_s15 + $0x388] sm:$0xff] }
0x1479   : > { %3156 = vmatpush.msra.mxu1 %v4663_v31  ;;  %v4772_v31 = vld [vmem:[%s8464_s15 + $0x390] sm:$0xff] }
0x147a   : > { %3515 = vmatpush.msra.mxu2 %v4772_v31 }
0x147b   : > { %3157 = vmatpush.msra.mxu1 %v4662_v32  ;;  %v4773_v32 = vld [vmem:[%s8464_s15 + $0x398] sm:$0xff] }
0x147d   : > { %3158 = vmatpush.msra.mxu1 %v4661_v55  ;;  %v4766_v55 = vld [vmem:[%s8464_s15 + $0x360] sm:$0xff] }
0x147f   : > { %3159 = vmatpush.msra.mxu1 %v4660_v62  ;;  %v4767_v62 = vld [vmem:[%s8464_s15 + $0x368] sm:$0xff] }
0x1481   : > { %3160 = vmatpush.msra.mxu1 %v4659_v33  ;;  %v4768_v33 = vld [vmem:[%s8464_s15 + $0x370] sm:$0xff] }
0x1482   : > { %3516 = vmatpush.msra.mxu2 %v4768_v33 }
0x14df   : > { %v3091_v34 = vpop.f32.mrf.mxu1 }
0x14e0   : > { %4658 = vmatmul.msk.f32.vlgmr.msrb.gmra.mxu1 %vm1093_vm5, %v3091_v34  ;;  %v4769_v34 = vld [vmem:[%s8464_s15 + $0x378] sm:$0xff] }
0x14e1   : > { %3492 = vmatpush.msrb.mxu1 %v4783_v7  ;;  %v4727_v7 = vld [vmem:[%s8464_s15 + $0x228] sm:$0xff] }
0x14e3   : > { %3493 = vmatpush.msrb.mxu1 %v4779_v11  ;;  %v4723_v11 = vld [vmem:[%s8464_s15 + $0x208] sm:$0xff] }
0x14e5   : > { %3494 = vmatpush.msrb.mxu1 %v4775_v24 }
0x14e7   : > { %3495 = vmatpush.msrb.mxu1 %v4771_v28  ;;  %v4898_v28 = vld [vmem:[%s8462_s13 + $0x1] ss:$0 sm:$0xff] }
0x14e8   : > { %3161 = vmatmul.f32.vlgmr.msra.gmra.mxu1 %v6994_v53 }
0x14e9   : > { %3496 = vmatpush.msrb.mxu1 %v4767_v62 }
0x155d   : > { %v3119_v16 = vpop.f32.mrf.mxu1 }
0x155e   : > { %v3122_v36 = vadd.f32 %v3119_v16, %v2889_v63  ;;  %v4762_v63 = vld [vmem:[%s8464_s15 + $0x340] sm:$0xff]  ;;  %v4763_v16 = vld [vmem:[%s8464_s15 + $0x348] sm:$0xff] }
0x155f   : > { %3497 = vmatpush.msrb.mxu1 %v4763_v16 }
0x1565   : > { %v3162_v18 = vpop.f32.mrf.mxu1 }
0x1566   : > { %v3163_v40 = vadd.f32 %v4896_v37, %v3162_v18  ;;  %v4765_v37 = vld [vmem:[%s8464_s15 + $0x358] sm:$0xff]  ;;  %v4758_v18 = vld [vmem:[%s8464_s15 + $0x320] sm:$0xff] }
0x1568   : > { %v3165_v41 = vmul.f32 0.17677669, %v3163_v40  ;;  %v4759_v40 = vld [vmem:[%s8464_s15 + $0x328] sm:$0xff] }
0x1569   : > { %3498 = vmatpush.msrb.mxu1 %v4759_v40  ;;  %v4802_v40 = vld [vmem:[%s8466_s17 + $0x278] sm:$0xff] }
0x156a   : > { %4711 = vmatmul.msk.f32.vlgmr.msra.gmra.mxu0 %vm1093_vm5, %v3165_v41  ;;  %v4760_v41 = vld [vmem:[%s8464_s15 + $0x330] sm:$0xff] }
0x156b   : > { %3346 = vmatpush.msra.mxu0 %v4717_v35  ;;  %v4752_v35 = vld [vmem:[%s8464_s15 + $0x2f0] sm:$0xff] }
0x156d   : > { %3347 = vmatpush.msra.mxu0 %v4716_v51  ;;  %v4753_v51 = vld [vmem:[%s8464_s15 + $0x2f8] sm:$0xff] }
0x156f   : > { %3348 = vmatpush.msra.mxu0 %v4715_v52  ;;  %v4746_v52 = vld [vmem:[%s8464_s15 + $0x2c0] sm:$0xff] }
0x1571   : > { %3349 = vmatpush.msra.mxu0 %v4714_v0  ;;  %v4735_v0 = vld [vmem:[%s8464_s15 + $0x268] sm:$0xff] }
0x15e7   : > { %v3273_v42 = vpop.f32.mrf.mxu0 }
0x15e8   : > { %v3276_v46 = vsel %vm1120_vm6, %v3273_v42, -inf }
0x15e9   : > { %3277 = vmax.xlane.f32.xlu2 %v3276_v46  ;;  %v4754_v46 = vld [vmem:[%s8464_s15 + $0x300] sm:$0xff] }
0x165c   : > { %v3278_v22 = vpop.xlane.xlu2 %3277 }
0x165d   : > { %v3279_v53 = vsub.f32 %v3273_v42, %v3278_v22  ;;  %v4761_v42 = vld [vmem:[%s8464_s15 + $0x338] sm:$0xff]  ;;  %v4755_v22 = vld [vmem:[%s8464_s15 + $0x308] sm:$0xff] }
0x165e   : > { %3499 = vmatpush.msrb.mxu1 %v4755_v22 }
0x165f   : > { %v3280_v50 = vmul.f32 1.442695, %v3279_v53  ;;  %v4756_v53 = vld [vmem:[%s8464_s15 + $0x310] sm:$0xff] }
0x1661   : > { %4955 = vpow2.f32 %v3280_v50  ;;  %v4757_v50 = vld [vmem:[%s8464_s15 + $0x318] sm:$0xff] }
0x1667   : > { %v4956_v38 = vpop.eup %4955 }
0x1668   : > { %v3282_v44 = vsel %vm1120_vm6, %v4956_v38, 0.0 }
0x1669   : > { %3283 = vadd.xlane.f32.xlu0 %v3282_v44  ;;  %v4751_v44 = vld [vmem:[%s8464_s15 + $0x2e8] sm:$0xff] }
0x166a   : > { %3500 = vmatpush.msrb.mxu1 %v4751_v44 }
0x16dc   : > { %v3284_v12 = vpop.xlane.xlu0 %3283 }
0x16dd   : > { %4957 = vrcp.f32 %v3284_v12  ;;  %v3296_v49 = vand.u32 2147483648, %v3284_v12  ;;  %v3294_v17 = vand.u32 2147483647, %v3284_v12  ;;  %vm3290_vm14 = vweird.f32 %v3284_v12 }
0x16df   : > { %v3297_v39 = vor.u32 1.1754944e-38, %v3296_v49  ;;  %vm3295_vm1 = vcmp.eq.f32.partialorder %v3294_v17, 8.507059e+37  ;;  %v4743_v49 = vld [vmem:[%s8464_s15 + $0x2a8] sm:$0xff]  ;;  %v4745_v17 = vld [vmem:[%s8464_s15 + $0x2b8] sm:$0xff] }
0x16e3   : > { %v4958_v56 = vpop.eup %4957 }
0x16e4   : > { %v3286_v57 = vmul.f32 %v4958_v56, %v3284_v12  ;;  %vm3291_vm6 = vweird.f32 %v4958_v56  ;;  %v4747_v12 = vld [vmem:[%s8464_s15 + $0x2c8] sm:$0xff] }
0x16e5   : > { %vm3292_vm15 = vmor %vm3290_vm14, %vm3291_vm6  ;;  %3501 = vmatpush.msrb.mxu1 %v4747_v12 }
0x16e6   : > { %v3287_v47 = vsub.f32 1.0, %v3286_v57  ;;  %v4749_v57 = vld [vmem:[%s8464_s15 + $0x2d8] sm:$0xff] }
0x16e7   : > { %3502 = vmatpush.msrb.mxu1 %v4743_v49 }
0x16e8   : > { %v3288_v58 = vmul.f32 %v4958_v56, %v3287_v47  ;;  %v4742_v47 = vld [vmem:[%s8464_s15 + $0x2a0] sm:$0xff] }
0x16ea   : > { %v3289_v59 = vadd.f32 %v4958_v56, %v3288_v58  ;;  %v4744_v58 = vld [vmem:[%s8464_s15 + $0x2b0] sm:$0xff] }
0x16ec   : > { %v3293_v60 = vsel %vm3292_vm15, %v4958_v56, %v3289_v59  ;;  %v4748_v56 = vld [vmem:[%s8464_s15 + $0x2d0] sm:$0xff]  ;;  %v4738_v59 = vld [vmem:[%s8464_s15 + $0x280] sm:$0xff] }
0x16ed   : > { %v3298_v20 = vsel %vm3295_vm1, %v3297_v39, %v3293_v60  ;;  %v4739_v39 = vld [vmem:[%s8464_s15 + $0x288] sm:$0xff]  ;;  %v4740_v60 = vld [vmem:[%s8464_s15 + $0x290] sm:$0xff] }
0x16ee   : > { %v3299_v61 = vmul.f32 %v4956_v38, %v3298_v20  ;;  %v4750_v38 = vld [vmem:[%s8464_s15 + $0x2e0] sm:$0xff]  ;;  %3503 = vmatpush.msrb.mxu1 %v4739_v39  ;;  %v4741_v20 = vld [vmem:[%s8464_s15 + $0x298] sm:$0xff] }
0x16ef   : > { %v4834_v39 = vld [vmem:[%s8466_s17 + $0x378] sm:$0xff] }
0x16f0   : > { %4713 = vmatmul.msk.f32.vlgmr.msrb.gmra.mxu0 %vm1145_vm11, %v3299_v61  ;;  %v4734_v61 = vld [vmem:[%s8464_s15 + $0x260] sm:$0xff]  ;;  %3504 = vmatpush.msrb.mxu1 %v4735_v0  ;;  %v4798_v0 = vld [vmem:[%s8466_s17 + $0x258] sm:$0xff] }
0x16f1   : > { %3472 = vmatpush.msrb.mxu0 %v4782_v6  ;;  %v4726_v6 = vld [vmem:[%s8464_s15 + $0x220] sm:$0xff] }
0x16f3   : > { %3473 = vmatpush.msrb.mxu0 %v4778_v8  ;;  %v4722_v8 = vld [vmem:[%s8464_s15 + $0x200] sm:$0xff] }
0x16f5   : > { %3474 = vmatpush.msrb.mxu0 %v4774_v23 }
0x16f7   : > { %3475 = vmatpush.msrb.mxu0 %v4770_v27 }
0x16f9   : > { %3476 = vmatpush.msrb.mxu0 %v4766_v55  ;;  %v4899_v55 = vld [vmem:[%s8463_s14 + $0x1] ss:$0 sm:$0xff] }
0x16fb   : > { %3477 = vmatpush.msrb.mxu0 %v4762_v63 }
0x16fd   : > { %3478 = vmatpush.msrb.mxu0 %v4758_v18 }
0x16ff   : > { %3479 = vmatpush.msrb.mxu0 %v4754_v46 }
0x1701   : > { %3480 = vmatpush.msrb.mxu0 %v4750_v38  ;;  %v4817_v38 = vld [vmem:[%s8466_s17 + $0x2f0] sm:$0xff] }
0x1703   : > { %3481 = vmatpush.msrb.mxu0 %v4746_v52  ;;  %v4816_v52 = vld [vmem:[%s8466_s17 + $0x2e8] sm:$0xff] }
0x1705   : > { %3482 = vmatpush.msrb.mxu0 %v4742_v47 }
0x1707   : > { %3483 = vmatpush.msrb.mxu0 %v4738_v59  ;;  %v4815_v59 = vld [vmem:[%s8466_s17 + $0x2e0] sm:$0xff] }
0x1709   : > { %3484 = vmatpush.msrb.mxu0 %v4734_v61  ;;  %v4850_v61 = vld [vmem:[%s8466_s17 + $0x3f8] sm:$0xff] }
0x176d   : > { %v3323_v1 = vpop.f32.mrf.mxu0 }
0x176e   : > { %4718 = vmatmul.msk.f32.vlgmr.msra.gmra.mxu0 %vm1093_vm5, %v3323_v1  ;;  %v4736_v1 = vld [vmem:[%s8464_s15 + $0x270] sm:$0xff] }
0x17eb   : > { %v3351_v43 = vpop.f32.mrf.mxu0 }
0x17ec   : > { %v3354_v2 = vadd.f32 %v3351_v43, %v3122_v36  ;;  %v4764_v36 = vld [vmem:[%s8464_s15 + $0x350] sm:$0xff]  ;;  %v4737_v43 = vld [vmem:[%s8464_s15 + $0x278] sm:$0xff] }
0x17ed   : > { %3517 = vmatpush.msra.mxu2 %v4764_v36 }
0x17ee   : > { %v3355_v29 = vadd.f32 %v3354_v2, %v6735_v9  ;;  %v4785_v9 = vld [vmem:[%s8464_s15 + $0x3f8] sm:$0xff]  ;;  %v4730_v2 = vld [vmem:[%s8464_s15 + $0x240] sm:$0xff] }
0x17ef   : > { %3532 = vmatpush.msra.mxu3 %v4785_v9  ;;  %3518 = vmatpush.msra.mxu2 %v4760_v41  ;;  %v4729_v9 = vld [vmem:[%s8464_s15 + $0x238] sm:$0xff] }
0x17f0   : > { %v7466_v4 = vadd.f32 %v4897_v3, %v3355_v29  ;;  %v4731_v3 = vld [vmem:[%s8464_s15 + $0x248] sm:$0xff]  ;;  %v4732_v29 = vld [vmem:[%s8464_s15 + $0x250] sm:$0xff]  ;;  %3485 = vmatpush.msrb.mxu0 %v4730_v2  ;;  %v4818_v41 = vld [vmem:[%s8466_s17 + $0x2f8] sm:$0xff] }
0x17f1   : > { %3533 = vmatpush.msra.mxu3 %v4781_v45  ;;  %3519 = vmatpush.msra.mxu2 %v4756_v53  ;;  %v4725_v45 = vld [vmem:[%s8464_s15 + $0x218] sm:$0xff]  ;;  %v4833_v2 = vld [vmem:[%s8466_s17 + $0x370] sm:$0xff] }
0x17f2   : > { %v3366_v5 = vsel %vm934_vm0, %v7466_v4, 0.0  ;;  %3505 = vmatpush.msrb.mxu1 %v4731_v3  ;;  %3486 = vmatpush.msrb.mxu0 %v4726_v6  ;;  %v4849_v3 = vld [vmem:[%s8466_s17 + $0x3f0] sm:$0xff] }
0x17f3   : > { %3367 = vadd.xlane.f32.xlu1 %v3366_v5  ;;  %3534 = vmatpush.msra.mxu3 %v4777_v26  ;;  %v4733_v5 = vld [vmem:[%s8464_s15 + $0x258] sm:$0xff]  ;;  %v4813_v6 = vld [vmem:[%s8466_s17 + $0x2d0] sm:$0xff] }
0x17f4   : > { %3520 = vmatpush.msra.mxu2 %v4752_v35  ;;  %3506 = vmatpush.msrb.mxu1 %v4727_v7  ;;  %v4832_v7 = vld [vmem:[%s8466_s17 + $0x368] sm:$0xff] }
0x17f5   : > { %3535 = vmatpush.msra.mxu3 %v4773_v32  ;;  %3487 = vmatpush.msrb.mxu0 %v4722_v8  ;;  %v4796_v8 = vld [vmem:[%s8466_s17 + $0x248] sm:$0xff] }
0x17f6   : > { %3521 = vmatpush.msra.mxu2 %v4748_v56  ;;  %3507 = vmatpush.msrb.mxu1 %v4723_v11  ;;  %v4812_v11 = vld [vmem:[%s8466_s17 + $0x2c8] sm:$0xff] }
0x17f7   : > { %3536 = vmatpush.msra.mxu3 %v4769_v34  ;;  %v4786_v34 = vld [vmem:[%s8465_s16 + $0x4] sm:$0xf]  ;;  %3782 = vmatpush.msra.mxu0 %v4802_v40  ;;  %v4809_v40 = vld [vmem:[%s8466_s17 + $0x2b0] sm:$0xff] }
0x17f8   : > { %3522 = vmatpush.msra.mxu2 %v4744_v58  ;;  %v3464_v63 = vperm.slane %v4786_v34, 0  ;;  %v3465_v16 = vperm.slane %v4786_v34, 1  ;;  %3802 = vmatpush.msra.mxu1 %v4818_v41  ;;  %v3466_v22 = vperm.slane %v4786_v34, 2  ;;  %v3467_v53 = vperm.slane %v4786_v34, 3  ;;  %v4845_v34 = vld [vmem:[%s8466_s17 + $0x3d0] sm:$0xff]  ;;  %v4828_v41 = vld [vmem:[%s8466_s17 + $0x348] sm:$0xff] }
0x17f9   : > { %3537 = vmatpush.msra.mxu3 %v4765_v37 }
0x17fa   : > { %3523 = vmatpush.msra.mxu2 %v4740_v60  ;;  %3803 = vmatpush.msra.mxu1 %v4817_v38  ;;  %v4844_v38 = vld [vmem:[%s8466_s17 + $0x3c8] sm:$0xff] }
0x17fb   : > { %3538 = vmatpush.msra.mxu3 %v4761_v42 }
0x17fc   : > { %3524 = vmatpush.msra.mxu2 %v4736_v1  ;;  %3804 = vmatpush.msra.mxu1 %v4816_v52  ;;  %v4814_v1 = vld [vmem:[%s8466_s17 + $0x2d8] sm:$0xff] }
0x17fd   : > { %3539 = vmatpush.msra.mxu3 %v4757_v50  ;;  %v4801_v50 = vld [vmem:[%s8466_s17 + $0x270] sm:$0xff] }
0x17fe   : > { %3525 = vmatpush.msra.mxu2 %v4732_v29  ;;  %3783 = vmatpush.msra.mxu0 %v4801_v50  ;;  %v4797_v29 = vld [vmem:[%s8466_s17 + $0x250] sm:$0xff] }
0x17ff   : > { %3540 = vmatpush.msra.mxu3 %v4753_v51  ;;  %v4800_v51 = vld [vmem:[%s8466_s17 + $0x268] sm:$0xff]  ;;  %3805 = vmatpush.msra.mxu1 %v4815_v59 }
0x1800   : > { %3526 = vmatpush.msra.mxu2 %v4728_v30  ;;  %3784 = vmatpush.msra.mxu0 %v4800_v51  ;;  %v4848_v30 = vld [vmem:[%s8466_s17 + $0x3e8] sm:$0xff] }
0x1801   : > { %3541 = vmatpush.msra.mxu3 %v4749_v57  ;;  %3806 = vmatpush.msra.mxu1 %v4814_v1 }
0x1802   : > { %3527 = vmatpush.msra.mxu2 %v4724_v13  ;;  %v4831_v13 = vld [vmem:[%s8466_s17 + $0x360] sm:$0xff] }
0x1803   : > { %3542 = vmatpush.msra.mxu3 %v4745_v17  ;;  %v4799_v17 = vld [vmem:[%s8466_s17 + $0x260] sm:$0xff]  ;;  %3807 = vmatpush.msra.mxu1 %v4813_v6 }
0x1804   : > { %3785 = vmatpush.msra.mxu0 %v4799_v17  ;;  %3822 = vmatpush.msrb.mxu2 %v4834_v39  ;;  %v4843_v39 = vld [vmem:[%s8466_s17 + $0x3c0] sm:$0xff] }
0x1805   : > { %3543 = vmatpush.msra.mxu3 %v4741_v20  ;;  %3808 = vmatpush.msra.mxu1 %v4812_v11  ;;  %v4825_v11 = vld [vmem:[%s8466_s17 + $0x330] sm:$0xff] }
0x1806   : > { %3786 = vmatpush.msra.mxu0 %v4798_v0  ;;  %3823 = vmatpush.msrb.mxu2 %v4833_v2  ;;  %v4826_v2 = vld [vmem:[%s8466_s17 + $0x338] sm:$0xff] }
0x1807   : > { %3544 = vmatpush.msra.mxu3 %v4737_v43 }
0x1808   : > { %3787 = vmatpush.msra.mxu0 %v4797_v29  ;;  %3824 = vmatpush.msrb.mxu2 %v4832_v7 }
0x1809   : > { %3545 = vmatpush.msra.mxu3 %v4733_v5 }
0x180a   : > { %3788 = vmatpush.msra.mxu0 %v4796_v8  ;;  %3825 = vmatpush.msrb.mxu2 %v4831_v13  ;;  %v4806_v8 = vld [vmem:[%s8466_s17 + $0x298] sm:$0xff] }
0x180b   : > { %3546 = vmatpush.msra.mxu3 %v4729_v9 }
0x180d   : > { %3547 = vmatpush.msra.mxu3 %v4725_v45  ;;  %v4847_v45 = vld [vmem:[%s8466_s17 + $0x3e0] sm:$0xff] }
0x180f   : > { %3842 = vmatpush.msrb.mxu3 %v4850_v61  ;;  %v4791_v61 = vld [vmem:[%s8466_s17 + $0x220] sm:$0xff] }
0x1811   : > { %3843 = vmatpush.msrb.mxu3 %v4849_v3  ;;  %v4842_v3 = vld [vmem:[%s8466_s17 + $0x3b8] sm:$0xff] }
0x1813   : > { %3844 = vmatpush.msrb.mxu3 %v4848_v30  ;;  %v4790_v30 = vld [vmem:[%s8466_s17 + $0x218] sm:$0xff] }
0x1815   : > { %3845 = vmatpush.msrb.mxu3 %v4847_v45 }
0x1866   : > { %v3368_v15 = vpop.xlane.xlu1 %3367 }
0x1867   : > { %v3369_v19 = vmul.f32 %v3368_v15, %v5484_v10 }
0x1869   : > { %v7496_v48 = vsub.f32 %v7466_v4, %v3369_v19 }
0x186b   : > { %v3371_v14 = vmul.f32 %v7496_v48, %v7496_v48 }
0x186d   : > { %v3372_v21 = vsel %vm934_vm0, %v3371_v14, 0.0 }
0x186e   : > { %3373 = vadd.xlane.f32.xlu2 %v3372_v21 }
0x18e1   : > { %v3374_v15 = vpop.xlane.xlu2 %3373 }
0x18e2   : > { %v3375_v19 = vmul.f32 %v3374_v15, %v5484_v10  ;;  %v4795_v15 = vld [vmem:[%s8466_s17 + $0x240] sm:$0xff] }
0x18e3   : > { %3789 = vmatpush.msra.mxu0 %v4795_v15 }
0x18e4   : > { %v3376_v14 = vadd.f32 1e-06, %v3375_v19 }
0x18e6   : > { %4959 = vrsqrt.f32 %v3376_v14  ;;  %vm3383_vm11 = vweird.f32 %v3376_v14 }
0x18ec   : > { %v4960_v21 = vpop.eup %4959 }
0x18ed   : > { %v3378_v23 = vmul.f32 %v4960_v21, %v3376_v14  ;;  %vm3384_vm5 = vweird.f32 %v4960_v21 }
0x18ee   : > { %vm3385_vm2 = vmor %vm3383_vm11, %vm3384_vm5 }
0x18ef   : > { %v3379_v24 = vmul.f32 %v4960_v21, %v3378_v23  ;;  %v4811_v23 = vld [vmem:[%s8466_s17 + $0x2c0] sm:$0xff] }
0x18f0   : > { %3809 = vmatpush.msra.mxu1 %v4811_v23 }
0x18f1   : > { %v3380_v25 = vmul.f32 0.5, %v3379_v24  ;;  %v4830_v24 = vld [vmem:[%s8466_s17 + $0x358] sm:$0xff] }
0x18f2   : > { %3826 = vmatpush.msrb.mxu2 %v4830_v24 }
0x18f3   : > { %v3381_v26 = vsub.f32 1.5, %v3380_v25  ;;  %v4846_v25 = vld [vmem:[%s8466_s17 + $0x3d8] sm:$0xff] }
0x18f4   : > { %3846 = vmatpush.msrb.mxu3 %v4846_v25  ;;  %v4805_v25 = vld [vmem:[%s8466_s17 + $0x290] sm:$0xff] }
0x18f5   : > { %v3382_v27 = vmul.f32 %v4960_v21, %v3381_v26 }
0x18f6   : > { %3847 = vmatpush.msrb.mxu3 %v4845_v34 }
0x18f7   : > { %v3386_v31 = vsel %vm3385_vm2, %v4960_v21, %v3382_v27 }
0x18f8   : > { %v3387_v32 = vmul.f32 %v3386_v31, %v7496_v48  ;;  %v4794_v31 = vld [vmem:[%s8466_s17 + $0x238] sm:$0xff]  ;;  %3848 = vmatpush.msrb.mxu3 %v4844_v38 }
0x18f9   : > { %3790 = vmatpush.msra.mxu0 %v4794_v31 }
0x18fa   : > { %v3391_v62 = vmul.f32 %v4898_v28, %v3387_v32  ;;  %v4810_v32 = vld [vmem:[%s8466_s17 + $0x2b8] sm:$0xff]  ;;  %3849 = vmatpush.msrb.mxu3 %v4843_v39 }
0x18fb   : > { %3810 = vmatpush.msra.mxu1 %v4810_v32 }
0x18fc   : > { %v3395_v33 = vadd.f32 %v4899_v55, %v3391_v62  ;;  %v4829_v55 = vld [vmem:[%s8466_s17 + $0x350] sm:$0xff]  ;;  %3850 = vmatpush.msrb.mxu3 %v4842_v3 }
0x18fd   : > { %3827 = vmatpush.msrb.mxu2 %v4829_v55  ;;  %3811 = vmatpush.msra.mxu1 %v4809_v40 }
0x18fe   : > { %3488 = vmatmul.f32.vlgmr.msrb.gmra.mxu0 %v3395_v33  ;;  %3508 = vmatmul.f32.vlgmr.msrb.gmra.mxu1 %v3395_v33 }
0x18ff   : > { %3528 = vmatmul.f32.vlgmr.msra.gmra.mxu2 %v3395_v33  ;;  %3548 = vmatmul.f32.vlgmr.msra.gmra.mxu3 %v3395_v33 }
0x1900   : > { %3828 = vmatpush.msrb.mxu2 %v4828_v41 }
0x197b   : > { %v3489_v36 = vpop.f32.mrf.mxu0  ;;  %v3509_v37 = vpop.f32.mrf.mxu1 }
0x197c   : > { %v7680_v18 = vadd.f32 %v3489_v36, %v3464_v63  ;;  %v7682_v48 = vadd.f32 %v3509_v37, %v3465_v16  ;;  %v4793_v63 = vld [vmem:[%s8466_s17 + $0x230] sm:$0xff] }
0x197d   : > { %3791 = vmatpush.msra.mxu0 %v4793_v63  ;;  %v4788_v63 = vld [vmem:[%s8466_s17 + $0x208] sm:$0xff] }
0x197e   : > { %v7691_v42 = vmul.f32 0.70710677, %v7680_v18  ;;  %v7694_v46 = vmul.f32 0.70710677, %v7682_v48 }
0x1980   : > { %v7703_v44 = vand.u32 2147483647, %v7691_v42  ;;  %v7706_v35 = vand.u32 2147483647, %v7694_v46 }
0x1982   : > { %v3572_v12 = vmul.f32 0.3275911, %v7703_v44  ;;  %v3573_v56 = vmul.f32 0.3275911, %v7706_v35  ;;  %v3529_v57 = vpop.f32.mrf.mxu2  ;;  %v3549_v47 = vpop.f32.mrf.mxu3  ;;  %v3676_v36 = vsub.f32 0.0, %v7703_v44  ;;  %v3677_v37 = vsub.f32 0.0, %v7706_v35 }
0x1983   : > { %v7716_v49 = vadd.f32 %v3529_v57, %v3466_v22  ;;  %v7718_v58 = vadd.f32 %v3549_v47, %v3467_v53  ;;  %v4808_v57 = vld [vmem:[%s8466_s17 + $0x2a8] sm:$0xff]  ;;  %v4827_v47 = vld [vmem:[%s8466_s17 + $0x340] sm:$0xff] }
0x1984   : > { %v7729_v60 = vadd.f32 1.0, %v3572_v12  ;;  %v7731_v20 = vadd.f32 1.0, %v3573_v56  ;;  %v4792_v56 = vld [vmem:[%s8466_s17 + $0x228] sm:$0xff]  ;;  %3812 = vmatpush.msra.mxu1 %v4808_v57  ;;  %3829 = vmatpush.msrb.mxu2 %v4827_v47  ;;  %v3680_v6 = vmul.f32 %v3676_v36, %v7703_v44  ;;  %v3681_v15 = vmul.f32 %v3677_v37, %v7706_v35  ;;  %v4789_v35 = vld [vmem:[%s8466_s17 + $0x210] sm:$0xff]  ;;  %v4823_v36 = vld [vmem:[%s8466_s17 + $0x320] sm:$0xff] }
0x1985   : > { %v7743_v43 = vmul.f32 0.70710677, %v7716_v49  ;;  %v7757_v5 = vmul.f32 0.70710677, %v7718_v58  ;;  %3792 = vmatpush.msra.mxu0 %v4792_v56  ;;  %v4822_v56 = vld [vmem:[%s8466_s17 + $0x318] sm:$0xff] }
0x1986   : > { %4961 = vrcp.f32 %v7729_v60  ;;  %v3591_v22 = vand.u32 2147483648, %v7729_v60  ;;  %v3589_v52 = vand.u32 2147483647, %v7729_v60  ;;  %v3606_v12 = vand.u32 2147483648, %v7731_v20  ;;  %3830 = vmatpush.msrb.mxu2 %v4826_v2 }
0x1987   : > { %4963 = vrcp.f32 %v7731_v20  ;;  %v7769_v9 = vand.u32 2147483647, %v7743_v43  ;;  %v7788_v14 = vand.u32 2147483647, %v7757_v5  ;;  %vm3585_vm4 = vweird.f32 %v7729_v60  ;;  %3793 = vmatpush.msra.mxu0 %v4791_v61 }
0x1988   : > { %v3604_v59 = vand.u32 2147483647, %v7731_v20  ;;  %v3592_v29 = vor.u32 1.1754944e-38, %v3591_v22  ;;  %vm3600_vm9 = vweird.f32 %v7731_v20  ;;  %vm3590_vm10 = vcmp.eq.f32.partialorder %v3589_v52, 8.507059e+37  ;;  %3831 = vmatpush.msrb.mxu2 %v4825_v11  ;;  %v4839_v22 = vld [vmem:[%s8466_s17 + $0x3a0] sm:$0xff] }
0x1989   : > { %v3574_v19 = vmul.f32 0.3275911, %v7769_v9  ;;  %v3575_v33 = vmul.f32 0.3275911, %v7788_v14  ;;  %v3607_v45 = vor.u32 1.1754944e-38, %v3606_v12  ;;  %3794 = vmatpush.msra.mxu0 %v4790_v30  ;;  %v4787_v52 = vld [vmem:[%s8466_s17 + $0x200] sm:$0xff] }
0x198a   : > { %vm3605_vm13 = vcmp.eq.f32.partialorder %v3604_v59, 8.507059e+37  ;;  %v3684_v41 = vmul.f32 1.442695, %v3680_v6  ;;  %v4803_v12 = vld [vmem:[%s8466_s17 + $0x280] sm:$0xff]  ;;  %v3686_v47 = vmul.f32 1.442695, %v3681_v15 }
0x198b   : > { %v7805_v28 = vadd.f32 1.0, %v3574_v19  ;;  %v7836_v50 = vadd.f32 1.0, %v3575_v33  ;;  %v4841_v19 = vld [vmem:[%s8466_s17 + $0x3b0] sm:$0xff]  ;;  %3795 = vmatpush.msra.mxu0 %v4789_v35  ;;  %v4838_v59 = vld [vmem:[%s8466_s17 + $0x398] sm:$0xff] }
0x198c   : > { %v7790_v21 = vpop.eup %4961  ;;  %3851 = vmatpush.msrb.mxu3 %v4841_v19 }
0x198d   : > { %v7801_v26 = vpop.eup %4963  ;;  %v3581_v27 = vmul.f32 %v7790_v21, %v7729_v60  ;;  %4965 = vrcp.f32 %v7805_v28  ;;  %vm3586_vm3 = vweird.f32 %v7790_v21  ;;  %v4807_v60 = vld [vmem:[%s8466_s17 + $0x2a0] sm:$0xff]  ;;  %v3619_v32 = vand.u32 2147483647, %v7805_v28  ;;  %3796 = vmatpush.msra.mxu0 %v4788_v63 }
0x198e   : > { %v3596_v62 = vmul.f32 %v7801_v26, %v7731_v20  ;;  %vm3601_vm7 = vweird.f32 %v7801_v26  ;;  %vm7869_vm8 = vmor %vm3585_vm4, %vm3586_vm3  ;;  %4967 = vrcp.f32 %v7836_v50  ;;  %3813 = vmatpush.msra.mxu1 %v4807_v60  ;;  %v3621_v55 = vand.u32 2147483648, %v7805_v28 }
0x198f   : > { %v3582_v16 = vsub.f32 1.0, %v3581_v27  ;;  %vm7899_vm12 = vmor %vm3600_vm9, %vm3601_vm7  ;;  %v4824_v27 = vld [vmem:[%s8466_s17 + $0x328] sm:$0xff]  ;;  %vm3615_vm14 = vweird.f32 %v7805_v28  ;;  %vm7961_vm15 = vcmp.eq.f32.partialorder %v3619_v32, 8.507059e+37  ;;  %3797 = vmatpush.msra.mxu0 %v4787_v52  ;;  %v3634_v2 = vand.u32 2147483647, %v7836_v50 }
0x1990   : > { %v3597_v53 = vsub.f32 1.0, %v3596_v62  ;;  %3814 = vmatpush.msra.mxu1 %v4806_v8  ;;  %v4840_v62 = vld [vmem:[%s8466_s17 + $0x3a8] sm:$0xff]  ;;  %3832 = vmatpush.msrb.mxu2 %v4824_v27  ;;  %v3622_v60 = vor.u32 1.1754944e-38, %v3621_v55  ;;  %v3636_v3 = vand.u32 2147483648, %v7836_v50  ;;  %4969 = vpow2.f32 %v3684_v41 }
0x1991   : > { %v3583_v51 = vmul.f32 %v7790_v21, %v3582_v16  ;;  %v4804_v16 = vld [vmem:[%s8466_s17 + $0x288] sm:$0xff]  ;;  %3852 = vmatpush.msrb.mxu3 %v4840_v62  ;;  %v3678_v20 = vsub.f32 0.0, %v7769_v9  ;;  %vm3630_vm11 = vweird.f32 %v7836_v50  ;;  %4971 = vpow2.f32 %v3686_v47 }
0x1992   : > { %v3598_v17 = vmul.f32 %v7801_v26, %v3597_v53  ;;  %3815 = vmatpush.msra.mxu1 %v4805_v25  ;;  %3833 = vmatpush.msrb.mxu2 %v4823_v36  ;;  %v4820_v8 = vld [vmem:[%s8466_s17 + $0x308] sm:$0xff]  ;;  %v3637_v35 = vor.u32 1.1754944e-38, %v3636_v3  ;;  %v4835_v25 = vld [vmem:[%s8466_s17 + $0x380] sm:$0xff]  ;;  %vm3635_vm3 = vcmp.eq.f32.partialorder %v3634_v2, 8.507059e+37  ;;  %vm3560_vm4 = vcmp.ge.f32.partialorder %v7691_v42, 0.0 }
0x1993   : > { %v3584_v0 = vadd.f32 %v7790_v21, %v3583_v51  ;;  %v7892_v13 = vpop.eup %4965  ;;  %3853 = vmatpush.msrb.mxu3 %v4839_v22  ;;  %v3682_v55 = vmul.f32 %v3678_v20, %v7769_v9  ;;  %vm3561_vm7 = vcmp.ge.f32.partialorder %v7694_v46, 0.0  ;;  %v3552_v46 = vmul.f32 0.5, %v7680_v18 }
0x1994   : > { %v3599_v7 = vadd.f32 %v7801_v26, %v3598_v17  ;;  %v3611_v24 = vmul.f32 %v7892_v13, %v7805_v28  ;;  %v7941_v37 = vpop.eup %4967  ;;  %vm3616_vm6 = vweird.f32 %v7892_v13  ;;  %3816 = vmatpush.msra.mxu1 %v4804_v16  ;;  %v4821_v28 = vld [vmem:[%s8466_s17 + $0x310] sm:$0xff]  ;;  %3834 = vmatpush.msrb.mxu2 %v4822_v56  ;;  %vm3563_vm9 = vcmp.ge.f32.partialorder %v7757_v5, 0.0 }
0x1995   : > { %v3588_v44 = vsel %vm7869_vm8, %v7790_v21, %v3584_v0  ;;  %v3626_v51 = vmul.f32 %v7941_v37, %v7836_v50  ;;  %vm3617_vm1 = vmor %vm3615_vm14, %vm3616_vm6  ;;  %vm3631_vm5 = vweird.f32 %v7941_v37  ;;  %3854 = vmatpush.msrb.mxu3 %v4838_v59  ;;  %vm3562_vm8 = vcmp.ge.f32.partialorder %v7743_v43, 0.0 }
0x1996   : > { %v7907_v23 = vsel %vm3590_vm10, %v3592_v29, %v3588_v44  ;;  %v3603_v21 = vsel %vm7899_vm12, %v7801_v26, %v3599_v7  ;;  %v3612_v34 = vsub.f32 1.0, %v3611_v24  ;;  %3817 = vmatpush.msra.mxu1 %v4803_v12  ;;  %v4837_v29 = vld [vmem:[%s8466_s17 + $0x390] sm:$0xff]  ;;  %3835 = vmatpush.msrb.mxu2 %v4821_v28  ;;  %vm3632_vm2 = vmor %vm3630_vm11, %vm3631_vm5  ;;  %v4970_v36 = vpop.eup %4969  ;;  %v3565_v28 = vsel %vm3561_vm7, 1.0, %v4988_v54 }
0x1997   : > { %v3640_v26 = vmul.f32 1.0614054, %v7907_v23  ;;  %v7924_v31 = vsel %vm3605_vm13, %v3607_v45, %v3603_v21  ;;  %v3627_v0 = vsub.f32 1.0, %v3626_v51  ;;  %3855 = vmatpush.msrb.mxu3 %v4837_v29  ;;  %v4819_v21 = vld [vmem:[%s8466_s17 + $0x300] sm:$0xff]  ;;  %v3688_v51 = vmul.f32 1.442695, %v3682_v55 }
0x1998   : > { %v3641_v33 = vmul.f32 1.0614054, %v7924_v31  ;;  %v3613_v38 = vmul.f32 %v7892_v13, %v3612_v34  ;;  %3836 = vmatpush.msrb.mxu2 %v4820_v8  ;;  %v3553_v29 = vmul.f32 0.5, %v7682_v48  ;;  %vm4216_vm13 = vcmask 1040384  }
0x1999   : > { %v3644_v40 = vadd.f32 -1.4531521, %v3640_v26  ;;  %v3628_v30 = vmul.f32 %v7941_v37, %v3627_v0  ;;  %4973 = vpow2.f32 %v3688_v51  ;;  %v4009_v51 = vld [vmem:[%s8470_s21 + $0x390] sm:$0xff]  ;;  %vm4218_vm6 = vcmask 1042434  }
0x199a   : > { %v3645_v53 = vadd.f32 -1.4531521, %v3641_v33  ;;  %v3614_v61 = vadd.f32 %v7892_v13, %v3613_v38  ;;  %v3679_v33 = vsub.f32 0.0, %v7788_v14  ;;  %3837 = vmatpush.msrb.mxu2 %v4819_v21  ;;  %v3566_v21 = vsel %vm3562_vm8, 1.0, %v4988_v54 }
0x199b   : > { %v3648_v57 = vmul.f32 %v3644_v40, %v7907_v23  ;;  %v3629_v19 = vadd.f32 %v7941_v37, %v3628_v30  ;;  %vm4220_vm14 = vcmask 1041408   ;;  %vm4226_vm5 = vcmask 1045508  }
0x199c   : > { %v3649_v39 = vmul.f32 %v3645_v53, %v7924_v31  ;;  %v3618_v7 = vsel %vm3617_vm1, %v7892_v13, %v3614_v61  ;;  %v4836_v13 = vld [vmem:[%s8466_s17 + $0x388] sm:$0xff]  ;;  %v4972_v53 = vpop.eup %4971  ;;  %v3683_v9 = vmul.f32 %v3679_v33, %v7788_v14  ;;  %vm4224_vm1 = vcmask 1046534  }
0x199d   : > { %v3652_v1 = vadd.f32 1.4214138, %v3648_v57  ;;  %v7989_v44 = vsel %vm7961_vm15, %v3622_v60, %v3618_v7  ;;  %v3633_v50 = vsel %vm3632_vm2, %v7941_v37, %v3629_v19  ;;  %3856 = vmatpush.msrb.mxu3 %v4836_v13  ;;  %vm4222_vm15 = vcmask 1044484  }
0x199e   : > { %v3653_v6 = vadd.f32 1.4214138, %v3649_v39  ;;  %v3642_v15 = vmul.f32 1.0614054, %v7989_v44  ;;  %v3638_v62 = vsel %vm3635_vm3, %v3637_v35, %v3633_v50  ;;  %v3690_v61 = vmul.f32 1.442695, %v3683_v9 }
0x199f   : > { %v3656_v11 = vmul.f32 %v3652_v1, %v7907_v23  ;;  %v3643_v16 = vmul.f32 1.0614054, %v3638_v62  ;;  %3857 = vmatpush.msrb.mxu3 %v4835_v25  ;;  %v4974_v8 = vpop.eup %4973  ;;  %v3555_v50 = vmul.f32 0.5, %v7718_v58  ;;  %v4010_v9 = vld [vmem:[%s8470_s21 + $0x398] sm:$0xff]  ;;  %vm4228_vm11 = vcmask 1043456  }
0x19a0   : > { %v3657_v45 = vmul.f32 %v3653_v6, %v7924_v31  ;;  %v3646_v26 = vadd.f32 -1.4531521, %v3642_v15  ;;  %4975 = vpow2.f32 %v3690_v61  ;;  %v3983_v61 = vld [vmem:[%s8470_s21 + $0x2c0] sm:$0xff] }
0x19a1   : > { %v3660_v24 = vadd.f32 -0.28449672, %v3656_v11  ;;  %v3647_v22 = vadd.f32 -1.4531521, %v3643_v16 }
0x19a2   : > { %v3661_v27 = vadd.f32 -0.28449672, %v3657_v45  ;;  %v3650_v63 = vmul.f32 %v3646_v26, %v7989_v44 }
0x19a3   : > { %v3664_v32 = vmul.f32 %v3660_v24, %v7907_v23  ;;  %v3651_v56 = vmul.f32 %v3647_v22, %v3638_v62  ;;  %v4017_v22 = vld [vmem:[%s8470_s21 + $0x3d0] sm:$0xff] }
0x19a4   : > { %v3665_v34 = vmul.f32 %v3661_v27, %v7924_v31  ;;  %v3654_v37 = vadd.f32 1.4214138, %v3650_v63  ;;  %v3567_v27 = vsel %vm3563_vm9, 1.0, %v4988_v54  ;;  %4081 = vmatpush.msra.mxu2 %v4017_v22  ;;  %v3895_v22 = vld [vmem:[%s8470_s21] sm:$0xff] }
0x19a5   : > { %v3668_v40 = vadd.f32 0.2548296, %v3664_v32  ;;  %v3655_v59 = vadd.f32 1.4214138, %v3651_v56  ;;  %v4001_v56 = vld [vmem:[%s8470_s21 + $0x350] sm:$0xff] }
0x19a6   : > { %v3669_v41 = vadd.f32 0.2548296, %v3665_v34  ;;  %v3658_v12 = vmul.f32 %v3654_v37, %v7989_v44  ;;  %v4976_v18 = vpop.eup %4975  ;;  %v4016_v37 = vld [vmem:[%s8470_s21 + $0x3c8] sm:$0xff]  ;;  %4082 = vmatpush.msra.mxu2 %v4009_v51  ;;  %v4019_v51 = vld [vmem:[%s8470_s21 + $0x3e0] sm:$0xff] }
0x19a7   : > { %v3672_v38 = vmul.f32 %v3668_v40, %v7907_v23  ;;  %v3564_v23 = vsel %vm3560_vm4, 1.0, %v4988_v54  ;;  %4061 = vmatpush.msrb.mxu1 %v4016_v37  ;;  %v3906_v37 = vld [vmem:[%s8470_s21 + $0x58] sm:$0xff] }
0x19a8   : > { %v3673_v52 = vmul.f32 %v3669_v41, %v7924_v31  ;;  %v3662_v17 = vadd.f32 -0.28449672, %v3658_v12  ;;  %v3659_v31 = vmul.f32 %v3655_v59, %v3638_v62  ;;  %v4015_v41 = vld [vmem:[%s8470_s21 + $0x3c0] sm:$0xff]  ;;  %v4000_v12 = vld [vmem:[%s8470_s21 + $0x348] sm:$0xff]  ;;  %v3993_v59 = vld [vmem:[%s8470_s21 + $0x310] sm:$0xff]  ;;  %4083 = vmatpush.msra.mxu2 %v4001_v56 }
0x19a9   : > { %v3692_v57 = vmul.f32 %v4970_v36, %v3672_v38  ;;  %4041 = vmatpush.msrb.mxu0 %v4015_v41  ;;  %v4008_v38 = vld [vmem:[%s8470_s21 + $0x388] sm:$0xff]  ;;  %v3905_v41 = vld [vmem:[%s8470_s21 + $0x50] sm:$0xff]  ;;  %v4011_v56 = vld [vmem:[%s8470_s21 + $0x3a0] sm:$0xff] }
0x19aa   : > { %v3693_v47 = vmul.f32 %v4972_v53, %v3673_v52  ;;  %v3666_v14 = vmul.f32 %v3662_v17, %v7989_v44  ;;  %v3663_v2 = vadd.f32 -0.28449672, %v3659_v31  ;;  %v4007_v53 = vld [vmem:[%s8470_s21 + $0x380] sm:$0xff]  ;;  %4062 = vmatpush.msrb.mxu1 %v4008_v38  ;;  %v3992_v17 = vld [vmem:[%s8470_s21 + $0x308] sm:$0xff]  ;;  %4084 = vmatpush.msra.mxu2 %v3993_v59  ;;  %v3898_v38 = vld [vmem:[%s8470_s21 + $0x18] sm:$0xff] }
0x19ab   : > { %v3696_v39 = vsub.f32 1.0, %v3692_v57  ;;  %v3999_v52 = vld [vmem:[%s8470_s21 + $0x340] sm:$0xff]  ;;  %4042 = vmatpush.msrb.mxu0 %v4007_v53  ;;  %v4002_v57 = vld [vmem:[%s8470_s21 + $0x358] sm:$0xff]  ;;  %v3897_v53 = vld [vmem:[%s8470_s21 + $0x10] sm:$0xff] }
0x19ac   : > { %v3697_v60 = vsub.f32 1.0, %v3693_v47  ;;  %v3670_v42 = vadd.f32 0.2548296, %v3666_v14  ;;  %v3667_v30 = vmul.f32 %v3663_v2, %v3638_v62  ;;  %v3991_v47 = vld [vmem:[%s8470_s21 + $0x300] sm:$0xff]  ;;  %4063 = vmatpush.msrb.mxu1 %v4000_v12  ;;  %v3986_v14 = vld [vmem:[%s8470_s21 + $0x2d8] sm:$0xff]  ;;  %v3968_v2 = vld [vmem:[%s8470_s21 + $0x248] sm:$0xff] }
0x19ad   : > { %v3700_v0 = vmul.f32 %v3696_v39, %v3564_v23  ;;  %4043 = vmatpush.msrb.mxu0 %v3999_v52  ;;  %v3994_v39 = vld [vmem:[%s8470_s21 + $0x318] sm:$0xff]  ;;  %v3984_v23 = vld [vmem:[%s8470_s21 + $0x2c8] sm:$0xff]  ;;  %v3975_v31 = vld [vmem:[%s8470_s21 + $0x280] sm:$0xff] }
0x19ae   : > { %v3701_v1 = vmul.f32 %v3697_v60, %v3565_v28  ;;  %v3674_v7 = vmul.f32 %v3670_v42, %v7989_v44  ;;  %v3671_v45 = vadd.f32 0.2548296, %v3667_v30  ;;  %v3554_v44 = vmul.f32 0.5, %v7716_v49  ;;  %4064 = vmatpush.msrb.mxu1 %v3992_v17  ;;  %v3985_v60 = vld [vmem:[%s8470_s21 + $0x2d0] sm:$0xff]  ;;  %v3967_v42 = vld [vmem:[%s8470_s21 + $0x240] sm:$0xff]  ;;  %v3962_v30 = vld [vmem:[%s8470_s21 + $0x218] sm:$0xff] }
0x19af   : > { %v3704_v3 = vadd.f32 1.0, %v3700_v0  ;;  %4044 = vmatpush.msrb.mxu0 %v3991_v47  ;;  %v3976_v0 = vld [vmem:[%s8470_s21 + $0x288] sm:$0xff]  ;;  %v3977_v28 = vld [vmem:[%s8470_s21 + $0x290] sm:$0xff]  ;;  %4085 = vmatpush.msra.mxu2 %v3985_v60  ;;  %v4022_v12 = vld [vmem:[%s8470_s21 + $0x3f8] sm:$0xff] }
0x19b0   : > { %v3705_v6 = vadd.f32 1.0, %v3701_v1  ;;  %v3694_v13 = vmul.f32 %v4974_v8, %v3674_v7  ;;  %v3675_v19 = vmul.f32 %v3671_v45, %v3638_v62  ;;  %v4900_v62 = vld [vmem:[%s8467_s18 + $0x1] ss:$0 sm:$0xff]  ;;  %4065 = vmatpush.msrb.mxu1 %v3984_v23  ;;  %v3978_v1 = vld [vmem:[%s8470_s21 + $0x298] sm:$0xff]  ;;  %v3961_v7 = vld [vmem:[%s8470_s21 + $0x210] sm:$0xff] }
0x19b1   : > { %v3708_v11 = vmul.f32 %v3704_v3, %v3552_v46  ;;  %4045 = vmatpush.msrb.mxu0 %v3983_v61  ;;  %v3969_v46 = vld [vmem:[%s8470_s21 + $0x250] sm:$0xff]  ;;  %v3970_v3 = vld [vmem:[%s8470_s21 + $0x258] sm:$0xff]  ;;  %4086 = vmatpush.msra.mxu2 %v3977_v28  ;;  %v3951_v8 = vld [vmem:[%s8470_s21 + $0x1c0] sm:$0xff] }
0x19b2   : > { %v3709_v20 = vmul.f32 %v3705_v6, %v3553_v29  ;;  %v3698_v15 = vsub.f32 1.0, %v3694_v13  ;;  %v3695_v48 = vmul.f32 %v4976_v18, %v3675_v19  ;;  %4066 = vmatpush.msrb.mxu1 %v3976_v0  ;;  %v3959_v29 = vld [vmem:[%s8470_s21 + $0x200] sm:$0xff]  ;;  %v3960_v6 = vld [vmem:[%s8470_s21 + $0x208] sm:$0xff]  ;;  %v3954_v13 = vld [vmem:[%s8470_s21 + $0x1d8] sm:$0xff] }
0x19b3   : > { %3798 = vmatmul.f32.vlgmr.msra.gmra.mxu0 %v3708_v11  ;;  %4087 = vmatpush.msra.mxu2 %v3969_v46  ;;  %v3952_v11 = vld [vmem:[%s8470_s21 + $0x1c8] sm:$0xff]  ;;  %v3943_v45 = vld [vmem:[%s8470_s21 + $0x180] sm:$0xff]  ;;  %v3945_v19 = vld [vmem:[%s8470_s21 + $0x190] sm:$0xff] }
0x19b4   : > { %3818 = vmatmul.f32.vlgmr.msra.gmra.mxu1 %v3709_v20  ;;  %v3702_v24 = vmul.f32 %v3698_v15, %v3566_v21  ;;  %v3699_v25 = vsub.f32 1.0, %v3695_v48  ;;  %4046 = vmatpush.msrb.mxu0 %v3975_v31  ;;  %v3953_v20 = vld [vmem:[%s8470_s21 + $0x1d0] sm:$0xff]  ;;  %v3944_v15 = vld [vmem:[%s8470_s21 + $0x188] sm:$0xff]  ;;  %v3946_v18 = vld [vmem:[%s8470_s21 + $0x198] sm:$0xff] }
0x19b5   : > { %4067 = vmatpush.msrb.mxu1 %v3968_v2  ;;  %4088 = vmatpush.msra.mxu2 %v3961_v7  ;;  %v3935_v21 = vld [vmem:[%s8470_s21 + $0x140] sm:$0xff]  ;;  %v3937_v48 = vld [vmem:[%s8470_s21 + $0x150] sm:$0xff]  ;;  %v4014_v17 = vld [vmem:[%s8470_s21 + $0x3b8] sm:$0xff] }
0x19b6   : > { %v3706_v35 = vadd.f32 1.0, %v3702_v24  ;;  %v3703_v26 = vmul.f32 %v3699_v25, %v3567_v27  ;;  %4047 = vmatpush.msrb.mxu0 %v3967_v42  ;;  %v3936_v24 = vld [vmem:[%s8470_s21 + $0x148] sm:$0xff]  ;;  %v3929_v27 = vld [vmem:[%s8470_s21 + $0x110] sm:$0xff]  ;;  %v4003_v59 = vld [vmem:[%s8470_s21 + $0x360] sm:$0xff] }
0x19b7   : > { %4068 = vmatpush.msrb.mxu1 %v3960_v6  ;;  %4089 = vmatpush.msra.mxu2 %v3953_v20  ;;  %v3928_v25 = vld [vmem:[%s8470_s21 + $0x108] sm:$0xff]  ;;  %v4021_v52 = vld [vmem:[%s8470_s21 + $0x3f0] sm:$0xff]  ;;  %v4006_v23 = vld [vmem:[%s8470_s21 + $0x378] sm:$0xff] }
0x19b8   : > { %v3710_v43 = vmul.f32 %v3706_v35, %v3554_v44  ;;  %v3707_v32 = vadd.f32 1.0, %v3703_v26  ;;  %4048 = vmatpush.msrb.mxu0 %v3959_v29  ;;  %v3938_v44 = vld [vmem:[%s8470_s21 + $0x158] sm:$0xff]  ;;  %v3927_v35 = vld [vmem:[%s8470_s21 + $0x100] sm:$0xff]  ;;  %v4013_v47 = vld [vmem:[%s8470_s21 + $0x3b0] sm:$0xff] }
0x19b9   : > { %4069 = vmatpush.msrb.mxu1 %v3952_v11  ;;  %4090 = vmatpush.msra.mxu2 %v3945_v19  ;;  %v3919_v26 = vld [vmem:[%s8470_s21 + $0xc0] sm:$0xff]  ;;  %v4005_v61 = vld [vmem:[%s8470_s21 + $0x370] sm:$0xff]  ;;  %v3998_v0 = vld [vmem:[%s8470_s21 + $0x338] sm:$0xff] }
0x19ba   : > { %3838 = vmatmul.f32.vlgmr.msrb.gmra.mxu2 %v3710_v43  ;;  %v3711_v55 = vmul.f32 %v3707_v32, %v3555_v50  ;;  %4049 = vmatpush.msrb.mxu0 %v3951_v8  ;;  %v3930_v43 = vld [vmem:[%s8470_s21 + $0x118] sm:$0xff]  ;;  %v3920_v50 = vld [vmem:[%s8470_s21 + $0xc8] sm:$0xff]  ;;  %v3921_v32 = vld [vmem:[%s8470_s21 + $0xd0] sm:$0xff] }
0x19bb   : > { %4070 = vmatpush.msrb.mxu1 %v3944_v15  ;;  %4091 = vmatpush.msra.mxu2 %v3937_v48  ;;  %v3995_v60 = vld [vmem:[%s8470_s21 + $0x320] sm:$0xff]  ;;  %v3997_v31 = vld [vmem:[%s8470_s21 + $0x330] sm:$0xff]  ;;  %v3990_v2 = vld [vmem:[%s8470_s21 + $0x2f8] sm:$0xff] }
0x19bc   : > { %3858 = vmatmul.f32.vlgmr.msrb.gmra.mxu3 %v3711_v55  ;;  %4050 = vmatpush.msrb.mxu0 %v3943_v45  ;;  %v3922_v55 = vld [vmem:[%s8470_s21 + $0xd8] sm:$0xff]  ;;  %v3987_v28 = vld [vmem:[%s8470_s21 + $0x2e0] sm:$0xff]  ;;  %v3989_v42 = vld [vmem:[%s8470_s21 + $0x2f0] sm:$0xff] }
0x19bd   : > { %4071 = vmatpush.msrb.mxu1 %v3936_v24  ;;  %4092 = vmatpush.msra.mxu2 %v3929_v27  ;;  %v3979_v46 = vld [vmem:[%s8470_s21 + $0x2a0] sm:$0xff]  ;;  %v3981_v29 = vld [vmem:[%s8470_s21 + $0x2b0] sm:$0xff]  ;;  %v3982_v6 = vld [vmem:[%s8470_s21 + $0x2b8] sm:$0xff] }
0x19be   : > { %4051 = vmatpush.msrb.mxu0 %v3935_v21  ;;  %v3971_v7 = vld [vmem:[%s8470_s21 + $0x260] sm:$0xff]  ;;  %v3973_v8 = vld [vmem:[%s8470_s21 + $0x270] sm:$0xff]  ;;  %v3974_v11 = vld [vmem:[%s8470_s21 + $0x278] sm:$0xff] }
0x19bf   : > { %4072 = vmatpush.msrb.mxu1 %v3928_v25  ;;  %4093 = vmatpush.msra.mxu2 %v3921_v32  ;;  %v3963_v20 = vld [vmem:[%s8470_s21 + $0x220] sm:$0xff]  ;;  %v3965_v45 = vld [vmem:[%s8470_s21 + $0x230] sm:$0xff]  ;;  %v3966_v15 = vld [vmem:[%s8470_s21 + $0x238] sm:$0xff] }
0x19c0   : > { %4052 = vmatpush.msrb.mxu0 %v3927_v35  ;;  %v3955_v19 = vld [vmem:[%s8470_s21 + $0x1e0] sm:$0xff]  ;;  %v3957_v21 = vld [vmem:[%s8470_s21 + $0x1f0] sm:$0xff]  ;;  %v3958_v24 = vld [vmem:[%s8470_s21 + $0x1f8] sm:$0xff] }
0x19c1   : > { %4073 = vmatpush.msrb.mxu1 %v3920_v50  ;;  %v3947_v48 = vld [vmem:[%s8470_s21 + $0x1a0] sm:$0xff]  ;;  %v3949_v35 = vld [vmem:[%s8470_s21 + $0x1b0] sm:$0xff]  ;;  %v3950_v25 = vld [vmem:[%s8470_s21 + $0x1b8] sm:$0xff] }
0x19c2   : > { %4053 = vmatpush.msrb.mxu0 %v3919_v26  ;;  %v3939_v27 = vld [vmem:[%s8470_s21 + $0x160] sm:$0xff]  ;;  %v3941_v26 = vld [vmem:[%s8470_s21 + $0x170] sm:$0xff]  ;;  %v3942_v50 = vld [vmem:[%s8470_s21 + $0x178] sm:$0xff] }
0x19c3   : > { %v3931_v32 = vld [vmem:[%s8470_s21 + $0x120] sm:$0xff] }
0x1a30   : > { %v3799_v5 = vpop.f32.mrf.mxu0 }
0x1a31   : > { %v3800_v33 = vadd.f32 %v4900_v62, %v3799_v5  ;;  %v3819_v34 = vpop.f32.mrf.mxu1 }
0x1a33   : > { %v3820_v49 = vadd.f32 %v3819_v34, %v3800_v33 }
0x1a3d   : > { %v3839_v63 = vpop.f32.mrf.mxu2 }
0x1a3e   : > { %v3840_v16 = vadd.f32 %v3839_v63, %v3820_v49  ;;  %v3911_v63 = vld [vmem:[%s8470_s21 + $0x80] sm:$0xff] }
0x1a3f   : > { %v3859_v36 = vpop.f32.mrf.mxu3  ;;  %4054 = vmatpush.msrb.mxu0 %v3911_v63  ;;  %v3924_v63 = vld [vmem:[%s8470_s21 + $0xe8] sm:$0xff] }
0x1a40   : > { %v3860_v54 = vadd.f32 %v3859_v36, %v3840_v16  ;;  %v3912_v16 = vld [vmem:[%s8470_s21 + $0x88] sm:$0xff]  ;;  %v3913_v36 = vld [vmem:[%s8470_s21 + $0x90] sm:$0xff] }
0x1a41   : > { %4074 = vmatpush.msrb.mxu1 %v3912_v16  ;;  %4094 = vmatpush.msra.mxu2 %v3913_v36  ;;  %v3925_v36 = vld [vmem:[%s8470_s21 + $0xf0] sm:$0xff] }
0x1a42   : > { %v8035_v40 = vadd.f32 %v3860_v54, %v7466_v4  ;;  %v4018_v4 = vld [vmem:[%s8470_s21 + $0x3d8] sm:$0xff] }
0x1a43   : > { %4101 = vmatpush.msra.mxu3 %v4018_v4  ;;  %v3914_v54 = vld [vmem:[%s8470_s21 + $0x98] sm:$0xff]  ;;  %4095 = vmatpush.msra.mxu2 %v3905_v41  ;;  %v3896_v4 = vld [vmem:[%s8470_s21 + $0x8] sm:$0xff]  ;;  %v3917_v41 = vld [vmem:[%s8470_s21 + $0xb0] sm:$0xff] }
0x1a44   : > { %v3865_v58 = vsel %vm934_vm0, %v8035_v40, 0.0 }
0x1a45   : > { %3866 = vadd.xlane.f32.xlu0 %v3865_v58  ;;  %4102 = vmatpush.msra.mxu3 %v4010_v9  ;;  %v3904_v58 = vld [vmem:[%s8470_s21 + $0x48] sm:$0xff] }
0x1a46   : > { %4075 = vmatpush.msrb.mxu1 %v3904_v58  ;;  %v4020_v9 = vld [vmem:[%s8470_s21 + $0x3e8] sm:$0xff]  ;;  %4096 = vmatpush.msra.mxu2 %v3897_v53  ;;  %v3909_v53 = vld [vmem:[%s8470_s21 + $0x70] sm:$0xff] }
0x1a47   : > { %4103 = vmatpush.msra.mxu3 %v4002_v57  ;;  %v4012_v57 = vld [vmem:[%s8470_s21 + $0x3a8] sm:$0xff] }
0x1a48   : > { %4076 = vmatpush.msrb.mxu1 %v3896_v4  ;;  %4161 = vmatpush.msrb.mxu2 %v4021_v52  ;;  %v3908_v4 = vld [vmem:[%s8470_s21 + $0x68] sm:$0xff]  ;;  %v3901_v52 = vld [vmem:[%s8470_s21 + $0x30] sm:$0xff] }
0x1a49   : > { %4104 = vmatpush.msra.mxu3 %v3994_v39  ;;  %v4004_v39 = vld [vmem:[%s8470_s21 + $0x368] sm:$0xff] }
0x1a4a   : > { %4141 = vmatpush.msra.mxu1 %v4020_v9  ;;  %4162 = vmatpush.msrb.mxu2 %v4013_v47  ;;  %v3900_v9 = vld [vmem:[%s8470_s21 + $0x28] sm:$0xff] }
0x1a4b   : > { %4105 = vmatpush.msra.mxu3 %v3986_v14  ;;  %v3996_v14 = vld [vmem:[%s8470_s21 + $0x328] sm:$0xff] }
0x1a4c   : > { %4142 = vmatpush.msra.mxu1 %v4012_v57  ;;  %4163 = vmatpush.msrb.mxu2 %v4005_v61  ;;  %v4901_v61 = vld [vmem:[%s8468_s19] ss:$0 sm:$0xff] }
0x1a4d   : > { %4106 = vmatpush.msra.mxu3 %v3978_v1  ;;  %v3988_v1 = vld [vmem:[%s8470_s21 + $0x2e8] sm:$0xff] }
0x1a4e   : > { %4143 = vmatpush.msra.mxu1 %v4004_v39  ;;  %4164 = vmatpush.msrb.mxu2 %v3997_v31 }
0x1a4f   : > { %4107 = vmatpush.msra.mxu3 %v3970_v3  ;;  %v3980_v3 = vld [vmem:[%s8470_s21 + $0x2a8] sm:$0xff] }
0x1a50   : > { %4144 = vmatpush.msra.mxu1 %v3996_v14  ;;  %4165 = vmatpush.msrb.mxu2 %v3989_v42  ;;  %v4023_v42 = vld [vmem:[%s8471_s22] sm:$0xff] }
0x1a51   : > { %4108 = vmatpush.msra.mxu3 %v3962_v30  ;;  %v3972_v30 = vld [vmem:[%s8470_s21 + $0x268] sm:$0xff] }
0x1a52   : > { %4145 = vmatpush.msra.mxu1 %v3988_v1  ;;  %4166 = vmatpush.msrb.mxu2 %v3981_v29 }
0x1a53   : > { %4109 = vmatpush.msra.mxu3 %v3954_v13  ;;  %v3964_v13 = vld [vmem:[%s8470_s21 + $0x228] sm:$0xff] }
0x1a54   : > { %4146 = vmatpush.msra.mxu1 %v3980_v3  ;;  %4167 = vmatpush.msrb.mxu2 %v3973_v8  ;;  %v4026_v3 = vperm.slane %v4023_v42, 1 }
0x1a55   : > { %4110 = vmatpush.msra.mxu3 %v3946_v18  ;;  %v3956_v18 = vld [vmem:[%s8470_s21 + $0x1e8] sm:$0xff] }
0x1a56   : > { %4147 = vmatpush.msra.mxu1 %v3972_v30  ;;  %4168 = vmatpush.msrb.mxu2 %v3965_v45 }
0x1a57   : > { %4111 = vmatpush.msra.mxu3 %v3938_v44  ;;  %v3948_v44 = vld [vmem:[%s8470_s21 + $0x1a8] sm:$0xff] }
0x1a58   : > { %4148 = vmatpush.msra.mxu1 %v3964_v13  ;;  %4169 = vmatpush.msrb.mxu2 %v3957_v21  ;;  %v4025_v21 = vperm.slane %v4023_v42, 0 }
0x1a59   : > { %4112 = vmatpush.msra.mxu3 %v3930_v43  ;;  %v3940_v43 = vld [vmem:[%s8470_s21 + $0x168] sm:$0xff] }
0x1a5a   : > { %4149 = vmatpush.msra.mxu1 %v3956_v18  ;;  %4170 = vmatpush.msrb.mxu2 %v3949_v35  ;;  %v4032_v18 = vperm.slane %v4023_v42, 7 }
0x1a5b   : > { %4113 = vmatpush.msra.mxu3 %v3922_v55  ;;  %v3932_v55 = vld [vmem:[%s8470_s21 + $0x128] sm:$0xff] }
0x1a5c   : > { %4150 = vmatpush.msra.mxu1 %v3948_v44  ;;  %4171 = vmatpush.msrb.mxu2 %v3941_v26 }
0x1a5d   : > { %4114 = vmatpush.msra.mxu3 %v3914_v54  ;;  %v3926_v54 = vld [vmem:[%s8470_s21 + $0xf8] sm:$0xff] }
0x1a5e   : > { %4151 = vmatpush.msra.mxu1 %v3940_v43 }
0x1a5f   : > { %4115 = vmatpush.msra.mxu3 %v3906_v37  ;;  %v3918_v37 = vld [vmem:[%s8470_s21 + $0xb8] sm:$0xff] }
0x1a60   : > { %4152 = vmatpush.msra.mxu1 %v3932_v55 }
0x1a61   : > { %4116 = vmatpush.msra.mxu3 %v3898_v38  ;;  %v3910_v38 = vld [vmem:[%s8470_s21 + $0x78] sm:$0xff] }
0x1a62   : > { %4153 = vmatpush.msra.mxu1 %v3924_v63 }
0x1a63   : > { %4181 = vmatpush.msrb.mxu3 %v4022_v12  ;;  %v3902_v12 = vld [vmem:[%s8470_s21 + $0x38] sm:$0xff] }
0x1a65   : > { %4182 = vmatpush.msrb.mxu3 %v4014_v17 }
0x1a67   : > { %4183 = vmatpush.msrb.mxu3 %v4006_v23 }
0x1a69   : > { %4184 = vmatpush.msrb.mxu3 %v3998_v0 }
0x1a6b   : > { %4185 = vmatpush.msrb.mxu3 %v3990_v2  ;;  %v4027_v2 = vperm.slane %v4023_v42, 2 }
0x1a6d   : > { %4186 = vmatpush.msrb.mxu3 %v3982_v6  ;;  %v4029_v6 = vperm.slane %v4023_v42, 4 }
0x1a6f   : > { %4187 = vmatpush.msrb.mxu3 %v3974_v11 }
0x1a71   : > { %4188 = vmatpush.msrb.mxu3 %v3966_v15 }
0x1a73   : > { %4189 = vmatpush.msrb.mxu3 %v3958_v24 }
0x1a75   : > { %4190 = vmatpush.msrb.mxu3 %v3950_v25 }
0x1a77   : > { %4191 = vmatpush.msrb.mxu3 %v3942_v50 }
0x1ab8   : > { %v3867_v62 = vpop.xlane.xlu0 %3866 }
0x1ab9   : > { %v3868_v5 = vmul.f32 %v3867_v62, %v5484_v10  ;;  %v3933_v62 = vld [vmem:[%s8470_s21 + $0x130] sm:$0xff] }
0x1aba   : > { %4172 = vmatpush.msrb.mxu2 %v3933_v62 }
0x1abb   : > { %v8197_v33 = vsub.f32 %v8035_v40, %v3868_v5  ;;  %v3903_v40 = vld [vmem:[%s8470_s21 + $0x40] sm:$0xff]  ;;  %v3934_v5 = vld [vmem:[%s8470_s21 + $0x138] sm:$0xff] }
0x1abc   : > { %4055 = vmatpush.msrb.mxu0 %v3903_v40  ;;  %4192 = vmatpush.msrb.mxu3 %v3934_v5  ;;  %v3915_v40 = vld [vmem:[%s8470_s21 + $0xa0] sm:$0xff] }
0x1abd   : > { %v3870_v34 = vmul.f32 %v8197_v33, %v8197_v33  ;;  %4173 = vmatpush.msrb.mxu2 %v3925_v36 }
0x1abe   : > { %4056 = vmatpush.msrb.mxu0 %v3895_v22  ;;  %4193 = vmatpush.msrb.mxu3 %v3926_v54  ;;  %v3907_v22 = vld [vmem:[%s8470_s21 + $0x60] sm:$0xff] }
0x1abf   : > { %v3871_v49 = vsel %vm934_vm0, %v3870_v34, 0.0  ;;  %4174 = vmatpush.msrb.mxu2 %v3917_v41 }
0x1ac0   : > { %3872 = vadd.xlane.f32.xlu1 %v3871_v49  ;;  %4121 = vmatpush.msra.mxu0 %v4019_v51  ;;  %v3923_v49 = vld [vmem:[%s8470_s21 + $0xe0] sm:$0xff] }
0x1ac1   : > { %4194 = vmatpush.msrb.mxu3 %v3918_v37  ;;  %v3899_v51 = vld [vmem:[%s8470_s21 + $0x20] sm:$0xff]  ;;  %4175 = vmatpush.msrb.mxu2 %v3909_v53 }
0x1ac2   : > { %4122 = vmatpush.msra.mxu0 %v4011_v56 }
0x1ac3   : > { %4195 = vmatpush.msrb.mxu3 %v3910_v38  ;;  %4176 = vmatpush.msrb.mxu2 %v3901_v52 }
0x1ac4   : > { %4123 = vmatpush.msra.mxu0 %v4003_v59 }
0x1ac5   : > { %4196 = vmatpush.msrb.mxu3 %v3902_v12 }
0x1ac6   : > { %4124 = vmatpush.msra.mxu0 %v3995_v60  ;;  %v4902_v60 = vld [vmem:[%s8469_s20] ss:$0 sm:$0xff] }
0x1ac8   : > { %4125 = vmatpush.msra.mxu0 %v3987_v28 }
0x1aca   : > { %4126 = vmatpush.msra.mxu0 %v3979_v46  ;;  %v4028_v46 = vperm.slane %v4023_v42, 3 }
0x1acc   : > { %4127 = vmatpush.msra.mxu0 %v3971_v7  ;;  %v4030_v7 = vperm.slane %v4023_v42, 5 }
0x1ace   : > { %4128 = vmatpush.msra.mxu0 %v3963_v20 }
0x1ad0   : > { %4129 = vmatpush.msra.mxu0 %v3955_v19  ;;  %v4031_v19 = vperm.slane %v4023_v42, 6 }
0x1ad2   : > { %4130 = vmatpush.msra.mxu0 %v3947_v48 }
0x1ad4   : > { %4131 = vmatpush.msra.mxu0 %v3939_v27 }
0x1ad6   : > { %4132 = vmatpush.msra.mxu0 %v3931_v32 }
0x1ad8   : > { %4133 = vmatpush.msra.mxu0 %v3923_v49 }
0x1ada   : > { %4134 = vmatpush.msra.mxu0 %v3915_v40 }
0x1adc   : > { %4135 = vmatpush.msra.mxu0 %v3907_v22 }
0x1ade   : > { %4136 = vmatpush.msra.mxu0 %v3899_v51 }
0x1b33   : > { %v3873_v34 = vpop.xlane.xlu1 %3872 }
0x1b34   : > { %v3874_v16 = vmul.f32 %v3873_v34, %v5484_v10  ;;  %v3916_v10 = vld [vmem:[%s8470_s21 + $0xa8] sm:$0xff] }
0x1b35   : > { %4154 = vmatpush.msra.mxu1 %v3916_v10 }
0x1b36   : > { %v3875_v58 = vadd.f32 1e-06, %v3874_v16 }
0x1b37   : > { %4155 = vmatpush.msra.mxu1 %v3908_v4 }
0x1b38   : > { %4977 = vrsqrt.f32 %v3875_v58  ;;  %vm3882_vm10 = vweird.f32 %v3875_v58 }
0x1b39   : > { %4156 = vmatpush.msra.mxu1 %v3900_v9 }
0x1b3e   : > { %v4978_v56 = vpop.eup %4977 }
0x1b3f   : > { %v3877_v57 = vmul.f32 %v4978_v56, %v3875_v58  ;;  %vm3883_vm0 = vweird.f32 %v4978_v56 }
0x1b40   : > { %vm3884_vm12 = vmor %vm3882_vm10, %vm3883_vm0 }
0x1b41   : > { %v3878_v47 = vmul.f32 %v4978_v56, %v3877_v57 }
0x1b43   : > { %v3879_v17 = vmul.f32 0.5, %v3878_v47 }
0x1b45   : > { %v3880_v59 = vsub.f32 1.5, %v3879_v17 }
0x1b47   : > { %v3881_v39 = vmul.f32 %v4978_v56, %v3880_v59 }
0x1b49   : > { %v3885_v23 = vsel %vm3884_vm12, %v4978_v56, %v3881_v39 }
0x1b4a   : > { %v3886_v14 = vmul.f32 %v3885_v23, %v8197_v33 }
0x1b4c   : > { %v3890_v31 = vmul.f32 %v4901_v61, %v3886_v14 }
0x1b4e   : > { %v3894_v0 = vadd.f32 %v4902_v60, %v3890_v31 }
0x1b50   : > { %4057 = vmatmul.f32.vlgmr.msrb.gmra.mxu0 %v3894_v0  ;;  %4077 = vmatmul.f32.vlgmr.msrb.gmra.mxu1 %v3894_v0 }
0x1b51   : > { %4097 = vmatmul.f32.vlgmr.msra.gmra.mxu2 %v3894_v0  ;;  %4117 = vmatmul.f32.vlgmr.msra.gmra.mxu3 %v3894_v0 }
0x1b58   : > { %4137 = vmatmul.f32.vlgmr.msra.gmra.mxu0 %v3894_v0  ;;  %4157 = vmatmul.f32.vlgmr.msra.gmra.mxu1 %v3894_v0 }
0x1b59   : > { %4177 = vmatmul.f32.vlgmr.msrb.gmra.mxu2 %v3894_v0  ;;  %4197 = vmatmul.f32.vlgmr.msrb.gmra.mxu3 %v3894_v0 }
0x1bcd   : > { %v4058_v28 = vpop.f32.mrf.mxu0  ;;  %v4078_v1 = vpop.f32.mrf.mxu1 }
0x1bce   : > { %v4079_v13 = vadd.f32 %v4078_v1, %v4026_v3  ;;  %v4059_v32 = vadd.f32 %v4058_v28, %v4025_v21 }
0x1bd0   : > { %v4209_v44 = vrot.slane %v4079_v13, 7 }
0x1bd2   : > { %v4217_v34 = vsel %vm4216_vm13, %v4059_v32, %v4209_v44 }
0x1bd4   : > { %v4098_v33 = vpop.f32.mrf.mxu2  ;;  %v4118_v29 = vpop.f32.mrf.mxu3 }
0x1bd5   : > { %v4138_v30 = vpop.f32.mrf.mxu0  ;;  %v4158_v8 = vpop.f32.mrf.mxu1  ;;  %v4099_v11 = vadd.f32 %v4098_v33, %v4027_v2  ;;  %v4119_v20 = vadd.f32 %v4118_v29, %v4028_v46 }
0x1bd6   : > { %v4139_v45 = vadd.f32 %v4138_v30, %v4029_v6  ;;  %v4159_v15 = vadd.f32 %v4158_v8, %v4030_v7 }
0x1bd7   : > { %v4210_v24 = vrot.slane %v4099_v11, 6  ;;  %v4211_v48 = vrot.slane %v4119_v20, 5 }
0x1bd8   : > { %v4212_v27 = vrot.slane %v4139_v45, 4  ;;  %v4213_v43 = vrot.slane %v4159_v15, 3 }
0x1bd9   : > { %v4219_v55 = vsel %vm4218_vm6, %v4210_v24, %v4211_v48 }
0x1bda   : > { %v4223_v49 = vsel %vm4222_vm15, %v4212_v27, %v4213_v43  ;;  %v4221_v16 = vsel %vm4220_vm14, %v4217_v34, %v4219_v55 }
0x1bdc   : > { %v4178_v35 = vpop.f32.mrf.mxu2  ;;  %v4198_v25 = vpop.f32.mrf.mxu3 }
0x1bdd   : > { %v4179_v26 = vadd.f32 %v4178_v35, %v4031_v19  ;;  %v4199_v50 = vadd.f32 %v4198_v25, %v4032_v18 }
0x1bdf   : > { %v4214_v62 = vrot.slane %v4179_v26, 2  ;;  %v4215_v5 = vrot.slane %v4199_v50, 1 }
0x1be1   : > { %v4225_v63 = vsel %vm4224_vm1, %v4214_v62, %v4215_v5 }
0x1be2   : > { %v4227_v36 = vsel %vm4226_vm5, %v4223_v49, %v4225_v63 }
0x1be3   : > { %v4229_v54 = vsel %vm4228_vm11, %v4221_v16, %v4227_v36 }
0x1be4   : > { %4231 = vst [vmem:[%s708_s3] sm:$0xff] %v4229_v54 }
0x1be5 PF: > { %s8513_s30 = sld [smem:[#allocation2_spill]] }
0x1beb   : > { %s33_s4 = sadd.s32 1, %s8513_s30  }
0x1bec   : > { %p30_p4 = scmp.ge.s32.totalorder %s33_s4, 4  }
0x1bee   :  { %32 = sbr.rel (!%p30_p4) target bundleno = 10 (0xa), region = 200 }

</bundles_post_ra>
